<compile_context>
chip_gen: v7x
topology: tpu7x:2x2x1
jax: 0.10.0
libtpu: 0.0.40
codegen_flags: <defaults>
</compile_context>

<pallas_src>
import functools

import numpy as np
import jax
import jax.numpy as jnp
from jax import lax
from jax.experimental import pallas as pl
from jax.experimental.pallas import tpu as pltpu


def _qcircuit_kernel(coef_ref, bits_ref, signs_ref, out_ref, *,
                     n_layers, n_block, n_qubits, half_rows):
    nq = n_qubits
    H = half_rows
    R = 2 * H
    LANES = bits_ref.shape[2]

    # Hoisted full-shape per-wire bit masks: one compare per wire, reused by every
    # gate; the kernel never emits a (1, N) -> (R, N) broadcast.
    b0 = [bits_ref[w] == 0 for w in range(nq)]           # each (R, LANES) bool

    def partner(sr, si, w):
        # amplitude at basis index j XOR 2**(nq-1-w) in the folded layout
        if w == 0:
            # wire 0 lives on the sublane axis (row = a0*H + b): flip a0 == roll by H
            return pltpu.roll(sr, H, axis=0), pltpu.roll(si, H, axis=0)
        k = 1 << (nq - 1 - w)                             # lane-bit value of wire w
        m = b0[w]
        fr = pltpu.roll(sr, LANES - k, axis=1)            # sr[(lane + k) % LANES]
        br = pltpu.roll(sr, k, axis=1)                    # sr[(lane - k) % LANES]
        fi = pltpu.roll(si, LANES - k, axis=1)
        bi = pltpu.roll(si, k, axis=1)
        return jnp.where(m, fr, br), jnp.where(m, fi, bi)

    def apply_rot(sr, si, w, g):
        # (possibly RX-fused) single-qubit gate: coefficient planes precomputed in
        # the wrapper with the per-basis-state bit selection already baked in.
        base = 4 * g
        d_r = coef_ref[base + 0]
        d_i = coef_ref[base + 1]
        o_r = coef_ref[base + 2]
        o_i = coef_ref[base + 3]
        pr, pi = partner(sr, si, w)
        nr = d_r * sr - d_i * si + o_r * pr - o_i * pi
        ni = d_r * si + d_i * sr + o_r * pi + o_i * pr
        return nr, ni

    def apply_cnot(sr, si, c, t):
        pr, pi = partner(sr, si, t)
        m = b0[c]
        return jnp.where(m, sr, pr), jnp.where(m, si, pi)

    # initial |0...0> state for every (padded) batch row: amp 1 at lane 0, rows [0,H)
    row = lax.broadcasted_iota(jnp.int32, (R, LANES), 0)
    lane = lax.broadcasted_iota(jnp.int32, (R, LANES), 1)
    sr = jnp.where((row < H) & (lane == 0), 1.0, 0.0).astype(jnp.float32)
    si = jnp.zeros((R, LANES), jnp.float32)

    # StronglyEntanglingLayers; the AngleEmbedding RX between layers is fused into
    # sub-layer 0 of layers >= 1 (done in the wrapper's coefficient tables).
    for layer in range(n_layers):
        for l in range(n_block):
            r = (l % (nq - 1)) + 1
            for q in range(nq):
                g = (layer * n_block + l) * nq + q
                sr, si = apply_rot(sr, si, q, g)
            for q in range(nq):
                sr, si = apply_cnot(sr, si, q, (q + r) % nq)

    probs = sr * sr + si * si                             # (R, LANES)
    # <PauliZ_i>: one matmul per a0-half (the wire-0 sign depends on the sublane
    # half); output is a lane-dense (H, 128) slab, sliced outside the kernel.
    z = jnp.dot(probs[:H, :], signs_ref[0],
                preferred_element_type=jnp.float32,
                precision=lax.Precision.HIGHEST)
    z = z + jnp.dot(probs[H:, :], signs_ref[1],
                    preferred_element_type=jnp.float32,
                    precision=lax.Precision.HIGHEST)
    out_ref[...] = z


@functools.partial(jax.jit, static_argnums=2)
def quantum_classification_forward(x, weights, n_classes):
    """x: (B, n_qubits) float32 features; weights: (n_layers, n_block, n_qubits, 3)."""
    x = jnp.asarray(x, jnp.float32)
    weights = jnp.asarray(weights, jnp.float32)
    B, nq = x.shape
    L, K, nq_w, _ = weights.shape
    assert nq_w == nq and 1 <= n_classes <= nq and nq > 1 and n_classes <= 128
    LANES = 2 ** (nq - 1)                 # wires 1..nq-1 live on the lane axis
    H = ((B + 3) // 4) * 4                # wire 0 on sublanes -> 2H rows, mult. of 8
    R = 2 * H
    CPAD = 128                            # lane-dense output columns (zero-padded)

    # ---- compile-time constant tables (baked as constants under jit) ----
    rows = np.arange(R)
    lanes = np.arange(LANES)
    bitp = np.empty((nq, R, LANES), np.int32)
    bitp[0] = (rows[:, None] >= H)                               # wire-0 bit = a0
    for w in range(1, nq):
        bitp[w] = (lanes >> (nq - 1 - w)) & 1                    # lane-bit of wire w
    signs = np.zeros((2, LANES, CPAD), np.float32)
    signs[0, :, 0] = 1.0                                         # class 0 = wire 0
    signs[1, :, 0] = -1.0
    for i in range(1, n_classes):
        ls = (1.0 - 2.0 * ((lanes >> (nq - 1 - i)) & 1)).astype(np.float32)
        signs[0, :, i] = ls
        signs[1, :, i] = ls

    # ---- per-gate coefficient planes (Rot with the preceding AngleEmbedding RX
    #      fused into sub-layer 0 of layers >= 1) -------------------------------
    phi, theta, omega = weights[..., 0], weights[..., 1], weights[..., 2]  # (L,K,nq)
    ct, st = jnp.cos(theta / 2), jnp.sin(theta / 2)
    hs, hd = (phi + omega) / 2, (phi - omega) / 2
    u00r, u00i = jnp.cos(hs) * ct, -jnp.sin(hs) * ct
    u01r, u01i = -jnp.cos(hd) * st, -jnp.sin(hd) * st
    u10r, u10i = jnp.cos(hd) * st, -jnp.sin(hd) * st
    u11r, u11i = jnp.cos(hs) * ct, jnp.sin(hs) * ct
    (u00r, u00i, u01r, u01i, u10r, u10i, u11r, u11i) = (
        a[..., None] for a in (u00r, u00i, u01r, u01i, u10r, u10i, u11r, u11i))

    # RX angles per (layer, sub-layer, wire, padded batch row); RX(0) = identity.
    xpad = jnp.zeros((H, nq), jnp.float32).at[:B, :].set(x)
    rx = jnp.zeros((L, K, nq, H), jnp.float32)
    if L > 1:
        rx = rx.at[1:, 0].set(jnp.broadcast_to(xpad.T, (L - 1, nq, H)))
    c, s = jnp.cos(rx / 2), jnp.sin(rx / 2)               # (L, K, nq, H)

    # V = Rot @ RX (RX applied first), explicit real/imag arithmetic
    v00r, v00i = u00r * c + u01i * s, u00i * c - u01r * s
    v01r, v01i = u00i * s + u01r * c, -u00r * s + u01i * c
    v10r, v10i = u10r * c + u11i * s, u10i * c - u11r * s
    v11r, v11i = u10i * s + u11r * c, -u10r * s + u11i * c

    dup = lambda a: jnp.concatenate([a, a], axis=-1)[..., None]   # rows = a0*H + b
    b0p = (jnp.asarray(bitp) == 0)[None, None]                    # (1,1,nq,R,LANES)
    d_r = jnp.where(b0p, dup(v00r), dup(v11r))
    d_i = jnp.where(b0p, dup(v00i), dup(v11i))
    o_r = jnp.where(b0p, dup(v01r), dup(v10r))
    o_i = jnp.where(b0p, dup(v01i), dup(v10i))
    coef = jnp.stack([d_r, d_i, o_r, o_i], axis=3)                # (L,K,nq,4,R,LANES)
    coef = coef.reshape(L * K * nq * 4, R, LANES).astype(jnp.float32)

    kernel = functools.partial(_qcircuit_kernel, n_layers=L, n_block=K,
                               n_qubits=nq, half_rows=H)
    vmem = pl.BlockSpec(memory_space=pltpu.MemorySpace.VMEM)
    out = pl.pallas_call(
        kernel,
        out_shape=jax.ShapeDtypeStruct((H, CPAD), jnp.float32),
        in_specs=[vmem, vmem, vmem],
        out_specs=vmem,
    )(coef, jnp.asarray(bitp), jnp.asarray(signs))
    return out[:B, :n_classes]


def reference_forward(x, weights, n_classes):
    """Plain numpy complex128 statevector reference (same PennyLane semantics)."""
    x = np.asarray(x, dtype=np.float64)
    w = np.asarray(weights, dtype=np.float64)
    B, nq = x.shape
    L, K = w.shape[0], w.shape[1]
    N = 2 ** nq
    state = np.zeros((B, N), dtype=np.complex128)
    state[:, 0] = 1.0
    idxs = np.arange(N)

    def apply_1q(state, q, U):
        st = state.reshape(B, 2 ** q, 2, 2 ** (nq - 1 - q))
        s0, s1 = st[:, :, 0, :], st[:, :, 1, :]
        if U.ndim == 2:
            n0 = U[0, 0] * s0 + U[0, 1] * s1
            n1 = U[1, 0] * s0 + U[1, 1] * s1
        else:
            n0 = U[:, 0, 0, None, None] * s0 + U[:, 0, 1, None, None] * s1
            n1 = U[:, 1, 0, None, None] * s0 + U[:, 1, 1, None, None] * s1
        return np.stack([n0, n1], axis=2).reshape(B, N)

    def apply_cnot(state, c, t):
        cb = (idxs >> (nq - 1 - c)) & 1
        perm = idxs ^ ((1 << (nq - 1 - t)) * cb)
        return state[:, perm]

    def rot_u(phi, theta, omega):
        ct, st_ = np.cos(theta / 2), np.sin(theta / 2)
        return np.array(
            [[np.exp(-1j * (phi + omega) / 2) * ct, -np.exp(1j * (phi - omega) / 2) * st_],
             [np.exp(-1j * (phi - omega) / 2) * st_, np.exp(1j * (phi + omega) / 2) * ct]])

    def sel(state, block):
        for l in range(K):
            r = (l % (nq - 1)) + 1
            for q in range(nq):
                state = apply_1q(state, q, rot_u(*block[l, q]))
            for q in range(nq):
                state = apply_cnot(state, q, (q + r) % nq)
        return state

    for layer in range(L - 1):
        state = sel(state, w[layer])
        for q in range(nq):
            c, s = np.cos(x[:, q] / 2), np.sin(x[:, q] / 2)
            U = np.zeros((B, 2, 2), np.complex128)
            U[:, 0, 0] = c; U[:, 1, 1] = c
            U[:, 0, 1] = -1j * s; U[:, 1, 0] = -1j * s
            state = apply_1q(state, q, U)
    state = sel(state, w[L - 1])

    probs = np.abs(state) ** 2
    out = np.zeros((B, n_classes))
    for i in range(n_classes):
        sign = 1.0 - 2.0 * ((idxs >> (nq - 1 - i)) & 1)
        out[:, i] = np.sum(probs * sign, axis=1)
    return out


if __name__ == "__main__":
    INPUT_DIM = 8      # n_qubits        -> statevector of 2**8 = 256 amplitudes
    OUTPUT_DIM = 4     # n_classes       -> PauliZ expvals on wires 0..3
    N_LAYERS = 2       # so the AngleEmbedding(inputs) actually enters the circuit
    N_BLOCK = 3        # n_trainable_block_layers (module default)
    BATCH = 2

    key = jax.random.PRNGKey(0)
    kx, kw = jax.random.split(key)
    x = jax.random.uniform(kx, (BATCH, INPUT_DIM), jnp.float32, 0.0, float(np.pi))
    weights = jax.random.uniform(kw, (N_LAYERS, N_BLOCK, INPUT_DIM, 3),
                                 jnp.float32, 0.0, float(2 * np.pi))

    out = quantum_classification_forward(x, weights, OUTPUT_DIM)
    out = jax.block_until_ready(out)
    assert out.shape == (BATCH, OUTPUT_DIM)

    ref = reference_forward(x, weights, OUTPUT_DIM)
    if not np.allclose(np.asarray(out), ref, atol=3e-2):
        raise AssertionError(f"kernel/reference mismatch:\n{np.asarray(out)}\n{ref}")

    print("KERNEL_OK")
</pallas_src>

<mosaic_0001>
module attributes {stable_mosaic.version = 11 : i64} {
  func.func @_qcircuit_kernel(%arg0: memref<192x8x128xf32, #tpu.memory_space<vmem>>, %arg1: memref<8x8x128xi32, #tpu.memory_space<vmem>>, %arg2: memref<2x128x128xf32, #tpu.memory_space<vmem>>, %arg3: memref<4x128xf32, #tpu.memory_space<vmem>>) attributes {dimension_semantics = [], scalar_prefetch = 0 : i64, scratch_operands = 0 : i64, tpu.core_type = #tpu.core_type<tc>} {
    %c0 = arith.constant 0 : index
    %c0_0 = arith.constant 0 : index
    %c0_1 = arith.constant 0 : index
    %0 = vector.load %arg1[%c0, %c0_0, %c0_1] : memref<8x8x128xi32, #tpu.memory_space<vmem>>, vector<1x8x128xi32>
    %1 = vector.shape_cast %0 : vector<1x8x128xi32> to vector<8x128xi32>
    %c0_i32 = arith.constant 0 : i32
    %2 = vector.broadcast %c0_i32 : i32 to vector<8x128xi32>
    %3 = arith.cmpi eq, %1, %2 : vector<8x128xi32>
    %c1 = arith.constant 1 : index
    %c0_2 = arith.constant 0 : index
    %c0_3 = arith.constant 0 : index
    %4 = vector.load %arg1[%c1, %c0_2, %c0_3] : memref<8x8x128xi32, #tpu.memory_space<vmem>>, vector<1x8x128xi32>
    %5 = vector.shape_cast %4 : vector<1x8x128xi32> to vector<8x128xi32>
    %c0_i32_4 = arith.constant 0 : i32
    %6 = vector.broadcast %c0_i32_4 : i32 to vector<8x128xi32>
    %7 = arith.cmpi eq, %5, %6 : vector<8x128xi32>
    %c2 = arith.constant 2 : index
    %c0_5 = arith.constant 0 : index
    %c0_6 = arith.constant 0 : index
    %8 = vector.load %arg1[%c2, %c0_5, %c0_6] : memref<8x8x128xi32, #tpu.memory_space<vmem>>, vector<1x8x128xi32>
    %9 = vector.shape_cast %8 : vector<1x8x128xi32> to vector<8x128xi32>
    %c0_i32_7 = arith.constant 0 : i32
    %10 = vector.broadcast %c0_i32_7 : i32 to vector<8x128xi32>
    %11 = arith.cmpi eq, %9, %10 : vector<8x128xi32>
    %c3 = arith.constant 3 : index
    %c0_8 = arith.constant 0 : index
    %c0_9 = arith.constant 0 : index
    %12 = vector.load %arg1[%c3, %c0_8, %c0_9] : memref<8x8x128xi32, #tpu.memory_space<vmem>>, vector<1x8x128xi32>
    %13 = vector.shape_cast %12 : vector<1x8x128xi32> to vector<8x128xi32>
    %c0_i32_10 = arith.constant 0 : i32
    %14 = vector.broadcast %c0_i32_10 : i32 to vector<8x128xi32>
    %15 = arith.cmpi eq, %13, %14 : vector<8x128xi32>
    %c4 = arith.constant 4 : index
    %c0_11 = arith.constant 0 : index
    %c0_12 = arith.constant 0 : index
    %16 = vector.load %arg1[%c4, %c0_11, %c0_12] : memref<8x8x128xi32, #tpu.memory_space<vmem>>, vector<1x8x128xi32>
    %17 = vector.shape_cast %16 : vector<1x8x128xi32> to vector<8x128xi32>
    %c0_i32_13 = arith.constant 0 : i32
    %18 = vector.broadcast %c0_i32_13 : i32 to vector<8x128xi32>
    %19 = arith.cmpi eq, %17, %18 : vector<8x128xi32>
    %c5 = arith.constant 5 : index
    %c0_14 = arith.constant 0 : index
    %c0_15 = arith.constant 0 : index
    %20 = vector.load %arg1[%c5, %c0_14, %c0_15] : memref<8x8x128xi32, #tpu.memory_space<vmem>>, vector<1x8x128xi32>
    %21 = vector.shape_cast %20 : vector<1x8x128xi32> to vector<8x128xi32>
    %c0_i32_16 = arith.constant 0 : i32
    %22 = vector.broadcast %c0_i32_16 : i32 to vector<8x128xi32>
    %23 = arith.cmpi eq, %21, %22 : vector<8x128xi32>
    %c6 = arith.constant 6 : index
    %c0_17 = arith.constant 0 : index
    %c0_18 = arith.constant 0 : index
    %24 = vector.load %arg1[%c6, %c0_17, %c0_18] : memref<8x8x128xi32, #tpu.memory_space<vmem>>, vector<1x8x128xi32>
    %25 = vector.shape_cast %24 : vector<1x8x128xi32> to vector<8x128xi32>
    %c0_i32_19 = arith.constant 0 : i32
    %26 = vector.broadcast %c0_i32_19 : i32 to vector<8x128xi32>
    %27 = arith.cmpi eq, %25, %26 : vector<8x128xi32>
    %c7 = arith.constant 7 : index
    %c0_20 = arith.constant 0 : index
    %c0_21 = arith.constant 0 : index
    %28 = vector.load %arg1[%c7, %c0_20, %c0_21] : memref<8x8x128xi32, #tpu.memory_space<vmem>>, vector<1x8x128xi32>
    %29 = vector.shape_cast %28 : vector<1x8x128xi32> to vector<8x128xi32>
    %c0_i32_22 = arith.constant 0 : i32
    %30 = vector.broadcast %c0_i32_22 : i32 to vector<8x128xi32>
    %31 = arith.cmpi eq, %29, %30 : vector<8x128xi32>
    %32 = tpu.iota {dimensions = array<i32: 0>} : vector<8x128xi32>
    %33 = tpu.iota {dimensions = array<i32: 1>} : vector<8x128xi32>
    %c4_i32 = arith.constant 4 : i32
    %34 = vector.broadcast %c4_i32 : i32 to vector<8x128xi32>
    %35 = arith.cmpi slt, %32, %34 : vector<8x128xi32>
    %c0_i32_23 = arith.constant 0 : i32
    %36 = vector.broadcast %c0_i32_23 : i32 to vector<8x128xi32>
    %37 = arith.cmpi eq, %33, %36 : vector<8x128xi32>
    %38 = arith.andi %35, %37 : vector<8x128xi1>
    %cst = arith.constant 1.000000e+00 : f32
    %cst_24 = arith.constant 0.000000e+00 : f32
    %39 = vector.broadcast %cst : f32 to vector<8x128xf32>
    %40 = vector.broadcast %cst_24 : f32 to vector<8x128xf32>
    %41 = arith.select %38, %39, %40 : vector<8x128xi1>, vector<8x128xf32>
    %cst_25 = arith.constant 0.000000e+00 : f32
    %42 = vector.broadcast %cst_25 : f32 to vector<8x128xf32>
    %c0_26 = arith.constant 0 : index
    %c0_27 = arith.constant 0 : index
    %c0_28 = arith.constant 0 : index
    %43 = vector.load %arg0[%c0_26, %c0_27, %c0_28] : memref<192x8x128xf32, #tpu.memory_space<vmem>>, vector<1x8x128xf32>
    %44 = vector.shape_cast %43 : vector<1x8x128xf32> to vector<8x128xf32>
    %c1_29 = arith.constant 1 : index
    %c0_30 = arith.constant 0 : index
    %c0_31 = arith.constant 0 : index
    %45 = vector.load %arg0[%c1_29, %c0_30, %c0_31] : memref<192x8x128xf32, #tpu.memory_space<vmem>>, vector<1x8x128xf32>
    %46 = vector.shape_cast %45 : vector<1x8x128xf32> to vector<8x128xf32>
    %c2_32 = arith.constant 2 : index
    %c0_33 = arith.constant 0 : index
    %c0_34 = arith.constant 0 : index
    %47 = vector.load %arg0[%c2_32, %c0_33, %c0_34] : memref<192x8x128xf32, #tpu.memory_space<vmem>>, vector<1x8x128xf32>
    %48 = vector.shape_cast %47 : vector<1x8x128xf32> to vector<8x128xf32>
    %c3_35 = arith.constant 3 : index
    %c0_36 = arith.constant 0 : index
    %c0_37 = arith.constant 0 : index
    %49 = vector.load %arg0[%c3_35, %c0_36, %c0_37] : memref<192x8x128xf32, #tpu.memory_space<vmem>>, vector<1x8x128xf32>
    %50 = vector.shape_cast %49 : vector<1x8x128xf32> to vector<8x128xf32>
    %c4_i32_38 = arith.constant 4 : i32
    %51 = tpu.dynamic_rotate %41 by %c4_i32_38 dim 0 : vector<8x128xf32>, i32 -> vector<8x128xf32>
    %c4_i32_39 = arith.constant 4 : i32
    %52 = tpu.dynamic_rotate %42 by %c4_i32_39 dim 0 : vector<8x128xf32>, i32 -> vector<8x128xf32>
    %53 = arith.mulf %44, %41 : vector<8x128xf32>
    %54 = arith.mulf %46, %42 : vector<8x128xf32>
    %55 = arith.subf %53, %54 : vector<8x128xf32>
    %56 = arith.mulf %48, %51 : vector<8x128xf32>
    %57 = arith.addf %55, %56 : vector<8x128xf32>
    %58 = arith.mulf %50, %52 : vector<8x128xf32>
    %59 = arith.subf %57, %58 : vector<8x128xf32>
    %60 = arith.mulf %44, %42 : vector<8x128xf32>
    %61 = arith.mulf %46, %41 : vector<8x128xf32>
    %62 = arith.addf %60, %61 : vector<8x128xf32>
    %63 = arith.mulf %48, %52 : vector<8x128xf32>
    %64 = arith.addf %62, %63 : vector<8x128xf32>
    %65 = arith.mulf %50, %51 : vector<8x128xf32>
    %66 = arith.addf %64, %65 : vector<8x128xf32>
    %c4_40 = arith.constant 4 : index
    %c0_41 = arith.constant 0 : index
    %c0_42 = arith.constant 0 : index
    %67 = vector.load %arg0[%c4_40, %c0_41, %c0_42] : memref<192x8x128xf32, #tpu.memory_space<vmem>>, vector<1x8x128xf32>
    %68 = vector.shape_cast %67 : vector<1x8x128xf32> to vector<8x128xf32>
    %c5_43 = arith.constant 5 : index
    %c0_44 = arith.constant 0 : index
    %c0_45 = arith.constant 0 : index
    %69 = vector.load %arg0[%c5_43, %c0_44, %c0_45] : memref<192x8x128xf32, #tpu.memory_space<vmem>>, vector<1x8x128xf32>
    %70 = vector.shape_cast %69 : vector<1x8x128xf32> to vector<8x128xf32>
    %c6_46 = arith.constant 6 : index
    %c0_47 = arith.constant 0 : index
    %c0_48 = arith.constant 0 : index
    %71 = vector.load %arg0[%c6_46, %c0_47, %c0_48] : memref<192x8x128xf32, #tpu.memory_space<vmem>>, vector<1x8x128xf32>
    %72 = vector.shape_cast %71 : vector<1x8x128xf32> to vector<8x128xf32>
    %c7_49 = arith.constant 7 : index
    %c0_50 = arith.constant 0 : index
    %c0_51 = arith.constant 0 : index
    %73 = vector.load %arg0[%c7_49, %c0_50, %c0_51] : memref<192x8x128xf32, #tpu.memory_space<vmem>>, vector<1x8x128xf32>
    %74 = vector.shape_cast %73 : vector<1x8x128xf32> to vector<8x128xf32>
    %c64_i32 = arith.constant 64 : i32
    %75 = tpu.dynamic_rotate %59 by %c64_i32 dim 1 : vector<8x128xf32>, i32 -> vector<8x128xf32>
    %c64_i32_52 = arith.constant 64 : i32
    %76 = tpu.dynamic_rotate %59 by %c64_i32_52 dim 1 : vector<8x128xf32>, i32 -> vector<8x128xf32>
    %c64_i32_53 = arith.constant 64 : i32
    %77 = tpu.dynamic_rotate %66 by %c64_i32_53 dim 1 : vector<8x128xf32>, i32 -> vector<8x128xf32>
    %c64_i32_54 = arith.constant 64 : i32
    %78 = tpu.dynamic_rotate %66 by %c64_i32_54 dim 1 : vector<8x128xf32>, i32 -> vector<8x128xf32>
    %79 = arith.select %7, %75, %76 : vector<8x128xi1>, vector<8x128xf32>
    %80 = arith.select %7, %77, %78 : vector<8x128xi1>, vector<8x128xf32>
    %81 = arith.mulf %68, %59 : vector<8x128xf32>
    %82 = arith.mulf %70, %66 : vector<8x128xf32>
    %83 = arith.subf %81, %82 : vector<8x128xf32>
    %84 = arith.mulf %72, %79 : vector<8x128xf32>
    %85 = arith.addf %83, %84 : vector<8x128xf32>
    %86 = arith.mulf %74, %80 : vector<8x128xf32>
    %87 = arith.subf %85, %86 : vector<8x128xf32>
    %88 = arith.mulf %68, %66 : vector<8x128xf32>
    %89 = arith.mulf %70, %59 : vector<8x128xf32>
    %90 = arith.addf %88, %89 : vector<8x128xf32>
    %91 = arith.mulf %72, %80 : vector<8x128xf32>
    %92 = arith.addf %90, %91 : vector<8x128xf32>
    %93 = arith.mulf %74, %79 : vector<8x128xf32>
    %94 = arith.addf %92, %93 : vector<8x128xf32>
    %c8 = arith.constant 8 : index
    %c0_55 = arith.constant 0 : index
    %c0_56 = arith.constant 0 : index
    %95 = vector.load %arg0[%c8, %c0_55, %c0_56] : memref<192x8x128xf32, #tpu.memory_space<vmem>>, vector<1x8x128xf32>
    %96 = vector.shape_cast %95 : vector<1x8x128xf32> to vector<8x128xf32>
    %c9 = arith.constant 9 : index
    %c0_57 = arith.constant 0 : index
    %c0_58 = arith.constant 0 : index
    %97 = vector.load %arg0[%c9, %c0_57, %c0_58] : memref<192x8x128xf32, #tpu.memory_space<vmem>>, vector<1x8x128xf32>
    %98 = vector.shape_cast %97 : vector<1x8x128xf32> to vector<8x128xf32>
    %c10 = arith.constant 10 : index
    %c0_59 = arith.constant 0 : index
    %c0_60 = arith.constant 0 : index
    %99 = vector.load %arg0[%c10, %c0_59, %c0_60] : memref<192x8x128xf32, #tpu.memory_space<vmem>>, vector<1x8x128xf32>
    %100 = vector.shape_cast %99 : vector<1x8x128xf32> to vector<8x128xf32>
    %c11 = arith.constant 11 : index
    %c0_61 = arith.constant 0 : index
    %c0_62 = arith.constant 0 : index
    %101 = vector.load %arg0[%c11, %c0_61, %c0_62] : memref<192x8x128xf32, #tpu.memory_space<vmem>>, vector<1x8x128xf32>
    %102 = vector.shape_cast %101 : vector<1x8x128xf32> to vector<8x128xf32>
    %c96_i32 = arith.constant 96 : i32
    %103 = tpu.dynamic_rotate %87 by %c96_i32 dim 1 : vector<8x128xf32>, i32 -> vector<8x128xf32>
    %c32_i32 = arith.constant 32 : i32
    %104 = tpu.dynamic_rotate %87 by %c32_i32 dim 1 : vector<8x128xf32>, i32 -> vector<8x128xf32>
    %c96_i32_63 = arith.constant 96 : i32
    %105 = tpu.dynamic_rotate %94 by %c96_i32_63 dim 1 : vector<8x128xf32>, i32 -> vector<8x128xf32>
    %c32_i32_64 = arith.constant 32 : i32
    %106 = tpu.dynamic_rotate %94 by %c32_i32_64 dim 1 : vector<8x128xf32>, i32 -> vector<8x128xf32>
    %107 = arith.select %11, %103, %104 : vector<8x128xi1>, vector<8x128xf32>
    %108 = arith.select %11, %105, %106 : vector<8x128xi1>, vector<8x128xf32>
    %109 = arith.mulf %96, %87 : vector<8x128xf32>
    %110 = arith.mulf %98, %94 : vector<8x128xf32>
    %111 = arith.subf %109, %110 : vector<8x128xf32>
    %112 = arith.mulf %100, %107 : vector<8x128xf32>
    %113 = arith.addf %111, %112 : vector<8x128xf32>
    %114 = arith.mulf %102, %108 : vector<8x128xf32>
    %115 = arith.subf %113, %114 : vector<8x128xf32>
    %116 = arith.mulf %96, %94 : vector<8x128xf32>
    %117 = arith.mulf %98, %87 : vector<8x128xf32>
    %118 = arith.addf %116, %117 : vector<8x128xf32>
    %119 = arith.mulf %100, %108 : vector<8x128xf32>
    %120 = arith.addf %118, %119 : vector<8x128xf32>
    %121 = arith.mulf %102, %107 : vector<8x128xf32>
    %122 = arith.addf %120, %121 : vector<8x128xf32>
    %c12 = arith.constant 12 : index
    %c0_65 = arith.constant 0 : index
    %c0_66 = arith.constant 0 : index
    %123 = vector.load %arg0[%c12, %c0_65, %c0_66] : memref<192x8x128xf32, #tpu.memory_space<vmem>>, vector<1x8x128xf32>
    %124 = vector.shape_cast %123 : vector<1x8x128xf32> to vector<8x128xf32>
    %c13 = arith.constant 13 : index
    %c0_67 = arith.constant 0 : index
    %c0_68 = arith.constant 0 : index
    %125 = vector.load %arg0[%c13, %c0_67, %c0_68] : memref<192x8x128xf32, #tpu.memory_space<vmem>>, vector<1x8x128xf32>
    %126 = vector.shape_cast %125 : vector<1x8x128xf32> to vector<8x128xf32>
    %c14 = arith.constant 14 : index
    %c0_69 = arith.constant 0 : index
    %c0_70 = arith.constant 0 : index
    %127 = vector.load %arg0[%c14, %c0_69, %c0_70] : memref<192x8x128xf32, #tpu.memory_space<vmem>>, vector<1x8x128xf32>
    %128 = vector.shape_cast %127 : vector<1x8x128xf32> to vector<8x128xf32>
    %c15 = arith.constant 15 : index
    %c0_71 = arith.constant 0 : index
    %c0_72 = arith.constant 0 : index
    %129 = vector.load %arg0[%c15, %c0_71, %c0_72] : memref<192x8x128xf32, #tpu.memory_space<vmem>>, vector<1x8x128xf32>
    %130 = vector.shape_cast %129 : vector<1x8x128xf32> to vector<8x128xf32>
    %c112_i32 = arith.constant 112 : i32
    %131 = tpu.dynamic_rotate %115 by %c112_i32 dim 1 : vector<8x128xf32>, i32 -> vector<8x128xf32>
    %c16_i32 = arith.constant 16 : i32
    %132 = tpu.dynamic_rotate %115 by %c16_i32 dim 1 : vector<8x128xf32>, i32 -> vector<8x128xf32>
    %c112_i32_73 = arith.constant 112 : i32
    %133 = tpu.dynamic_rotate %122 by %c112_i32_73 dim 1 : vector<8x128xf32>, i32 -> vector<8x128xf32>
    %c16_i32_74 = arith.constant 16 : i32
    %134 = tpu.dynamic_rotate %122 by %c16_i32_74 dim 1 : vector<8x128xf32>, i32 -> vector<8x128xf32>
    %135 = arith.select %15, %131, %132 : vector<8x128xi1>, vector<8x128xf32>
    %136 = arith.select %15, %133, %134 : vector<8x128xi1>, vector<8x128xf32>
    %137 = arith.mulf %124, %115 : vector<8x128xf32>
    %138 = arith.mulf %126, %122 : vector<8x128xf32>
    %139 = arith.subf %137, %138 : vector<8x128xf32>
    %140 = arith.mulf %128, %135 : vector<8x128xf32>
    %141 = arith.addf %139, %140 : vector<8x128xf32>
    %142 = arith.mulf %130, %136 : vector<8x128xf32>
    %143 = arith.subf %141, %142 : vector<8x128xf32>
    %144 = arith.mulf %124, %122 : vector<8x128xf32>
    %145 = arith.mulf %126, %115 : vector<8x128xf32>
    %146 = arith.addf %144, %145 : vector<8x128xf32>
    %147 = arith.mulf %128, %136 : vector<8x128xf32>
    %148 = arith.addf %146, %147 : vector<8x128xf32>
    %149 = arith.mulf %130, %135 : vector<8x128xf32>
    %150 = arith.addf %148, %149 : vector<8x128xf32>
    %c16 = arith.constant 16 : index
    %c0_75 = arith.constant 0 : index
    %c0_76 = arith.constant 0 : index
    %151 = vector.load %arg0[%c16, %c0_75, %c0_76] : memref<192x8x128xf32, #tpu.memory_space<vmem>>, vector<1x8x128xf32>
    %152 = vector.shape_cast %151 : vector<1x8x128xf32> to vector<8x128xf32>
    %c17 = arith.constant 17 : index
    %c0_77 = arith.constant 0 : index
    %c0_78 = arith.constant 0 : index
    %153 = vector.load %arg0[%c17, %c0_77, %c0_78] : memref<192x8x128xf32, #tpu.memory_space<vmem>>, vector<1x8x128xf32>
    %154 = vector.shape_cast %153 : vector<1x8x128xf32> to vector<8x128xf32>
    %c18 = arith.constant 18 : index
    %c0_79 = arith.constant 0 : index
    %c0_80 = arith.constant 0 : index
    %155 = vector.load %arg0[%c18, %c0_79, %c0_80] : memref<192x8x128xf32, #tpu.memory_space<vmem>>, vector<1x8x128xf32>
    %156 = vector.shape_cast %155 : vector<1x8x128xf32> to vector<8x128xf32>
    %c19 = arith.constant 19 : index
    %c0_81 = arith.constant 0 : index
    %c0_82 = arith.constant 0 : index
    %157 = vector.load %arg0[%c19, %c0_81, %c0_82] : memref<192x8x128xf32, #tpu.memory_space<vmem>>, vector<1x8x128xf32>
    %158 = vector.shape_cast %157 : vector<1x8x128xf32> to vector<8x128xf32>
    %c120_i32 = arith.constant 120 : i32
    %159 = tpu.dynamic_rotate %143 by %c120_i32 dim 1 : vector<8x128xf32>, i32 -> vector<8x128xf32>
    %c8_i32 = arith.constant 8 : i32
    %160 = tpu.dynamic_rotate %143 by %c8_i32 dim 1 : vector<8x128xf32>, i32 -> vector<8x128xf32>
    %c120_i32_83 = arith.constant 120 : i32
    %161 = tpu.dynamic_rotate %150 by %c120_i32_83 dim 1 : vector<8x128xf32>, i32 -> vector<8x128xf32>
    %c8_i32_84 = arith.constant 8 : i32
    %162 = tpu.dynamic_rotate %150 by %c8_i32_84 dim 1 : vector<8x128xf32>, i32 -> vector<8x128xf32>
    %163 = arith.select %19, %159, %160 : vector<8x128xi1>, vector<8x128xf32>
    %164 = arith.select %19, %161, %162 : vector<8x128xi1>, vector<8x128xf32>
    %165 = arith.mulf %152, %143 : vector<8x128xf32>
    %166 = arith.mulf %154, %150 : vector<8x128xf32>
    %167 = arith.subf %165, %166 : vector<8x128xf32>
    %168 = arith.mulf %156, %163 : vector<8x128xf32>
    %169 = arith.addf %167, %168 : vector<8x128xf32>
    %170 = arith.mulf %158, %164 : vector<8x128xf32>
    %171 = arith.subf %169, %170 : vector<8x128xf32>
    %172 = arith.mulf %152, %150 : vector<8x128xf32>
    %173 = arith.mulf %154, %143 : vector<8x128xf32>
    %174 = arith.addf %172, %173 : vector<8x128xf32>
    %175 = arith.mulf %156, %164 : vector<8x128xf32>
    %176 = arith.addf %174, %175 : vector<8x128xf32>
    %177 = arith.mulf %158, %163 : vector<8x128xf32>
    %178 = arith.addf %176, %177 : vector<8x128xf32>
    %c20 = arith.constant 20 : index
    %c0_85 = arith.constant 0 : index
    %c0_86 = arith.constant 0 : index
    %179 = vector.load %arg0[%c20, %c0_85, %c0_86] : memref<192x8x128xf32, #tpu.memory_space<vmem>>, vector<1x8x128xf32>
    %180 = vector.shape_cast %179 : vector<1x8x128xf32> to vector<8x128xf32>
    %c21 = arith.constant 21 : index
    %c0_87 = arith.constant 0 : index
    %c0_88 = arith.constant 0 : index
    %181 = vector.load %arg0[%c21, %c0_87, %c0_88] : memref<192x8x128xf32, #tpu.memory_space<vmem>>, vector<1x8x128xf32>
    %182 = vector.shape_cast %181 : vector<1x8x128xf32> to vector<8x128xf32>
    %c22 = arith.constant 22 : index
    %c0_89 = arith.constant 0 : index
    %c0_90 = arith.constant 0 : index
    %183 = vector.load %arg0[%c22, %c0_89, %c0_90] : memref<192x8x128xf32, #tpu.memory_space<vmem>>, vector<1x8x128xf32>
    %184 = vector.shape_cast %183 : vector<1x8x128xf32> to vector<8x128xf32>
    %c23 = arith.constant 23 : index
    %c0_91 = arith.constant 0 : index
    %c0_92 = arith.constant 0 : index
    %185 = vector.load %arg0[%c23, %c0_91, %c0_92] : memref<192x8x128xf32, #tpu.memory_space<vmem>>, vector<1x8x128xf32>
    %186 = vector.shape_cast %185 : vector<1x8x128xf32> to vector<8x128xf32>
    %c124_i32 = arith.constant 124 : i32
    %187 = tpu.dynamic_rotate %171 by %c124_i32 dim 1 : vector<8x128xf32>, i32 -> vector<8x128xf32>
    %c4_i32_93 = arith.constant 4 : i32
    %188 = tpu.dynamic_rotate %171 by %c4_i32_93 dim 1 : vector<8x128xf32>, i32 -> vector<8x128xf32>
    %c124_i32_94 = arith.constant 124 : i32
    %189 = tpu.dynamic_rotate %178 by %c124_i32_94 dim 1 : vector<8x128xf32>, i32 -> vector<8x128xf32>
    %c4_i32_95 = arith.constant 4 : i32
    %190 = tpu.dynamic_rotate %178 by %c4_i32_95 dim 1 : vector<8x128xf32>, i32 -> vector<8x128xf32>
    %191 = arith.select %23, %187, %188 : vector<8x128xi1>, vector<8x128xf32>
    %192 = arith.select %23, %189, %190 : vector<8x128xi1>, vector<8x128xf32>
    %193 = arith.mulf %180, %171 : vector<8x128xf32>
    %194 = arith.mulf %182, %178 : vector<8x128xf32>
    %195 = arith.subf %193, %194 : vector<8x128xf32>
    %196 = arith.mulf %184, %191 : vector<8x128xf32>
    %197 = arith.addf %195, %196 : vector<8x128xf32>
    %198 = arith.mulf %186, %192 : vector<8x128xf32>
    %199 = arith.subf %197, %198 : vector<8x128xf32>
    %200 = arith.mulf %180, %178 : vector<8x128xf32>
    %201 = arith.mulf %182, %171 : vector<8x128xf32>
    %202 = arith.addf %200, %201 : vector<8x128xf32>
    %203 = arith.mulf %184, %192 : vector<8x128xf32>
    %204 = arith.addf %202, %203 : vector<8x128xf32>
    %205 = arith.mulf %186, %191 : vector<8x128xf32>
    %206 = arith.addf %204, %205 : vector<8x128xf32>
    %c24 = arith.constant 24 : index
    %c0_96 = arith.constant 0 : index
    %c0_97 = arith.constant 0 : index
    %207 = vector.load %arg0[%c24, %c0_96, %c0_97] : memref<192x8x128xf32, #tpu.memory_space<vmem>>, vector<1x8x128xf32>
    %208 = vector.shape_cast %207 : vector<1x8x128xf32> to vector<8x128xf32>
    %c25 = arith.constant 25 : index
    %c0_98 = arith.constant 0 : index
    %c0_99 = arith.constant 0 : index
    %209 = vector.load %arg0[%c25, %c0_98, %c0_99] : memref<192x8x128xf32, #tpu.memory_space<vmem>>, vector<1x8x128xf32>
    %210 = vector.shape_cast %209 : vector<1x8x128xf32> to vector<8x128xf32>
    %c26 = arith.constant 26 : index
    %c0_100 = arith.constant 0 : index
    %c0_101 = arith.constant 0 : index
    %211 = vector.load %arg0[%c26, %c0_100, %c0_101] : memref<192x8x128xf32, #tpu.memory_space<vmem>>, vector<1x8x128xf32>
    %212 = vector.shape_cast %211 : vector<1x8x128xf32> to vector<8x128xf32>
    %c27 = arith.constant 27 : index
    %c0_102 = arith.constant 0 : index
    %c0_103 = arith.constant 0 : index
    %213 = vector.load %arg0[%c27, %c0_102, %c0_103] : memref<192x8x128xf32, #tpu.memory_space<vmem>>, vector<1x8x128xf32>
    %214 = vector.shape_cast %213 : vector<1x8x128xf32> to vector<8x128xf32>
    %c126_i32 = arith.constant 126 : i32
    %215 = tpu.dynamic_rotate %199 by %c126_i32 dim 1 : vector<8x128xf32>, i32 -> vector<8x128xf32>
    %c2_i32 = arith.constant 2 : i32
    %216 = tpu.dynamic_rotate %199 by %c2_i32 dim 1 : vector<8x128xf32>, i32 -> vector<8x128xf32>
    %c126_i32_104 = arith.constant 126 : i32
    %217 = tpu.dynamic_rotate %206 by %c126_i32_104 dim 1 : vector<8x128xf32>, i32 -> vector<8x128xf32>
    %c2_i32_105 = arith.constant 2 : i32
    %218 = tpu.dynamic_rotate %206 by %c2_i32_105 dim 1 : vector<8x128xf32>, i32 -> vector<8x128xf32>
    %219 = arith.select %27, %215, %216 : vector<8x128xi1>, vector<8x128xf32>
    %220 = arith.select %27, %217, %218 : vector<8x128xi1>, vector<8x128xf32>
    %221 = arith.mulf %208, %199 : vector<8x128xf32>
    %222 = arith.mulf %210, %206 : vector<8x128xf32>
    %223 = arith.subf %221, %222 : vector<8x128xf32>
    %224 = arith.mulf %212, %219 : vector<8x128xf32>
    %225 = arith.addf %223, %224 : vector<8x128xf32>
    %226 = arith.mulf %214, %220 : vector<8x128xf32>
    %227 = arith.subf %225, %226 : vector<8x128xf32>
    %228 = arith.mulf %208, %206 : vector<8x128xf32>
    %229 = arith.mulf %210, %199 : vector<8x128xf32>
    %230 = arith.addf %228, %229 : vector<8x128xf32>
    %231 = arith.mulf %212, %220 : vector<8x128xf32>
    %232 = arith.addf %230, %231 : vector<8x128xf32>
    %233 = arith.mulf %214, %219 : vector<8x128xf32>
    %234 = arith.addf %232, %233 : vector<8x128xf32>
    %c28 = arith.constant 28 : index
    %c0_106 = arith.constant 0 : index
    %c0_107 = arith.constant 0 : index
    %235 = vector.load %arg0[%c28, %c0_106, %c0_107] : memref<192x8x128xf32, #tpu.memory_space<vmem>>, vector<1x8x128xf32>
    %236 = vector.shape_cast %235 : vector<1x8x128xf32> to vector<8x128xf32>
    %c29 = arith.constant 29 : index
    %c0_108 = arith.constant 0 : index
    %c0_109 = arith.constant 0 : index
    %237 = vector.load %arg0[%c29, %c0_108, %c0_109] : memref<192x8x128xf32, #tpu.memory_space<vmem>>, vector<1x8x128xf32>
    %238 = vector.shape_cast %237 : vector<1x8x128xf32> to vector<8x128xf32>
    %c30 = arith.constant 30 : index
    %c0_110 = arith.constant 0 : index
    %c0_111 = arith.constant 0 : index
    %239 = vector.load %arg0[%c30, %c0_110, %c0_111] : memref<192x8x128xf32, #tpu.memory_space<vmem>>, vector<1x8x128xf32>
    %240 = vector.shape_cast %239 : vector<1x8x128xf32> to vector<8x128xf32>
    %c31 = arith.constant 31 : index
    %c0_112 = arith.constant 0 : index
    %c0_113 = arith.constant 0 : index
    %241 = vector.load %arg0[%c31, %c0_112, %c0_113] : memref<192x8x128xf32, #tpu.memory_space<vmem>>, vector<1x8x128xf32>
    %242 = vector.shape_cast %241 : vector<1x8x128xf32> to vector<8x128xf32>
    %c127_i32 = arith.constant 127 : i32
    %243 = tpu.dynamic_rotate %227 by %c127_i32 dim 1 : vector<8x128xf32>, i32 -> vector<8x128xf32>
    %c1_i32 = arith.constant 1 : i32
    %244 = tpu.dynamic_rotate %227 by %c1_i32 dim 1 : vector<8x128xf32>, i32 -> vector<8x128xf32>
    %c127_i32_114 = arith.constant 127 : i32
    %245 = tpu.dynamic_rotate %234 by %c127_i32_114 dim 1 : vector<8x128xf32>, i32 -> vector<8x128xf32>
    %c1_i32_115 = arith.constant 1 : i32
    %246 = tpu.dynamic_rotate %234 by %c1_i32_115 dim 1 : vector<8x128xf32>, i32 -> vector<8x128xf32>
    %247 = arith.select %31, %243, %244 : vector<8x128xi1>, vector<8x128xf32>
    %248 = arith.select %31, %245, %246 : vector<8x128xi1>, vector<8x128xf32>
    %249 = arith.mulf %236, %227 : vector<8x128xf32>
    %250 = arith.mulf %238, %234 : vector<8x128xf32>
    %251 = arith.subf %249, %250 : vector<8x128xf32>
    %252 = arith.mulf %240, %247 : vector<8x128xf32>
    %253 = arith.addf %251, %252 : vector<8x128xf32>
    %254 = arith.mulf %242, %248 : vector<8x128xf32>
    %255 = arith.subf %253, %254 : vector<8x128xf32>
    %256 = arith.mulf %236, %234 : vector<8x128xf32>
    %257 = arith.mulf %238, %227 : vector<8x128xf32>
    %258 = arith.addf %256, %257 : vector<8x128xf32>
    %259 = arith.mulf %240, %248 : vector<8x128xf32>
    %260 = arith.addf %258, %259 : vector<8x128xf32>
    %261 = arith.mulf %242, %247 : vector<8x128xf32>
    %262 = arith.addf %260, %261 : vector<8x128xf32>
    %c64_i32_116 = arith.constant 64 : i32
    %263 = tpu.dynamic_rotate %255 by %c64_i32_116 dim 1 : vector<8x128xf32>, i32 -> vector<8x128xf32>
    %c64_i32_117 = arith.constant 64 : i32
    %264 = tpu.dynamic_rotate %255 by %c64_i32_117 dim 1 : vector<8x128xf32>, i32 -> vector<8x128xf32>
    %c64_i32_118 = arith.constant 64 : i32
    %265 = tpu.dynamic_rotate %262 by %c64_i32_118 dim 1 : vector<8x128xf32>, i32 -> vector<8x128xf32>
    %c64_i32_119 = arith.constant 64 : i32
    %266 = tpu.dynamic_rotate %262 by %c64_i32_119 dim 1 : vector<8x128xf32>, i32 -> vector<8x128xf32>
    %267 = arith.select %7, %263, %264 : vector<8x128xi1>, vector<8x128xf32>
    %268 = arith.select %7, %265, %266 : vector<8x128xi1>, vector<8x128xf32>
    %269 = arith.select %3, %255, %267 : vector<8x128xi1>, vector<8x128xf32>
    %270 = arith.select %3, %262, %268 : vector<8x128xi1>, vector<8x128xf32>
    %c96_i32_120 = arith.constant 96 : i32
    %271 = tpu.dynamic_rotate %269 by %c96_i32_120 dim 1 : vector<8x128xf32>, i32 -> vector<8x128xf32>
    %c32_i32_121 = arith.constant 32 : i32
    %272 = tpu.dynamic_rotate %269 by %c32_i32_121 dim 1 : vector<8x128xf32>, i32 -> vector<8x128xf32>
    %c96_i32_122 = arith.constant 96 : i32
    %273 = tpu.dynamic_rotate %270 by %c96_i32_122 dim 1 : vector<8x128xf32>, i32 -> vector<8x128xf32>
    %c32_i32_123 = arith.constant 32 : i32
    %274 = tpu.dynamic_rotate %270 by %c32_i32_123 dim 1 : vector<8x128xf32>, i32 -> vector<8x128xf32>
    %275 = arith.select %11, %271, %272 : vector<8x128xi1>, vector<8x128xf32>
    %276 = arith.select %11, %273, %274 : vector<8x128xi1>, vector<8x128xf32>
    %277 = arith.select %7, %269, %275 : vector<8x128xi1>, vector<8x128xf32>
    %278 = arith.select %7, %270, %276 : vector<8x128xi1>, vector<8x128xf32>
    %c112_i32_124 = arith.constant 112 : i32
    %279 = tpu.dynamic_rotate %277 by %c112_i32_124 dim 1 : vector<8x128xf32>, i32 -> vector<8x128xf32>
    %c16_i32_125 = arith.constant 16 : i32
    %280 = tpu.dynamic_rotate %277 by %c16_i32_125 dim 1 : vector<8x128xf32>, i32 -> vector<8x128xf32>
    %c112_i32_126 = arith.constant 112 : i32
    %281 = tpu.dynamic_rotate %278 by %c112_i32_126 dim 1 : vector<8x128xf32>, i32 -> vector<8x128xf32>
    %c16_i32_127 = arith.constant 16 : i32
    %282 = tpu.dynamic_rotate %278 by %c16_i32_127 dim 1 : vector<8x128xf32>, i32 -> vector<8x128xf32>
    %283 = arith.select %15, %279, %280 : vector<8x128xi1>, vector<8x128xf32>
    %284 = arith.select %15, %281, %282 : vector<8x128xi1>, vector<8x128xf32>
    %285 = arith.select %11, %277, %283 : vector<8x128xi1>, vector<8x128xf32>
    %286 = arith.select %11, %278, %284 : vector<8x128xi1>, vector<8x128xf32>
    %c120_i32_128 = arith.constant 120 : i32
    %287 = tpu.dynamic_rotate %285 by %c120_i32_128 dim 1 : vector<8x128xf32>, i32 -> vector<8x128xf32>
    %c8_i32_129 = arith.constant 8 : i32
    %288 = tpu.dynamic_rotate %285 by %c8_i32_129 dim 1 : vector<8x128xf32>, i32 -> vector<8x128xf32>
    %c120_i32_130 = arith.constant 120 : i32
    %289 = tpu.dynamic_rotate %286 by %c120_i32_130 dim 1 : vector<8x128xf32>, i32 -> vector<8x128xf32>
    %c8_i32_131 = arith.constant 8 : i32
    %290 = tpu.dynamic_rotate %286 by %c8_i32_131 dim 1 : vector<8x128xf32>, i32 -> vector<8x128xf32>
    %291 = arith.select %19, %287, %288 : vector<8x128xi1>, vector<8x128xf32>
    %292 = arith.select %19, %289, %290 : vector<8x128xi1>, vector<8x128xf32>
    %293 = arith.select %15, %285, %291 : vector<8x128xi1>, vector<8x128xf32>
    %294 = arith.select %15, %286, %292 : vector<8x128xi1>, vector<8x128xf32>
    %c124_i32_132 = arith.constant 124 : i32
    %295 = tpu.dynamic_rotate %293 by %c124_i32_132 dim 1 : vector<8x128xf32>, i32 -> vector<8x128xf32>
    %c4_i32_133 = arith.constant 4 : i32
    %296 = tpu.dynamic_rotate %293 by %c4_i32_133 dim 1 : vector<8x128xf32>, i32 -> vector<8x128xf32>
    %c124_i32_134 = arith.constant 124 : i32
    %297 = tpu.dynamic_rotate %294 by %c124_i32_134 dim 1 : vector<8x128xf32>, i32 -> vector<8x128xf32>
    %c4_i32_135 = arith.constant 4 : i32
    %298 = tpu.dynamic_rotate %294 by %c4_i32_135 dim 1 : vector<8x128xf32>, i32 -> vector<8x128xf32>
    %299 = arith.select %23, %295, %296 : vector<8x128xi1>, vector<8x128xf32>
    %300 = arith.select %23, %297, %298 : vector<8x128xi1>, vector<8x128xf32>
    %301 = arith.select %19, %293, %299 : vector<8x128xi1>, vector<8x128xf32>
    %302 = arith.select %19, %294, %300 : vector<8x128xi1>, vector<8x128xf32>
    %c126_i32_136 = arith.constant 126 : i32
    %303 = tpu.dynamic_rotate %301 by %c126_i32_136 dim 1 : vector<8x128xf32>, i32 -> vector<8x128xf32>
    %c2_i32_137 = arith.constant 2 : i32
    %304 = tpu.dynamic_rotate %301 by %c2_i32_137 dim 1 : vector<8x128xf32>, i32 -> vector<8x128xf32>
    %c126_i32_138 = arith.constant 126 : i32
    %305 = tpu.dynamic_rotate %302 by %c126_i32_138 dim 1 : vector<8x128xf32>, i32 -> vector<8x128xf32>
    %c2_i32_139 = arith.constant 2 : i32
    %306 = tpu.dynamic_rotate %302 by %c2_i32_139 dim 1 : vector<8x128xf32>, i32 -> vector<8x128xf32>
    %307 = arith.select %27, %303, %304 : vector<8x128xi1>, vector<8x128xf32>
    %308 = arith.select %27, %305, %306 : vector<8x128xi1>, vector<8x128xf32>
    %309 = arith.select %23, %301, %307 : vector<8x128xi1>, vector<8x128xf32>
    %310 = arith.select %23, %302, %308 : vector<8x128xi1>, vector<8x128xf32>
    %c127_i32_140 = arith.constant 127 : i32
    %311 = tpu.dynamic_rotate %309 by %c127_i32_140 dim 1 : vector<8x128xf32>, i32 -> vector<8x128xf32>
    %c1_i32_141 = arith.constant 1 : i32
    %312 = tpu.dynamic_rotate %309 by %c1_i32_141 dim 1 : vector<8x128xf32>, i32 -> vector<8x128xf32>
    %c127_i32_142 = arith.constant 127 : i32
    %313 = tpu.dynamic_rotate %310 by %c127_i32_142 dim 1 : vector<8x128xf32>, i32 -> vector<8x128xf32>
    %c1_i32_143 = arith.constant 1 : i32
    %314 = tpu.dynamic_rotate %310 by %c1_i32_143 dim 1 : vector<8x128xf32>, i32 -> vector<8x128xf32>
    %315 = arith.select %31, %311, %312 : vector<8x128xi1>, vector<8x128xf32>
    %316 = arith.select %31, %313, %314 : vector<8x128xi1>, vector<8x128xf32>
    %317 = arith.select %27, %309, %315 : vector<8x128xi1>, vector<8x128xf32>
    %318 = arith.select %27, %310, %316 : vector<8x128xi1>, vector<8x128xf32>
    %c4_i32_144 = arith.constant 4 : i32
    %319 = tpu.dynamic_rotate %317 by %c4_i32_144 dim 0 : vector<8x128xf32>, i32 -> vector<8x128xf32>
    %c4_i32_145 = arith.constant 4 : i32
    %320 = tpu.dynamic_rotate %318 by %c4_i32_145 dim 0 : vector<8x128xf32>, i32 -> vector<8x128xf32>
    %321 = arith.select %31, %317, %319 : vector<8x128xi1>, vector<8x128xf32>
    %322 = arith.select %31, %318, %320 : vector<8x128xi1>, vector<8x128xf32>
    %c32 = arith.constant 32 : index
    %c0_146 = arith.constant 0 : index
    %c0_147 = arith.constant 0 : index
    %323 = vector.load %arg0[%c32, %c0_146, %c0_147] : memref<192x8x128xf32, #tpu.memory_space<vmem>>, vector<1x8x128xf32>
    %324 = vector.shape_cast %323 : vector<1x8x128xf32> to vector<8x128xf32>
    %c33 = arith.constant 33 : index
    %c0_148 = arith.constant 0 : index
    %c0_149 = arith.constant 0 : index
    %325 = vector.load %arg0[%c33, %c0_148, %c0_149] : memref<192x8x128xf32, #tpu.memory_space<vmem>>, vector<1x8x128xf32>
    %326 = vector.shape_cast %325 : vector<1x8x128xf32> to vector<8x128xf32>
    %c34 = arith.constant 34 : index
    %c0_150 = arith.constant 0 : index
    %c0_151 = arith.constant 0 : index
    %327 = vector.load %arg0[%c34, %c0_150, %c0_151] : memref<192x8x128xf32, #tpu.memory_space<vmem>>, vector<1x8x128xf32>
    %328 = vector.shape_cast %327 : vector<1x8x128xf32> to vector<8x128xf32>
    %c35 = arith.constant 35 : index
    %c0_152 = arith.constant 0 : index
    %c0_153 = arith.constant 0 : index
    %329 = vector.load %arg0[%c35, %c0_152, %c0_153] : memref<192x8x128xf32, #tpu.memory_space<vmem>>, vector<1x8x128xf32>
    %330 = vector.shape_cast %329 : vector<1x8x128xf32> to vector<8x128xf32>
    %c4_i32_154 = arith.constant 4 : i32
    %331 = tpu.dynamic_rotate %321 by %c4_i32_154 dim 0 : vector<8x128xf32>, i32 -> vector<8x128xf32>
    %c4_i32_155 = arith.constant 4 : i32
    %332 = tpu.dynamic_rotate %322 by %c4_i32_155 dim 0 : vector<8x128xf32>, i32 -> vector<8x128xf32>
    %333 = arith.mulf %324, %321 : vector<8x128xf32>
    %334 = arith.mulf %326, %322 : vector<8x128xf32>
    %335 = arith.subf %333, %334 : vector<8x128xf32>
    %336 = arith.mulf %328, %331 : vector<8x128xf32>
    %337 = arith.addf %335, %336 : vector<8x128xf32>
    %338 = arith.mulf %330, %332 : vector<8x128xf32>
    %339 = arith.subf %337, %338 : vector<8x128xf32>
    %340 = arith.mulf %324, %322 : vector<8x128xf32>
    %341 = arith.mulf %326, %321 : vector<8x128xf32>
    %342 = arith.addf %340, %341 : vector<8x128xf32>
    %343 = arith.mulf %328, %332 : vector<8x128xf32>
    %344 = arith.addf %342, %343 : vector<8x128xf32>
    %345 = arith.mulf %330, %331 : vector<8x128xf32>
    %346 = arith.addf %344, %345 : vector<8x128xf32>
    %c36 = arith.constant 36 : index
    %c0_156 = arith.constant 0 : index
    %c0_157 = arith.constant 0 : index
    %347 = vector.load %arg0[%c36, %c0_156, %c0_157] : memref<192x8x128xf32, #tpu.memory_space<vmem>>, vector<1x8x128xf32>
    %348 = vector.shape_cast %347 : vector<1x8x128xf32> to vector<8x128xf32>
    %c37 = arith.constant 37 : index
    %c0_158 = arith.constant 0 : index
    %c0_159 = arith.constant 0 : index
    %349 = vector.load %arg0[%c37, %c0_158, %c0_159] : memref<192x8x128xf32, #tpu.memory_space<vmem>>, vector<1x8x128xf32>
    %350 = vector.shape_cast %349 : vector<1x8x128xf32> to vector<8x128xf32>
    %c38 = arith.constant 38 : index
    %c0_160 = arith.constant 0 : index
    %c0_161 = arith.constant 0 : index
    %351 = vector.load %arg0[%c38, %c0_160, %c0_161] : memref<192x8x128xf32, #tpu.memory_space<vmem>>, vector<1x8x128xf32>
    %352 = vector.shape_cast %351 : vector<1x8x128xf32> to vector<8x128xf32>
    %c39 = arith.constant 39 : index
    %c0_162 = arith.constant 0 : index
    %c0_163 = arith.constant 0 : index
    %353 = vector.load %arg0[%c39, %c0_162, %c0_163] : memref<192x8x128xf32, #tpu.memory_space<vmem>>, vector<1x8x128xf32>
    %354 = vector.shape_cast %353 : vector<1x8x128xf32> to vector<8x128xf32>
    %c64_i32_164 = arith.constant 64 : i32
    %355 = tpu.dynamic_rotate %339 by %c64_i32_164 dim 1 : vector<8x128xf32>, i32 -> vector<8x128xf32>
    %c64_i32_165 = arith.constant 64 : i32
    %356 = tpu.dynamic_rotate %339 by %c64_i32_165 dim 1 : vector<8x128xf32>, i32 -> vector<8x128xf32>
    %c64_i32_166 = arith.constant 64 : i32
    %357 = tpu.dynamic_rotate %346 by %c64_i32_166 dim 1 : vector<8x128xf32>, i32 -> vector<8x128xf32>
    %c64_i32_167 = arith.constant 64 : i32
    %358 = tpu.dynamic_rotate %346 by %c64_i32_167 dim 1 : vector<8x128xf32>, i32 -> vector<8x128xf32>
    %359 = arith.select %7, %355, %356 : vector<8x128xi1>, vector<8x128xf32>
    %360 = arith.select %7, %357, %358 : vector<8x128xi1>, vector<8x128xf32>
    %361 = arith.mulf %348, %339 : vector<8x128xf32>
    %362 = arith.mulf %350, %346 : vector<8x128xf32>
    %363 = arith.subf %361, %362 : vector<8x128xf32>
    %364 = arith.mulf %352, %359 : vector<8x128xf32>
    %365 = arith.addf %363, %364 : vector<8x128xf32>
    %366 = arith.mulf %354, %360 : vector<8x128xf32>
    %367 = arith.subf %365, %366 : vector<8x128xf32>
    %368 = arith.mulf %348, %346 : vector<8x128xf32>
    %369 = arith.mulf %350, %339 : vector<8x128xf32>
    %370 = arith.addf %368, %369 : vector<8x128xf32>
    %371 = arith.mulf %352, %360 : vector<8x128xf32>
    %372 = arith.addf %370, %371 : vector<8x128xf32>
    %373 = arith.mulf %354, %359 : vector<8x128xf32>
    %374 = arith.addf %372, %373 : vector<8x128xf32>
    %c40 = arith.constant 40 : index
    %c0_168 = arith.constant 0 : index
    %c0_169 = arith.constant 0 : index
    %375 = vector.load %arg0[%c40, %c0_168, %c0_169] : memref<192x8x128xf32, #tpu.memory_space<vmem>>, vector<1x8x128xf32>
    %376 = vector.shape_cast %375 : vector<1x8x128xf32> to vector<8x128xf32>
    %c41 = arith.constant 41 : index
    %c0_170 = arith.constant 0 : index
    %c0_171 = arith.constant 0 : index
    %377 = vector.load %arg0[%c41, %c0_170, %c0_171] : memref<192x8x128xf32, #tpu.memory_space<vmem>>, vector<1x8x128xf32>
    %378 = vector.shape_cast %377 : vector<1x8x128xf32> to vector<8x128xf32>
    %c42 = arith.constant 42 : index
    %c0_172 = arith.constant 0 : index
    %c0_173 = arith.constant 0 : index
    %379 = vector.load %arg0[%c42, %c0_172, %c0_173] : memref<192x8x128xf32, #tpu.memory_space<vmem>>, vector<1x8x128xf32>
    %380 = vector.shape_cast %379 : vector<1x8x128xf32> to vector<8x128xf32>
    %c43 = arith.constant 43 : index
    %c0_174 = arith.constant 0 : index
    %c0_175 = arith.constant 0 : index
    %381 = vector.load %arg0[%c43, %c0_174, %c0_175] : memref<192x8x128xf32, #tpu.memory_space<vmem>>, vector<1x8x128xf32>
    %382 = vector.shape_cast %381 : vector<1x8x128xf32> to vector<8x128xf32>
    %c96_i32_176 = arith.constant 96 : i32
    %383 = tpu.dynamic_rotate %367 by %c96_i32_176 dim 1 : vector<8x128xf32>, i32 -> vector<8x128xf32>
    %c32_i32_177 = arith.constant 32 : i32
    %384 = tpu.dynamic_rotate %367 by %c32_i32_177 dim 1 : vector<8x128xf32>, i32 -> vector<8x128xf32>
    %c96_i32_178 = arith.constant 96 : i32
    %385 = tpu.dynamic_rotate %374 by %c96_i32_178 dim 1 : vector<8x128xf32>, i32 -> vector<8x128xf32>
    %c32_i32_179 = arith.constant 32 : i32
    %386 = tpu.dynamic_rotate %374 by %c32_i32_179 dim 1 : vector<8x128xf32>, i32 -> vector<8x128xf32>
    %387 = arith.select %11, %383, %384 : vector<8x128xi1>, vector<8x128xf32>
    %388 = arith.select %11, %385, %386 : vector<8x128xi1>, vector<8x128xf32>
    %389 = arith.mulf %376, %367 : vector<8x128xf32>
    %390 = arith.mulf %378, %374 : vector<8x128xf32>
    %391 = arith.subf %389, %390 : vector<8x128xf32>
    %392 = arith.mulf %380, %387 : vector<8x128xf32>
    %393 = arith.addf %391, %392 : vector<8x128xf32>
    %394 = arith.mulf %382, %388 : vector<8x128xf32>
    %395 = arith.subf %393, %394 : vector<8x128xf32>
    %396 = arith.mulf %376, %374 : vector<8x128xf32>
    %397 = arith.mulf %378, %367 : vector<8x128xf32>
    %398 = arith.addf %396, %397 : vector<8x128xf32>
    %399 = arith.mulf %380, %388 : vector<8x128xf32>
    %400 = arith.addf %398, %399 : vector<8x128xf32>
    %401 = arith.mulf %382, %387 : vector<8x128xf32>
    %402 = arith.addf %400, %401 : vector<8x128xf32>
    %c44 = arith.constant 44 : index
    %c0_180 = arith.constant 0 : index
    %c0_181 = arith.constant 0 : index
    %403 = vector.load %arg0[%c44, %c0_180, %c0_181] : memref<192x8x128xf32, #tpu.memory_space<vmem>>, vector<1x8x128xf32>
    %404 = vector.shape_cast %403 : vector<1x8x128xf32> to vector<8x128xf32>
    %c45 = arith.constant 45 : index
    %c0_182 = arith.constant 0 : index
    %c0_183 = arith.constant 0 : index
    %405 = vector.load %arg0[%c45, %c0_182, %c0_183] : memref<192x8x128xf32, #tpu.memory_space<vmem>>, vector<1x8x128xf32>
    %406 = vector.shape_cast %405 : vector<1x8x128xf32> to vector<8x128xf32>
    %c46 = arith.constant 46 : index
    %c0_184 = arith.constant 0 : index
    %c0_185 = arith.constant 0 : index
    %407 = vector.load %arg0[%c46, %c0_184, %c0_185] : memref<192x8x128xf32, #tpu.memory_space<vmem>>, vector<1x8x128xf32>
    %408 = vector.shape_cast %407 : vector<1x8x128xf32> to vector<8x128xf32>
    %c47 = arith.constant 47 : index
    %c0_186 = arith.constant 0 : index
    %c0_187 = arith.constant 0 : index
    %409 = vector.load %arg0[%c47, %c0_186, %c0_187] : memref<192x8x128xf32, #tpu.memory_space<vmem>>, vector<1x8x128xf32>
    %410 = vector.shape_cast %409 : vector<1x8x128xf32> to vector<8x128xf32>
    %c112_i32_188 = arith.constant 112 : i32
    %411 = tpu.dynamic_rotate %395 by %c112_i32_188 dim 1 : vector<8x128xf32>, i32 -> vector<8x128xf32>
    %c16_i32_189 = arith.constant 16 : i32
    %412 = tpu.dynamic_rotate %395 by %c16_i32_189 dim 1 : vector<8x128xf32>, i32 -> vector<8x128xf32>
    %c112_i32_190 = arith.constant 112 : i32
    %413 = tpu.dynamic_rotate %402 by %c112_i32_190 dim 1 : vector<8x128xf32>, i32 -> vector<8x128xf32>
    %c16_i32_191 = arith.constant 16 : i32
    %414 = tpu.dynamic_rotate %402 by %c16_i32_191 dim 1 : vector<8x128xf32>, i32 -> vector<8x128xf32>
    %415 = arith.select %15, %411, %412 : vector<8x128xi1>, vector<8x128xf32>
    %416 = arith.select %15, %413, %414 : vector<8x128xi1>, vector<8x128xf32>
    %417 = arith.mulf %404, %395 : vector<8x128xf32>
    %418 = arith.mulf %406, %402 : vector<8x128xf32>
    %419 = arith.subf %417, %418 : vector<8x128xf32>
    %420 = arith.mulf %408, %415 : vector<8x128xf32>
    %421 = arith.addf %419, %420 : vector<8x128xf32>
    %422 = arith.mulf %410, %416 : vector<8x128xf32>
    %423 = arith.subf %421, %422 : vector<8x128xf32>
    %424 = arith.mulf %404, %402 : vector<8x128xf32>
    %425 = arith.mulf %406, %395 : vector<8x128xf32>
    %426 = arith.addf %424, %425 : vector<8x128xf32>
    %427 = arith.mulf %408, %416 : vector<8x128xf32>
    %428 = arith.addf %426, %427 : vector<8x128xf32>
    %429 = arith.mulf %410, %415 : vector<8x128xf32>
    %430 = arith.addf %428, %429 : vector<8x128xf32>
    %c48 = arith.constant 48 : index
    %c0_192 = arith.constant 0 : index
    %c0_193 = arith.constant 0 : index
    %431 = vector.load %arg0[%c48, %c0_192, %c0_193] : memref<192x8x128xf32, #tpu.memory_space<vmem>>, vector<1x8x128xf32>
    %432 = vector.shape_cast %431 : vector<1x8x128xf32> to vector<8x128xf32>
    %c49 = arith.constant 49 : index
    %c0_194 = arith.constant 0 : index
    %c0_195 = arith.constant 0 : index
    %433 = vector.load %arg0[%c49, %c0_194, %c0_195] : memref<192x8x128xf32, #tpu.memory_space<vmem>>, vector<1x8x128xf32>
    %434 = vector.shape_cast %433 : vector<1x8x128xf32> to vector<8x128xf32>
    %c50 = arith.constant 50 : index
    %c0_196 = arith.constant 0 : index
    %c0_197 = arith.constant 0 : index
    %435 = vector.load %arg0[%c50, %c0_196, %c0_197] : memref<192x8x128xf32, #tpu.memory_space<vmem>>, vector<1x8x128xf32>
    %436 = vector.shape_cast %435 : vector<1x8x128xf32> to vector<8x128xf32>
    %c51 = arith.constant 51 : index
    %c0_198 = arith.constant 0 : index
    %c0_199 = arith.constant 0 : index
    %437 = vector.load %arg0[%c51, %c0_198, %c0_199] : memref<192x8x128xf32, #tpu.memory_space<vmem>>, vector<1x8x128xf32>
    %438 = vector.shape_cast %437 : vector<1x8x128xf32> to vector<8x128xf32>
    %c120_i32_200 = arith.constant 120 : i32
    %439 = tpu.dynamic_rotate %423 by %c120_i32_200 dim 1 : vector<8x128xf32>, i32 -> vector<8x128xf32>
    %c8_i32_201 = arith.constant 8 : i32
    %440 = tpu.dynamic_rotate %423 by %c8_i32_201 dim 1 : vector<8x128xf32>, i32 -> vector<8x128xf32>
    %c120_i32_202 = arith.constant 120 : i32
    %441 = tpu.dynamic_rotate %430 by %c120_i32_202 dim 1 : vector<8x128xf32>, i32 -> vector<8x128xf32>
    %c8_i32_203 = arith.constant 8 : i32
    %442 = tpu.dynamic_rotate %430 by %c8_i32_203 dim 1 : vector<8x128xf32>, i32 -> vector<8x128xf32>
    %443 = arith.select %19, %439, %440 : vector<8x128xi1>, vector<8x128xf32>
    %444 = arith.select %19, %441, %442 : vector<8x128xi1>, vector<8x128xf32>
    %445 = arith.mulf %432, %423 : vector<8x128xf32>
    %446 = arith.mulf %434, %430 : vector<8x128xf32>
    %447 = arith.subf %445, %446 : vector<8x128xf32>
    %448 = arith.mulf %436, %443 : vector<8x128xf32>
    %449 = arith.addf %447, %448 : vector<8x128xf32>
    %450 = arith.mulf %438, %444 : vector<8x128xf32>
    %451 = arith.subf %449, %450 : vector<8x128xf32>
    %452 = arith.mulf %432, %430 : vector<8x128xf32>
    %453 = arith.mulf %434, %423 : vector<8x128xf32>
    %454 = arith.addf %452, %453 : vector<8x128xf32>
    %455 = arith.mulf %436, %444 : vector<8x128xf32>
    %456 = arith.addf %454, %455 : vector<8x128xf32>
    %457 = arith.mulf %438, %443 : vector<8x128xf32>
    %458 = arith.addf %456, %457 : vector<8x128xf32>
    %c52 = arith.constant 52 : index
    %c0_204 = arith.constant 0 : index
    %c0_205 = arith.constant 0 : index
    %459 = vector.load %arg0[%c52, %c0_204, %c0_205] : memref<192x8x128xf32, #tpu.memory_space<vmem>>, vector<1x8x128xf32>
    %460 = vector.shape_cast %459 : vector<1x8x128xf32> to vector<8x128xf32>
    %c53 = arith.constant 53 : index
    %c0_206 = arith.constant 0 : index
    %c0_207 = arith.constant 0 : index
    %461 = vector.load %arg0[%c53, %c0_206, %c0_207] : memref<192x8x128xf32, #tpu.memory_space<vmem>>, vector<1x8x128xf32>
    %462 = vector.shape_cast %461 : vector<1x8x128xf32> to vector<8x128xf32>
    %c54 = arith.constant 54 : index
    %c0_208 = arith.constant 0 : index
    %c0_209 = arith.constant 0 : index
    %463 = vector.load %arg0[%c54, %c0_208, %c0_209] : memref<192x8x128xf32, #tpu.memory_space<vmem>>, vector<1x8x128xf32>
    %464 = vector.shape_cast %463 : vector<1x8x128xf32> to vector<8x128xf32>
    %c55 = arith.constant 55 : index
    %c0_210 = arith.constant 0 : index
    %c0_211 = arith.constant 0 : index
    %465 = vector.load %arg0[%c55, %c0_210, %c0_211] : memref<192x8x128xf32, #tpu.memory_space<vmem>>, vector<1x8x128xf32>
    %466 = vector.shape_cast %465 : vector<1x8x128xf32> to vector<8x128xf32>
    %c124_i32_212 = arith.constant 124 : i32
    %467 = tpu.dynamic_rotate %451 by %c124_i32_212 dim 1 : vector<8x128xf32>, i32 -> vector<8x128xf32>
    %c4_i32_213 = arith.constant 4 : i32
    %468 = tpu.dynamic_rotate %451 by %c4_i32_213 dim 1 : vector<8x128xf32>, i32 -> vector<8x128xf32>
    %c124_i32_214 = arith.constant 124 : i32
    %469 = tpu.dynamic_rotate %458 by %c124_i32_214 dim 1 : vector<8x128xf32>, i32 -> vector<8x128xf32>
    %c4_i32_215 = arith.constant 4 : i32
    %470 = tpu.dynamic_rotate %458 by %c4_i32_215 dim 1 : vector<8x128xf32>, i32 -> vector<8x128xf32>
    %471 = arith.select %23, %467, %468 : vector<8x128xi1>, vector<8x128xf32>
    %472 = arith.select %23, %469, %470 : vector<8x128xi1>, vector<8x128xf32>
    %473 = arith.mulf %460, %451 : vector<8x128xf32>
    %474 = arith.mulf %462, %458 : vector<8x128xf32>
    %475 = arith.subf %473, %474 : vector<8x128xf32>
    %476 = arith.mulf %464, %471 : vector<8x128xf32>
    %477 = arith.addf %475, %476 : vector<8x128xf32>
    %478 = arith.mulf %466, %472 : vector<8x128xf32>
    %479 = arith.subf %477, %478 : vector<8x128xf32>
    %480 = arith.mulf %460, %458 : vector<8x128xf32>
    %481 = arith.mulf %462, %451 : vector<8x128xf32>
    %482 = arith.addf %480, %481 : vector<8x128xf32>
    %483 = arith.mulf %464, %472 : vector<8x128xf32>
    %484 = arith.addf %482, %483 : vector<8x128xf32>
    %485 = arith.mulf %466, %471 : vector<8x128xf32>
    %486 = arith.addf %484, %485 : vector<8x128xf32>
    %c56 = arith.constant 56 : index
    %c0_216 = arith.constant 0 : index
    %c0_217 = arith.constant 0 : index
    %487 = vector.load %arg0[%c56, %c0_216, %c0_217] : memref<192x8x128xf32, #tpu.memory_space<vmem>>, vector<1x8x128xf32>
    %488 = vector.shape_cast %487 : vector<1x8x128xf32> to vector<8x128xf32>
    %c57 = arith.constant 57 : index
    %c0_218 = arith.constant 0 : index
    %c0_219 = arith.constant 0 : index
    %489 = vector.load %arg0[%c57, %c0_218, %c0_219] : memref<192x8x128xf32, #tpu.memory_space<vmem>>, vector<1x8x128xf32>
    %490 = vector.shape_cast %489 : vector<1x8x128xf32> to vector<8x128xf32>
    %c58 = arith.constant 58 : index
    %c0_220 = arith.constant 0 : index
    %c0_221 = arith.constant 0 : index
    %491 = vector.load %arg0[%c58, %c0_220, %c0_221] : memref<192x8x128xf32, #tpu.memory_space<vmem>>, vector<1x8x128xf32>
    %492 = vector.shape_cast %491 : vector<1x8x128xf32> to vector<8x128xf32>
    %c59 = arith.constant 59 : index
    %c0_222 = arith.constant 0 : index
    %c0_223 = arith.constant 0 : index
    %493 = vector.load %arg0[%c59, %c0_222, %c0_223] : memref<192x8x128xf32, #tpu.memory_space<vmem>>, vector<1x8x128xf32>
    %494 = vector.shape_cast %493 : vector<1x8x128xf32> to vector<8x128xf32>
    %c126_i32_224 = arith.constant 126 : i32
    %495 = tpu.dynamic_rotate %479 by %c126_i32_224 dim 1 : vector<8x128xf32>, i32 -> vector<8x128xf32>
    %c2_i32_225 = arith.constant 2 : i32
    %496 = tpu.dynamic_rotate %479 by %c2_i32_225 dim 1 : vector<8x128xf32>, i32 -> vector<8x128xf32>
    %c126_i32_226 = arith.constant 126 : i32
    %497 = tpu.dynamic_rotate %486 by %c126_i32_226 dim 1 : vector<8x128xf32>, i32 -> vector<8x128xf32>
    %c2_i32_227 = arith.constant 2 : i32
    %498 = tpu.dynamic_rotate %486 by %c2_i32_227 dim 1 : vector<8x128xf32>, i32 -> vector<8x128xf32>
    %499 = arith.select %27, %495, %496 : vector<8x128xi1>, vector<8x128xf32>
    %500 = arith.select %27, %497, %498 : vector<8x128xi1>, vector<8x128xf32>
    %501 = arith.mulf %488, %479 : vector<8x128xf32>
    %502 = arith.mulf %490, %486 : vector<8x128xf32>
    %503 = arith.subf %501, %502 : vector<8x128xf32>
    %504 = arith.mulf %492, %499 : vector<8x128xf32>
    %505 = arith.addf %503, %504 : vector<8x128xf32>
    %506 = arith.mulf %494, %500 : vector<8x128xf32>
    %507 = arith.subf %505, %506 : vector<8x128xf32>
    %508 = arith.mulf %488, %486 : vector<8x128xf32>
    %509 = arith.mulf %490, %479 : vector<8x128xf32>
    %510 = arith.addf %508, %509 : vector<8x128xf32>
    %511 = arith.mulf %492, %500 : vector<8x128xf32>
    %512 = arith.addf %510, %511 : vector<8x128xf32>
    %513 = arith.mulf %494, %499 : vector<8x128xf32>
    %514 = arith.addf %512, %513 : vector<8x128xf32>
    %c60 = arith.constant 60 : index
    %c0_228 = arith.constant 0 : index
    %c0_229 = arith.constant 0 : index
    %515 = vector.load %arg0[%c60, %c0_228, %c0_229] : memref<192x8x128xf32, #tpu.memory_space<vmem>>, vector<1x8x128xf32>
    %516 = vector.shape_cast %515 : vector<1x8x128xf32> to vector<8x128xf32>
    %c61 = arith.constant 61 : index
    %c0_230 = arith.constant 0 : index
    %c0_231 = arith.constant 0 : index
    %517 = vector.load %arg0[%c61, %c0_230, %c0_231] : memref<192x8x128xf32, #tpu.memory_space<vmem>>, vector<1x8x128xf32>
    %518 = vector.shape_cast %517 : vector<1x8x128xf32> to vector<8x128xf32>
    %c62 = arith.constant 62 : index
    %c0_232 = arith.constant 0 : index
    %c0_233 = arith.constant 0 : index
    %519 = vector.load %arg0[%c62, %c0_232, %c0_233] : memref<192x8x128xf32, #tpu.memory_space<vmem>>, vector<1x8x128xf32>
    %520 = vector.shape_cast %519 : vector<1x8x128xf32> to vector<8x128xf32>
    %c63 = arith.constant 63 : index
    %c0_234 = arith.constant 0 : index
    %c0_235 = arith.constant 0 : index
    %521 = vector.load %arg0[%c63, %c0_234, %c0_235] : memref<192x8x128xf32, #tpu.memory_space<vmem>>, vector<1x8x128xf32>
    %522 = vector.shape_cast %521 : vector<1x8x128xf32> to vector<8x128xf32>
    %c127_i32_236 = arith.constant 127 : i32
    %523 = tpu.dynamic_rotate %507 by %c127_i32_236 dim 1 : vector<8x128xf32>, i32 -> vector<8x128xf32>
    %c1_i32_237 = arith.constant 1 : i32
    %524 = tpu.dynamic_rotate %507 by %c1_i32_237 dim 1 : vector<8x128xf32>, i32 -> vector<8x128xf32>
    %c127_i32_238 = arith.constant 127 : i32
    %525 = tpu.dynamic_rotate %514 by %c127_i32_238 dim 1 : vector<8x128xf32>, i32 -> vector<8x128xf32>
    %c1_i32_239 = arith.constant 1 : i32
    %526 = tpu.dynamic_rotate %514 by %c1_i32_239 dim 1 : vector<8x128xf32>, i32 -> vector<8x128xf32>
    %527 = arith.select %31, %523, %524 : vector<8x128xi1>, vector<8x128xf32>
    %528 = arith.select %31, %525, %526 : vector<8x128xi1>, vector<8x128xf32>
    %529 = arith.mulf %516, %507 : vector<8x128xf32>
    %530 = arith.mulf %518, %514 : vector<8x128xf32>
    %531 = arith.subf %529, %530 : vector<8x128xf32>
    %532 = arith.mulf %520, %527 : vector<8x128xf32>
    %533 = arith.addf %531, %532 : vector<8x128xf32>
    %534 = arith.mulf %522, %528 : vector<8x128xf32>
    %535 = arith.subf %533, %534 : vector<8x128xf32>
    %536 = arith.mulf %516, %514 : vector<8x128xf32>
    %537 = arith.mulf %518, %507 : vector<8x128xf32>
    %538 = arith.addf %536, %537 : vector<8x128xf32>
    %539 = arith.mulf %520, %528 : vector<8x128xf32>
    %540 = arith.addf %538, %539 : vector<8x128xf32>
    %541 = arith.mulf %522, %527 : vector<8x128xf32>
    %542 = arith.addf %540, %541 : vector<8x128xf32>
    %c96_i32_240 = arith.constant 96 : i32
    %543 = tpu.dynamic_rotate %535 by %c96_i32_240 dim 1 : vector<8x128xf32>, i32 -> vector<8x128xf32>
    %c32_i32_241 = arith.constant 32 : i32
    %544 = tpu.dynamic_rotate %535 by %c32_i32_241 dim 1 : vector<8x128xf32>, i32 -> vector<8x128xf32>
    %c96_i32_242 = arith.constant 96 : i32
    %545 = tpu.dynamic_rotate %542 by %c96_i32_242 dim 1 : vector<8x128xf32>, i32 -> vector<8x128xf32>
    %c32_i32_243 = arith.constant 32 : i32
    %546 = tpu.dynamic_rotate %542 by %c32_i32_243 dim 1 : vector<8x128xf32>, i32 -> vector<8x128xf32>
    %547 = arith.select %11, %543, %544 : vector<8x128xi1>, vector<8x128xf32>
    %548 = arith.select %11, %545, %546 : vector<8x128xi1>, vector<8x128xf32>
    %549 = arith.select %3, %535, %547 : vector<8x128xi1>, vector<8x128xf32>
    %550 = arith.select %3, %542, %548 : vector<8x128xi1>, vector<8x128xf32>
    %c112_i32_244 = arith.constant 112 : i32
    %551 = tpu.dynamic_rotate %549 by %c112_i32_244 dim 1 : vector<8x128xf32>, i32 -> vector<8x128xf32>
    %c16_i32_245 = arith.constant 16 : i32
    %552 = tpu.dynamic_rotate %549 by %c16_i32_245 dim 1 : vector<8x128xf32>, i32 -> vector<8x128xf32>
    %c112_i32_246 = arith.constant 112 : i32
    %553 = tpu.dynamic_rotate %550 by %c112_i32_246 dim 1 : vector<8x128xf32>, i32 -> vector<8x128xf32>
    %c16_i32_247 = arith.constant 16 : i32
    %554 = tpu.dynamic_rotate %550 by %c16_i32_247 dim 1 : vector<8x128xf32>, i32 -> vector<8x128xf32>
    %555 = arith.select %15, %551, %552 : vector<8x128xi1>, vector<8x128xf32>
    %556 = arith.select %15, %553, %554 : vector<8x128xi1>, vector<8x128xf32>
    %557 = arith.select %7, %549, %555 : vector<8x128xi1>, vector<8x128xf32>
    %558 = arith.select %7, %550, %556 : vector<8x128xi1>, vector<8x128xf32>
    %c120_i32_248 = arith.constant 120 : i32
    %559 = tpu.dynamic_rotate %557 by %c120_i32_248 dim 1 : vector<8x128xf32>, i32 -> vector<8x128xf32>
    %c8_i32_249 = arith.constant 8 : i32
    %560 = tpu.dynamic_rotate %557 by %c8_i32_249 dim 1 : vector<8x128xf32>, i32 -> vector<8x128xf32>
    %c120_i32_250 = arith.constant 120 : i32
    %561 = tpu.dynamic_rotate %558 by %c120_i32_250 dim 1 : vector<8x128xf32>, i32 -> vector<8x128xf32>
    %c8_i32_251 = arith.constant 8 : i32
    %562 = tpu.dynamic_rotate %558 by %c8_i32_251 dim 1 : vector<8x128xf32>, i32 -> vector<8x128xf32>
    %563 = arith.select %19, %559, %560 : vector<8x128xi1>, vector<8x128xf32>
    %564 = arith.select %19, %561, %562 : vector<8x128xi1>, vector<8x128xf32>
    %565 = arith.select %11, %557, %563 : vector<8x128xi1>, vector<8x128xf32>
    %566 = arith.select %11, %558, %564 : vector<8x128xi1>, vector<8x128xf32>
    %c124_i32_252 = arith.constant 124 : i32
    %567 = tpu.dynamic_rotate %565 by %c124_i32_252 dim 1 : vector<8x128xf32>, i32 -> vector<8x128xf32>
    %c4_i32_253 = arith.constant 4 : i32
    %568 = tpu.dynamic_rotate %565 by %c4_i32_253 dim 1 : vector<8x128xf32>, i32 -> vector<8x128xf32>
    %c124_i32_254 = arith.constant 124 : i32
    %569 = tpu.dynamic_rotate %566 by %c124_i32_254 dim 1 : vector<8x128xf32>, i32 -> vector<8x128xf32>
    %c4_i32_255 = arith.constant 4 : i32
    %570 = tpu.dynamic_rotate %566 by %c4_i32_255 dim 1 : vector<8x128xf32>, i32 -> vector<8x128xf32>
    %571 = arith.select %23, %567, %568 : vector<8x128xi1>, vector<8x128xf32>
    %572 = arith.select %23, %569, %570 : vector<8x128xi1>, vector<8x128xf32>
    %573 = arith.select %15, %565, %571 : vector<8x128xi1>, vector<8x128xf32>
    %574 = arith.select %15, %566, %572 : vector<8x128xi1>, vector<8x128xf32>
    %c126_i32_256 = arith.constant 126 : i32
    %575 = tpu.dynamic_rotate %573 by %c126_i32_256 dim 1 : vector<8x128xf32>, i32 -> vector<8x128xf32>
    %c2_i32_257 = arith.constant 2 : i32
    %576 = tpu.dynamic_rotate %573 by %c2_i32_257 dim 1 : vector<8x128xf32>, i32 -> vector<8x128xf32>
    %c126_i32_258 = arith.constant 126 : i32
    %577 = tpu.dynamic_rotate %574 by %c126_i32_258 dim 1 : vector<8x128xf32>, i32 -> vector<8x128xf32>
    %c2_i32_259 = arith.constant 2 : i32
    %578 = tpu.dynamic_rotate %574 by %c2_i32_259 dim 1 : vector<8x128xf32>, i32 -> vector<8x128xf32>
    %579 = arith.select %27, %575, %576 : vector<8x128xi1>, vector<8x128xf32>
    %580 = arith.select %27, %577, %578 : vector<8x128xi1>, vector<8x128xf32>
    %581 = arith.select %19, %573, %579 : vector<8x128xi1>, vector<8x128xf32>
    %582 = arith.select %19, %574, %580 : vector<8x128xi1>, vector<8x128xf32>
    %c127_i32_260 = arith.constant 127 : i32
    %583 = tpu.dynamic_rotate %581 by %c127_i32_260 dim 1 : vector<8x128xf32>, i32 -> vector<8x128xf32>
    %c1_i32_261 = arith.constant 1 : i32
    %584 = tpu.dynamic_rotate %581 by %c1_i32_261 dim 1 : vector<8x128xf32>, i32 -> vector<8x128xf32>
    %c127_i32_262 = arith.constant 127 : i32
    %585 = tpu.dynamic_rotate %582 by %c127_i32_262 dim 1 : vector<8x128xf32>, i32 -> vector<8x128xf32>
    %c1_i32_263 = arith.constant 1 : i32
    %586 = tpu.dynamic_rotate %582 by %c1_i32_263 dim 1 : vector<8x128xf32>, i32 -> vector<8x128xf32>
    %587 = arith.select %31, %583, %584 : vector<8x128xi1>, vector<8x128xf32>
    %588 = arith.select %31, %585, %586 : vector<8x128xi1>, vector<8x128xf32>
    %589 = arith.select %23, %581, %587 : vector<8x128xi1>, vector<8x128xf32>
    %590 = arith.select %23, %582, %588 : vector<8x128xi1>, vector<8x128xf32>
    %c4_i32_264 = arith.constant 4 : i32
    %591 = tpu.dynamic_rotate %589 by %c4_i32_264 dim 0 : vector<8x128xf32>, i32 -> vector<8x128xf32>
    %c4_i32_265 = arith.constant 4 : i32
    %592 = tpu.dynamic_rotate %590 by %c4_i32_265 dim 0 : vector<8x128xf32>, i32 -> vector<8x128xf32>
    %593 = arith.select %27, %589, %591 : vector<8x128xi1>, vector<8x128xf32>
    %594 = arith.select %27, %590, %592 : vector<8x128xi1>, vector<8x128xf32>
    %c64_i32_266 = arith.constant 64 : i32
    %595 = tpu.dynamic_rotate %593 by %c64_i32_266 dim 1 : vector<8x128xf32>, i32 -> vector<8x128xf32>
    %c64_i32_267 = arith.constant 64 : i32
    %596 = tpu.dynamic_rotate %593 by %c64_i32_267 dim 1 : vector<8x128xf32>, i32 -> vector<8x128xf32>
    %c64_i32_268 = arith.constant 64 : i32
    %597 = tpu.dynamic_rotate %594 by %c64_i32_268 dim 1 : vector<8x128xf32>, i32 -> vector<8x128xf32>
    %c64_i32_269 = arith.constant 64 : i32
    %598 = tpu.dynamic_rotate %594 by %c64_i32_269 dim 1 : vector<8x128xf32>, i32 -> vector<8x128xf32>
    %599 = arith.select %7, %595, %596 : vector<8x128xi1>, vector<8x128xf32>
    %600 = arith.select %7, %597, %598 : vector<8x128xi1>, vector<8x128xf32>
    %601 = arith.select %31, %593, %599 : vector<8x128xi1>, vector<8x128xf32>
    %602 = arith.select %31, %594, %600 : vector<8x128xi1>, vector<8x128xf32>
    %c64 = arith.constant 64 : index
    %c0_270 = arith.constant 0 : index
    %c0_271 = arith.constant 0 : index
    %603 = vector.load %arg0[%c64, %c0_270, %c0_271] : memref<192x8x128xf32, #tpu.memory_space<vmem>>, vector<1x8x128xf32>
    %604 = vector.shape_cast %603 : vector<1x8x128xf32> to vector<8x128xf32>
    %c65 = arith.constant 65 : index
    %c0_272 = arith.constant 0 : index
    %c0_273 = arith.constant 0 : index
    %605 = vector.load %arg0[%c65, %c0_272, %c0_273] : memref<192x8x128xf32, #tpu.memory_space<vmem>>, vector<1x8x128xf32>
    %606 = vector.shape_cast %605 : vector<1x8x128xf32> to vector<8x128xf32>
    %c66 = arith.constant 66 : index
    %c0_274 = arith.constant 0 : index
    %c0_275 = arith.constant 0 : index
    %607 = vector.load %arg0[%c66, %c0_274, %c0_275] : memref<192x8x128xf32, #tpu.memory_space<vmem>>, vector<1x8x128xf32>
    %608 = vector.shape_cast %607 : vector<1x8x128xf32> to vector<8x128xf32>
    %c67 = arith.constant 67 : index
    %c0_276 = arith.constant 0 : index
    %c0_277 = arith.constant 0 : index
    %609 = vector.load %arg0[%c67, %c0_276, %c0_277] : memref<192x8x128xf32, #tpu.memory_space<vmem>>, vector<1x8x128xf32>
    %610 = vector.shape_cast %609 : vector<1x8x128xf32> to vector<8x128xf32>
    %c4_i32_278 = arith.constant 4 : i32
    %611 = tpu.dynamic_rotate %601 by %c4_i32_278 dim 0 : vector<8x128xf32>, i32 -> vector<8x128xf32>
    %c4_i32_279 = arith.constant 4 : i32
    %612 = tpu.dynamic_rotate %602 by %c4_i32_279 dim 0 : vector<8x128xf32>, i32 -> vector<8x128xf32>
    %613 = arith.mulf %604, %601 : vector<8x128xf32>
    %614 = arith.mulf %606, %602 : vector<8x128xf32>
    %615 = arith.subf %613, %614 : vector<8x128xf32>
    %616 = arith.mulf %608, %611 : vector<8x128xf32>
    %617 = arith.addf %615, %616 : vector<8x128xf32>
    %618 = arith.mulf %610, %612 : vector<8x128xf32>
    %619 = arith.subf %617, %618 : vector<8x128xf32>
    %620 = arith.mulf %604, %602 : vector<8x128xf32>
    %621 = arith.mulf %606, %601 : vector<8x128xf32>
    %622 = arith.addf %620, %621 : vector<8x128xf32>
    %623 = arith.mulf %608, %612 : vector<8x128xf32>
    %624 = arith.addf %622, %623 : vector<8x128xf32>
    %625 = arith.mulf %610, %611 : vector<8x128xf32>
    %626 = arith.addf %624, %625 : vector<8x128xf32>
    %c68 = arith.constant 68 : index
    %c0_280 = arith.constant 0 : index
    %c0_281 = arith.constant 0 : index
    %627 = vector.load %arg0[%c68, %c0_280, %c0_281] : memref<192x8x128xf32, #tpu.memory_space<vmem>>, vector<1x8x128xf32>
    %628 = vector.shape_cast %627 : vector<1x8x128xf32> to vector<8x128xf32>
    %c69 = arith.constant 69 : index
    %c0_282 = arith.constant 0 : index
    %c0_283 = arith.constant 0 : index
    %629 = vector.load %arg0[%c69, %c0_282, %c0_283] : memref<192x8x128xf32, #tpu.memory_space<vmem>>, vector<1x8x128xf32>
    %630 = vector.shape_cast %629 : vector<1x8x128xf32> to vector<8x128xf32>
    %c70 = arith.constant 70 : index
    %c0_284 = arith.constant 0 : index
    %c0_285 = arith.constant 0 : index
    %631 = vector.load %arg0[%c70, %c0_284, %c0_285] : memref<192x8x128xf32, #tpu.memory_space<vmem>>, vector<1x8x128xf32>
    %632 = vector.shape_cast %631 : vector<1x8x128xf32> to vector<8x128xf32>
    %c71 = arith.constant 71 : index
    %c0_286 = arith.constant 0 : index
    %c0_287 = arith.constant 0 : index
    %633 = vector.load %arg0[%c71, %c0_286, %c0_287] : memref<192x8x128xf32, #tpu.memory_space<vmem>>, vector<1x8x128xf32>
    %634 = vector.shape_cast %633 : vector<1x8x128xf32> to vector<8x128xf32>
    %c64_i32_288 = arith.constant 64 : i32
    %635 = tpu.dynamic_rotate %619 by %c64_i32_288 dim 1 : vector<8x128xf32>, i32 -> vector<8x128xf32>
    %c64_i32_289 = arith.constant 64 : i32
    %636 = tpu.dynamic_rotate %619 by %c64_i32_289 dim 1 : vector<8x128xf32>, i32 -> vector<8x128xf32>
    %c64_i32_290 = arith.constant 64 : i32
    %637 = tpu.dynamic_rotate %626 by %c64_i32_290 dim 1 : vector<8x128xf32>, i32 -> vector<8x128xf32>
    %c64_i32_291 = arith.constant 64 : i32
    %638 = tpu.dynamic_rotate %626 by %c64_i32_291 dim 1 : vector<8x128xf32>, i32 -> vector<8x128xf32>
    %639 = arith.select %7, %635, %636 : vector<8x128xi1>, vector<8x128xf32>
    %640 = arith.select %7, %637, %638 : vector<8x128xi1>, vector<8x128xf32>
    %641 = arith.mulf %628, %619 : vector<8x128xf32>
    %642 = arith.mulf %630, %626 : vector<8x128xf32>
    %643 = arith.subf %641, %642 : vector<8x128xf32>
    %644 = arith.mulf %632, %639 : vector<8x128xf32>
    %645 = arith.addf %643, %644 : vector<8x128xf32>
    %646 = arith.mulf %634, %640 : vector<8x128xf32>
    %647 = arith.subf %645, %646 : vector<8x128xf32>
    %648 = arith.mulf %628, %626 : vector<8x128xf32>
    %649 = arith.mulf %630, %619 : vector<8x128xf32>
    %650 = arith.addf %648, %649 : vector<8x128xf32>
    %651 = arith.mulf %632, %640 : vector<8x128xf32>
    %652 = arith.addf %650, %651 : vector<8x128xf32>
    %653 = arith.mulf %634, %639 : vector<8x128xf32>
    %654 = arith.addf %652, %653 : vector<8x128xf32>
    %c72 = arith.constant 72 : index
    %c0_292 = arith.constant 0 : index
    %c0_293 = arith.constant 0 : index
    %655 = vector.load %arg0[%c72, %c0_292, %c0_293] : memref<192x8x128xf32, #tpu.memory_space<vmem>>, vector<1x8x128xf32>
    %656 = vector.shape_cast %655 : vector<1x8x128xf32> to vector<8x128xf32>
    %c73 = arith.constant 73 : index
    %c0_294 = arith.constant 0 : index
    %c0_295 = arith.constant 0 : index
    %657 = vector.load %arg0[%c73, %c0_294, %c0_295] : memref<192x8x128xf32, #tpu.memory_space<vmem>>, vector<1x8x128xf32>
    %658 = vector.shape_cast %657 : vector<1x8x128xf32> to vector<8x128xf32>
    %c74 = arith.constant 74 : index
    %c0_296 = arith.constant 0 : index
    %c0_297 = arith.constant 0 : index
    %659 = vector.load %arg0[%c74, %c0_296, %c0_297] : memref<192x8x128xf32, #tpu.memory_space<vmem>>, vector<1x8x128xf32>
    %660 = vector.shape_cast %659 : vector<1x8x128xf32> to vector<8x128xf32>
    %c75 = arith.constant 75 : index
    %c0_298 = arith.constant 0 : index
    %c0_299 = arith.constant 0 : index
    %661 = vector.load %arg0[%c75, %c0_298, %c0_299] : memref<192x8x128xf32, #tpu.memory_space<vmem>>, vector<1x8x128xf32>
    %662 = vector.shape_cast %661 : vector<1x8x128xf32> to vector<8x128xf32>
    %c96_i32_300 = arith.constant 96 : i32
    %663 = tpu.dynamic_rotate %647 by %c96_i32_300 dim 1 : vector<8x128xf32>, i32 -> vector<8x128xf32>
    %c32_i32_301 = arith.constant 32 : i32
    %664 = tpu.dynamic_rotate %647 by %c32_i32_301 dim 1 : vector<8x128xf32>, i32 -> vector<8x128xf32>
    %c96_i32_302 = arith.constant 96 : i32
    %665 = tpu.dynamic_rotate %654 by %c96_i32_302 dim 1 : vector<8x128xf32>, i32 -> vector<8x128xf32>
    %c32_i32_303 = arith.constant 32 : i32
    %666 = tpu.dynamic_rotate %654 by %c32_i32_303 dim 1 : vector<8x128xf32>, i32 -> vector<8x128xf32>
    %667 = arith.select %11, %663, %664 : vector<8x128xi1>, vector<8x128xf32>
    %668 = arith.select %11, %665, %666 : vector<8x128xi1>, vector<8x128xf32>
    %669 = arith.mulf %656, %647 : vector<8x128xf32>
    %670 = arith.mulf %658, %654 : vector<8x128xf32>
    %671 = arith.subf %669, %670 : vector<8x128xf32>
    %672 = arith.mulf %660, %667 : vector<8x128xf32>
    %673 = arith.addf %671, %672 : vector<8x128xf32>
    %674 = arith.mulf %662, %668 : vector<8x128xf32>
    %675 = arith.subf %673, %674 : vector<8x128xf32>
    %676 = arith.mulf %656, %654 : vector<8x128xf32>
    %677 = arith.mulf %658, %647 : vector<8x128xf32>
    %678 = arith.addf %676, %677 : vector<8x128xf32>
    %679 = arith.mulf %660, %668 : vector<8x128xf32>
    %680 = arith.addf %678, %679 : vector<8x128xf32>
    %681 = arith.mulf %662, %667 : vector<8x128xf32>
    %682 = arith.addf %680, %681 : vector<8x128xf32>
    %c76 = arith.constant 76 : index
    %c0_304 = arith.constant 0 : index
    %c0_305 = arith.constant 0 : index
    %683 = vector.load %arg0[%c76, %c0_304, %c0_305] : memref<192x8x128xf32, #tpu.memory_space<vmem>>, vector<1x8x128xf32>
    %684 = vector.shape_cast %683 : vector<1x8x128xf32> to vector<8x128xf32>
    %c77 = arith.constant 77 : index
    %c0_306 = arith.constant 0 : index
    %c0_307 = arith.constant 0 : index
    %685 = vector.load %arg0[%c77, %c0_306, %c0_307] : memref<192x8x128xf32, #tpu.memory_space<vmem>>, vector<1x8x128xf32>
    %686 = vector.shape_cast %685 : vector<1x8x128xf32> to vector<8x128xf32>
    %c78 = arith.constant 78 : index
    %c0_308 = arith.constant 0 : index
    %c0_309 = arith.constant 0 : index
    %687 = vector.load %arg0[%c78, %c0_308, %c0_309] : memref<192x8x128xf32, #tpu.memory_space<vmem>>, vector<1x8x128xf32>
    %688 = vector.shape_cast %687 : vector<1x8x128xf32> to vector<8x128xf32>
    %c79 = arith.constant 79 : index
    %c0_310 = arith.constant 0 : index
    %c0_311 = arith.constant 0 : index
    %689 = vector.load %arg0[%c79, %c0_310, %c0_311] : memref<192x8x128xf32, #tpu.memory_space<vmem>>, vector<1x8x128xf32>
    %690 = vector.shape_cast %689 : vector<1x8x128xf32> to vector<8x128xf32>
    %c112_i32_312 = arith.constant 112 : i32
    %691 = tpu.dynamic_rotate %675 by %c112_i32_312 dim 1 : vector<8x128xf32>, i32 -> vector<8x128xf32>
    %c16_i32_313 = arith.constant 16 : i32
    %692 = tpu.dynamic_rotate %675 by %c16_i32_313 dim 1 : vector<8x128xf32>, i32 -> vector<8x128xf32>
    %c112_i32_314 = arith.constant 112 : i32
    %693 = tpu.dynamic_rotate %682 by %c112_i32_314 dim 1 : vector<8x128xf32>, i32 -> vector<8x128xf32>
    %c16_i32_315 = arith.constant 16 : i32
    %694 = tpu.dynamic_rotate %682 by %c16_i32_315 dim 1 : vector<8x128xf32>, i32 -> vector<8x128xf32>
    %695 = arith.select %15, %691, %692 : vector<8x128xi1>, vector<8x128xf32>
    %696 = arith.select %15, %693, %694 : vector<8x128xi1>, vector<8x128xf32>
    %697 = arith.mulf %684, %675 : vector<8x128xf32>
    %698 = arith.mulf %686, %682 : vector<8x128xf32>
    %699 = arith.subf %697, %698 : vector<8x128xf32>
    %700 = arith.mulf %688, %695 : vector<8x128xf32>
    %701 = arith.addf %699, %700 : vector<8x128xf32>
    %702 = arith.mulf %690, %696 : vector<8x128xf32>
    %703 = arith.subf %701, %702 : vector<8x128xf32>
    %704 = arith.mulf %684, %682 : vector<8x128xf32>
    %705 = arith.mulf %686, %675 : vector<8x128xf32>
    %706 = arith.addf %704, %705 : vector<8x128xf32>
    %707 = arith.mulf %688, %696 : vector<8x128xf32>
    %708 = arith.addf %706, %707 : vector<8x128xf32>
    %709 = arith.mulf %690, %695 : vector<8x128xf32>
    %710 = arith.addf %708, %709 : vector<8x128xf32>
    %c80 = arith.constant 80 : index
    %c0_316 = arith.constant 0 : index
    %c0_317 = arith.constant 0 : index
    %711 = vector.load %arg0[%c80, %c0_316, %c0_317] : memref<192x8x128xf32, #tpu.memory_space<vmem>>, vector<1x8x128xf32>
    %712 = vector.shape_cast %711 : vector<1x8x128xf32> to vector<8x128xf32>
    %c81 = arith.constant 81 : index
    %c0_318 = arith.constant 0 : index
    %c0_319 = arith.constant 0 : index
    %713 = vector.load %arg0[%c81, %c0_318, %c0_319] : memref<192x8x128xf32, #tpu.memory_space<vmem>>, vector<1x8x128xf32>
    %714 = vector.shape_cast %713 : vector<1x8x128xf32> to vector<8x128xf32>
    %c82 = arith.constant 82 : index
    %c0_320 = arith.constant 0 : index
    %c0_321 = arith.constant 0 : index
    %715 = vector.load %arg0[%c82, %c0_320, %c0_321] : memref<192x8x128xf32, #tpu.memory_space<vmem>>, vector<1x8x128xf32>
    %716 = vector.shape_cast %715 : vector<1x8x128xf32> to vector<8x128xf32>
    %c83 = arith.constant 83 : index
    %c0_322 = arith.constant 0 : index
    %c0_323 = arith.constant 0 : index
    %717 = vector.load %arg0[%c83, %c0_322, %c0_323] : memref<192x8x128xf32, #tpu.memory_space<vmem>>, vector<1x8x128xf32>
    %718 = vector.shape_cast %717 : vector<1x8x128xf32> to vector<8x128xf32>
    %c120_i32_324 = arith.constant 120 : i32
    %719 = tpu.dynamic_rotate %703 by %c120_i32_324 dim 1 : vector<8x128xf32>, i32 -> vector<8x128xf32>
    %c8_i32_325 = arith.constant 8 : i32
    %720 = tpu.dynamic_rotate %703 by %c8_i32_325 dim 1 : vector<8x128xf32>, i32 -> vector<8x128xf32>
    %c120_i32_326 = arith.constant 120 : i32
    %721 = tpu.dynamic_rotate %710 by %c120_i32_326 dim 1 : vector<8x128xf32>, i32 -> vector<8x128xf32>
    %c8_i32_327 = arith.constant 8 : i32
    %722 = tpu.dynamic_rotate %710 by %c8_i32_327 dim 1 : vector<8x128xf32>, i32 -> vector<8x128xf32>
    %723 = arith.select %19, %719, %720 : vector<8x128xi1>, vector<8x128xf32>
    %724 = arith.select %19, %721, %722 : vector<8x128xi1>, vector<8x128xf32>
    %725 = arith.mulf %712, %703 : vector<8x128xf32>
    %726 = arith.mulf %714, %710 : vector<8x128xf32>
    %727 = arith.subf %725, %726 : vector<8x128xf32>
    %728 = arith.mulf %716, %723 : vector<8x128xf32>
    %729 = arith.addf %727, %728 : vector<8x128xf32>
    %730 = arith.mulf %718, %724 : vector<8x128xf32>
    %731 = arith.subf %729, %730 : vector<8x128xf32>
    %732 = arith.mulf %712, %710 : vector<8x128xf32>
    %733 = arith.mulf %714, %703 : vector<8x128xf32>
    %734 = arith.addf %732, %733 : vector<8x128xf32>
    %735 = arith.mulf %716, %724 : vector<8x128xf32>
    %736 = arith.addf %734, %735 : vector<8x128xf32>
    %737 = arith.mulf %718, %723 : vector<8x128xf32>
    %738 = arith.addf %736, %737 : vector<8x128xf32>
    %c84 = arith.constant 84 : index
    %c0_328 = arith.constant 0 : index
    %c0_329 = arith.constant 0 : index
    %739 = vector.load %arg0[%c84, %c0_328, %c0_329] : memref<192x8x128xf32, #tpu.memory_space<vmem>>, vector<1x8x128xf32>
    %740 = vector.shape_cast %739 : vector<1x8x128xf32> to vector<8x128xf32>
    %c85 = arith.constant 85 : index
    %c0_330 = arith.constant 0 : index
    %c0_331 = arith.constant 0 : index
    %741 = vector.load %arg0[%c85, %c0_330, %c0_331] : memref<192x8x128xf32, #tpu.memory_space<vmem>>, vector<1x8x128xf32>
    %742 = vector.shape_cast %741 : vector<1x8x128xf32> to vector<8x128xf32>
    %c86 = arith.constant 86 : index
    %c0_332 = arith.constant 0 : index
    %c0_333 = arith.constant 0 : index
    %743 = vector.load %arg0[%c86, %c0_332, %c0_333] : memref<192x8x128xf32, #tpu.memory_space<vmem>>, vector<1x8x128xf32>
    %744 = vector.shape_cast %743 : vector<1x8x128xf32> to vector<8x128xf32>
    %c87 = arith.constant 87 : index
    %c0_334 = arith.constant 0 : index
    %c0_335 = arith.constant 0 : index
    %745 = vector.load %arg0[%c87, %c0_334, %c0_335] : memref<192x8x128xf32, #tpu.memory_space<vmem>>, vector<1x8x128xf32>
    %746 = vector.shape_cast %745 : vector<1x8x128xf32> to vector<8x128xf32>
    %c124_i32_336 = arith.constant 124 : i32
    %747 = tpu.dynamic_rotate %731 by %c124_i32_336 dim 1 : vector<8x128xf32>, i32 -> vector<8x128xf32>
    %c4_i32_337 = arith.constant 4 : i32
    %748 = tpu.dynamic_rotate %731 by %c4_i32_337 dim 1 : vector<8x128xf32>, i32 -> vector<8x128xf32>
    %c124_i32_338 = arith.constant 124 : i32
    %749 = tpu.dynamic_rotate %738 by %c124_i32_338 dim 1 : vector<8x128xf32>, i32 -> vector<8x128xf32>
    %c4_i32_339 = arith.constant 4 : i32
    %750 = tpu.dynamic_rotate %738 by %c4_i32_339 dim 1 : vector<8x128xf32>, i32 -> vector<8x128xf32>
    %751 = arith.select %23, %747, %748 : vector<8x128xi1>, vector<8x128xf32>
    %752 = arith.select %23, %749, %750 : vector<8x128xi1>, vector<8x128xf32>
    %753 = arith.mulf %740, %731 : vector<8x128xf32>
    %754 = arith.mulf %742, %738 : vector<8x128xf32>
    %755 = arith.subf %753, %754 : vector<8x128xf32>
    %756 = arith.mulf %744, %751 : vector<8x128xf32>
    %757 = arith.addf %755, %756 : vector<8x128xf32>
    %758 = arith.mulf %746, %752 : vector<8x128xf32>
    %759 = arith.subf %757, %758 : vector<8x128xf32>
    %760 = arith.mulf %740, %738 : vector<8x128xf32>
    %761 = arith.mulf %742, %731 : vector<8x128xf32>
    %762 = arith.addf %760, %761 : vector<8x128xf32>
    %763 = arith.mulf %744, %752 : vector<8x128xf32>
    %764 = arith.addf %762, %763 : vector<8x128xf32>
    %765 = arith.mulf %746, %751 : vector<8x128xf32>
    %766 = arith.addf %764, %765 : vector<8x128xf32>
    %c88 = arith.constant 88 : index
    %c0_340 = arith.constant 0 : index
    %c0_341 = arith.constant 0 : index
    %767 = vector.load %arg0[%c88, %c0_340, %c0_341] : memref<192x8x128xf32, #tpu.memory_space<vmem>>, vector<1x8x128xf32>
    %768 = vector.shape_cast %767 : vector<1x8x128xf32> to vector<8x128xf32>
    %c89 = arith.constant 89 : index
    %c0_342 = arith.constant 0 : index
    %c0_343 = arith.constant 0 : index
    %769 = vector.load %arg0[%c89, %c0_342, %c0_343] : memref<192x8x128xf32, #tpu.memory_space<vmem>>, vector<1x8x128xf32>
    %770 = vector.shape_cast %769 : vector<1x8x128xf32> to vector<8x128xf32>
    %c90 = arith.constant 90 : index
    %c0_344 = arith.constant 0 : index
    %c0_345 = arith.constant 0 : index
    %771 = vector.load %arg0[%c90, %c0_344, %c0_345] : memref<192x8x128xf32, #tpu.memory_space<vmem>>, vector<1x8x128xf32>
    %772 = vector.shape_cast %771 : vector<1x8x128xf32> to vector<8x128xf32>
    %c91 = arith.constant 91 : index
    %c0_346 = arith.constant 0 : index
    %c0_347 = arith.constant 0 : index
    %773 = vector.load %arg0[%c91, %c0_346, %c0_347] : memref<192x8x128xf32, #tpu.memory_space<vmem>>, vector<1x8x128xf32>
    %774 = vector.shape_cast %773 : vector<1x8x128xf32> to vector<8x128xf32>
    %c126_i32_348 = arith.constant 126 : i32
    %775 = tpu.dynamic_rotate %759 by %c126_i32_348 dim 1 : vector<8x128xf32>, i32 -> vector<8x128xf32>
    %c2_i32_349 = arith.constant 2 : i32
    %776 = tpu.dynamic_rotate %759 by %c2_i32_349 dim 1 : vector<8x128xf32>, i32 -> vector<8x128xf32>
    %c126_i32_350 = arith.constant 126 : i32
    %777 = tpu.dynamic_rotate %766 by %c126_i32_350 dim 1 : vector<8x128xf32>, i32 -> vector<8x128xf32>
    %c2_i32_351 = arith.constant 2 : i32
    %778 = tpu.dynamic_rotate %766 by %c2_i32_351 dim 1 : vector<8x128xf32>, i32 -> vector<8x128xf32>
    %779 = arith.select %27, %775, %776 : vector<8x128xi1>, vector<8x128xf32>
    %780 = arith.select %27, %777, %778 : vector<8x128xi1>, vector<8x128xf32>
    %781 = arith.mulf %768, %759 : vector<8x128xf32>
    %782 = arith.mulf %770, %766 : vector<8x128xf32>
    %783 = arith.subf %781, %782 : vector<8x128xf32>
    %784 = arith.mulf %772, %779 : vector<8x128xf32>
    %785 = arith.addf %783, %784 : vector<8x128xf32>
    %786 = arith.mulf %774, %780 : vector<8x128xf32>
    %787 = arith.subf %785, %786 : vector<8x128xf32>
    %788 = arith.mulf %768, %766 : vector<8x128xf32>
    %789 = arith.mulf %770, %759 : vector<8x128xf32>
    %790 = arith.addf %788, %789 : vector<8x128xf32>
    %791 = arith.mulf %772, %780 : vector<8x128xf32>
    %792 = arith.addf %790, %791 : vector<8x128xf32>
    %793 = arith.mulf %774, %779 : vector<8x128xf32>
    %794 = arith.addf %792, %793 : vector<8x128xf32>
    %c92 = arith.constant 92 : index
    %c0_352 = arith.constant 0 : index
    %c0_353 = arith.constant 0 : index
    %795 = vector.load %arg0[%c92, %c0_352, %c0_353] : memref<192x8x128xf32, #tpu.memory_space<vmem>>, vector<1x8x128xf32>
    %796 = vector.shape_cast %795 : vector<1x8x128xf32> to vector<8x128xf32>
    %c93 = arith.constant 93 : index
    %c0_354 = arith.constant 0 : index
    %c0_355 = arith.constant 0 : index
    %797 = vector.load %arg0[%c93, %c0_354, %c0_355] : memref<192x8x128xf32, #tpu.memory_space<vmem>>, vector<1x8x128xf32>
    %798 = vector.shape_cast %797 : vector<1x8x128xf32> to vector<8x128xf32>
    %c94 = arith.constant 94 : index
    %c0_356 = arith.constant 0 : index
    %c0_357 = arith.constant 0 : index
    %799 = vector.load %arg0[%c94, %c0_356, %c0_357] : memref<192x8x128xf32, #tpu.memory_space<vmem>>, vector<1x8x128xf32>
    %800 = vector.shape_cast %799 : vector<1x8x128xf32> to vector<8x128xf32>
    %c95 = arith.constant 95 : index
    %c0_358 = arith.constant 0 : index
    %c0_359 = arith.constant 0 : index
    %801 = vector.load %arg0[%c95, %c0_358, %c0_359] : memref<192x8x128xf32, #tpu.memory_space<vmem>>, vector<1x8x128xf32>
    %802 = vector.shape_cast %801 : vector<1x8x128xf32> to vector<8x128xf32>
    %c127_i32_360 = arith.constant 127 : i32
    %803 = tpu.dynamic_rotate %787 by %c127_i32_360 dim 1 : vector<8x128xf32>, i32 -> vector<8x128xf32>
    %c1_i32_361 = arith.constant 1 : i32
    %804 = tpu.dynamic_rotate %787 by %c1_i32_361 dim 1 : vector<8x128xf32>, i32 -> vector<8x128xf32>
    %c127_i32_362 = arith.constant 127 : i32
    %805 = tpu.dynamic_rotate %794 by %c127_i32_362 dim 1 : vector<8x128xf32>, i32 -> vector<8x128xf32>
    %c1_i32_363 = arith.constant 1 : i32
    %806 = tpu.dynamic_rotate %794 by %c1_i32_363 dim 1 : vector<8x128xf32>, i32 -> vector<8x128xf32>
    %807 = arith.select %31, %803, %804 : vector<8x128xi1>, vector<8x128xf32>
    %808 = arith.select %31, %805, %806 : vector<8x128xi1>, vector<8x128xf32>
    %809 = arith.mulf %796, %787 : vector<8x128xf32>
    %810 = arith.mulf %798, %794 : vector<8x128xf32>
    %811 = arith.subf %809, %810 : vector<8x128xf32>
    %812 = arith.mulf %800, %807 : vector<8x128xf32>
    %813 = arith.addf %811, %812 : vector<8x128xf32>
    %814 = arith.mulf %802, %808 : vector<8x128xf32>
    %815 = arith.subf %813, %814 : vector<8x128xf32>
    %816 = arith.mulf %796, %794 : vector<8x128xf32>
    %817 = arith.mulf %798, %787 : vector<8x128xf32>
    %818 = arith.addf %816, %817 : vector<8x128xf32>
    %819 = arith.mulf %800, %808 : vector<8x128xf32>
    %820 = arith.addf %818, %819 : vector<8x128xf32>
    %821 = arith.mulf %802, %807 : vector<8x128xf32>
    %822 = arith.addf %820, %821 : vector<8x128xf32>
    %c112_i32_364 = arith.constant 112 : i32
    %823 = tpu.dynamic_rotate %815 by %c112_i32_364 dim 1 : vector<8x128xf32>, i32 -> vector<8x128xf32>
    %c16_i32_365 = arith.constant 16 : i32
    %824 = tpu.dynamic_rotate %815 by %c16_i32_365 dim 1 : vector<8x128xf32>, i32 -> vector<8x128xf32>
    %c112_i32_366 = arith.constant 112 : i32
    %825 = tpu.dynamic_rotate %822 by %c112_i32_366 dim 1 : vector<8x128xf32>, i32 -> vector<8x128xf32>
    %c16_i32_367 = arith.constant 16 : i32
    %826 = tpu.dynamic_rotate %822 by %c16_i32_367 dim 1 : vector<8x128xf32>, i32 -> vector<8x128xf32>
    %827 = arith.select %15, %823, %824 : vector<8x128xi1>, vector<8x128xf32>
    %828 = arith.select %15, %825, %826 : vector<8x128xi1>, vector<8x128xf32>
    %829 = arith.select %3, %815, %827 : vector<8x128xi1>, vector<8x128xf32>
    %830 = arith.select %3, %822, %828 : vector<8x128xi1>, vector<8x128xf32>
    %c120_i32_368 = arith.constant 120 : i32
    %831 = tpu.dynamic_rotate %829 by %c120_i32_368 dim 1 : vector<8x128xf32>, i32 -> vector<8x128xf32>
    %c8_i32_369 = arith.constant 8 : i32
    %832 = tpu.dynamic_rotate %829 by %c8_i32_369 dim 1 : vector<8x128xf32>, i32 -> vector<8x128xf32>
    %c120_i32_370 = arith.constant 120 : i32
    %833 = tpu.dynamic_rotate %830 by %c120_i32_370 dim 1 : vector<8x128xf32>, i32 -> vector<8x128xf32>
    %c8_i32_371 = arith.constant 8 : i32
    %834 = tpu.dynamic_rotate %830 by %c8_i32_371 dim 1 : vector<8x128xf32>, i32 -> vector<8x128xf32>
    %835 = arith.select %19, %831, %832 : vector<8x128xi1>, vector<8x128xf32>
    %836 = arith.select %19, %833, %834 : vector<8x128xi1>, vector<8x128xf32>
    %837 = arith.select %7, %829, %835 : vector<8x128xi1>, vector<8x128xf32>
    %838 = arith.select %7, %830, %836 : vector<8x128xi1>, vector<8x128xf32>
    %c124_i32_372 = arith.constant 124 : i32
    %839 = tpu.dynamic_rotate %837 by %c124_i32_372 dim 1 : vector<8x128xf32>, i32 -> vector<8x128xf32>
    %c4_i32_373 = arith.constant 4 : i32
    %840 = tpu.dynamic_rotate %837 by %c4_i32_373 dim 1 : vector<8x128xf32>, i32 -> vector<8x128xf32>
    %c124_i32_374 = arith.constant 124 : i32
    %841 = tpu.dynamic_rotate %838 by %c124_i32_374 dim 1 : vector<8x128xf32>, i32 -> vector<8x128xf32>
    %c4_i32_375 = arith.constant 4 : i32
    %842 = tpu.dynamic_rotate %838 by %c4_i32_375 dim 1 : vector<8x128xf32>, i32 -> vector<8x128xf32>
    %843 = arith.select %23, %839, %840 : vector<8x128xi1>, vector<8x128xf32>
    %844 = arith.select %23, %841, %842 : vector<8x128xi1>, vector<8x128xf32>
    %845 = arith.select %11, %837, %843 : vector<8x128xi1>, vector<8x128xf32>
    %846 = arith.select %11, %838, %844 : vector<8x128xi1>, vector<8x128xf32>
    %c126_i32_376 = arith.constant 126 : i32
    %847 = tpu.dynamic_rotate %845 by %c126_i32_376 dim 1 : vector<8x128xf32>, i32 -> vector<8x128xf32>
    %c2_i32_377 = arith.constant 2 : i32
    %848 = tpu.dynamic_rotate %845 by %c2_i32_377 dim 1 : vector<8x128xf32>, i32 -> vector<8x128xf32>
    %c126_i32_378 = arith.constant 126 : i32
    %849 = tpu.dynamic_rotate %846 by %c126_i32_378 dim 1 : vector<8x128xf32>, i32 -> vector<8x128xf32>
    %c2_i32_379 = arith.constant 2 : i32
    %850 = tpu.dynamic_rotate %846 by %c2_i32_379 dim 1 : vector<8x128xf32>, i32 -> vector<8x128xf32>
    %851 = arith.select %27, %847, %848 : vector<8x128xi1>, vector<8x128xf32>
    %852 = arith.select %27, %849, %850 : vector<8x128xi1>, vector<8x128xf32>
    %853 = arith.select %15, %845, %851 : vector<8x128xi1>, vector<8x128xf32>
    %854 = arith.select %15, %846, %852 : vector<8x128xi1>, vector<8x128xf32>
    %c127_i32_380 = arith.constant 127 : i32
    %855 = tpu.dynamic_rotate %853 by %c127_i32_380 dim 1 : vector<8x128xf32>, i32 -> vector<8x128xf32>
    %c1_i32_381 = arith.constant 1 : i32
    %856 = tpu.dynamic_rotate %853 by %c1_i32_381 dim 1 : vector<8x128xf32>, i32 -> vector<8x128xf32>
    %c127_i32_382 = arith.constant 127 : i32
    %857 = tpu.dynamic_rotate %854 by %c127_i32_382 dim 1 : vector<8x128xf32>, i32 -> vector<8x128xf32>
    %c1_i32_383 = arith.constant 1 : i32
    %858 = tpu.dynamic_rotate %854 by %c1_i32_383 dim 1 : vector<8x128xf32>, i32 -> vector<8x128xf32>
    %859 = arith.select %31, %855, %856 : vector<8x128xi1>, vector<8x128xf32>
    %860 = arith.select %31, %857, %858 : vector<8x128xi1>, vector<8x128xf32>
    %861 = arith.select %19, %853, %859 : vector<8x128xi1>, vector<8x128xf32>
    %862 = arith.select %19, %854, %860 : vector<8x128xi1>, vector<8x128xf32>
    %c4_i32_384 = arith.constant 4 : i32
    %863 = tpu.dynamic_rotate %861 by %c4_i32_384 dim 0 : vector<8x128xf32>, i32 -> vector<8x128xf32>
    %c4_i32_385 = arith.constant 4 : i32
    %864 = tpu.dynamic_rotate %862 by %c4_i32_385 dim 0 : vector<8x128xf32>, i32 -> vector<8x128xf32>
    %865 = arith.select %23, %861, %863 : vector<8x128xi1>, vector<8x128xf32>
    %866 = arith.select %23, %862, %864 : vector<8x128xi1>, vector<8x128xf32>
    %c64_i32_386 = arith.constant 64 : i32
    %867 = tpu.dynamic_rotate %865 by %c64_i32_386 dim 1 : vector<8x128xf32>, i32 -> vector<8x128xf32>
    %c64_i32_387 = arith.constant 64 : i32
    %868 = tpu.dynamic_rotate %865 by %c64_i32_387 dim 1 : vector<8x128xf32>, i32 -> vector<8x128xf32>
    %c64_i32_388 = arith.constant 64 : i32
    %869 = tpu.dynamic_rotate %866 by %c64_i32_388 dim 1 : vector<8x128xf32>, i32 -> vector<8x128xf32>
    %c64_i32_389 = arith.constant 64 : i32
    %870 = tpu.dynamic_rotate %866 by %c64_i32_389 dim 1 : vector<8x128xf32>, i32 -> vector<8x128xf32>
    %871 = arith.select %7, %867, %868 : vector<8x128xi1>, vector<8x128xf32>
    %872 = arith.select %7, %869, %870 : vector<8x128xi1>, vector<8x128xf32>
    %873 = arith.select %27, %865, %871 : vector<8x128xi1>, vector<8x128xf32>
    %874 = arith.select %27, %866, %872 : vector<8x128xi1>, vector<8x128xf32>
    %c96_i32_390 = arith.constant 96 : i32
    %875 = tpu.dynamic_rotate %873 by %c96_i32_390 dim 1 : vector<8x128xf32>, i32 -> vector<8x128xf32>
    %c32_i32_391 = arith.constant 32 : i32
    %876 = tpu.dynamic_rotate %873 by %c32_i32_391 dim 1 : vector<8x128xf32>, i32 -> vector<8x128xf32>
    %c96_i32_392 = arith.constant 96 : i32
    %877 = tpu.dynamic_rotate %874 by %c96_i32_392 dim 1 : vector<8x128xf32>, i32 -> vector<8x128xf32>
    %c32_i32_393 = arith.constant 32 : i32
    %878 = tpu.dynamic_rotate %874 by %c32_i32_393 dim 1 : vector<8x128xf32>, i32 -> vector<8x128xf32>
    %879 = arith.select %11, %875, %876 : vector<8x128xi1>, vector<8x128xf32>
    %880 = arith.select %11, %877, %878 : vector<8x128xi1>, vector<8x128xf32>
    %881 = arith.select %31, %873, %879 : vector<8x128xi1>, vector<8x128xf32>
    %882 = arith.select %31, %874, %880 : vector<8x128xi1>, vector<8x128xf32>
    %c96 = arith.constant 96 : index
    %c0_394 = arith.constant 0 : index
    %c0_395 = arith.constant 0 : index
    %883 = vector.load %arg0[%c96, %c0_394, %c0_395] : memref<192x8x128xf32, #tpu.memory_space<vmem>>, vector<1x8x128xf32>
    %884 = vector.shape_cast %883 : vector<1x8x128xf32> to vector<8x128xf32>
    %c97 = arith.constant 97 : index
    %c0_396 = arith.constant 0 : index
    %c0_397 = arith.constant 0 : index
    %885 = vector.load %arg0[%c97, %c0_396, %c0_397] : memref<192x8x128xf32, #tpu.memory_space<vmem>>, vector<1x8x128xf32>
    %886 = vector.shape_cast %885 : vector<1x8x128xf32> to vector<8x128xf32>
    %c98 = arith.constant 98 : index
    %c0_398 = arith.constant 0 : index
    %c0_399 = arith.constant 0 : index
    %887 = vector.load %arg0[%c98, %c0_398, %c0_399] : memref<192x8x128xf32, #tpu.memory_space<vmem>>, vector<1x8x128xf32>
    %888 = vector.shape_cast %887 : vector<1x8x128xf32> to vector<8x128xf32>
    %c99 = arith.constant 99 : index
    %c0_400 = arith.constant 0 : index
    %c0_401 = arith.constant 0 : index
    %889 = vector.load %arg0[%c99, %c0_400, %c0_401] : memref<192x8x128xf32, #tpu.memory_space<vmem>>, vector<1x8x128xf32>
    %890 = vector.shape_cast %889 : vector<1x8x128xf32> to vector<8x128xf32>
    %c4_i32_402 = arith.constant 4 : i32
    %891 = tpu.dynamic_rotate %881 by %c4_i32_402 dim 0 : vector<8x128xf32>, i32 -> vector<8x128xf32>
    %c4_i32_403 = arith.constant 4 : i32
    %892 = tpu.dynamic_rotate %882 by %c4_i32_403 dim 0 : vector<8x128xf32>, i32 -> vector<8x128xf32>
    %893 = arith.mulf %884, %881 : vector<8x128xf32>
    %894 = arith.mulf %886, %882 : vector<8x128xf32>
    %895 = arith.subf %893, %894 : vector<8x128xf32>
    %896 = arith.mulf %888, %891 : vector<8x128xf32>
    %897 = arith.addf %895, %896 : vector<8x128xf32>
    %898 = arith.mulf %890, %892 : vector<8x128xf32>
    %899 = arith.subf %897, %898 : vector<8x128xf32>
    %900 = arith.mulf %884, %882 : vector<8x128xf32>
    %901 = arith.mulf %886, %881 : vector<8x128xf32>
    %902 = arith.addf %900, %901 : vector<8x128xf32>
    %903 = arith.mulf %888, %892 : vector<8x128xf32>
    %904 = arith.addf %902, %903 : vector<8x128xf32>
    %905 = arith.mulf %890, %891 : vector<8x128xf32>
    %906 = arith.addf %904, %905 : vector<8x128xf32>
    %c100 = arith.constant 100 : index
    %c0_404 = arith.constant 0 : index
    %c0_405 = arith.constant 0 : index
    %907 = vector.load %arg0[%c100, %c0_404, %c0_405] : memref<192x8x128xf32, #tpu.memory_space<vmem>>, vector<1x8x128xf32>
    %908 = vector.shape_cast %907 : vector<1x8x128xf32> to vector<8x128xf32>
    %c101 = arith.constant 101 : index
    %c0_406 = arith.constant 0 : index
    %c0_407 = arith.constant 0 : index
    %909 = vector.load %arg0[%c101, %c0_406, %c0_407] : memref<192x8x128xf32, #tpu.memory_space<vmem>>, vector<1x8x128xf32>
    %910 = vector.shape_cast %909 : vector<1x8x128xf32> to vector<8x128xf32>
    %c102 = arith.constant 102 : index
    %c0_408 = arith.constant 0 : index
    %c0_409 = arith.constant 0 : index
    %911 = vector.load %arg0[%c102, %c0_408, %c0_409] : memref<192x8x128xf32, #tpu.memory_space<vmem>>, vector<1x8x128xf32>
    %912 = vector.shape_cast %911 : vector<1x8x128xf32> to vector<8x128xf32>
    %c103 = arith.constant 103 : index
    %c0_410 = arith.constant 0 : index
    %c0_411 = arith.constant 0 : index
    %913 = vector.load %arg0[%c103, %c0_410, %c0_411] : memref<192x8x128xf32, #tpu.memory_space<vmem>>, vector<1x8x128xf32>
    %914 = vector.shape_cast %913 : vector<1x8x128xf32> to vector<8x128xf32>
    %c64_i32_412 = arith.constant 64 : i32
    %915 = tpu.dynamic_rotate %899 by %c64_i32_412 dim 1 : vector<8x128xf32>, i32 -> vector<8x128xf32>
    %c64_i32_413 = arith.constant 64 : i32
    %916 = tpu.dynamic_rotate %899 by %c64_i32_413 dim 1 : vector<8x128xf32>, i32 -> vector<8x128xf32>
    %c64_i32_414 = arith.constant 64 : i32
    %917 = tpu.dynamic_rotate %906 by %c64_i32_414 dim 1 : vector<8x128xf32>, i32 -> vector<8x128xf32>
    %c64_i32_415 = arith.constant 64 : i32
    %918 = tpu.dynamic_rotate %906 by %c64_i32_415 dim 1 : vector<8x128xf32>, i32 -> vector<8x128xf32>
    %919 = arith.select %7, %915, %916 : vector<8x128xi1>, vector<8x128xf32>
    %920 = arith.select %7, %917, %918 : vector<8x128xi1>, vector<8x128xf32>
    %921 = arith.mulf %908, %899 : vector<8x128xf32>
    %922 = arith.mulf %910, %906 : vector<8x128xf32>
    %923 = arith.subf %921, %922 : vector<8x128xf32>
    %924 = arith.mulf %912, %919 : vector<8x128xf32>
    %925 = arith.addf %923, %924 : vector<8x128xf32>
    %926 = arith.mulf %914, %920 : vector<8x128xf32>
    %927 = arith.subf %925, %926 : vector<8x128xf32>
    %928 = arith.mulf %908, %906 : vector<8x128xf32>
    %929 = arith.mulf %910, %899 : vector<8x128xf32>
    %930 = arith.addf %928, %929 : vector<8x128xf32>
    %931 = arith.mulf %912, %920 : vector<8x128xf32>
    %932 = arith.addf %930, %931 : vector<8x128xf32>
    %933 = arith.mulf %914, %919 : vector<8x128xf32>
    %934 = arith.addf %932, %933 : vector<8x128xf32>
    %c104 = arith.constant 104 : index
    %c0_416 = arith.constant 0 : index
    %c0_417 = arith.constant 0 : index
    %935 = vector.load %arg0[%c104, %c0_416, %c0_417] : memref<192x8x128xf32, #tpu.memory_space<vmem>>, vector<1x8x128xf32>
    %936 = vector.shape_cast %935 : vector<1x8x128xf32> to vector<8x128xf32>
    %c105 = arith.constant 105 : index
    %c0_418 = arith.constant 0 : index
    %c0_419 = arith.constant 0 : index
    %937 = vector.load %arg0[%c105, %c0_418, %c0_419] : memref<192x8x128xf32, #tpu.memory_space<vmem>>, vector<1x8x128xf32>
    %938 = vector.shape_cast %937 : vector<1x8x128xf32> to vector<8x128xf32>
    %c106 = arith.constant 106 : index
    %c0_420 = arith.constant 0 : index
    %c0_421 = arith.constant 0 : index
    %939 = vector.load %arg0[%c106, %c0_420, %c0_421] : memref<192x8x128xf32, #tpu.memory_space<vmem>>, vector<1x8x128xf32>
    %940 = vector.shape_cast %939 : vector<1x8x128xf32> to vector<8x128xf32>
    %c107 = arith.constant 107 : index
    %c0_422 = arith.constant 0 : index
    %c0_423 = arith.constant 0 : index
    %941 = vector.load %arg0[%c107, %c0_422, %c0_423] : memref<192x8x128xf32, #tpu.memory_space<vmem>>, vector<1x8x128xf32>
    %942 = vector.shape_cast %941 : vector<1x8x128xf32> to vector<8x128xf32>
    %c96_i32_424 = arith.constant 96 : i32
    %943 = tpu.dynamic_rotate %927 by %c96_i32_424 dim 1 : vector<8x128xf32>, i32 -> vector<8x128xf32>
    %c32_i32_425 = arith.constant 32 : i32
    %944 = tpu.dynamic_rotate %927 by %c32_i32_425 dim 1 : vector<8x128xf32>, i32 -> vector<8x128xf32>
    %c96_i32_426 = arith.constant 96 : i32
    %945 = tpu.dynamic_rotate %934 by %c96_i32_426 dim 1 : vector<8x128xf32>, i32 -> vector<8x128xf32>
    %c32_i32_427 = arith.constant 32 : i32
    %946 = tpu.dynamic_rotate %934 by %c32_i32_427 dim 1 : vector<8x128xf32>, i32 -> vector<8x128xf32>
    %947 = arith.select %11, %943, %944 : vector<8x128xi1>, vector<8x128xf32>
    %948 = arith.select %11, %945, %946 : vector<8x128xi1>, vector<8x128xf32>
    %949 = arith.mulf %936, %927 : vector<8x128xf32>
    %950 = arith.mulf %938, %934 : vector<8x128xf32>
    %951 = arith.subf %949, %950 : vector<8x128xf32>
    %952 = arith.mulf %940, %947 : vector<8x128xf32>
    %953 = arith.addf %951, %952 : vector<8x128xf32>
    %954 = arith.mulf %942, %948 : vector<8x128xf32>
    %955 = arith.subf %953, %954 : vector<8x128xf32>
    %956 = arith.mulf %936, %934 : vector<8x128xf32>
    %957 = arith.mulf %938, %927 : vector<8x128xf32>
    %958 = arith.addf %956, %957 : vector<8x128xf32>
    %959 = arith.mulf %940, %948 : vector<8x128xf32>
    %960 = arith.addf %958, %959 : vector<8x128xf32>
    %961 = arith.mulf %942, %947 : vector<8x128xf32>
    %962 = arith.addf %960, %961 : vector<8x128xf32>
    %c108 = arith.constant 108 : index
    %c0_428 = arith.constant 0 : index
    %c0_429 = arith.constant 0 : index
    %963 = vector.load %arg0[%c108, %c0_428, %c0_429] : memref<192x8x128xf32, #tpu.memory_space<vmem>>, vector<1x8x128xf32>
    %964 = vector.shape_cast %963 : vector<1x8x128xf32> to vector<8x128xf32>
    %c109 = arith.constant 109 : index
    %c0_430 = arith.constant 0 : index
    %c0_431 = arith.constant 0 : index
    %965 = vector.load %arg0[%c109, %c0_430, %c0_431] : memref<192x8x128xf32, #tpu.memory_space<vmem>>, vector<1x8x128xf32>
    %966 = vector.shape_cast %965 : vector<1x8x128xf32> to vector<8x128xf32>
    %c110 = arith.constant 110 : index
    %c0_432 = arith.constant 0 : index
    %c0_433 = arith.constant 0 : index
    %967 = vector.load %arg0[%c110, %c0_432, %c0_433] : memref<192x8x128xf32, #tpu.memory_space<vmem>>, vector<1x8x128xf32>
    %968 = vector.shape_cast %967 : vector<1x8x128xf32> to vector<8x128xf32>
    %c111 = arith.constant 111 : index
    %c0_434 = arith.constant 0 : index
    %c0_435 = arith.constant 0 : index
    %969 = vector.load %arg0[%c111, %c0_434, %c0_435] : memref<192x8x128xf32, #tpu.memory_space<vmem>>, vector<1x8x128xf32>
    %970 = vector.shape_cast %969 : vector<1x8x128xf32> to vector<8x128xf32>
    %c112_i32_436 = arith.constant 112 : i32
    %971 = tpu.dynamic_rotate %955 by %c112_i32_436 dim 1 : vector<8x128xf32>, i32 -> vector<8x128xf32>
    %c16_i32_437 = arith.constant 16 : i32
    %972 = tpu.dynamic_rotate %955 by %c16_i32_437 dim 1 : vector<8x128xf32>, i32 -> vector<8x128xf32>
    %c112_i32_438 = arith.constant 112 : i32
    %973 = tpu.dynamic_rotate %962 by %c112_i32_438 dim 1 : vector<8x128xf32>, i32 -> vector<8x128xf32>
    %c16_i32_439 = arith.constant 16 : i32
    %974 = tpu.dynamic_rotate %962 by %c16_i32_439 dim 1 : vector<8x128xf32>, i32 -> vector<8x128xf32>
    %975 = arith.select %15, %971, %972 : vector<8x128xi1>, vector<8x128xf32>
    %976 = arith.select %15, %973, %974 : vector<8x128xi1>, vector<8x128xf32>
    %977 = arith.mulf %964, %955 : vector<8x128xf32>
    %978 = arith.mulf %966, %962 : vector<8x128xf32>
    %979 = arith.subf %977, %978 : vector<8x128xf32>
    %980 = arith.mulf %968, %975 : vector<8x128xf32>
    %981 = arith.addf %979, %980 : vector<8x128xf32>
    %982 = arith.mulf %970, %976 : vector<8x128xf32>
    %983 = arith.subf %981, %982 : vector<8x128xf32>
    %984 = arith.mulf %964, %962 : vector<8x128xf32>
    %985 = arith.mulf %966, %955 : vector<8x128xf32>
    %986 = arith.addf %984, %985 : vector<8x128xf32>
    %987 = arith.mulf %968, %976 : vector<8x128xf32>
    %988 = arith.addf %986, %987 : vector<8x128xf32>
    %989 = arith.mulf %970, %975 : vector<8x128xf32>
    %990 = arith.addf %988, %989 : vector<8x128xf32>
    %c112 = arith.constant 112 : index
    %c0_440 = arith.constant 0 : index
    %c0_441 = arith.constant 0 : index
    %991 = vector.load %arg0[%c112, %c0_440, %c0_441] : memref<192x8x128xf32, #tpu.memory_space<vmem>>, vector<1x8x128xf32>
    %992 = vector.shape_cast %991 : vector<1x8x128xf32> to vector<8x128xf32>
    %c113 = arith.constant 113 : index
    %c0_442 = arith.constant 0 : index
    %c0_443 = arith.constant 0 : index
    %993 = vector.load %arg0[%c113, %c0_442, %c0_443] : memref<192x8x128xf32, #tpu.memory_space<vmem>>, vector<1x8x128xf32>
    %994 = vector.shape_cast %993 : vector<1x8x128xf32> to vector<8x128xf32>
    %c114 = arith.constant 114 : index
    %c0_444 = arith.constant 0 : index
    %c0_445 = arith.constant 0 : index
    %995 = vector.load %arg0[%c114, %c0_444, %c0_445] : memref<192x8x128xf32, #tpu.memory_space<vmem>>, vector<1x8x128xf32>
    %996 = vector.shape_cast %995 : vector<1x8x128xf32> to vector<8x128xf32>
    %c115 = arith.constant 115 : index
    %c0_446 = arith.constant 0 : index
    %c0_447 = arith.constant 0 : index
    %997 = vector.load %arg0[%c115, %c0_446, %c0_447] : memref<192x8x128xf32, #tpu.memory_space<vmem>>, vector<1x8x128xf32>
    %998 = vector.shape_cast %997 : vector<1x8x128xf32> to vector<8x128xf32>
    %c120_i32_448 = arith.constant 120 : i32
    %999 = tpu.dynamic_rotate %983 by %c120_i32_448 dim 1 : vector<8x128xf32>, i32 -> vector<8x128xf32>
    %c8_i32_449 = arith.constant 8 : i32
    %1000 = tpu.dynamic_rotate %983 by %c8_i32_449 dim 1 : vector<8x128xf32>, i32 -> vector<8x128xf32>
    %c120_i32_450 = arith.constant 120 : i32
    %1001 = tpu.dynamic_rotate %990 by %c120_i32_450 dim 1 : vector<8x128xf32>, i32 -> vector<8x128xf32>
    %c8_i32_451 = arith.constant 8 : i32
    %1002 = tpu.dynamic_rotate %990 by %c8_i32_451 dim 1 : vector<8x128xf32>, i32 -> vector<8x128xf32>
    %1003 = arith.select %19, %999, %1000 : vector<8x128xi1>, vector<8x128xf32>
    %1004 = arith.select %19, %1001, %1002 : vector<8x128xi1>, vector<8x128xf32>
    %1005 = arith.mulf %992, %983 : vector<8x128xf32>
    %1006 = arith.mulf %994, %990 : vector<8x128xf32>
    %1007 = arith.subf %1005, %1006 : vector<8x128xf32>
    %1008 = arith.mulf %996, %1003 : vector<8x128xf32>
    %1009 = arith.addf %1007, %1008 : vector<8x128xf32>
    %1010 = arith.mulf %998, %1004 : vector<8x128xf32>
    %1011 = arith.subf %1009, %1010 : vector<8x128xf32>
    %1012 = arith.mulf %992, %990 : vector<8x128xf32>
    %1013 = arith.mulf %994, %983 : vector<8x128xf32>
    %1014 = arith.addf %1012, %1013 : vector<8x128xf32>
    %1015 = arith.mulf %996, %1004 : vector<8x128xf32>
    %1016 = arith.addf %1014, %1015 : vector<8x128xf32>
    %1017 = arith.mulf %998, %1003 : vector<8x128xf32>
    %1018 = arith.addf %1016, %1017 : vector<8x128xf32>
    %c116 = arith.constant 116 : index
    %c0_452 = arith.constant 0 : index
    %c0_453 = arith.constant 0 : index
    %1019 = vector.load %arg0[%c116, %c0_452, %c0_453] : memref<192x8x128xf32, #tpu.memory_space<vmem>>, vector<1x8x128xf32>
    %1020 = vector.shape_cast %1019 : vector<1x8x128xf32> to vector<8x128xf32>
    %c117 = arith.constant 117 : index
    %c0_454 = arith.constant 0 : index
    %c0_455 = arith.constant 0 : index
    %1021 = vector.load %arg0[%c117, %c0_454, %c0_455] : memref<192x8x128xf32, #tpu.memory_space<vmem>>, vector<1x8x128xf32>
    %1022 = vector.shape_cast %1021 : vector<1x8x128xf32> to vector<8x128xf32>
    %c118 = arith.constant 118 : index
    %c0_456 = arith.constant 0 : index
    %c0_457 = arith.constant 0 : index
    %1023 = vector.load %arg0[%c118, %c0_456, %c0_457] : memref<192x8x128xf32, #tpu.memory_space<vmem>>, vector<1x8x128xf32>
    %1024 = vector.shape_cast %1023 : vector<1x8x128xf32> to vector<8x128xf32>
    %c119 = arith.constant 119 : index
    %c0_458 = arith.constant 0 : index
    %c0_459 = arith.constant 0 : index
    %1025 = vector.load %arg0[%c119, %c0_458, %c0_459] : memref<192x8x128xf32, #tpu.memory_space<vmem>>, vector<1x8x128xf32>
    %1026 = vector.shape_cast %1025 : vector<1x8x128xf32> to vector<8x128xf32>
    %c124_i32_460 = arith.constant 124 : i32
    %1027 = tpu.dynamic_rotate %1011 by %c124_i32_460 dim 1 : vector<8x128xf32>, i32 -> vector<8x128xf32>
    %c4_i32_461 = arith.constant 4 : i32
    %1028 = tpu.dynamic_rotate %1011 by %c4_i32_461 dim 1 : vector<8x128xf32>, i32 -> vector<8x128xf32>
    %c124_i32_462 = arith.constant 124 : i32
    %1029 = tpu.dynamic_rotate %1018 by %c124_i32_462 dim 1 : vector<8x128xf32>, i32 -> vector<8x128xf32>
    %c4_i32_463 = arith.constant 4 : i32
    %1030 = tpu.dynamic_rotate %1018 by %c4_i32_463 dim 1 : vector<8x128xf32>, i32 -> vector<8x128xf32>
    %1031 = arith.select %23, %1027, %1028 : vector<8x128xi1>, vector<8x128xf32>
    %1032 = arith.select %23, %1029, %1030 : vector<8x128xi1>, vector<8x128xf32>
    %1033 = arith.mulf %1020, %1011 : vector<8x128xf32>
    %1034 = arith.mulf %1022, %1018 : vector<8x128xf32>
    %1035 = arith.subf %1033, %1034 : vector<8x128xf32>
    %1036 = arith.mulf %1024, %1031 : vector<8x128xf32>
    %1037 = arith.addf %1035, %1036 : vector<8x128xf32>
    %1038 = arith.mulf %1026, %1032 : vector<8x128xf32>
    %1039 = arith.subf %1037, %1038 : vector<8x128xf32>
    %1040 = arith.mulf %1020, %1018 : vector<8x128xf32>
    %1041 = arith.mulf %1022, %1011 : vector<8x128xf32>
    %1042 = arith.addf %1040, %1041 : vector<8x128xf32>
    %1043 = arith.mulf %1024, %1032 : vector<8x128xf32>
    %1044 = arith.addf %1042, %1043 : vector<8x128xf32>
    %1045 = arith.mulf %1026, %1031 : vector<8x128xf32>
    %1046 = arith.addf %1044, %1045 : vector<8x128xf32>
    %c120 = arith.constant 120 : index
    %c0_464 = arith.constant 0 : index
    %c0_465 = arith.constant 0 : index
    %1047 = vector.load %arg0[%c120, %c0_464, %c0_465] : memref<192x8x128xf32, #tpu.memory_space<vmem>>, vector<1x8x128xf32>
    %1048 = vector.shape_cast %1047 : vector<1x8x128xf32> to vector<8x128xf32>
    %c121 = arith.constant 121 : index
    %c0_466 = arith.constant 0 : index
    %c0_467 = arith.constant 0 : index
    %1049 = vector.load %arg0[%c121, %c0_466, %c0_467] : memref<192x8x128xf32, #tpu.memory_space<vmem>>, vector<1x8x128xf32>
    %1050 = vector.shape_cast %1049 : vector<1x8x128xf32> to vector<8x128xf32>
    %c122 = arith.constant 122 : index
    %c0_468 = arith.constant 0 : index
    %c0_469 = arith.constant 0 : index
    %1051 = vector.load %arg0[%c122, %c0_468, %c0_469] : memref<192x8x128xf32, #tpu.memory_space<vmem>>, vector<1x8x128xf32>
    %1052 = vector.shape_cast %1051 : vector<1x8x128xf32> to vector<8x128xf32>
    %c123 = arith.constant 123 : index
    %c0_470 = arith.constant 0 : index
    %c0_471 = arith.constant 0 : index
    %1053 = vector.load %arg0[%c123, %c0_470, %c0_471] : memref<192x8x128xf32, #tpu.memory_space<vmem>>, vector<1x8x128xf32>
    %1054 = vector.shape_cast %1053 : vector<1x8x128xf32> to vector<8x128xf32>
    %c126_i32_472 = arith.constant 126 : i32
    %1055 = tpu.dynamic_rotate %1039 by %c126_i32_472 dim 1 : vector<8x128xf32>, i32 -> vector<8x128xf32>
    %c2_i32_473 = arith.constant 2 : i32
    %1056 = tpu.dynamic_rotate %1039 by %c2_i32_473 dim 1 : vector<8x128xf32>, i32 -> vector<8x128xf32>
    %c126_i32_474 = arith.constant 126 : i32
    %1057 = tpu.dynamic_rotate %1046 by %c126_i32_474 dim 1 : vector<8x128xf32>, i32 -> vector<8x128xf32>
    %c2_i32_475 = arith.constant 2 : i32
    %1058 = tpu.dynamic_rotate %1046 by %c2_i32_475 dim 1 : vector<8x128xf32>, i32 -> vector<8x128xf32>
    %1059 = arith.select %27, %1055, %1056 : vector<8x128xi1>, vector<8x128xf32>
    %1060 = arith.select %27, %1057, %1058 : vector<8x128xi1>, vector<8x128xf32>
    %1061 = arith.mulf %1048, %1039 : vector<8x128xf32>
    %1062 = arith.mulf %1050, %1046 : vector<8x128xf32>
    %1063 = arith.subf %1061, %1062 : vector<8x128xf32>
    %1064 = arith.mulf %1052, %1059 : vector<8x128xf32>
    %1065 = arith.addf %1063, %1064 : vector<8x128xf32>
    %1066 = arith.mulf %1054, %1060 : vector<8x128xf32>
    %1067 = arith.subf %1065, %1066 : vector<8x128xf32>
    %1068 = arith.mulf %1048, %1046 : vector<8x128xf32>
    %1069 = arith.mulf %1050, %1039 : vector<8x128xf32>
    %1070 = arith.addf %1068, %1069 : vector<8x128xf32>
    %1071 = arith.mulf %1052, %1060 : vector<8x128xf32>
    %1072 = arith.addf %1070, %1071 : vector<8x128xf32>
    %1073 = arith.mulf %1054, %1059 : vector<8x128xf32>
    %1074 = arith.addf %1072, %1073 : vector<8x128xf32>
    %c124 = arith.constant 124 : index
    %c0_476 = arith.constant 0 : index
    %c0_477 = arith.constant 0 : index
    %1075 = vector.load %arg0[%c124, %c0_476, %c0_477] : memref<192x8x128xf32, #tpu.memory_space<vmem>>, vector<1x8x128xf32>
    %1076 = vector.shape_cast %1075 : vector<1x8x128xf32> to vector<8x128xf32>
    %c125 = arith.constant 125 : index
    %c0_478 = arith.constant 0 : index
    %c0_479 = arith.constant 0 : index
    %1077 = vector.load %arg0[%c125, %c0_478, %c0_479] : memref<192x8x128xf32, #tpu.memory_space<vmem>>, vector<1x8x128xf32>
    %1078 = vector.shape_cast %1077 : vector<1x8x128xf32> to vector<8x128xf32>
    %c126 = arith.constant 126 : index
    %c0_480 = arith.constant 0 : index
    %c0_481 = arith.constant 0 : index
    %1079 = vector.load %arg0[%c126, %c0_480, %c0_481] : memref<192x8x128xf32, #tpu.memory_space<vmem>>, vector<1x8x128xf32>
    %1080 = vector.shape_cast %1079 : vector<1x8x128xf32> to vector<8x128xf32>
    %c127 = arith.constant 127 : index
    %c0_482 = arith.constant 0 : index
    %c0_483 = arith.constant 0 : index
    %1081 = vector.load %arg0[%c127, %c0_482, %c0_483] : memref<192x8x128xf32, #tpu.memory_space<vmem>>, vector<1x8x128xf32>
    %1082 = vector.shape_cast %1081 : vector<1x8x128xf32> to vector<8x128xf32>
    %c127_i32_484 = arith.constant 127 : i32
    %1083 = tpu.dynamic_rotate %1067 by %c127_i32_484 dim 1 : vector<8x128xf32>, i32 -> vector<8x128xf32>
    %c1_i32_485 = arith.constant 1 : i32
    %1084 = tpu.dynamic_rotate %1067 by %c1_i32_485 dim 1 : vector<8x128xf32>, i32 -> vector<8x128xf32>
    %c127_i32_486 = arith.constant 127 : i32
    %1085 = tpu.dynamic_rotate %1074 by %c127_i32_486 dim 1 : vector<8x128xf32>, i32 -> vector<8x128xf32>
    %c1_i32_487 = arith.constant 1 : i32
    %1086 = tpu.dynamic_rotate %1074 by %c1_i32_487 dim 1 : vector<8x128xf32>, i32 -> vector<8x128xf32>
    %1087 = arith.select %31, %1083, %1084 : vector<8x128xi1>, vector<8x128xf32>
    %1088 = arith.select %31, %1085, %1086 : vector<8x128xi1>, vector<8x128xf32>
    %1089 = arith.mulf %1076, %1067 : vector<8x128xf32>
    %1090 = arith.mulf %1078, %1074 : vector<8x128xf32>
    %1091 = arith.subf %1089, %1090 : vector<8x128xf32>
    %1092 = arith.mulf %1080, %1087 : vector<8x128xf32>
    %1093 = arith.addf %1091, %1092 : vector<8x128xf32>
    %1094 = arith.mulf %1082, %1088 : vector<8x128xf32>
    %1095 = arith.subf %1093, %1094 : vector<8x128xf32>
    %1096 = arith.mulf %1076, %1074 : vector<8x128xf32>
    %1097 = arith.mulf %1078, %1067 : vector<8x128xf32>
    %1098 = arith.addf %1096, %1097 : vector<8x128xf32>
    %1099 = arith.mulf %1080, %1088 : vector<8x128xf32>
    %1100 = arith.addf %1098, %1099 : vector<8x128xf32>
    %1101 = arith.mulf %1082, %1087 : vector<8x128xf32>
    %1102 = arith.addf %1100, %1101 : vector<8x128xf32>
    %c64_i32_488 = arith.constant 64 : i32
    %1103 = tpu.dynamic_rotate %1095 by %c64_i32_488 dim 1 : vector<8x128xf32>, i32 -> vector<8x128xf32>
    %c64_i32_489 = arith.constant 64 : i32
    %1104 = tpu.dynamic_rotate %1095 by %c64_i32_489 dim 1 : vector<8x128xf32>, i32 -> vector<8x128xf32>
    %c64_i32_490 = arith.constant 64 : i32
    %1105 = tpu.dynamic_rotate %1102 by %c64_i32_490 dim 1 : vector<8x128xf32>, i32 -> vector<8x128xf32>
    %c64_i32_491 = arith.constant 64 : i32
    %1106 = tpu.dynamic_rotate %1102 by %c64_i32_491 dim 1 : vector<8x128xf32>, i32 -> vector<8x128xf32>
    %1107 = arith.select %7, %1103, %1104 : vector<8x128xi1>, vector<8x128xf32>
    %1108 = arith.select %7, %1105, %1106 : vector<8x128xi1>, vector<8x128xf32>
    %1109 = arith.select %3, %1095, %1107 : vector<8x128xi1>, vector<8x128xf32>
    %1110 = arith.select %3, %1102, %1108 : vector<8x128xi1>, vector<8x128xf32>
    %c96_i32_492 = arith.constant 96 : i32
    %1111 = tpu.dynamic_rotate %1109 by %c96_i32_492 dim 1 : vector<8x128xf32>, i32 -> vector<8x128xf32>
    %c32_i32_493 = arith.constant 32 : i32
    %1112 = tpu.dynamic_rotate %1109 by %c32_i32_493 dim 1 : vector<8x128xf32>, i32 -> vector<8x128xf32>
    %c96_i32_494 = arith.constant 96 : i32
    %1113 = tpu.dynamic_rotate %1110 by %c96_i32_494 dim 1 : vector<8x128xf32>, i32 -> vector<8x128xf32>
    %c32_i32_495 = arith.constant 32 : i32
    %1114 = tpu.dynamic_rotate %1110 by %c32_i32_495 dim 1 : vector<8x128xf32>, i32 -> vector<8x128xf32>
    %1115 = arith.select %11, %1111, %1112 : vector<8x128xi1>, vector<8x128xf32>
    %1116 = arith.select %11, %1113, %1114 : vector<8x128xi1>, vector<8x128xf32>
    %1117 = arith.select %7, %1109, %1115 : vector<8x128xi1>, vector<8x128xf32>
    %1118 = arith.select %7, %1110, %1116 : vector<8x128xi1>, vector<8x128xf32>
    %c112_i32_496 = arith.constant 112 : i32
    %1119 = tpu.dynamic_rotate %1117 by %c112_i32_496 dim 1 : vector<8x128xf32>, i32 -> vector<8x128xf32>
    %c16_i32_497 = arith.constant 16 : i32
    %1120 = tpu.dynamic_rotate %1117 by %c16_i32_497 dim 1 : vector<8x128xf32>, i32 -> vector<8x128xf32>
    %c112_i32_498 = arith.constant 112 : i32
    %1121 = tpu.dynamic_rotate %1118 by %c112_i32_498 dim 1 : vector<8x128xf32>, i32 -> vector<8x128xf32>
    %c16_i32_499 = arith.constant 16 : i32
    %1122 = tpu.dynamic_rotate %1118 by %c16_i32_499 dim 1 : vector<8x128xf32>, i32 -> vector<8x128xf32>
    %1123 = arith.select %15, %1119, %1120 : vector<8x128xi1>, vector<8x128xf32>
    %1124 = arith.select %15, %1121, %1122 : vector<8x128xi1>, vector<8x128xf32>
    %1125 = arith.select %11, %1117, %1123 : vector<8x128xi1>, vector<8x128xf32>
    %1126 = arith.select %11, %1118, %1124 : vector<8x128xi1>, vector<8x128xf32>
    %c120_i32_500 = arith.constant 120 : i32
    %1127 = tpu.dynamic_rotate %1125 by %c120_i32_500 dim 1 : vector<8x128xf32>, i32 -> vector<8x128xf32>
    %c8_i32_501 = arith.constant 8 : i32
    %1128 = tpu.dynamic_rotate %1125 by %c8_i32_501 dim 1 : vector<8x128xf32>, i32 -> vector<8x128xf32>
    %c120_i32_502 = arith.constant 120 : i32
    %1129 = tpu.dynamic_rotate %1126 by %c120_i32_502 dim 1 : vector<8x128xf32>, i32 -> vector<8x128xf32>
    %c8_i32_503 = arith.constant 8 : i32
    %1130 = tpu.dynamic_rotate %1126 by %c8_i32_503 dim 1 : vector<8x128xf32>, i32 -> vector<8x128xf32>
    %1131 = arith.select %19, %1127, %1128 : vector<8x128xi1>, vector<8x128xf32>
    %1132 = arith.select %19, %1129, %1130 : vector<8x128xi1>, vector<8x128xf32>
    %1133 = arith.select %15, %1125, %1131 : vector<8x128xi1>, vector<8x128xf32>
    %1134 = arith.select %15, %1126, %1132 : vector<8x128xi1>, vector<8x128xf32>
    %c124_i32_504 = arith.constant 124 : i32
    %1135 = tpu.dynamic_rotate %1133 by %c124_i32_504 dim 1 : vector<8x128xf32>, i32 -> vector<8x128xf32>
    %c4_i32_505 = arith.constant 4 : i32
    %1136 = tpu.dynamic_rotate %1133 by %c4_i32_505 dim 1 : vector<8x128xf32>, i32 -> vector<8x128xf32>
    %c124_i32_506 = arith.constant 124 : i32
    %1137 = tpu.dynamic_rotate %1134 by %c124_i32_506 dim 1 : vector<8x128xf32>, i32 -> vector<8x128xf32>
    %c4_i32_507 = arith.constant 4 : i32
    %1138 = tpu.dynamic_rotate %1134 by %c4_i32_507 dim 1 : vector<8x128xf32>, i32 -> vector<8x128xf32>
    %1139 = arith.select %23, %1135, %1136 : vector<8x128xi1>, vector<8x128xf32>
    %1140 = arith.select %23, %1137, %1138 : vector<8x128xi1>, vector<8x128xf32>
    %1141 = arith.select %19, %1133, %1139 : vector<8x128xi1>, vector<8x128xf32>
    %1142 = arith.select %19, %1134, %1140 : vector<8x128xi1>, vector<8x128xf32>
    %c126_i32_508 = arith.constant 126 : i32
    %1143 = tpu.dynamic_rotate %1141 by %c126_i32_508 dim 1 : vector<8x128xf32>, i32 -> vector<8x128xf32>
    %c2_i32_509 = arith.constant 2 : i32
    %1144 = tpu.dynamic_rotate %1141 by %c2_i32_509 dim 1 : vector<8x128xf32>, i32 -> vector<8x128xf32>
    %c126_i32_510 = arith.constant 126 : i32
    %1145 = tpu.dynamic_rotate %1142 by %c126_i32_510 dim 1 : vector<8x128xf32>, i32 -> vector<8x128xf32>
    %c2_i32_511 = arith.constant 2 : i32
    %1146 = tpu.dynamic_rotate %1142 by %c2_i32_511 dim 1 : vector<8x128xf32>, i32 -> vector<8x128xf32>
    %1147 = arith.select %27, %1143, %1144 : vector<8x128xi1>, vector<8x128xf32>
    %1148 = arith.select %27, %1145, %1146 : vector<8x128xi1>, vector<8x128xf32>
    %1149 = arith.select %23, %1141, %1147 : vector<8x128xi1>, vector<8x128xf32>
    %1150 = arith.select %23, %1142, %1148 : vector<8x128xi1>, vector<8x128xf32>
    %c127_i32_512 = arith.constant 127 : i32
    %1151 = tpu.dynamic_rotate %1149 by %c127_i32_512 dim 1 : vector<8x128xf32>, i32 -> vector<8x128xf32>
    %c1_i32_513 = arith.constant 1 : i32
    %1152 = tpu.dynamic_rotate %1149 by %c1_i32_513 dim 1 : vector<8x128xf32>, i32 -> vector<8x128xf32>
    %c127_i32_514 = arith.constant 127 : i32
    %1153 = tpu.dynamic_rotate %1150 by %c127_i32_514 dim 1 : vector<8x128xf32>, i32 -> vector<8x128xf32>
    %c1_i32_515 = arith.constant 1 : i32
    %1154 = tpu.dynamic_rotate %1150 by %c1_i32_515 dim 1 : vector<8x128xf32>, i32 -> vector<8x128xf32>
    %1155 = arith.select %31, %1151, %1152 : vector<8x128xi1>, vector<8x128xf32>
    %1156 = arith.select %31, %1153, %1154 : vector<8x128xi1>, vector<8x128xf32>
    %1157 = arith.select %27, %1149, %1155 : vector<8x128xi1>, vector<8x128xf32>
    %1158 = arith.select %27, %1150, %1156 : vector<8x128xi1>, vector<8x128xf32>
    %c4_i32_516 = arith.constant 4 : i32
    %1159 = tpu.dynamic_rotate %1157 by %c4_i32_516 dim 0 : vector<8x128xf32>, i32 -> vector<8x128xf32>
    %c4_i32_517 = arith.constant 4 : i32
    %1160 = tpu.dynamic_rotate %1158 by %c4_i32_517 dim 0 : vector<8x128xf32>, i32 -> vector<8x128xf32>
    %1161 = arith.select %31, %1157, %1159 : vector<8x128xi1>, vector<8x128xf32>
    %1162 = arith.select %31, %1158, %1160 : vector<8x128xi1>, vector<8x128xf32>
    %c128 = arith.constant 128 : index
    %c0_518 = arith.constant 0 : index
    %c0_519 = arith.constant 0 : index
    %1163 = vector.load %arg0[%c128, %c0_518, %c0_519] : memref<192x8x128xf32, #tpu.memory_space<vmem>>, vector<1x8x128xf32>
    %1164 = vector.shape_cast %1163 : vector<1x8x128xf32> to vector<8x128xf32>
    %c129 = arith.constant 129 : index
    %c0_520 = arith.constant 0 : index
    %c0_521 = arith.constant 0 : index
    %1165 = vector.load %arg0[%c129, %c0_520, %c0_521] : memref<192x8x128xf32, #tpu.memory_space<vmem>>, vector<1x8x128xf32>
    %1166 = vector.shape_cast %1165 : vector<1x8x128xf32> to vector<8x128xf32>
    %c130 = arith.constant 130 : index
    %c0_522 = arith.constant 0 : index
    %c0_523 = arith.constant 0 : index
    %1167 = vector.load %arg0[%c130, %c0_522, %c0_523] : memref<192x8x128xf32, #tpu.memory_space<vmem>>, vector<1x8x128xf32>
    %1168 = vector.shape_cast %1167 : vector<1x8x128xf32> to vector<8x128xf32>
    %c131 = arith.constant 131 : index
    %c0_524 = arith.constant 0 : index
    %c0_525 = arith.constant 0 : index
    %1169 = vector.load %arg0[%c131, %c0_524, %c0_525] : memref<192x8x128xf32, #tpu.memory_space<vmem>>, vector<1x8x128xf32>
    %1170 = vector.shape_cast %1169 : vector<1x8x128xf32> to vector<8x128xf32>
    %c4_i32_526 = arith.constant 4 : i32
    %1171 = tpu.dynamic_rotate %1161 by %c4_i32_526 dim 0 : vector<8x128xf32>, i32 -> vector<8x128xf32>
    %c4_i32_527 = arith.constant 4 : i32
    %1172 = tpu.dynamic_rotate %1162 by %c4_i32_527 dim 0 : vector<8x128xf32>, i32 -> vector<8x128xf32>
    %1173 = arith.mulf %1164, %1161 : vector<8x128xf32>
    %1174 = arith.mulf %1166, %1162 : vector<8x128xf32>
    %1175 = arith.subf %1173, %1174 : vector<8x128xf32>
    %1176 = arith.mulf %1168, %1171 : vector<8x128xf32>
    %1177 = arith.addf %1175, %1176 : vector<8x128xf32>
    %1178 = arith.mulf %1170, %1172 : vector<8x128xf32>
    %1179 = arith.subf %1177, %1178 : vector<8x128xf32>
    %1180 = arith.mulf %1164, %1162 : vector<8x128xf32>
    %1181 = arith.mulf %1166, %1161 : vector<8x128xf32>
    %1182 = arith.addf %1180, %1181 : vector<8x128xf32>
    %1183 = arith.mulf %1168, %1172 : vector<8x128xf32>
    %1184 = arith.addf %1182, %1183 : vector<8x128xf32>
    %1185 = arith.mulf %1170, %1171 : vector<8x128xf32>
    %1186 = arith.addf %1184, %1185 : vector<8x128xf32>
    %c132 = arith.constant 132 : index
    %c0_528 = arith.constant 0 : index
    %c0_529 = arith.constant 0 : index
    %1187 = vector.load %arg0[%c132, %c0_528, %c0_529] : memref<192x8x128xf32, #tpu.memory_space<vmem>>, vector<1x8x128xf32>
    %1188 = vector.shape_cast %1187 : vector<1x8x128xf32> to vector<8x128xf32>
    %c133 = arith.constant 133 : index
    %c0_530 = arith.constant 0 : index
    %c0_531 = arith.constant 0 : index
    %1189 = vector.load %arg0[%c133, %c0_530, %c0_531] : memref<192x8x128xf32, #tpu.memory_space<vmem>>, vector<1x8x128xf32>
    %1190 = vector.shape_cast %1189 : vector<1x8x128xf32> to vector<8x128xf32>
    %c134 = arith.constant 134 : index
    %c0_532 = arith.constant 0 : index
    %c0_533 = arith.constant 0 : index
    %1191 = vector.load %arg0[%c134, %c0_532, %c0_533] : memref<192x8x128xf32, #tpu.memory_space<vmem>>, vector<1x8x128xf32>
    %1192 = vector.shape_cast %1191 : vector<1x8x128xf32> to vector<8x128xf32>
    %c135 = arith.constant 135 : index
    %c0_534 = arith.constant 0 : index
    %c0_535 = arith.constant 0 : index
    %1193 = vector.load %arg0[%c135, %c0_534, %c0_535] : memref<192x8x128xf32, #tpu.memory_space<vmem>>, vector<1x8x128xf32>
    %1194 = vector.shape_cast %1193 : vector<1x8x128xf32> to vector<8x128xf32>
    %c64_i32_536 = arith.constant 64 : i32
    %1195 = tpu.dynamic_rotate %1179 by %c64_i32_536 dim 1 : vector<8x128xf32>, i32 -> vector<8x128xf32>
    %c64_i32_537 = arith.constant 64 : i32
    %1196 = tpu.dynamic_rotate %1179 by %c64_i32_537 dim 1 : vector<8x128xf32>, i32 -> vector<8x128xf32>
    %c64_i32_538 = arith.constant 64 : i32
    %1197 = tpu.dynamic_rotate %1186 by %c64_i32_538 dim 1 : vector<8x128xf32>, i32 -> vector<8x128xf32>
    %c64_i32_539 = arith.constant 64 : i32
    %1198 = tpu.dynamic_rotate %1186 by %c64_i32_539 dim 1 : vector<8x128xf32>, i32 -> vector<8x128xf32>
    %1199 = arith.select %7, %1195, %1196 : vector<8x128xi1>, vector<8x128xf32>
    %1200 = arith.select %7, %1197, %1198 : vector<8x128xi1>, vector<8x128xf32>
    %1201 = arith.mulf %1188, %1179 : vector<8x128xf32>
    %1202 = arith.mulf %1190, %1186 : vector<8x128xf32>
    %1203 = arith.subf %1201, %1202 : vector<8x128xf32>
    %1204 = arith.mulf %1192, %1199 : vector<8x128xf32>
    %1205 = arith.addf %1203, %1204 : vector<8x128xf32>
    %1206 = arith.mulf %1194, %1200 : vector<8x128xf32>
    %1207 = arith.subf %1205, %1206 : vector<8x128xf32>
    %1208 = arith.mulf %1188, %1186 : vector<8x128xf32>
    %1209 = arith.mulf %1190, %1179 : vector<8x128xf32>
    %1210 = arith.addf %1208, %1209 : vector<8x128xf32>
    %1211 = arith.mulf %1192, %1200 : vector<8x128xf32>
    %1212 = arith.addf %1210, %1211 : vector<8x128xf32>
    %1213 = arith.mulf %1194, %1199 : vector<8x128xf32>
    %1214 = arith.addf %1212, %1213 : vector<8x128xf32>
    %c136 = arith.constant 136 : index
    %c0_540 = arith.constant 0 : index
    %c0_541 = arith.constant 0 : index
    %1215 = vector.load %arg0[%c136, %c0_540, %c0_541] : memref<192x8x128xf32, #tpu.memory_space<vmem>>, vector<1x8x128xf32>
    %1216 = vector.shape_cast %1215 : vector<1x8x128xf32> to vector<8x128xf32>
    %c137 = arith.constant 137 : index
    %c0_542 = arith.constant 0 : index
    %c0_543 = arith.constant 0 : index
    %1217 = vector.load %arg0[%c137, %c0_542, %c0_543] : memref<192x8x128xf32, #tpu.memory_space<vmem>>, vector<1x8x128xf32>
    %1218 = vector.shape_cast %1217 : vector<1x8x128xf32> to vector<8x128xf32>
    %c138 = arith.constant 138 : index
    %c0_544 = arith.constant 0 : index
    %c0_545 = arith.constant 0 : index
    %1219 = vector.load %arg0[%c138, %c0_544, %c0_545] : memref<192x8x128xf32, #tpu.memory_space<vmem>>, vector<1x8x128xf32>
    %1220 = vector.shape_cast %1219 : vector<1x8x128xf32> to vector<8x128xf32>
    %c139 = arith.constant 139 : index
    %c0_546 = arith.constant 0 : index
    %c0_547 = arith.constant 0 : index
    %1221 = vector.load %arg0[%c139, %c0_546, %c0_547] : memref<192x8x128xf32, #tpu.memory_space<vmem>>, vector<1x8x128xf32>
    %1222 = vector.shape_cast %1221 : vector<1x8x128xf32> to vector<8x128xf32>
    %c96_i32_548 = arith.constant 96 : i32
    %1223 = tpu.dynamic_rotate %1207 by %c96_i32_548 dim 1 : vector<8x128xf32>, i32 -> vector<8x128xf32>
    %c32_i32_549 = arith.constant 32 : i32
    %1224 = tpu.dynamic_rotate %1207 by %c32_i32_549 dim 1 : vector<8x128xf32>, i32 -> vector<8x128xf32>
    %c96_i32_550 = arith.constant 96 : i32
    %1225 = tpu.dynamic_rotate %1214 by %c96_i32_550 dim 1 : vector<8x128xf32>, i32 -> vector<8x128xf32>
    %c32_i32_551 = arith.constant 32 : i32
    %1226 = tpu.dynamic_rotate %1214 by %c32_i32_551 dim 1 : vector<8x128xf32>, i32 -> vector<8x128xf32>
    %1227 = arith.select %11, %1223, %1224 : vector<8x128xi1>, vector<8x128xf32>
    %1228 = arith.select %11, %1225, %1226 : vector<8x128xi1>, vector<8x128xf32>
    %1229 = arith.mulf %1216, %1207 : vector<8x128xf32>
    %1230 = arith.mulf %1218, %1214 : vector<8x128xf32>
    %1231 = arith.subf %1229, %1230 : vector<8x128xf32>
    %1232 = arith.mulf %1220, %1227 : vector<8x128xf32>
    %1233 = arith.addf %1231, %1232 : vector<8x128xf32>
    %1234 = arith.mulf %1222, %1228 : vector<8x128xf32>
    %1235 = arith.subf %1233, %1234 : vector<8x128xf32>
    %1236 = arith.mulf %1216, %1214 : vector<8x128xf32>
    %1237 = arith.mulf %1218, %1207 : vector<8x128xf32>
    %1238 = arith.addf %1236, %1237 : vector<8x128xf32>
    %1239 = arith.mulf %1220, %1228 : vector<8x128xf32>
    %1240 = arith.addf %1238, %1239 : vector<8x128xf32>
    %1241 = arith.mulf %1222, %1227 : vector<8x128xf32>
    %1242 = arith.addf %1240, %1241 : vector<8x128xf32>
    %c140 = arith.constant 140 : index
    %c0_552 = arith.constant 0 : index
    %c0_553 = arith.constant 0 : index
    %1243 = vector.load %arg0[%c140, %c0_552, %c0_553] : memref<192x8x128xf32, #tpu.memory_space<vmem>>, vector<1x8x128xf32>
    %1244 = vector.shape_cast %1243 : vector<1x8x128xf32> to vector<8x128xf32>
    %c141 = arith.constant 141 : index
    %c0_554 = arith.constant 0 : index
    %c0_555 = arith.constant 0 : index
    %1245 = vector.load %arg0[%c141, %c0_554, %c0_555] : memref<192x8x128xf32, #tpu.memory_space<vmem>>, vector<1x8x128xf32>
    %1246 = vector.shape_cast %1245 : vector<1x8x128xf32> to vector<8x128xf32>
    %c142 = arith.constant 142 : index
    %c0_556 = arith.constant 0 : index
    %c0_557 = arith.constant 0 : index
    %1247 = vector.load %arg0[%c142, %c0_556, %c0_557] : memref<192x8x128xf32, #tpu.memory_space<vmem>>, vector<1x8x128xf32>
    %1248 = vector.shape_cast %1247 : vector<1x8x128xf32> to vector<8x128xf32>
    %c143 = arith.constant 143 : index
    %c0_558 = arith.constant 0 : index
    %c0_559 = arith.constant 0 : index
    %1249 = vector.load %arg0[%c143, %c0_558, %c0_559] : memref<192x8x128xf32, #tpu.memory_space<vmem>>, vector<1x8x128xf32>
    %1250 = vector.shape_cast %1249 : vector<1x8x128xf32> to vector<8x128xf32>
    %c112_i32_560 = arith.constant 112 : i32
    %1251 = tpu.dynamic_rotate %1235 by %c112_i32_560 dim 1 : vector<8x128xf32>, i32 -> vector<8x128xf32>
    %c16_i32_561 = arith.constant 16 : i32
    %1252 = tpu.dynamic_rotate %1235 by %c16_i32_561 dim 1 : vector<8x128xf32>, i32 -> vector<8x128xf32>
    %c112_i32_562 = arith.constant 112 : i32
    %1253 = tpu.dynamic_rotate %1242 by %c112_i32_562 dim 1 : vector<8x128xf32>, i32 -> vector<8x128xf32>
    %c16_i32_563 = arith.constant 16 : i32
    %1254 = tpu.dynamic_rotate %1242 by %c16_i32_563 dim 1 : vector<8x128xf32>, i32 -> vector<8x128xf32>
    %1255 = arith.select %15, %1251, %1252 : vector<8x128xi1>, vector<8x128xf32>
    %1256 = arith.select %15, %1253, %1254 : vector<8x128xi1>, vector<8x128xf32>
    %1257 = arith.mulf %1244, %1235 : vector<8x128xf32>
    %1258 = arith.mulf %1246, %1242 : vector<8x128xf32>
    %1259 = arith.subf %1257, %1258 : vector<8x128xf32>
    %1260 = arith.mulf %1248, %1255 : vector<8x128xf32>
    %1261 = arith.addf %1259, %1260 : vector<8x128xf32>
    %1262 = arith.mulf %1250, %1256 : vector<8x128xf32>
    %1263 = arith.subf %1261, %1262 : vector<8x128xf32>
    %1264 = arith.mulf %1244, %1242 : vector<8x128xf32>
    %1265 = arith.mulf %1246, %1235 : vector<8x128xf32>
    %1266 = arith.addf %1264, %1265 : vector<8x128xf32>
    %1267 = arith.mulf %1248, %1256 : vector<8x128xf32>
    %1268 = arith.addf %1266, %1267 : vector<8x128xf32>
    %1269 = arith.mulf %1250, %1255 : vector<8x128xf32>
    %1270 = arith.addf %1268, %1269 : vector<8x128xf32>
    %c144 = arith.constant 144 : index
    %c0_564 = arith.constant 0 : index
    %c0_565 = arith.constant 0 : index
    %1271 = vector.load %arg0[%c144, %c0_564, %c0_565] : memref<192x8x128xf32, #tpu.memory_space<vmem>>, vector<1x8x128xf32>
    %1272 = vector.shape_cast %1271 : vector<1x8x128xf32> to vector<8x128xf32>
    %c145 = arith.constant 145 : index
    %c0_566 = arith.constant 0 : index
    %c0_567 = arith.constant 0 : index
    %1273 = vector.load %arg0[%c145, %c0_566, %c0_567] : memref<192x8x128xf32, #tpu.memory_space<vmem>>, vector<1x8x128xf32>
    %1274 = vector.shape_cast %1273 : vector<1x8x128xf32> to vector<8x128xf32>
    %c146 = arith.constant 146 : index
    %c0_568 = arith.constant 0 : index
    %c0_569 = arith.constant 0 : index
    %1275 = vector.load %arg0[%c146, %c0_568, %c0_569] : memref<192x8x128xf32, #tpu.memory_space<vmem>>, vector<1x8x128xf32>
    %1276 = vector.shape_cast %1275 : vector<1x8x128xf32> to vector<8x128xf32>
    %c147 = arith.constant 147 : index
    %c0_570 = arith.constant 0 : index
    %c0_571 = arith.constant 0 : index
    %1277 = vector.load %arg0[%c147, %c0_570, %c0_571] : memref<192x8x128xf32, #tpu.memory_space<vmem>>, vector<1x8x128xf32>
    %1278 = vector.shape_cast %1277 : vector<1x8x128xf32> to vector<8x128xf32>
    %c120_i32_572 = arith.constant 120 : i32
    %1279 = tpu.dynamic_rotate %1263 by %c120_i32_572 dim 1 : vector<8x128xf32>, i32 -> vector<8x128xf32>
    %c8_i32_573 = arith.constant 8 : i32
    %1280 = tpu.dynamic_rotate %1263 by %c8_i32_573 dim 1 : vector<8x128xf32>, i32 -> vector<8x128xf32>
    %c120_i32_574 = arith.constant 120 : i32
    %1281 = tpu.dynamic_rotate %1270 by %c120_i32_574 dim 1 : vector<8x128xf32>, i32 -> vector<8x128xf32>
    %c8_i32_575 = arith.constant 8 : i32
    %1282 = tpu.dynamic_rotate %1270 by %c8_i32_575 dim 1 : vector<8x128xf32>, i32 -> vector<8x128xf32>
    %1283 = arith.select %19, %1279, %1280 : vector<8x128xi1>, vector<8x128xf32>
    %1284 = arith.select %19, %1281, %1282 : vector<8x128xi1>, vector<8x128xf32>
    %1285 = arith.mulf %1272, %1263 : vector<8x128xf32>
    %1286 = arith.mulf %1274, %1270 : vector<8x128xf32>
    %1287 = arith.subf %1285, %1286 : vector<8x128xf32>
    %1288 = arith.mulf %1276, %1283 : vector<8x128xf32>
    %1289 = arith.addf %1287, %1288 : vector<8x128xf32>
    %1290 = arith.mulf %1278, %1284 : vector<8x128xf32>
    %1291 = arith.subf %1289, %1290 : vector<8x128xf32>
    %1292 = arith.mulf %1272, %1270 : vector<8x128xf32>
    %1293 = arith.mulf %1274, %1263 : vector<8x128xf32>
    %1294 = arith.addf %1292, %1293 : vector<8x128xf32>
    %1295 = arith.mulf %1276, %1284 : vector<8x128xf32>
    %1296 = arith.addf %1294, %1295 : vector<8x128xf32>
    %1297 = arith.mulf %1278, %1283 : vector<8x128xf32>
    %1298 = arith.addf %1296, %1297 : vector<8x128xf32>
    %c148 = arith.constant 148 : index
    %c0_576 = arith.constant 0 : index
    %c0_577 = arith.constant 0 : index
    %1299 = vector.load %arg0[%c148, %c0_576, %c0_577] : memref<192x8x128xf32, #tpu.memory_space<vmem>>, vector<1x8x128xf32>
    %1300 = vector.shape_cast %1299 : vector<1x8x128xf32> to vector<8x128xf32>
    %c149 = arith.constant 149 : index
    %c0_578 = arith.constant 0 : index
    %c0_579 = arith.constant 0 : index
    %1301 = vector.load %arg0[%c149, %c0_578, %c0_579] : memref<192x8x128xf32, #tpu.memory_space<vmem>>, vector<1x8x128xf32>
    %1302 = vector.shape_cast %1301 : vector<1x8x128xf32> to vector<8x128xf32>
    %c150 = arith.constant 150 : index
    %c0_580 = arith.constant 0 : index
    %c0_581 = arith.constant 0 : index
    %1303 = vector.load %arg0[%c150, %c0_580, %c0_581] : memref<192x8x128xf32, #tpu.memory_space<vmem>>, vector<1x8x128xf32>
    %1304 = vector.shape_cast %1303 : vector<1x8x128xf32> to vector<8x128xf32>
    %c151 = arith.constant 151 : index
    %c0_582 = arith.constant 0 : index
    %c0_583 = arith.constant 0 : index
    %1305 = vector.load %arg0[%c151, %c0_582, %c0_583] : memref<192x8x128xf32, #tpu.memory_space<vmem>>, vector<1x8x128xf32>
    %1306 = vector.shape_cast %1305 : vector<1x8x128xf32> to vector<8x128xf32>
    %c124_i32_584 = arith.constant 124 : i32
    %1307 = tpu.dynamic_rotate %1291 by %c124_i32_584 dim 1 : vector<8x128xf32>, i32 -> vector<8x128xf32>
    %c4_i32_585 = arith.constant 4 : i32
    %1308 = tpu.dynamic_rotate %1291 by %c4_i32_585 dim 1 : vector<8x128xf32>, i32 -> vector<8x128xf32>
    %c124_i32_586 = arith.constant 124 : i32
    %1309 = tpu.dynamic_rotate %1298 by %c124_i32_586 dim 1 : vector<8x128xf32>, i32 -> vector<8x128xf32>
    %c4_i32_587 = arith.constant 4 : i32
    %1310 = tpu.dynamic_rotate %1298 by %c4_i32_587 dim 1 : vector<8x128xf32>, i32 -> vector<8x128xf32>
    %1311 = arith.select %23, %1307, %1308 : vector<8x128xi1>, vector<8x128xf32>
    %1312 = arith.select %23, %1309, %1310 : vector<8x128xi1>, vector<8x128xf32>
    %1313 = arith.mulf %1300, %1291 : vector<8x128xf32>
    %1314 = arith.mulf %1302, %1298 : vector<8x128xf32>
    %1315 = arith.subf %1313, %1314 : vector<8x128xf32>
    %1316 = arith.mulf %1304, %1311 : vector<8x128xf32>
    %1317 = arith.addf %1315, %1316 : vector<8x128xf32>
    %1318 = arith.mulf %1306, %1312 : vector<8x128xf32>
    %1319 = arith.subf %1317, %1318 : vector<8x128xf32>
    %1320 = arith.mulf %1300, %1298 : vector<8x128xf32>
    %1321 = arith.mulf %1302, %1291 : vector<8x128xf32>
    %1322 = arith.addf %1320, %1321 : vector<8x128xf32>
    %1323 = arith.mulf %1304, %1312 : vector<8x128xf32>
    %1324 = arith.addf %1322, %1323 : vector<8x128xf32>
    %1325 = arith.mulf %1306, %1311 : vector<8x128xf32>
    %1326 = arith.addf %1324, %1325 : vector<8x128xf32>
    %c152 = arith.constant 152 : index
    %c0_588 = arith.constant 0 : index
    %c0_589 = arith.constant 0 : index
    %1327 = vector.load %arg0[%c152, %c0_588, %c0_589] : memref<192x8x128xf32, #tpu.memory_space<vmem>>, vector<1x8x128xf32>
    %1328 = vector.shape_cast %1327 : vector<1x8x128xf32> to vector<8x128xf32>
    %c153 = arith.constant 153 : index
    %c0_590 = arith.constant 0 : index
    %c0_591 = arith.constant 0 : index
    %1329 = vector.load %arg0[%c153, %c0_590, %c0_591] : memref<192x8x128xf32, #tpu.memory_space<vmem>>, vector<1x8x128xf32>
    %1330 = vector.shape_cast %1329 : vector<1x8x128xf32> to vector<8x128xf32>
    %c154 = arith.constant 154 : index
    %c0_592 = arith.constant 0 : index
    %c0_593 = arith.constant 0 : index
    %1331 = vector.load %arg0[%c154, %c0_592, %c0_593] : memref<192x8x128xf32, #tpu.memory_space<vmem>>, vector<1x8x128xf32>
    %1332 = vector.shape_cast %1331 : vector<1x8x128xf32> to vector<8x128xf32>
    %c155 = arith.constant 155 : index
    %c0_594 = arith.constant 0 : index
    %c0_595 = arith.constant 0 : index
    %1333 = vector.load %arg0[%c155, %c0_594, %c0_595] : memref<192x8x128xf32, #tpu.memory_space<vmem>>, vector<1x8x128xf32>
    %1334 = vector.shape_cast %1333 : vector<1x8x128xf32> to vector<8x128xf32>
    %c126_i32_596 = arith.constant 126 : i32
    %1335 = tpu.dynamic_rotate %1319 by %c126_i32_596 dim 1 : vector<8x128xf32>, i32 -> vector<8x128xf32>
    %c2_i32_597 = arith.constant 2 : i32
    %1336 = tpu.dynamic_rotate %1319 by %c2_i32_597 dim 1 : vector<8x128xf32>, i32 -> vector<8x128xf32>
    %c126_i32_598 = arith.constant 126 : i32
    %1337 = tpu.dynamic_rotate %1326 by %c126_i32_598 dim 1 : vector<8x128xf32>, i32 -> vector<8x128xf32>
    %c2_i32_599 = arith.constant 2 : i32
    %1338 = tpu.dynamic_rotate %1326 by %c2_i32_599 dim 1 : vector<8x128xf32>, i32 -> vector<8x128xf32>
    %1339 = arith.select %27, %1335, %1336 : vector<8x128xi1>, vector<8x128xf32>
    %1340 = arith.select %27, %1337, %1338 : vector<8x128xi1>, vector<8x128xf32>
    %1341 = arith.mulf %1328, %1319 : vector<8x128xf32>
    %1342 = arith.mulf %1330, %1326 : vector<8x128xf32>
    %1343 = arith.subf %1341, %1342 : vector<8x128xf32>
    %1344 = arith.mulf %1332, %1339 : vector<8x128xf32>
    %1345 = arith.addf %1343, %1344 : vector<8x128xf32>
    %1346 = arith.mulf %1334, %1340 : vector<8x128xf32>
    %1347 = arith.subf %1345, %1346 : vector<8x128xf32>
    %1348 = arith.mulf %1328, %1326 : vector<8x128xf32>
    %1349 = arith.mulf %1330, %1319 : vector<8x128xf32>
    %1350 = arith.addf %1348, %1349 : vector<8x128xf32>
    %1351 = arith.mulf %1332, %1340 : vector<8x128xf32>
    %1352 = arith.addf %1350, %1351 : vector<8x128xf32>
    %1353 = arith.mulf %1334, %1339 : vector<8x128xf32>
    %1354 = arith.addf %1352, %1353 : vector<8x128xf32>
    %c156 = arith.constant 156 : index
    %c0_600 = arith.constant 0 : index
    %c0_601 = arith.constant 0 : index
    %1355 = vector.load %arg0[%c156, %c0_600, %c0_601] : memref<192x8x128xf32, #tpu.memory_space<vmem>>, vector<1x8x128xf32>
    %1356 = vector.shape_cast %1355 : vector<1x8x128xf32> to vector<8x128xf32>
    %c157 = arith.constant 157 : index
    %c0_602 = arith.constant 0 : index
    %c0_603 = arith.constant 0 : index
    %1357 = vector.load %arg0[%c157, %c0_602, %c0_603] : memref<192x8x128xf32, #tpu.memory_space<vmem>>, vector<1x8x128xf32>
    %1358 = vector.shape_cast %1357 : vector<1x8x128xf32> to vector<8x128xf32>
    %c158 = arith.constant 158 : index
    %c0_604 = arith.constant 0 : index
    %c0_605 = arith.constant 0 : index
    %1359 = vector.load %arg0[%c158, %c0_604, %c0_605] : memref<192x8x128xf32, #tpu.memory_space<vmem>>, vector<1x8x128xf32>
    %1360 = vector.shape_cast %1359 : vector<1x8x128xf32> to vector<8x128xf32>
    %c159 = arith.constant 159 : index
    %c0_606 = arith.constant 0 : index
    %c0_607 = arith.constant 0 : index
    %1361 = vector.load %arg0[%c159, %c0_606, %c0_607] : memref<192x8x128xf32, #tpu.memory_space<vmem>>, vector<1x8x128xf32>
    %1362 = vector.shape_cast %1361 : vector<1x8x128xf32> to vector<8x128xf32>
    %c127_i32_608 = arith.constant 127 : i32
    %1363 = tpu.dynamic_rotate %1347 by %c127_i32_608 dim 1 : vector<8x128xf32>, i32 -> vector<8x128xf32>
    %c1_i32_609 = arith.constant 1 : i32
    %1364 = tpu.dynamic_rotate %1347 by %c1_i32_609 dim 1 : vector<8x128xf32>, i32 -> vector<8x128xf32>
    %c127_i32_610 = arith.constant 127 : i32
    %1365 = tpu.dynamic_rotate %1354 by %c127_i32_610 dim 1 : vector<8x128xf32>, i32 -> vector<8x128xf32>
    %c1_i32_611 = arith.constant 1 : i32
    %1366 = tpu.dynamic_rotate %1354 by %c1_i32_611 dim 1 : vector<8x128xf32>, i32 -> vector<8x128xf32>
    %1367 = arith.select %31, %1363, %1364 : vector<8x128xi1>, vector<8x128xf32>
    %1368 = arith.select %31, %1365, %1366 : vector<8x128xi1>, vector<8x128xf32>
    %1369 = arith.mulf %1356, %1347 : vector<8x128xf32>
    %1370 = arith.mulf %1358, %1354 : vector<8x128xf32>
    %1371 = arith.subf %1369, %1370 : vector<8x128xf32>
    %1372 = arith.mulf %1360, %1367 : vector<8x128xf32>
    %1373 = arith.addf %1371, %1372 : vector<8x128xf32>
    %1374 = arith.mulf %1362, %1368 : vector<8x128xf32>
    %1375 = arith.subf %1373, %1374 : vector<8x128xf32>
    %1376 = arith.mulf %1356, %1354 : vector<8x128xf32>
    %1377 = arith.mulf %1358, %1347 : vector<8x128xf32>
    %1378 = arith.addf %1376, %1377 : vector<8x128xf32>
    %1379 = arith.mulf %1360, %1368 : vector<8x128xf32>
    %1380 = arith.addf %1378, %1379 : vector<8x128xf32>
    %1381 = arith.mulf %1362, %1367 : vector<8x128xf32>
    %1382 = arith.addf %1380, %1381 : vector<8x128xf32>
    %c96_i32_612 = arith.constant 96 : i32
    %1383 = tpu.dynamic_rotate %1375 by %c96_i32_612 dim 1 : vector<8x128xf32>, i32 -> vector<8x128xf32>
    %c32_i32_613 = arith.constant 32 : i32
    %1384 = tpu.dynamic_rotate %1375 by %c32_i32_613 dim 1 : vector<8x128xf32>, i32 -> vector<8x128xf32>
    %c96_i32_614 = arith.constant 96 : i32
    %1385 = tpu.dynamic_rotate %1382 by %c96_i32_614 dim 1 : vector<8x128xf32>, i32 -> vector<8x128xf32>
    %c32_i32_615 = arith.constant 32 : i32
    %1386 = tpu.dynamic_rotate %1382 by %c32_i32_615 dim 1 : vector<8x128xf32>, i32 -> vector<8x128xf32>
    %1387 = arith.select %11, %1383, %1384 : vector<8x128xi1>, vector<8x128xf32>
    %1388 = arith.select %11, %1385, %1386 : vector<8x128xi1>, vector<8x128xf32>
    %1389 = arith.select %3, %1375, %1387 : vector<8x128xi1>, vector<8x128xf32>
    %1390 = arith.select %3, %1382, %1388 : vector<8x128xi1>, vector<8x128xf32>
    %c112_i32_616 = arith.constant 112 : i32
    %1391 = tpu.dynamic_rotate %1389 by %c112_i32_616 dim 1 : vector<8x128xf32>, i32 -> vector<8x128xf32>
    %c16_i32_617 = arith.constant 16 : i32
    %1392 = tpu.dynamic_rotate %1389 by %c16_i32_617 dim 1 : vector<8x128xf32>, i32 -> vector<8x128xf32>
    %c112_i32_618 = arith.constant 112 : i32
    %1393 = tpu.dynamic_rotate %1390 by %c112_i32_618 dim 1 : vector<8x128xf32>, i32 -> vector<8x128xf32>
    %c16_i32_619 = arith.constant 16 : i32
    %1394 = tpu.dynamic_rotate %1390 by %c16_i32_619 dim 1 : vector<8x128xf32>, i32 -> vector<8x128xf32>
    %1395 = arith.select %15, %1391, %1392 : vector<8x128xi1>, vector<8x128xf32>
    %1396 = arith.select %15, %1393, %1394 : vector<8x128xi1>, vector<8x128xf32>
    %1397 = arith.select %7, %1389, %1395 : vector<8x128xi1>, vector<8x128xf32>
    %1398 = arith.select %7, %1390, %1396 : vector<8x128xi1>, vector<8x128xf32>
    %c120_i32_620 = arith.constant 120 : i32
    %1399 = tpu.dynamic_rotate %1397 by %c120_i32_620 dim 1 : vector<8x128xf32>, i32 -> vector<8x128xf32>
    %c8_i32_621 = arith.constant 8 : i32
    %1400 = tpu.dynamic_rotate %1397 by %c8_i32_621 dim 1 : vector<8x128xf32>, i32 -> vector<8x128xf32>
    %c120_i32_622 = arith.constant 120 : i32
    %1401 = tpu.dynamic_rotate %1398 by %c120_i32_622 dim 1 : vector<8x128xf32>, i32 -> vector<8x128xf32>
    %c8_i32_623 = arith.constant 8 : i32
    %1402 = tpu.dynamic_rotate %1398 by %c8_i32_623 dim 1 : vector<8x128xf32>, i32 -> vector<8x128xf32>
    %1403 = arith.select %19, %1399, %1400 : vector<8x128xi1>, vector<8x128xf32>
    %1404 = arith.select %19, %1401, %1402 : vector<8x128xi1>, vector<8x128xf32>
    %1405 = arith.select %11, %1397, %1403 : vector<8x128xi1>, vector<8x128xf32>
    %1406 = arith.select %11, %1398, %1404 : vector<8x128xi1>, vector<8x128xf32>
    %c124_i32_624 = arith.constant 124 : i32
    %1407 = tpu.dynamic_rotate %1405 by %c124_i32_624 dim 1 : vector<8x128xf32>, i32 -> vector<8x128xf32>
    %c4_i32_625 = arith.constant 4 : i32
    %1408 = tpu.dynamic_rotate %1405 by %c4_i32_625 dim 1 : vector<8x128xf32>, i32 -> vector<8x128xf32>
    %c124_i32_626 = arith.constant 124 : i32
    %1409 = tpu.dynamic_rotate %1406 by %c124_i32_626 dim 1 : vector<8x128xf32>, i32 -> vector<8x128xf32>
    %c4_i32_627 = arith.constant 4 : i32
    %1410 = tpu.dynamic_rotate %1406 by %c4_i32_627 dim 1 : vector<8x128xf32>, i32 -> vector<8x128xf32>
    %1411 = arith.select %23, %1407, %1408 : vector<8x128xi1>, vector<8x128xf32>
    %1412 = arith.select %23, %1409, %1410 : vector<8x128xi1>, vector<8x128xf32>
    %1413 = arith.select %15, %1405, %1411 : vector<8x128xi1>, vector<8x128xf32>
    %1414 = arith.select %15, %1406, %1412 : vector<8x128xi1>, vector<8x128xf32>
    %c126_i32_628 = arith.constant 126 : i32
    %1415 = tpu.dynamic_rotate %1413 by %c126_i32_628 dim 1 : vector<8x128xf32>, i32 -> vector<8x128xf32>
    %c2_i32_629 = arith.constant 2 : i32
    %1416 = tpu.dynamic_rotate %1413 by %c2_i32_629 dim 1 : vector<8x128xf32>, i32 -> vector<8x128xf32>
    %c126_i32_630 = arith.constant 126 : i32
    %1417 = tpu.dynamic_rotate %1414 by %c126_i32_630 dim 1 : vector<8x128xf32>, i32 -> vector<8x128xf32>
    %c2_i32_631 = arith.constant 2 : i32
    %1418 = tpu.dynamic_rotate %1414 by %c2_i32_631 dim 1 : vector<8x128xf32>, i32 -> vector<8x128xf32>
    %1419 = arith.select %27, %1415, %1416 : vector<8x128xi1>, vector<8x128xf32>
    %1420 = arith.select %27, %1417, %1418 : vector<8x128xi1>, vector<8x128xf32>
    %1421 = arith.select %19, %1413, %1419 : vector<8x128xi1>, vector<8x128xf32>
    %1422 = arith.select %19, %1414, %1420 : vector<8x128xi1>, vector<8x128xf32>
    %c127_i32_632 = arith.constant 127 : i32
    %1423 = tpu.dynamic_rotate %1421 by %c127_i32_632 dim 1 : vector<8x128xf32>, i32 -> vector<8x128xf32>
    %c1_i32_633 = arith.constant 1 : i32
    %1424 = tpu.dynamic_rotate %1421 by %c1_i32_633 dim 1 : vector<8x128xf32>, i32 -> vector<8x128xf32>
    %c127_i32_634 = arith.constant 127 : i32
    %1425 = tpu.dynamic_rotate %1422 by %c127_i32_634 dim 1 : vector<8x128xf32>, i32 -> vector<8x128xf32>
    %c1_i32_635 = arith.constant 1 : i32
    %1426 = tpu.dynamic_rotate %1422 by %c1_i32_635 dim 1 : vector<8x128xf32>, i32 -> vector<8x128xf32>
    %1427 = arith.select %31, %1423, %1424 : vector<8x128xi1>, vector<8x128xf32>
    %1428 = arith.select %31, %1425, %1426 : vector<8x128xi1>, vector<8x128xf32>
    %1429 = arith.select %23, %1421, %1427 : vector<8x128xi1>, vector<8x128xf32>
    %1430 = arith.select %23, %1422, %1428 : vector<8x128xi1>, vector<8x128xf32>
    %c4_i32_636 = arith.constant 4 : i32
    %1431 = tpu.dynamic_rotate %1429 by %c4_i32_636 dim 0 : vector<8x128xf32>, i32 -> vector<8x128xf32>
    %c4_i32_637 = arith.constant 4 : i32
    %1432 = tpu.dynamic_rotate %1430 by %c4_i32_637 dim 0 : vector<8x128xf32>, i32 -> vector<8x128xf32>
    %1433 = arith.select %27, %1429, %1431 : vector<8x128xi1>, vector<8x128xf32>
    %1434 = arith.select %27, %1430, %1432 : vector<8x128xi1>, vector<8x128xf32>
    %c64_i32_638 = arith.constant 64 : i32
    %1435 = tpu.dynamic_rotate %1433 by %c64_i32_638 dim 1 : vector<8x128xf32>, i32 -> vector<8x128xf32>
    %c64_i32_639 = arith.constant 64 : i32
    %1436 = tpu.dynamic_rotate %1433 by %c64_i32_639 dim 1 : vector<8x128xf32>, i32 -> vector<8x128xf32>
    %c64_i32_640 = arith.constant 64 : i32
    %1437 = tpu.dynamic_rotate %1434 by %c64_i32_640 dim 1 : vector<8x128xf32>, i32 -> vector<8x128xf32>
    %c64_i32_641 = arith.constant 64 : i32
    %1438 = tpu.dynamic_rotate %1434 by %c64_i32_641 dim 1 : vector<8x128xf32>, i32 -> vector<8x128xf32>
    %1439 = arith.select %7, %1435, %1436 : vector<8x128xi1>, vector<8x128xf32>
    %1440 = arith.select %7, %1437, %1438 : vector<8x128xi1>, vector<8x128xf32>
    %1441 = arith.select %31, %1433, %1439 : vector<8x128xi1>, vector<8x128xf32>
    %1442 = arith.select %31, %1434, %1440 : vector<8x128xi1>, vector<8x128xf32>
    %c160 = arith.constant 160 : index
    %c0_642 = arith.constant 0 : index
    %c0_643 = arith.constant 0 : index
    %1443 = vector.load %arg0[%c160, %c0_642, %c0_643] : memref<192x8x128xf32, #tpu.memory_space<vmem>>, vector<1x8x128xf32>
    %1444 = vector.shape_cast %1443 : vector<1x8x128xf32> to vector<8x128xf32>
    %c161 = arith.constant 161 : index
    %c0_644 = arith.constant 0 : index
    %c0_645 = arith.constant 0 : index
    %1445 = vector.load %arg0[%c161, %c0_644, %c0_645] : memref<192x8x128xf32, #tpu.memory_space<vmem>>, vector<1x8x128xf32>
    %1446 = vector.shape_cast %1445 : vector<1x8x128xf32> to vector<8x128xf32>
    %c162 = arith.constant 162 : index
    %c0_646 = arith.constant 0 : index
    %c0_647 = arith.constant 0 : index
    %1447 = vector.load %arg0[%c162, %c0_646, %c0_647] : memref<192x8x128xf32, #tpu.memory_space<vmem>>, vector<1x8x128xf32>
    %1448 = vector.shape_cast %1447 : vector<1x8x128xf32> to vector<8x128xf32>
    %c163 = arith.constant 163 : index
    %c0_648 = arith.constant 0 : index
    %c0_649 = arith.constant 0 : index
    %1449 = vector.load %arg0[%c163, %c0_648, %c0_649] : memref<192x8x128xf32, #tpu.memory_space<vmem>>, vector<1x8x128xf32>
    %1450 = vector.shape_cast %1449 : vector<1x8x128xf32> to vector<8x128xf32>
    %c4_i32_650 = arith.constant 4 : i32
    %1451 = tpu.dynamic_rotate %1441 by %c4_i32_650 dim 0 : vector<8x128xf32>, i32 -> vector<8x128xf32>
    %c4_i32_651 = arith.constant 4 : i32
    %1452 = tpu.dynamic_rotate %1442 by %c4_i32_651 dim 0 : vector<8x128xf32>, i32 -> vector<8x128xf32>
    %1453 = arith.mulf %1444, %1441 : vector<8x128xf32>
    %1454 = arith.mulf %1446, %1442 : vector<8x128xf32>
    %1455 = arith.subf %1453, %1454 : vector<8x128xf32>
    %1456 = arith.mulf %1448, %1451 : vector<8x128xf32>
    %1457 = arith.addf %1455, %1456 : vector<8x128xf32>
    %1458 = arith.mulf %1450, %1452 : vector<8x128xf32>
    %1459 = arith.subf %1457, %1458 : vector<8x128xf32>
    %1460 = arith.mulf %1444, %1442 : vector<8x128xf32>
    %1461 = arith.mulf %1446, %1441 : vector<8x128xf32>
    %1462 = arith.addf %1460, %1461 : vector<8x128xf32>
    %1463 = arith.mulf %1448, %1452 : vector<8x128xf32>
    %1464 = arith.addf %1462, %1463 : vector<8x128xf32>
    %1465 = arith.mulf %1450, %1451 : vector<8x128xf32>
    %1466 = arith.addf %1464, %1465 : vector<8x128xf32>
    %c164 = arith.constant 164 : index
    %c0_652 = arith.constant 0 : index
    %c0_653 = arith.constant 0 : index
    %1467 = vector.load %arg0[%c164, %c0_652, %c0_653] : memref<192x8x128xf32, #tpu.memory_space<vmem>>, vector<1x8x128xf32>
    %1468 = vector.shape_cast %1467 : vector<1x8x128xf32> to vector<8x128xf32>
    %c165 = arith.constant 165 : index
    %c0_654 = arith.constant 0 : index
    %c0_655 = arith.constant 0 : index
    %1469 = vector.load %arg0[%c165, %c0_654, %c0_655] : memref<192x8x128xf32, #tpu.memory_space<vmem>>, vector<1x8x128xf32>
    %1470 = vector.shape_cast %1469 : vector<1x8x128xf32> to vector<8x128xf32>
    %c166 = arith.constant 166 : index
    %c0_656 = arith.constant 0 : index
    %c0_657 = arith.constant 0 : index
    %1471 = vector.load %arg0[%c166, %c0_656, %c0_657] : memref<192x8x128xf32, #tpu.memory_space<vmem>>, vector<1x8x128xf32>
    %1472 = vector.shape_cast %1471 : vector<1x8x128xf32> to vector<8x128xf32>
    %c167 = arith.constant 167 : index
    %c0_658 = arith.constant 0 : index
    %c0_659 = arith.constant 0 : index
    %1473 = vector.load %arg0[%c167, %c0_658, %c0_659] : memref<192x8x128xf32, #tpu.memory_space<vmem>>, vector<1x8x128xf32>
    %1474 = vector.shape_cast %1473 : vector<1x8x128xf32> to vector<8x128xf32>
    %c64_i32_660 = arith.constant 64 : i32
    %1475 = tpu.dynamic_rotate %1459 by %c64_i32_660 dim 1 : vector<8x128xf32>, i32 -> vector<8x128xf32>
    %c64_i32_661 = arith.constant 64 : i32
    %1476 = tpu.dynamic_rotate %1459 by %c64_i32_661 dim 1 : vector<8x128xf32>, i32 -> vector<8x128xf32>
    %c64_i32_662 = arith.constant 64 : i32
    %1477 = tpu.dynamic_rotate %1466 by %c64_i32_662 dim 1 : vector<8x128xf32>, i32 -> vector<8x128xf32>
    %c64_i32_663 = arith.constant 64 : i32
    %1478 = tpu.dynamic_rotate %1466 by %c64_i32_663 dim 1 : vector<8x128xf32>, i32 -> vector<8x128xf32>
    %1479 = arith.select %7, %1475, %1476 : vector<8x128xi1>, vector<8x128xf32>
    %1480 = arith.select %7, %1477, %1478 : vector<8x128xi1>, vector<8x128xf32>
    %1481 = arith.mulf %1468, %1459 : vector<8x128xf32>
    %1482 = arith.mulf %1470, %1466 : vector<8x128xf32>
    %1483 = arith.subf %1481, %1482 : vector<8x128xf32>
    %1484 = arith.mulf %1472, %1479 : vector<8x128xf32>
    %1485 = arith.addf %1483, %1484 : vector<8x128xf32>
    %1486 = arith.mulf %1474, %1480 : vector<8x128xf32>
    %1487 = arith.subf %1485, %1486 : vector<8x128xf32>
    %1488 = arith.mulf %1468, %1466 : vector<8x128xf32>
    %1489 = arith.mulf %1470, %1459 : vector<8x128xf32>
    %1490 = arith.addf %1488, %1489 : vector<8x128xf32>
    %1491 = arith.mulf %1472, %1480 : vector<8x128xf32>
    %1492 = arith.addf %1490, %1491 : vector<8x128xf32>
    %1493 = arith.mulf %1474, %1479 : vector<8x128xf32>
    %1494 = arith.addf %1492, %1493 : vector<8x128xf32>
    %c168 = arith.constant 168 : index
    %c0_664 = arith.constant 0 : index
    %c0_665 = arith.constant 0 : index
    %1495 = vector.load %arg0[%c168, %c0_664, %c0_665] : memref<192x8x128xf32, #tpu.memory_space<vmem>>, vector<1x8x128xf32>
    %1496 = vector.shape_cast %1495 : vector<1x8x128xf32> to vector<8x128xf32>
    %c169 = arith.constant 169 : index
    %c0_666 = arith.constant 0 : index
    %c0_667 = arith.constant 0 : index
    %1497 = vector.load %arg0[%c169, %c0_666, %c0_667] : memref<192x8x128xf32, #tpu.memory_space<vmem>>, vector<1x8x128xf32>
    %1498 = vector.shape_cast %1497 : vector<1x8x128xf32> to vector<8x128xf32>
    %c170 = arith.constant 170 : index
    %c0_668 = arith.constant 0 : index
    %c0_669 = arith.constant 0 : index
    %1499 = vector.load %arg0[%c170, %c0_668, %c0_669] : memref<192x8x128xf32, #tpu.memory_space<vmem>>, vector<1x8x128xf32>
    %1500 = vector.shape_cast %1499 : vector<1x8x128xf32> to vector<8x128xf32>
    %c171 = arith.constant 171 : index
    %c0_670 = arith.constant 0 : index
    %c0_671 = arith.constant 0 : index
    %1501 = vector.load %arg0[%c171, %c0_670, %c0_671] : memref<192x8x128xf32, #tpu.memory_space<vmem>>, vector<1x8x128xf32>
    %1502 = vector.shape_cast %1501 : vector<1x8x128xf32> to vector<8x128xf32>
    %c96_i32_672 = arith.constant 96 : i32
    %1503 = tpu.dynamic_rotate %1487 by %c96_i32_672 dim 1 : vector<8x128xf32>, i32 -> vector<8x128xf32>
    %c32_i32_673 = arith.constant 32 : i32
    %1504 = tpu.dynamic_rotate %1487 by %c32_i32_673 dim 1 : vector<8x128xf32>, i32 -> vector<8x128xf32>
    %c96_i32_674 = arith.constant 96 : i32
    %1505 = tpu.dynamic_rotate %1494 by %c96_i32_674 dim 1 : vector<8x128xf32>, i32 -> vector<8x128xf32>
    %c32_i32_675 = arith.constant 32 : i32
    %1506 = tpu.dynamic_rotate %1494 by %c32_i32_675 dim 1 : vector<8x128xf32>, i32 -> vector<8x128xf32>
    %1507 = arith.select %11, %1503, %1504 : vector<8x128xi1>, vector<8x128xf32>
    %1508 = arith.select %11, %1505, %1506 : vector<8x128xi1>, vector<8x128xf32>
    %1509 = arith.mulf %1496, %1487 : vector<8x128xf32>
    %1510 = arith.mulf %1498, %1494 : vector<8x128xf32>
    %1511 = arith.subf %1509, %1510 : vector<8x128xf32>
    %1512 = arith.mulf %1500, %1507 : vector<8x128xf32>
    %1513 = arith.addf %1511, %1512 : vector<8x128xf32>
    %1514 = arith.mulf %1502, %1508 : vector<8x128xf32>
    %1515 = arith.subf %1513, %1514 : vector<8x128xf32>
    %1516 = arith.mulf %1496, %1494 : vector<8x128xf32>
    %1517 = arith.mulf %1498, %1487 : vector<8x128xf32>
    %1518 = arith.addf %1516, %1517 : vector<8x128xf32>
    %1519 = arith.mulf %1500, %1508 : vector<8x128xf32>
    %1520 = arith.addf %1518, %1519 : vector<8x128xf32>
    %1521 = arith.mulf %1502, %1507 : vector<8x128xf32>
    %1522 = arith.addf %1520, %1521 : vector<8x128xf32>
    %c172 = arith.constant 172 : index
    %c0_676 = arith.constant 0 : index
    %c0_677 = arith.constant 0 : index
    %1523 = vector.load %arg0[%c172, %c0_676, %c0_677] : memref<192x8x128xf32, #tpu.memory_space<vmem>>, vector<1x8x128xf32>
    %1524 = vector.shape_cast %1523 : vector<1x8x128xf32> to vector<8x128xf32>
    %c173 = arith.constant 173 : index
    %c0_678 = arith.constant 0 : index
    %c0_679 = arith.constant 0 : index
    %1525 = vector.load %arg0[%c173, %c0_678, %c0_679] : memref<192x8x128xf32, #tpu.memory_space<vmem>>, vector<1x8x128xf32>
    %1526 = vector.shape_cast %1525 : vector<1x8x128xf32> to vector<8x128xf32>
    %c174 = arith.constant 174 : index
    %c0_680 = arith.constant 0 : index
    %c0_681 = arith.constant 0 : index
    %1527 = vector.load %arg0[%c174, %c0_680, %c0_681] : memref<192x8x128xf32, #tpu.memory_space<vmem>>, vector<1x8x128xf32>
    %1528 = vector.shape_cast %1527 : vector<1x8x128xf32> to vector<8x128xf32>
    %c175 = arith.constant 175 : index
    %c0_682 = arith.constant 0 : index
    %c0_683 = arith.constant 0 : index
    %1529 = vector.load %arg0[%c175, %c0_682, %c0_683] : memref<192x8x128xf32, #tpu.memory_space<vmem>>, vector<1x8x128xf32>
    %1530 = vector.shape_cast %1529 : vector<1x8x128xf32> to vector<8x128xf32>
    %c112_i32_684 = arith.constant 112 : i32
    %1531 = tpu.dynamic_rotate %1515 by %c112_i32_684 dim 1 : vector<8x128xf32>, i32 -> vector<8x128xf32>
    %c16_i32_685 = arith.constant 16 : i32
    %1532 = tpu.dynamic_rotate %1515 by %c16_i32_685 dim 1 : vector<8x128xf32>, i32 -> vector<8x128xf32>
    %c112_i32_686 = arith.constant 112 : i32
    %1533 = tpu.dynamic_rotate %1522 by %c112_i32_686 dim 1 : vector<8x128xf32>, i32 -> vector<8x128xf32>
    %c16_i32_687 = arith.constant 16 : i32
    %1534 = tpu.dynamic_rotate %1522 by %c16_i32_687 dim 1 : vector<8x128xf32>, i32 -> vector<8x128xf32>
    %1535 = arith.select %15, %1531, %1532 : vector<8x128xi1>, vector<8x128xf32>
    %1536 = arith.select %15, %1533, %1534 : vector<8x128xi1>, vector<8x128xf32>
    %1537 = arith.mulf %1524, %1515 : vector<8x128xf32>
    %1538 = arith.mulf %1526, %1522 : vector<8x128xf32>
    %1539 = arith.subf %1537, %1538 : vector<8x128xf32>
    %1540 = arith.mulf %1528, %1535 : vector<8x128xf32>
    %1541 = arith.addf %1539, %1540 : vector<8x128xf32>
    %1542 = arith.mulf %1530, %1536 : vector<8x128xf32>
    %1543 = arith.subf %1541, %1542 : vector<8x128xf32>
    %1544 = arith.mulf %1524, %1522 : vector<8x128xf32>
    %1545 = arith.mulf %1526, %1515 : vector<8x128xf32>
    %1546 = arith.addf %1544, %1545 : vector<8x128xf32>
    %1547 = arith.mulf %1528, %1536 : vector<8x128xf32>
    %1548 = arith.addf %1546, %1547 : vector<8x128xf32>
    %1549 = arith.mulf %1530, %1535 : vector<8x128xf32>
    %1550 = arith.addf %1548, %1549 : vector<8x128xf32>
    %c176 = arith.constant 176 : index
    %c0_688 = arith.constant 0 : index
    %c0_689 = arith.constant 0 : index
    %1551 = vector.load %arg0[%c176, %c0_688, %c0_689] : memref<192x8x128xf32, #tpu.memory_space<vmem>>, vector<1x8x128xf32>
    %1552 = vector.shape_cast %1551 : vector<1x8x128xf32> to vector<8x128xf32>
    %c177 = arith.constant 177 : index
    %c0_690 = arith.constant 0 : index
    %c0_691 = arith.constant 0 : index
    %1553 = vector.load %arg0[%c177, %c0_690, %c0_691] : memref<192x8x128xf32, #tpu.memory_space<vmem>>, vector<1x8x128xf32>
    %1554 = vector.shape_cast %1553 : vector<1x8x128xf32> to vector<8x128xf32>
    %c178 = arith.constant 178 : index
    %c0_692 = arith.constant 0 : index
    %c0_693 = arith.constant 0 : index
    %1555 = vector.load %arg0[%c178, %c0_692, %c0_693] : memref<192x8x128xf32, #tpu.memory_space<vmem>>, vector<1x8x128xf32>
    %1556 = vector.shape_cast %1555 : vector<1x8x128xf32> to vector<8x128xf32>
    %c179 = arith.constant 179 : index
    %c0_694 = arith.constant 0 : index
    %c0_695 = arith.constant 0 : index
    %1557 = vector.load %arg0[%c179, %c0_694, %c0_695] : memref<192x8x128xf32, #tpu.memory_space<vmem>>, vector<1x8x128xf32>
    %1558 = vector.shape_cast %1557 : vector<1x8x128xf32> to vector<8x128xf32>
    %c120_i32_696 = arith.constant 120 : i32
    %1559 = tpu.dynamic_rotate %1543 by %c120_i32_696 dim 1 : vector<8x128xf32>, i32 -> vector<8x128xf32>
    %c8_i32_697 = arith.constant 8 : i32
    %1560 = tpu.dynamic_rotate %1543 by %c8_i32_697 dim 1 : vector<8x128xf32>, i32 -> vector<8x128xf32>
    %c120_i32_698 = arith.constant 120 : i32
    %1561 = tpu.dynamic_rotate %1550 by %c120_i32_698 dim 1 : vector<8x128xf32>, i32 -> vector<8x128xf32>
    %c8_i32_699 = arith.constant 8 : i32
    %1562 = tpu.dynamic_rotate %1550 by %c8_i32_699 dim 1 : vector<8x128xf32>, i32 -> vector<8x128xf32>
    %1563 = arith.select %19, %1559, %1560 : vector<8x128xi1>, vector<8x128xf32>
    %1564 = arith.select %19, %1561, %1562 : vector<8x128xi1>, vector<8x128xf32>
    %1565 = arith.mulf %1552, %1543 : vector<8x128xf32>
    %1566 = arith.mulf %1554, %1550 : vector<8x128xf32>
    %1567 = arith.subf %1565, %1566 : vector<8x128xf32>
    %1568 = arith.mulf %1556, %1563 : vector<8x128xf32>
    %1569 = arith.addf %1567, %1568 : vector<8x128xf32>
    %1570 = arith.mulf %1558, %1564 : vector<8x128xf32>
    %1571 = arith.subf %1569, %1570 : vector<8x128xf32>
    %1572 = arith.mulf %1552, %1550 : vector<8x128xf32>
    %1573 = arith.mulf %1554, %1543 : vector<8x128xf32>
    %1574 = arith.addf %1572, %1573 : vector<8x128xf32>
    %1575 = arith.mulf %1556, %1564 : vector<8x128xf32>
    %1576 = arith.addf %1574, %1575 : vector<8x128xf32>
    %1577 = arith.mulf %1558, %1563 : vector<8x128xf32>
    %1578 = arith.addf %1576, %1577 : vector<8x128xf32>
    %c180 = arith.constant 180 : index
    %c0_700 = arith.constant 0 : index
    %c0_701 = arith.constant 0 : index
    %1579 = vector.load %arg0[%c180, %c0_700, %c0_701] : memref<192x8x128xf32, #tpu.memory_space<vmem>>, vector<1x8x128xf32>
    %1580 = vector.shape_cast %1579 : vector<1x8x128xf32> to vector<8x128xf32>
    %c181 = arith.constant 181 : index
    %c0_702 = arith.constant 0 : index
    %c0_703 = arith.constant 0 : index
    %1581 = vector.load %arg0[%c181, %c0_702, %c0_703] : memref<192x8x128xf32, #tpu.memory_space<vmem>>, vector<1x8x128xf32>
    %1582 = vector.shape_cast %1581 : vector<1x8x128xf32> to vector<8x128xf32>
    %c182 = arith.constant 182 : index
    %c0_704 = arith.constant 0 : index
    %c0_705 = arith.constant 0 : index
    %1583 = vector.load %arg0[%c182, %c0_704, %c0_705] : memref<192x8x128xf32, #tpu.memory_space<vmem>>, vector<1x8x128xf32>
    %1584 = vector.shape_cast %1583 : vector<1x8x128xf32> to vector<8x128xf32>
    %c183 = arith.constant 183 : index
    %c0_706 = arith.constant 0 : index
    %c0_707 = arith.constant 0 : index
    %1585 = vector.load %arg0[%c183, %c0_706, %c0_707] : memref<192x8x128xf32, #tpu.memory_space<vmem>>, vector<1x8x128xf32>
    %1586 = vector.shape_cast %1585 : vector<1x8x128xf32> to vector<8x128xf32>
    %c124_i32_708 = arith.constant 124 : i32
    %1587 = tpu.dynamic_rotate %1571 by %c124_i32_708 dim 1 : vector<8x128xf32>, i32 -> vector<8x128xf32>
    %c4_i32_709 = arith.constant 4 : i32
    %1588 = tpu.dynamic_rotate %1571 by %c4_i32_709 dim 1 : vector<8x128xf32>, i32 -> vector<8x128xf32>
    %c124_i32_710 = arith.constant 124 : i32
    %1589 = tpu.dynamic_rotate %1578 by %c124_i32_710 dim 1 : vector<8x128xf32>, i32 -> vector<8x128xf32>
    %c4_i32_711 = arith.constant 4 : i32
    %1590 = tpu.dynamic_rotate %1578 by %c4_i32_711 dim 1 : vector<8x128xf32>, i32 -> vector<8x128xf32>
    %1591 = arith.select %23, %1587, %1588 : vector<8x128xi1>, vector<8x128xf32>
    %1592 = arith.select %23, %1589, %1590 : vector<8x128xi1>, vector<8x128xf32>
    %1593 = arith.mulf %1580, %1571 : vector<8x128xf32>
    %1594 = arith.mulf %1582, %1578 : vector<8x128xf32>
    %1595 = arith.subf %1593, %1594 : vector<8x128xf32>
    %1596 = arith.mulf %1584, %1591 : vector<8x128xf32>
    %1597 = arith.addf %1595, %1596 : vector<8x128xf32>
    %1598 = arith.mulf %1586, %1592 : vector<8x128xf32>
    %1599 = arith.subf %1597, %1598 : vector<8x128xf32>
    %1600 = arith.mulf %1580, %1578 : vector<8x128xf32>
    %1601 = arith.mulf %1582, %1571 : vector<8x128xf32>
    %1602 = arith.addf %1600, %1601 : vector<8x128xf32>
    %1603 = arith.mulf %1584, %1592 : vector<8x128xf32>
    %1604 = arith.addf %1602, %1603 : vector<8x128xf32>
    %1605 = arith.mulf %1586, %1591 : vector<8x128xf32>
    %1606 = arith.addf %1604, %1605 : vector<8x128xf32>
    %c184 = arith.constant 184 : index
    %c0_712 = arith.constant 0 : index
    %c0_713 = arith.constant 0 : index
    %1607 = vector.load %arg0[%c184, %c0_712, %c0_713] : memref<192x8x128xf32, #tpu.memory_space<vmem>>, vector<1x8x128xf32>
    %1608 = vector.shape_cast %1607 : vector<1x8x128xf32> to vector<8x128xf32>
    %c185 = arith.constant 185 : index
    %c0_714 = arith.constant 0 : index
    %c0_715 = arith.constant 0 : index
    %1609 = vector.load %arg0[%c185, %c0_714, %c0_715] : memref<192x8x128xf32, #tpu.memory_space<vmem>>, vector<1x8x128xf32>
    %1610 = vector.shape_cast %1609 : vector<1x8x128xf32> to vector<8x128xf32>
    %c186 = arith.constant 186 : index
    %c0_716 = arith.constant 0 : index
    %c0_717 = arith.constant 0 : index
    %1611 = vector.load %arg0[%c186, %c0_716, %c0_717] : memref<192x8x128xf32, #tpu.memory_space<vmem>>, vector<1x8x128xf32>
    %1612 = vector.shape_cast %1611 : vector<1x8x128xf32> to vector<8x128xf32>
    %c187 = arith.constant 187 : index
    %c0_718 = arith.constant 0 : index
    %c0_719 = arith.constant 0 : index
    %1613 = vector.load %arg0[%c187, %c0_718, %c0_719] : memref<192x8x128xf32, #tpu.memory_space<vmem>>, vector<1x8x128xf32>
    %1614 = vector.shape_cast %1613 : vector<1x8x128xf32> to vector<8x128xf32>
    %c126_i32_720 = arith.constant 126 : i32
    %1615 = tpu.dynamic_rotate %1599 by %c126_i32_720 dim 1 : vector<8x128xf32>, i32 -> vector<8x128xf32>
    %c2_i32_721 = arith.constant 2 : i32
    %1616 = tpu.dynamic_rotate %1599 by %c2_i32_721 dim 1 : vector<8x128xf32>, i32 -> vector<8x128xf32>
    %c126_i32_722 = arith.constant 126 : i32
    %1617 = tpu.dynamic_rotate %1606 by %c126_i32_722 dim 1 : vector<8x128xf32>, i32 -> vector<8x128xf32>
    %c2_i32_723 = arith.constant 2 : i32
    %1618 = tpu.dynamic_rotate %1606 by %c2_i32_723 dim 1 : vector<8x128xf32>, i32 -> vector<8x128xf32>
    %1619 = arith.select %27, %1615, %1616 : vector<8x128xi1>, vector<8x128xf32>
    %1620 = arith.select %27, %1617, %1618 : vector<8x128xi1>, vector<8x128xf32>
    %1621 = arith.mulf %1608, %1599 : vector<8x128xf32>
    %1622 = arith.mulf %1610, %1606 : vector<8x128xf32>
    %1623 = arith.subf %1621, %1622 : vector<8x128xf32>
    %1624 = arith.mulf %1612, %1619 : vector<8x128xf32>
    %1625 = arith.addf %1623, %1624 : vector<8x128xf32>
    %1626 = arith.mulf %1614, %1620 : vector<8x128xf32>
    %1627 = arith.subf %1625, %1626 : vector<8x128xf32>
    %1628 = arith.mulf %1608, %1606 : vector<8x128xf32>
    %1629 = arith.mulf %1610, %1599 : vector<8x128xf32>
    %1630 = arith.addf %1628, %1629 : vector<8x128xf32>
    %1631 = arith.mulf %1612, %1620 : vector<8x128xf32>
    %1632 = arith.addf %1630, %1631 : vector<8x128xf32>
    %1633 = arith.mulf %1614, %1619 : vector<8x128xf32>
    %1634 = arith.addf %1632, %1633 : vector<8x128xf32>
    %c188 = arith.constant 188 : index
    %c0_724 = arith.constant 0 : index
    %c0_725 = arith.constant 0 : index
    %1635 = vector.load %arg0[%c188, %c0_724, %c0_725] : memref<192x8x128xf32, #tpu.memory_space<vmem>>, vector<1x8x128xf32>
    %1636 = vector.shape_cast %1635 : vector<1x8x128xf32> to vector<8x128xf32>
    %c189 = arith.constant 189 : index
    %c0_726 = arith.constant 0 : index
    %c0_727 = arith.constant 0 : index
    %1637 = vector.load %arg0[%c189, %c0_726, %c0_727] : memref<192x8x128xf32, #tpu.memory_space<vmem>>, vector<1x8x128xf32>
    %1638 = vector.shape_cast %1637 : vector<1x8x128xf32> to vector<8x128xf32>
    %c190 = arith.constant 190 : index
    %c0_728 = arith.constant 0 : index
    %c0_729 = arith.constant 0 : index
    %1639 = vector.load %arg0[%c190, %c0_728, %c0_729] : memref<192x8x128xf32, #tpu.memory_space<vmem>>, vector<1x8x128xf32>
    %1640 = vector.shape_cast %1639 : vector<1x8x128xf32> to vector<8x128xf32>
    %c191 = arith.constant 191 : index
    %c0_730 = arith.constant 0 : index
    %c0_731 = arith.constant 0 : index
    %1641 = vector.load %arg0[%c191, %c0_730, %c0_731] : memref<192x8x128xf32, #tpu.memory_space<vmem>>, vector<1x8x128xf32>
    %1642 = vector.shape_cast %1641 : vector<1x8x128xf32> to vector<8x128xf32>
    %c127_i32_732 = arith.constant 127 : i32
    %1643 = tpu.dynamic_rotate %1627 by %c127_i32_732 dim 1 : vector<8x128xf32>, i32 -> vector<8x128xf32>
    %c1_i32_733 = arith.constant 1 : i32
    %1644 = tpu.dynamic_rotate %1627 by %c1_i32_733 dim 1 : vector<8x128xf32>, i32 -> vector<8x128xf32>
    %c127_i32_734 = arith.constant 127 : i32
    %1645 = tpu.dynamic_rotate %1634 by %c127_i32_734 dim 1 : vector<8x128xf32>, i32 -> vector<8x128xf32>
    %c1_i32_735 = arith.constant 1 : i32
    %1646 = tpu.dynamic_rotate %1634 by %c1_i32_735 dim 1 : vector<8x128xf32>, i32 -> vector<8x128xf32>
    %1647 = arith.select %31, %1643, %1644 : vector<8x128xi1>, vector<8x128xf32>
    %1648 = arith.select %31, %1645, %1646 : vector<8x128xi1>, vector<8x128xf32>
    %1649 = arith.mulf %1636, %1627 : vector<8x128xf32>
    %1650 = arith.mulf %1638, %1634 : vector<8x128xf32>
    %1651 = arith.subf %1649, %1650 : vector<8x128xf32>
    %1652 = arith.mulf %1640, %1647 : vector<8x128xf32>
    %1653 = arith.addf %1651, %1652 : vector<8x128xf32>
    %1654 = arith.mulf %1642, %1648 : vector<8x128xf32>
    %1655 = arith.subf %1653, %1654 : vector<8x128xf32>
    %1656 = arith.mulf %1636, %1634 : vector<8x128xf32>
    %1657 = arith.mulf %1638, %1627 : vector<8x128xf32>
    %1658 = arith.addf %1656, %1657 : vector<8x128xf32>
    %1659 = arith.mulf %1640, %1648 : vector<8x128xf32>
    %1660 = arith.addf %1658, %1659 : vector<8x128xf32>
    %1661 = arith.mulf %1642, %1647 : vector<8x128xf32>
    %1662 = arith.addf %1660, %1661 : vector<8x128xf32>
    %c112_i32_736 = arith.constant 112 : i32
    %1663 = tpu.dynamic_rotate %1655 by %c112_i32_736 dim 1 : vector<8x128xf32>, i32 -> vector<8x128xf32>
    %c16_i32_737 = arith.constant 16 : i32
    %1664 = tpu.dynamic_rotate %1655 by %c16_i32_737 dim 1 : vector<8x128xf32>, i32 -> vector<8x128xf32>
    %c112_i32_738 = arith.constant 112 : i32
    %1665 = tpu.dynamic_rotate %1662 by %c112_i32_738 dim 1 : vector<8x128xf32>, i32 -> vector<8x128xf32>
    %c16_i32_739 = arith.constant 16 : i32
    %1666 = tpu.dynamic_rotate %1662 by %c16_i32_739 dim 1 : vector<8x128xf32>, i32 -> vector<8x128xf32>
    %1667 = arith.select %15, %1663, %1664 : vector<8x128xi1>, vector<8x128xf32>
    %1668 = arith.select %15, %1665, %1666 : vector<8x128xi1>, vector<8x128xf32>
    %1669 = arith.select %3, %1655, %1667 : vector<8x128xi1>, vector<8x128xf32>
    %1670 = arith.select %3, %1662, %1668 : vector<8x128xi1>, vector<8x128xf32>
    %c120_i32_740 = arith.constant 120 : i32
    %1671 = tpu.dynamic_rotate %1669 by %c120_i32_740 dim 1 : vector<8x128xf32>, i32 -> vector<8x128xf32>
    %c8_i32_741 = arith.constant 8 : i32
    %1672 = tpu.dynamic_rotate %1669 by %c8_i32_741 dim 1 : vector<8x128xf32>, i32 -> vector<8x128xf32>
    %c120_i32_742 = arith.constant 120 : i32
    %1673 = tpu.dynamic_rotate %1670 by %c120_i32_742 dim 1 : vector<8x128xf32>, i32 -> vector<8x128xf32>
    %c8_i32_743 = arith.constant 8 : i32
    %1674 = tpu.dynamic_rotate %1670 by %c8_i32_743 dim 1 : vector<8x128xf32>, i32 -> vector<8x128xf32>
    %1675 = arith.select %19, %1671, %1672 : vector<8x128xi1>, vector<8x128xf32>
    %1676 = arith.select %19, %1673, %1674 : vector<8x128xi1>, vector<8x128xf32>
    %1677 = arith.select %7, %1669, %1675 : vector<8x128xi1>, vector<8x128xf32>
    %1678 = arith.select %7, %1670, %1676 : vector<8x128xi1>, vector<8x128xf32>
    %c124_i32_744 = arith.constant 124 : i32
    %1679 = tpu.dynamic_rotate %1677 by %c124_i32_744 dim 1 : vector<8x128xf32>, i32 -> vector<8x128xf32>
    %c4_i32_745 = arith.constant 4 : i32
    %1680 = tpu.dynamic_rotate %1677 by %c4_i32_745 dim 1 : vector<8x128xf32>, i32 -> vector<8x128xf32>
    %c124_i32_746 = arith.constant 124 : i32
    %1681 = tpu.dynamic_rotate %1678 by %c124_i32_746 dim 1 : vector<8x128xf32>, i32 -> vector<8x128xf32>
    %c4_i32_747 = arith.constant 4 : i32
    %1682 = tpu.dynamic_rotate %1678 by %c4_i32_747 dim 1 : vector<8x128xf32>, i32 -> vector<8x128xf32>
    %1683 = arith.select %23, %1679, %1680 : vector<8x128xi1>, vector<8x128xf32>
    %1684 = arith.select %23, %1681, %1682 : vector<8x128xi1>, vector<8x128xf32>
    %1685 = arith.select %11, %1677, %1683 : vector<8x128xi1>, vector<8x128xf32>
    %1686 = arith.select %11, %1678, %1684 : vector<8x128xi1>, vector<8x128xf32>
    %c126_i32_748 = arith.constant 126 : i32
    %1687 = tpu.dynamic_rotate %1685 by %c126_i32_748 dim 1 : vector<8x128xf32>, i32 -> vector<8x128xf32>
    %c2_i32_749 = arith.constant 2 : i32
    %1688 = tpu.dynamic_rotate %1685 by %c2_i32_749 dim 1 : vector<8x128xf32>, i32 -> vector<8x128xf32>
    %c126_i32_750 = arith.constant 126 : i32
    %1689 = tpu.dynamic_rotate %1686 by %c126_i32_750 dim 1 : vector<8x128xf32>, i32 -> vector<8x128xf32>
    %c2_i32_751 = arith.constant 2 : i32
    %1690 = tpu.dynamic_rotate %1686 by %c2_i32_751 dim 1 : vector<8x128xf32>, i32 -> vector<8x128xf32>
    %1691 = arith.select %27, %1687, %1688 : vector<8x128xi1>, vector<8x128xf32>
    %1692 = arith.select %27, %1689, %1690 : vector<8x128xi1>, vector<8x128xf32>
    %1693 = arith.select %15, %1685, %1691 : vector<8x128xi1>, vector<8x128xf32>
    %1694 = arith.select %15, %1686, %1692 : vector<8x128xi1>, vector<8x128xf32>
    %c127_i32_752 = arith.constant 127 : i32
    %1695 = tpu.dynamic_rotate %1693 by %c127_i32_752 dim 1 : vector<8x128xf32>, i32 -> vector<8x128xf32>
    %c1_i32_753 = arith.constant 1 : i32
    %1696 = tpu.dynamic_rotate %1693 by %c1_i32_753 dim 1 : vector<8x128xf32>, i32 -> vector<8x128xf32>
    %c127_i32_754 = arith.constant 127 : i32
    %1697 = tpu.dynamic_rotate %1694 by %c127_i32_754 dim 1 : vector<8x128xf32>, i32 -> vector<8x128xf32>
    %c1_i32_755 = arith.constant 1 : i32
    %1698 = tpu.dynamic_rotate %1694 by %c1_i32_755 dim 1 : vector<8x128xf32>, i32 -> vector<8x128xf32>
    %1699 = arith.select %31, %1695, %1696 : vector<8x128xi1>, vector<8x128xf32>
    %1700 = arith.select %31, %1697, %1698 : vector<8x128xi1>, vector<8x128xf32>
    %1701 = arith.select %19, %1693, %1699 : vector<8x128xi1>, vector<8x128xf32>
    %1702 = arith.select %19, %1694, %1700 : vector<8x128xi1>, vector<8x128xf32>
    %c4_i32_756 = arith.constant 4 : i32
    %1703 = tpu.dynamic_rotate %1701 by %c4_i32_756 dim 0 : vector<8x128xf32>, i32 -> vector<8x128xf32>
    %c4_i32_757 = arith.constant 4 : i32
    %1704 = tpu.dynamic_rotate %1702 by %c4_i32_757 dim 0 : vector<8x128xf32>, i32 -> vector<8x128xf32>
    %1705 = arith.select %23, %1701, %1703 : vector<8x128xi1>, vector<8x128xf32>
    %1706 = arith.select %23, %1702, %1704 : vector<8x128xi1>, vector<8x128xf32>
    %c64_i32_758 = arith.constant 64 : i32
    %1707 = tpu.dynamic_rotate %1705 by %c64_i32_758 dim 1 : vector<8x128xf32>, i32 -> vector<8x128xf32>
    %c64_i32_759 = arith.constant 64 : i32
    %1708 = tpu.dynamic_rotate %1705 by %c64_i32_759 dim 1 : vector<8x128xf32>, i32 -> vector<8x128xf32>
    %c64_i32_760 = arith.constant 64 : i32
    %1709 = tpu.dynamic_rotate %1706 by %c64_i32_760 dim 1 : vector<8x128xf32>, i32 -> vector<8x128xf32>
    %c64_i32_761 = arith.constant 64 : i32
    %1710 = tpu.dynamic_rotate %1706 by %c64_i32_761 dim 1 : vector<8x128xf32>, i32 -> vector<8x128xf32>
    %1711 = arith.select %7, %1707, %1708 : vector<8x128xi1>, vector<8x128xf32>
    %1712 = arith.select %7, %1709, %1710 : vector<8x128xi1>, vector<8x128xf32>
    %1713 = arith.select %27, %1705, %1711 : vector<8x128xi1>, vector<8x128xf32>
    %1714 = arith.select %27, %1706, %1712 : vector<8x128xi1>, vector<8x128xf32>
    %c96_i32_762 = arith.constant 96 : i32
    %1715 = tpu.dynamic_rotate %1713 by %c96_i32_762 dim 1 : vector<8x128xf32>, i32 -> vector<8x128xf32>
    %c32_i32_763 = arith.constant 32 : i32
    %1716 = tpu.dynamic_rotate %1713 by %c32_i32_763 dim 1 : vector<8x128xf32>, i32 -> vector<8x128xf32>
    %c96_i32_764 = arith.constant 96 : i32
    %1717 = tpu.dynamic_rotate %1714 by %c96_i32_764 dim 1 : vector<8x128xf32>, i32 -> vector<8x128xf32>
    %c32_i32_765 = arith.constant 32 : i32
    %1718 = tpu.dynamic_rotate %1714 by %c32_i32_765 dim 1 : vector<8x128xf32>, i32 -> vector<8x128xf32>
    %1719 = arith.select %11, %1715, %1716 : vector<8x128xi1>, vector<8x128xf32>
    %1720 = arith.select %11, %1717, %1718 : vector<8x128xi1>, vector<8x128xf32>
    %1721 = arith.select %31, %1713, %1719 : vector<8x128xi1>, vector<8x128xf32>
    %1722 = arith.select %31, %1714, %1720 : vector<8x128xi1>, vector<8x128xf32>
    %1723 = arith.mulf %1721, %1721 : vector<8x128xf32>
    %1724 = arith.mulf %1722, %1722 : vector<8x128xf32>
    %1725 = arith.addf %1723, %1724 : vector<8x128xf32>
    %1726 = vector.extract_strided_slice %1725 {offsets = [0, 0], sizes = [4, 128], strides = [1, 1]} : vector<8x128xf32> to vector<4x128xf32>
    %c0_766 = arith.constant 0 : index
    %c0_767 = arith.constant 0 : index
    %c0_768 = arith.constant 0 : index
    %1727 = vector.load %arg2[%c0_766, %c0_767, %c0_768] : memref<2x128x128xf32, #tpu.memory_space<vmem>>, vector<1x128x128xf32>
    %1728 = vector.shape_cast %1727 : vector<1x128x128xf32> to vector<128x128xf32>
    %cst_769 = arith.constant dense<0.000000e+00> : vector<4x128xf32>
    %1729 = tpu.matmul %1726, %1728, %cst_769 {dimension_numbers = #tpu.dot_dimension_numbers<[1], [0], [0], [1], [0, 0, 1, 1], [], []>, precision = #tpu.contract_precision<fp32>} : vector<4x128xf32>, vector<128x128xf32>, vector<4x128xf32> -> vector<4x128xf32>
    %1730 = vector.extract_strided_slice %1725 {offsets = [4, 0], sizes = [4, 128], strides = [1, 1]} : vector<8x128xf32> to vector<4x128xf32>
    %c1_770 = arith.constant 1 : index
    %c0_771 = arith.constant 0 : index
    %c0_772 = arith.constant 0 : index
    %1731 = vector.load %arg2[%c1_770, %c0_771, %c0_772] : memref<2x128x128xf32, #tpu.memory_space<vmem>>, vector<1x128x128xf32>
    %1732 = vector.shape_cast %1731 : vector<1x128x128xf32> to vector<128x128xf32>
    %cst_773 = arith.constant dense<0.000000e+00> : vector<4x128xf32>
    %1733 = tpu.matmul %1730, %1732, %cst_773 {dimension_numbers = #tpu.dot_dimension_numbers<[1], [0], [0], [1], [0, 0, 1, 1], [], []>, precision = #tpu.contract_precision<fp32>} : vector<4x128xf32>, vector<128x128xf32>, vector<4x128xf32> -> vector<4x128xf32>
    %1734 = arith.addf %1729, %1733 : vector<4x128xf32>
    %c0_774 = arith.constant 0 : index
    %c0_775 = arith.constant 0 : index
    %1735 = vector.load %arg3[%c0_774, %c0_775] : memref<4x128xf32, #tpu.memory_space<vmem>>, vector<4x128xf32>
    tpu.vector_store %arg3[%c0_774, %c0_775], %1734 {strides = array<i32>} : memref<4x128xf32, #tpu.memory_space<vmem>>, vector<4x128xf32>,
    return
  }
}

</mosaic_0001>

<bundles_post_ra>
// kernel: quantum_classification_forward.1
= control target key start
LH: loop header
LB: loop body
LE: loop exit
PB: predicated region body
PF: predicated region fallthrough
CT: control target
= control target key end

     0   :  { %v37_v0 = vlaneseq  ;;  %v6664_v8 = vmov 0.0   ;;  %s4477_s24 = smov 64   ;;  %s4478_s6 = smov 96   ;;  %vm4491_vm11 = vmmov 0   ;;  %s6660_s0 = inlined_call_operand.vmem [shape: f32[192,8,128], index: 0, kind: input, shape index: {}]   ;;  %s6661_s1 = inlined_call_operand.vmem [shape: s32[8,8,128], index: 1, kind: input, shape index: {}]   ;;  %s6662_s2 = inlined_call_operand.vmem [shape: f32[2,128,128], index: 2, kind: input, shape index: {}]   ;;  %s6663_s3 = inlined_call_operand.vmem [shape: f32[4,128], index: 3, kind: output, shape index: {}]  }
   0x1   :  { %v3320_v3 = vld [vmem:[%s6660_s0 + $0x8] sm:$0xff]  ;;  %v45_v4 = vld [vmem:[%s6660_s0] sm:$0xff]  ;;  %v3322_v5 = vld [vmem:[%s6660_s0 + $0x18] sm:$0xff]  ;;  %s4479_s7 = smov 32   ;;  %s4480_s18 = smov 16  }
   0x2   :  { %v38_v1 = vshrl.u32 %v37_v0, 7  ;;  %v40_v2 = vand.u32 127, %v37_v0  ;;  %v54_v6 = vmul.f32 0.0, %v3320_v3  ;;  %v60_v7 = vmul.f32 0.0, %v45_v4  ;;  %v3321_v10 = vld [vmem:[%s6660_s0 + $0x10] sm:$0xff]  ;;  %v3323_v22 = vld [vmem:[%s6660_s0 + $0x20] sm:$0xff] }
   0x3   :  { %v63_v14 = vmul.f32 0.0, %v3321_v10  ;;  %v58_v15 = vmul.f32 0.0, %v3322_v5  ;;  %v3324_v23 = vld [vmem:[%s6660_s0 + $0x28] sm:$0xff]  ;;  %v3325_v32 = vld [vmem:[%s6660_s0 + $0x30] sm:$0xff]  ;;  %v3326_v35 = vld [vmem:[%s6660_s0 + $0x38] sm:$0xff]  ;;  %s4481_s19 = smov 112  }
   0x4   :  { %vm41_vm0 = vcmp.lt.s32.totalorder %v38_v1, 4  ;;  %vm42_vm1 = vcmp.eq.s32.totalorder %v40_v2, 0  ;;  %v3327_v43 = vld [vmem:[%s6660_s0 + $0x40] sm:$0xff]  ;;  %v3328_v44 = vld [vmem:[%s6660_s0 + $0x48] sm:$0xff]  ;;  %v4552_v52 = vld [vmem:[%s6661_s1 + $0x10] sm:$0xff]  ;;  %s4482_s4 = smov 8  }
   0x5   :  { %vm43_vm2 = vmand %vm41_vm0, %vm42_vm1  ;;  %vm21_vm3 = vcmp.eq.s32.totalorder %v4552_v52, 0  ;;  %v3329_v54 = vld [vmem:[%s6660_s0 + $0x50] sm:$0xff]  ;;  %v3330_v60 = vld [vmem:[%s6660_s0 + $0x58] sm:$0xff]  ;;  %s4483_s5 = smov 120   ;;  %s4484_s20 = smov 4  }
   0x6   :  { %v44_v9 = vsel %vm43_vm2, 1.0, %v6664_v8  ;;  %s4485_s21 = smov 124   ;;  %s4486_s10 = smov 2  }
   0x7   :  { %v52_v11 = vrot.slane %v44_v9, 4  ;;  %v53_v12 = vmul.f32 %v45_v4, %v44_v9  ;;  %v61_v13 = vmul.f32 %v3320_v3, %v44_v9  ;;  %v3331_v4 = vld [vmem:[%s6660_s0 + $0x60] sm:$0xff]  ;;  %s4487_s11 = smov 126   ;;  %s4488_s27 = smov 1  }
   0x8   :  { %s4489_s28 = smov 127  }
   0x9   :  { %v55_v16 = vsub.f32 %v53_v12, %v54_v6  ;;  %v56_v17 = vmul.f32 %v3321_v10, %v52_v11  ;;  %v62_v18 = vadd.f32 %v61_v13, %v60_v7  ;;  %v65_v19 = vmul.f32 %v3322_v5, %v52_v11  ;;  %v3332_v5 = vld [vmem:[%s6660_s0 + $0x68] sm:$0xff] }
   0xb   :  { %v57_v20 = vadd.f32 %v56_v17, %v55_v16  ;;  %v64_v21 = vadd.f32 %v63_v14, %v62_v18  ;;  %v4578_v14 = vld [vmem:[%s6661_s1 + $0x18] sm:$0xff] }
   0xc   :  { %vm24_vm4 = vcmp.eq.s32.totalorder %v4578_v14, 0  ;;  %v3511_v14 = vld [vmem:[%s6662_s2 + $0x80] sm:$0xff] }
   0xd   :  { %v59_v24 = vsub.f32 %v57_v20, %v58_v15  ;;  %v66_v25 = vadd.f32 %v65_v19, %v64_v21  ;;  %v3333_v15 = vld [vmem:[%s6660_s0 + $0x70] sm:$0xff] }
   0xf   :  { %75 = vrot.lane.b32.xlu0 %v59_v24, %s4477_s24  ;;  %v79_v26 = vmul.f32 %v3323_v22, %v59_v24  ;;  %v87_v27 = vmul.f32 %v3324_v23, %v59_v24  ;;  %v80_v28 = vmul.f32 %v3324_v23, %v66_v25  ;;  %v86_v29 = vmul.f32 %v3323_v22, %v66_v25  ;;  %v3334_v22 = vld [vmem:[%s6660_s0 + $0x78] sm:$0xff] }
  0x11   :  { %v81_v30 = vsub.f32 %v79_v26, %v80_v28  ;;  %v88_v31 = vadd.f32 %v87_v27, %v86_v29 }
  0x13   :  { %77 = vrot.lane.b32.xlu0 %v66_v25, %s4477_s24 }
  0x81   :  { %v76_v33 = vpop.permute.xlu0 %75 }
  0x82   :  { %v82_v34 = vmul.f32 %v3325_v32, %v76_v33  ;;  %v91_v40 = vmul.f32 %v3326_v35, %v76_v33 }
  0x84   :  { %v83_v37 = vadd.f32 %v82_v34, %v81_v30  ;;  %v3335_v30 = vld [vmem:[%s6660_s0 + $0x80] sm:$0xff] }
  0x85   :  { %v78_v36 = vpop.permute.xlu0 %77 }
  0x86   :  { %v84_v38 = vmul.f32 %v3326_v35, %v78_v36  ;;  %v89_v39 = vmul.f32 %v3325_v32, %v78_v36 }
  0x88   :  { %v85_v41 = vsub.f32 %v83_v37, %v84_v38  ;;  %v90_v42 = vadd.f32 %v89_v39, %v88_v31  ;;  %v3336_v31 = vld [vmem:[%s6660_s0 + $0x88] sm:$0xff]  ;;  %v4604_v39 = vld [vmem:[%s6661_s1 + $0x20] sm:$0xff] }
  0x89   :  { %vm27_vm5 = vcmp.eq.s32.totalorder %v4604_v39, 0 }
  0x8a   :  { %101 = vrot.lane.b32.xlu1 %v85_v41, %s4478_s6  ;;  %v92_v45 = vadd.f32 %v91_v40, %v90_v42  ;;  %v111_v47 = vmul.f32 %v3327_v43, %v85_v41  ;;  %v119_v49 = vmul.f32 %v3328_v44, %v85_v41  ;;  %v3337_v40 = vld [vmem:[%s6660_s0 + $0x90] sm:$0xff] }
  0x8c   :  { %105 = vrot.lane.b32.xlu0 %v92_v45, %s4478_s6  ;;  %v112_v46 = vmul.f32 %v3328_v44, %v92_v45  ;;  %v118_v48 = vmul.f32 %v3327_v43, %v92_v45 }
  0x8e   :  { %103 = vrot.lane.b32.xlu1 %v85_v41, %s4479_s7  ;;  %v113_v50 = vsub.f32 %v111_v47, %v112_v46  ;;  %v120_v51 = vadd.f32 %v119_v49, %v118_v48  ;;  %v3338_v47 = vld [vmem:[%s6660_s0 + $0x98] sm:$0xff] }
  0x92   :  { %107 = vrot.lane.b32.xlu1 %v92_v45, %s4479_s7 }
  0xfc   :  { %v102_v53 = vpop.permute.xlu1 %101 }
  0xfe   :  { %v106_v58 = vpop.permute.xlu0 %105 }
 0x100   :  { %v104_v55 = vpop.permute.xlu1 %103 }
 0x101   :  { %v109_v56 = vsel %vm21_vm3, %v102_v53, %v104_v55 }
 0x102   :  { %v114_v57 = vmul.f32 %v3329_v54, %v109_v56  ;;  %v123_v1 = vmul.f32 %v3330_v60, %v109_v56  ;;  %v3339_v56 = vld [vmem:[%s6660_s0 + $0xa0] sm:$0xff] }
 0x104   :  { %v108_v59 = vpop.permute.xlu1 %107  ;;  %v115_v62 = vadd.f32 %v114_v57, %v113_v50  ;;  %v3340_v57 = vld [vmem:[%s6660_s0 + $0xa8] sm:$0xff] }
 0x105   :  { %v110_v61 = vsel %vm21_vm3, %v106_v58, %v108_v59 }
 0x106   :  { %v116_v63 = vmul.f32 %v3330_v60, %v110_v61  ;;  %v121_v0 = vmul.f32 %v3329_v54, %v110_v61 }
 0x108   :  { %v117_v2 = vsub.f32 %v115_v62, %v116_v63  ;;  %v122_v3 = vadd.f32 %v121_v0, %v120_v51 }
 0x10a   :  { %v124_v6 = vadd.f32 %v123_v1, %v122_v3  ;;  %135 = vrot.lane.b32.xlu1 %v117_v2, %s4480_s18  ;;  %133 = vrot.lane.b32.xlu0 %v117_v2, %s4481_s19  ;;  %v143_v9 = vmul.f32 %v3331_v4, %v117_v2  ;;  %v151_v11 = vmul.f32 %v3332_v5, %v117_v2  ;;  %v4630_v1 = vld [vmem:[%s6661_s1 + $0x28] sm:$0xff]  ;;  %v3341_v2 = vld [vmem:[%s6660_s0 + $0xb0] sm:$0xff] }
 0x10b   :  { %vm30_vm6 = vcmp.eq.s32.totalorder %v4630_v1, 0  ;;  %v1996_v1 = vld [vmem:[%s6662_s2 + $0x30] sm:$0xff] }
 0x10c   :  { %v144_v7 = vmul.f32 %v3332_v5, %v124_v6  ;;  %v150_v10 = vmul.f32 %v3331_v4, %v124_v6 }
 0x10e   :  { %139 = vrot.lane.b32.xlu1 %v124_v6, %s4480_s18  ;;  %137 = vrot.lane.b32.xlu0 %v124_v6, %s4481_s19  ;;  %v145_v12 = vsub.f32 %v143_v9, %v144_v7  ;;  %v152_v13 = vadd.f32 %v151_v11, %v150_v10  ;;  %v3342_v10 = vld [vmem:[%s6660_s0 + $0xb8] sm:$0xff] }
 0x17c   :  { %v136_v16 = vpop.permute.xlu1 %135  ;;  %v134_v17 = vpop.permute.xlu0 %133 }
 0x17d   :  { %v141_v18 = vsel %vm24_vm4, %v134_v17, %v136_v16 }
 0x17e   :  { %v146_v19 = vmul.f32 %v3333_v15, %v141_v18  ;;  %v155_v27 = vmul.f32 %v3334_v22, %v141_v18 }
 0x180   :  { %v140_v20 = vpop.permute.xlu1 %139  ;;  %v138_v21 = vpop.permute.xlu0 %137  ;;  %v147_v24 = vadd.f32 %v146_v19, %v145_v12  ;;  %v3343_v19 = vld [vmem:[%s6660_s0 + $0xc0] sm:$0xff] }
 0x181   :  { %v142_v23 = vsel %vm24_vm4, %v138_v21, %v140_v20  ;;  %v3344_v20 = vld [vmem:[%s6660_s0 + $0xc8] sm:$0xff] }
 0x182   :  { %v148_v25 = vmul.f32 %v3334_v22, %v142_v23  ;;  %v153_v26 = vmul.f32 %v3333_v15, %v142_v23 }
 0x184   :  { %v149_v28 = vsub.f32 %v147_v24, %v148_v25  ;;  %v154_v29 = vadd.f32 %v153_v26, %v152_v13 }
 0x186   :  { %v156_v32 = vadd.f32 %v155_v27, %v154_v29  ;;  %167 = vrot.lane.b32.xlu1 %v149_v28, %s4482_s4  ;;  %165 = vrot.lane.b32.xlu0 %v149_v28, %s4483_s5  ;;  %v175_v34 = vmul.f32 %v3335_v30, %v149_v28  ;;  %v183_v36 = vmul.f32 %v3336_v31, %v149_v28  ;;  %v4656_v28 = vld [vmem:[%s6661_s1 + $0x30] sm:$0xff] }
 0x187   :  { %vm33_vm7 = vcmp.eq.s32.totalorder %v4656_v28, 0  ;;  %v3345_v29 = vld [vmem:[%s6660_s0 + $0xd0] sm:$0xff] }
 0x188   :  { %v176_v33 = vmul.f32 %v3336_v31, %v156_v32  ;;  %v182_v35 = vmul.f32 %v3335_v30, %v156_v32 }
 0x18a   :  { %171 = vrot.lane.b32.xlu1 %v156_v32, %s4482_s4  ;;  %169 = vrot.lane.b32.xlu0 %v156_v32, %s4483_s5  ;;  %v177_v37 = vsub.f32 %v175_v34, %v176_v33  ;;  %v184_v38 = vadd.f32 %v183_v36, %v182_v35  ;;  %v3346_v36 = vld [vmem:[%s6660_s0 + $0xd8] sm:$0xff] }
 0x1f8   :  { %v168_v41 = vpop.permute.xlu1 %167  ;;  %v166_v42 = vpop.permute.xlu0 %165 }
 0x1f9   :  { %v173_v43 = vsel %vm27_vm5, %v166_v42, %v168_v41 }
 0x1fa   :  { %v178_v44 = vmul.f32 %v3337_v40, %v173_v43  ;;  %v187_v53 = vmul.f32 %v3338_v47, %v173_v43 }
 0x1fc   :  { %v172_v45 = vpop.permute.xlu1 %171  ;;  %v170_v46 = vpop.permute.xlu0 %169  ;;  %v179_v49 = vadd.f32 %v178_v44, %v177_v37 }
 0x1fd   :  { %v174_v48 = vsel %vm27_vm5, %v170_v46, %v172_v45  ;;  %v3347_v45 = vld [vmem:[%s6660_s0 + $0xe0] sm:$0xff]  ;;  %v3348_v46 = vld [vmem:[%s6660_s0 + $0xe8] sm:$0xff] }
 0x1fe   :  { %v180_v50 = vmul.f32 %v3338_v47, %v174_v48  ;;  %v185_v51 = vmul.f32 %v3337_v40, %v174_v48 }
 0x200   :  { %v181_v54 = vsub.f32 %v179_v49, %v180_v50  ;;  %v186_v55 = vadd.f32 %v185_v51, %v184_v38 }
 0x202   :  { %v188_v58 = vadd.f32 %v187_v53, %v186_v55  ;;  %199 = vrot.lane.b32.xlu1 %v181_v54, %s4484_s20  ;;  %197 = vrot.lane.b32.xlu0 %v181_v54, %s4485_s21  ;;  %v207_v60 = vmul.f32 %v3339_v56, %v181_v54  ;;  %v215_v62 = vmul.f32 %v3340_v57, %v181_v54  ;;  %v4682_v55 = vld [vmem:[%s6661_s1 + $0x38] sm:$0xff] }
 0x203   :  { %vm36_vm8 = vcmp.eq.s32.totalorder %v4682_v55, 0 }
 0x204   :  { %v208_v59 = vmul.f32 %v3340_v57, %v188_v58  ;;  %v214_v61 = vmul.f32 %v3339_v56, %v188_v58  ;;  %v3349_v56 = vld [vmem:[%s6660_s0 + $0xf0] sm:$0xff] }
 0x206   :  { %203 = vrot.lane.b32.xlu1 %v188_v58, %s4484_s20  ;;  %201 = vrot.lane.b32.xlu0 %v188_v58, %s4485_s21  ;;  %v209_v63 = vsub.f32 %v207_v60, %v208_v59  ;;  %v216_v0 = vadd.f32 %v215_v62, %v214_v61 }
 0x274   :  { %v200_v3 = vpop.permute.xlu1 %199  ;;  %v198_v4 = vpop.permute.xlu0 %197 }
 0x275   :  { %v205_v5 = vsel %vm30_vm6, %v198_v4, %v200_v3 }
 0x276   :  { %v210_v6 = vmul.f32 %v3341_v2, %v205_v5  ;;  %v219_v16 = vmul.f32 %v3342_v10, %v205_v5 }
 0x278   :  { %v204_v7 = vpop.permute.xlu1 %203  ;;  %v202_v9 = vpop.permute.xlu0 %201  ;;  %v211_v12 = vadd.f32 %v210_v6, %v209_v63  ;;  %v3350_v63 = vld [vmem:[%s6660_s0 + $0xf8] sm:$0xff] }
 0x279   :  { %v206_v11 = vsel %vm30_vm6, %v202_v9, %v204_v7 }
 0x27a   :  { %v212_v13 = vmul.f32 %v3342_v10, %v206_v11  ;;  %v217_v15 = vmul.f32 %v3341_v2, %v206_v11  ;;  %v4700_v10 = vld [vmem:[%s6661_s1] sm:$0xff] }
 0x27b   :  { %vm15_vm9 = vcmp.eq.s32.totalorder %v4700_v10, 0 }
 0x27c   :  { %v213_v17 = vsub.f32 %v211_v12, %v212_v13  ;;  %v218_v18 = vadd.f32 %v217_v15, %v216_v0 }
 0x27e   :  { %v220_v21 = vadd.f32 %v219_v16, %v218_v18  ;;  %231 = vrot.lane.b32.xlu1 %v213_v17, %s4486_s10  ;;  %229 = vrot.lane.b32.xlu0 %v213_v17, %s4487_s11  ;;  %v239_v23 = vmul.f32 %v3343_v19, %v213_v17  ;;  %v247_v25 = vmul.f32 %v3344_v20, %v213_v17  ;;  %v4714_v16 = vld [vmem:[%s6661_s1 + $0x8] sm:$0xff] }
 0x27f   :  { %vm18_vm10 = vcmp.eq.s32.totalorder %v4714_v16, 0 }
 0x280   :  { %v240_v22 = vmul.f32 %v3344_v20, %v220_v21  ;;  %v246_v24 = vmul.f32 %v3343_v19, %v220_v21 }
 0x282   :  { %235 = vrot.lane.b32.xlu1 %v220_v21, %s4486_s10  ;;  %233 = vrot.lane.b32.xlu0 %v220_v21, %s4487_s11  ;;  %v241_v26 = vsub.f32 %v239_v23, %v240_v22  ;;  %v248_v27 = vadd.f32 %v247_v25, %v246_v24 }
 0x2f0   :  { %v232_v30 = vpop.permute.xlu1 %231  ;;  %v230_v31 = vpop.permute.xlu0 %229 }
 0x2f1   :  { %v237_v32 = vsel %vm33_vm7, %v230_v31, %v232_v30 }
 0x2f2   :  { %v242_v33 = vmul.f32 %v3345_v29, %v237_v32  ;;  %v251_v42 = vmul.f32 %v3346_v36, %v237_v32 }
 0x2f4   :  { %v236_v34 = vpop.permute.xlu1 %235  ;;  %v234_v35 = vpop.permute.xlu0 %233  ;;  %v243_v38 = vadd.f32 %v242_v33, %v241_v26 }
 0x2f5   :  { %v238_v37 = vsel %vm33_vm7, %v234_v35, %v236_v34 }
 0x2f6   :  { %v244_v40 = vmul.f32 %v3346_v36, %v238_v37  ;;  %v249_v41 = vmul.f32 %v3345_v29, %v238_v37 }
 0x2f8   :  { %v245_v43 = vsub.f32 %v243_v38, %v244_v40  ;;  %v250_v44 = vadd.f32 %v249_v41, %v248_v27 }
 0x2fa   :  { %v252_v47 = vadd.f32 %v251_v42, %v250_v44  ;;  %263 = vrot.lane.b32.xlu1 %v245_v43, %s4488_s27  ;;  %261 = vrot.lane.b32.xlu0 %v245_v43, %s4489_s28  ;;  %v271_v49 = vmul.f32 %v3347_v45, %v245_v43  ;;  %v279_v51 = vmul.f32 %v3348_v46, %v245_v43 }
 0x2fc   :  { %v272_v48 = vmul.f32 %v3348_v46, %v252_v47  ;;  %v278_v50 = vmul.f32 %v3347_v45, %v252_v47 }
 0x2fe   :  { %267 = vrot.lane.b32.xlu1 %v252_v47, %s4488_s27  ;;  %265 = vrot.lane.b32.xlu0 %v252_v47, %s4489_s28  ;;  %v273_v53 = vsub.f32 %v271_v49, %v272_v48  ;;  %v280_v54 = vadd.f32 %v279_v51, %v278_v50 }
 0x36c   :  { %v264_v57 = vpop.permute.xlu1 %263  ;;  %v262_v58 = vpop.permute.xlu0 %261 }
 0x36d   :  { %v269_v59 = vsel %vm36_vm8, %v262_v58, %v264_v57 }
 0x36e   :  { %v274_v60 = vmul.f32 %v3349_v56, %v269_v59  ;;  %v283_v5 = vmul.f32 %v3350_v63, %v269_v59 }
 0x370   :  { %v268_v61 = vpop.permute.xlu1 %267  ;;  %v266_v62 = vpop.permute.xlu0 %265  ;;  %v275_v2 = vadd.f32 %v274_v60, %v273_v53 }
 0x371   :  { %v270_v0 = vsel %vm36_vm8, %v266_v62, %v268_v61 }
 0x372   :  { %v276_v3 = vmul.f32 %v3350_v63, %v270_v0  ;;  %v281_v4 = vmul.f32 %v3349_v56, %v270_v0 }
 0x374   :  { %v282_v6 = vadd.f32 %v281_v4, %v280_v54  ;;  %v277_v7 = vsub.f32 %v275_v2, %v276_v3 }
 0x376   :  { %285 = vrot.lane.b32.xlu0 %v277_v7, %s4477_s24  ;;  %v284_v9 = vadd.f32 %v283_v5, %v282_v6 }
 0x378   :  { %287 = vrot.lane.b32.xlu1 %v284_v9, %s4477_s24 }
 0x3e8   :  { %v286_v11 = vpop.permute.xlu0 %285 }
 0x3e9   :  { %v289_v12 = vsel %vm15_vm9, %v277_v7, %v286_v11  ;;  %v3351_v7 = vld [vmem:[%s6660_s0 + $0x100] sm:$0xff]  ;;  %v3352_v11 = vld [vmem:[%s6660_s0 + $0x108] sm:$0xff] }
 0x3ea   :  { %v288_v13 = vpop.permute.xlu1 %287  ;;  %293 = vrot.lane.b32.xlu1 %v289_v12, %s4479_s7  ;;  %291 = vrot.lane.b32.xlu0 %v289_v12, %s4478_s6 }
 0x3eb   :  { %v290_v15 = vsel %vm15_vm9, %v284_v9, %v288_v13 }
 0x3ee   :  { %297 = vrot.lane.b32.xlu1 %v290_v15, %s4479_s7  ;;  %295 = vrot.lane.b32.xlu0 %v290_v15, %s4478_s6 }
 0x45c   :  { %v294_v17 = vpop.permute.xlu1 %293  ;;  %v292_v18 = vpop.permute.xlu0 %291 }
 0x45d   :  { %v299_v19 = vsel %vm21_vm3, %v292_v18, %v294_v17  ;;  %v3353_v18 = vld [vmem:[%s6660_s0 + $0x110] sm:$0xff] }
 0x45e   :  { %v301_v20 = vsel %vm18_vm10, %v289_v12, %v299_v19 }
 0x45f   :  { %305 = vrot.lane.b32.xlu1 %v301_v20, %s4480_s18  ;;  %303 = vrot.lane.b32.xlu0 %v301_v20, %s4481_s19 }
 0x460   :  { %v298_v21 = vpop.permute.xlu1 %297  ;;  %v296_v22 = vpop.permute.xlu0 %295 }
 0x461   :  { %v300_v23 = vsel %vm21_vm3, %v296_v22, %v298_v21 }
 0x462   :  { %v302_v24 = vsel %vm18_vm10, %v290_v15, %v300_v23  ;;  %v3354_v23 = vld [vmem:[%s6660_s0 + $0x118] sm:$0xff] }
 0x463   :  { %309 = vrot.lane.b32.xlu1 %v302_v24, %s4480_s18  ;;  %307 = vrot.lane.b32.xlu0 %v302_v24, %s4481_s19 }
 0x4d1   :  { %v306_v25 = vpop.permute.xlu1 %305  ;;  %v304_v26 = vpop.permute.xlu0 %303 }
 0x4d2   :  { %v311_v27 = vsel %vm24_vm4, %v304_v26, %v306_v25 }
 0x4d3   :  { %v313_v29 = vsel %vm21_vm3, %v301_v20, %v311_v27 }
 0x4d4   :  { %317 = vrot.lane.b32.xlu1 %v313_v29, %s4482_s4  ;;  %315 = vrot.lane.b32.xlu0 %v313_v29, %s4483_s5 }
 0x4d5   :  { %v310_v30 = vpop.permute.xlu1 %309  ;;  %v308_v31 = vpop.permute.xlu0 %307 }
 0x4d6   :  { %v312_v32 = vsel %vm24_vm4, %v308_v31, %v310_v30 }
 0x4d7   :  { %v314_v33 = vsel %vm21_vm3, %v302_v24, %v312_v32 }
 0x4d8   :  { %321 = vrot.lane.b32.xlu1 %v314_v33, %s4482_s4  ;;  %319 = vrot.lane.b32.xlu0 %v314_v33, %s4483_s5 }
 0x546   :  { %v318_v34 = vpop.permute.xlu1 %317  ;;  %v316_v35 = vpop.permute.xlu0 %315 }
 0x547   :  { %v323_v36 = vsel %vm27_vm5, %v316_v35, %v318_v34  ;;  %v3356_v34 = vld [vmem:[%s6660_s0 + $0x128] sm:$0xff] }
 0x548   :  { %v325_v37 = vsel %vm24_vm4, %v313_v29, %v323_v36 }
 0x549   :  { %329 = vrot.lane.b32.xlu1 %v325_v37, %s4484_s20  ;;  %327 = vrot.lane.b32.xlu0 %v325_v37, %s4485_s21 }
 0x54a   :  { %v322_v38 = vpop.permute.xlu1 %321  ;;  %v320_v40 = vpop.permute.xlu0 %319 }
 0x54b   :  { %v324_v41 = vsel %vm27_vm5, %v320_v40, %v322_v38 }
 0x54c   :  { %v326_v42 = vsel %vm24_vm4, %v314_v33, %v324_v41  ;;  %v3355_v33 = vld [vmem:[%s6660_s0 + $0x120] sm:$0xff] }
 0x54d   :  { %333 = vrot.lane.b32.xlu1 %v326_v42, %s4484_s20  ;;  %331 = vrot.lane.b32.xlu0 %v326_v42, %s4485_s21 }
 0x5bb   :  { %v330_v43 = vpop.permute.xlu1 %329  ;;  %v328_v44 = vpop.permute.xlu0 %327 }
 0x5bc   :  { %v335_v45 = vsel %vm30_vm6, %v328_v44, %v330_v43  ;;  %v3357_v44 = vld [vmem:[%s6660_s0 + $0x130] sm:$0xff] }
 0x5bd   :  { %v337_v46 = vsel %vm27_vm5, %v325_v37, %v335_v45  ;;  %v3358_v45 = vld [vmem:[%s6660_s0 + $0x138] sm:$0xff] }
 0x5be   :  { %341 = vrot.lane.b32.xlu1 %v337_v46, %s4486_s10  ;;  %339 = vrot.lane.b32.xlu0 %v337_v46, %s4487_s11 }
 0x5bf   :  { %v334_v47 = vpop.permute.xlu1 %333  ;;  %v332_v48 = vpop.permute.xlu0 %331 }
 0x5c0   :  { %v336_v49 = vsel %vm30_vm6, %v332_v48, %v334_v47 }
 0x5c1   :  { %v338_v50 = vsel %vm27_vm5, %v326_v42, %v336_v49 }
 0x5c2   :  { %345 = vrot.lane.b32.xlu1 %v338_v50, %s4486_s10  ;;  %343 = vrot.lane.b32.xlu0 %v338_v50, %s4487_s11 }
 0x630   :  { %v342_v51 = vpop.permute.xlu1 %341  ;;  %v340_v53 = vpop.permute.xlu0 %339 }
 0x631   :  { %v347_v54 = vsel %vm33_vm7, %v340_v53, %v342_v51 }
 0x632   :  { %v349_v56 = vsel %vm30_vm6, %v337_v46, %v347_v54 }
 0x633   :  { %353 = vrot.lane.b32.xlu1 %v349_v56, %s4488_s27  ;;  %351 = vrot.lane.b32.xlu0 %v349_v56, %s4489_s28 }
 0x634   :  { %v346_v57 = vpop.permute.xlu1 %345  ;;  %v344_v58 = vpop.permute.xlu0 %343 }
 0x635   :  { %v348_v59 = vsel %vm33_vm7, %v344_v58, %v346_v57  ;;  %v3360_v57 = vld [vmem:[%s6660_s0 + $0x148] sm:$0xff] }
 0x636   :  { %v350_v60 = vsel %vm30_vm6, %v338_v50, %v348_v59 }
 0x637   :  { %357 = vrot.lane.b32.xlu1 %v350_v60, %s4488_s27  ;;  %355 = vrot.lane.b32.xlu0 %v350_v60, %s4489_s28 }
 0x6a5   :  { %v354_v61 = vpop.permute.xlu1 %353  ;;  %v352_v62 = vpop.permute.xlu0 %351 }
 0x6a6   :  { %v359_v63 = vsel %vm36_vm8, %v352_v62, %v354_v61 }
 0x6a7   :  { %v361_v0 = vsel %vm33_vm7, %v349_v56, %v359_v63  ;;  %v3359_v56 = vld [vmem:[%s6660_s0 + $0x140] sm:$0xff] }
 0x6a8   :  { %v363_v2 = vrot.slane %v361_v0, 4 }
 0x6a9   :  { %v358_v3 = vpop.permute.xlu1 %357  ;;  %v356_v4 = vpop.permute.xlu0 %355 }
 0x6aa   :  { %v365_v5 = vsel %vm36_vm8, %v361_v0, %v363_v2  ;;  %v360_v6 = vsel %vm36_vm8, %v356_v4, %v358_v3  ;;  %v3361_v3 = vld [vmem:[%s6660_s0 + $0x150] sm:$0xff] }
 0x6ab   :  { %v362_v9 = vsel %vm33_vm7, %v350_v60, %v360_v6  ;;  %v375_v13 = vrot.slane %v365_v5, 4  ;;  %v377_v15 = vmul.f32 %v3351_v7, %v365_v5  ;;  %v385_v19 = vmul.f32 %v3352_v11, %v365_v5 }
 0x6ac   :  { %v364_v12 = vrot.slane %v362_v9, 4 }
 0x6ad   :  { %v380_v27 = vmul.f32 %v3353_v18, %v375_v13  ;;  %v389_v30 = vmul.f32 %v3354_v23, %v375_v13 }
 0x6ae   :  { %v366_v17 = vsel %vm36_vm8, %v362_v9, %v364_v12  ;;  %v3362_v12 = vld [vmem:[%s6660_s0 + $0x158] sm:$0xff] }
 0x6af   :  { %v376_v20 = vrot.slane %v366_v17, 4  ;;  %v378_v21 = vmul.f32 %v3352_v11, %v366_v17  ;;  %v384_v22 = vmul.f32 %v3351_v7, %v366_v17 }
 0x6b1   :  { %v386_v24 = vadd.f32 %v385_v19, %v384_v22  ;;  %v387_v25 = vmul.f32 %v3353_v18, %v376_v20  ;;  %v379_v26 = vsub.f32 %v377_v15, %v378_v21  ;;  %v382_v32 = vmul.f32 %v3354_v23, %v376_v20  ;;  %v3363_v22 = vld [vmem:[%s6660_s0 + $0x160] sm:$0xff]  ;;  %v3364_v23 = vld [vmem:[%s6660_s0 + $0x168] sm:$0xff] }
 0x6b3   :  { %v388_v29 = vadd.f32 %v387_v25, %v386_v24  ;;  %v381_v31 = vadd.f32 %v380_v27, %v379_v26 }
 0x6b5   :  { %v390_v35 = vadd.f32 %v389_v30, %v388_v29  ;;  %v383_v36 = vsub.f32 %v381_v31, %v382_v32  ;;  %v3365_v32 = vld [vmem:[%s6660_s0 + $0x170] sm:$0xff] }
 0x6b7   :  { %401 = vrot.lane.b32.xlu1 %v390_v35, %s4477_s24  ;;  %v404_v37 = vmul.f32 %v3356_v34, %v390_v35  ;;  %v410_v38 = vmul.f32 %v3355_v33, %v390_v35  ;;  %399 = vrot.lane.b32.xlu0 %v383_v36, %s4477_s24  ;;  %v403_v40 = vmul.f32 %v3355_v33, %v383_v36 }
 0x6b8   :  { %v411_v41 = vmul.f32 %v3356_v34, %v383_v36 }
 0x6b9   :  { %v405_v42 = vsub.f32 %v403_v40, %v404_v37  ;;  %v3366_v40 = vld [vmem:[%s6660_s0 + $0x178] sm:$0xff] }
 0x6ba   :  { %v412_v43 = vadd.f32 %v411_v41, %v410_v38 }
 0x729   :  { %v402_v46 = vpop.permute.xlu1 %401  ;;  %v400_v47 = vpop.permute.xlu0 %399 }
 0x72a   :  { %v413_v48 = vmul.f32 %v3357_v44, %v402_v46  ;;  %v406_v49 = vmul.f32 %v3357_v44, %v400_v47  ;;  %v408_v50 = vmul.f32 %v3358_v45, %v402_v46  ;;  %v415_v54 = vmul.f32 %v3358_v45, %v400_v47 }
 0x72c   :  { %v414_v51 = vadd.f32 %v413_v48, %v412_v43  ;;  %v407_v53 = vadd.f32 %v406_v49, %v405_v42  ;;  %v3367_v48 = vld [vmem:[%s6660_s0 + $0x180] sm:$0xff]  ;;  %v3368_v49 = vld [vmem:[%s6660_s0 + $0x188] sm:$0xff] }
 0x72e   :  { %v416_v58 = vadd.f32 %v415_v54, %v414_v51  ;;  %v409_v59 = vsub.f32 %v407_v53, %v408_v50 }
 0x730   :  { %427 = vrot.lane.b32.xlu1 %v409_v59, %s4479_s7  ;;  %425 = vrot.lane.b32.xlu0 %v409_v59, %s4478_s6  ;;  %v436_v60 = vmul.f32 %v3360_v57, %v416_v58  ;;  %v435_v61 = vmul.f32 %v3359_v56, %v409_v59  ;;  %v442_v62 = vmul.f32 %v3359_v56, %v416_v58 }
 0x731   :  { %v443_v63 = vmul.f32 %v3360_v57, %v409_v59  ;;  %v3369_v59 = vld [vmem:[%s6660_s0 + $0x190] sm:$0xff] }
 0x732   :  { %v437_v0 = vsub.f32 %v435_v61, %v436_v60 }
 0x733   :  { %v444_v2 = vadd.f32 %v443_v63, %v442_v62 }
 0x734   :  { %431 = vrot.lane.b32.xlu1 %v416_v58, %s4479_s7  ;;  %429 = vrot.lane.b32.xlu0 %v416_v58, %s4478_s6 }
 0x7a2   :  { %v428_v4 = vpop.permute.xlu1 %427  ;;  %v426_v5 = vpop.permute.xlu0 %425 }
 0x7a3   :  { %v433_v6 = vsel %vm21_vm3, %v426_v5, %v428_v4 }
 0x7a4   :  { %v438_v7 = vmul.f32 %v3361_v3, %v433_v6  ;;  %v447_v19 = vmul.f32 %v3362_v12, %v433_v6 }
 0x7a6   :  { %v432_v9 = vpop.permute.xlu1 %431  ;;  %v430_v11 = vpop.permute.xlu0 %429  ;;  %v439_v15 = vadd.f32 %v438_v7, %v437_v0 }
 0x7a7   :  { %v434_v13 = vsel %vm21_vm3, %v430_v11, %v432_v9 }
 0x7a8   :  { %v440_v17 = vmul.f32 %v3362_v12, %v434_v13  ;;  %v445_v18 = vmul.f32 %v3361_v3, %v434_v13  ;;  %v3370_v3 = vld [vmem:[%s6660_s0 + $0x198] sm:$0xff]  ;;  %v3371_v13 = vld [vmem:[%s6660_s0 + $0x1a0] sm:$0xff] }
 0x7aa   :  { %v441_v20 = vsub.f32 %v439_v15, %v440_v17  ;;  %v446_v21 = vadd.f32 %v445_v18, %v444_v2  ;;  %v3372_v15 = vld [vmem:[%s6660_s0 + $0x1a8] sm:$0xff] }
 0x7ac   :  { %v448_v24 = vadd.f32 %v447_v19, %v446_v21  ;;  %459 = vrot.lane.b32.xlu1 %v441_v20, %s4480_s18  ;;  %457 = vrot.lane.b32.xlu0 %v441_v20, %s4481_s19  ;;  %v467_v26 = vmul.f32 %v3363_v22, %v441_v20  ;;  %v475_v29 = vmul.f32 %v3364_v23, %v441_v20 }
 0x7ae   :  { %v468_v25 = vmul.f32 %v3364_v23, %v448_v24  ;;  %v474_v27 = vmul.f32 %v3363_v22, %v448_v24 }
 0x7b0   :  { %463 = vrot.lane.b32.xlu1 %v448_v24, %s4480_s18  ;;  %461 = vrot.lane.b32.xlu0 %v448_v24, %s4481_s19  ;;  %v469_v30 = vsub.f32 %v467_v26, %v468_v25  ;;  %v476_v31 = vadd.f32 %v475_v29, %v474_v27  ;;  %v3373_v24 = vld [vmem:[%s6660_s0 + $0x1b0] sm:$0xff] }
 0x81e   :  { %v460_v33 = vpop.permute.xlu1 %459  ;;  %v458_v34 = vpop.permute.xlu0 %457 }
 0x81f   :  { %v465_v35 = vsel %vm24_vm4, %v458_v34, %v460_v33 }
 0x820   :  { %v470_v36 = vmul.f32 %v3365_v32, %v465_v35  ;;  %v479_v45 = vmul.f32 %v3366_v40, %v465_v35 }
 0x822   :  { %v464_v37 = vpop.permute.xlu1 %463  ;;  %v462_v38 = vpop.permute.xlu0 %461  ;;  %v471_v42 = vadd.f32 %v470_v36, %v469_v30 }
 0x823   :  { %v466_v41 = vsel %vm24_vm4, %v462_v38, %v464_v37 }
 0x824   :  { %v472_v43 = vmul.f32 %v3366_v40, %v466_v41  ;;  %v477_v44 = vmul.f32 %v3365_v32, %v466_v41  ;;  %v3374_v32 = vld [vmem:[%s6660_s0 + $0x1b8] sm:$0xff]  ;;  %v3375_v41 = vld [vmem:[%s6660_s0 + $0x1c0] sm:$0xff] }
 0x826   :  { %v473_v46 = vsub.f32 %v471_v42, %v472_v43  ;;  %v478_v47 = vadd.f32 %v477_v44, %v476_v31  ;;  %v3376_v42 = vld [vmem:[%s6660_s0 + $0x1c8] sm:$0xff] }
 0x828   :  { %v480_v50 = vadd.f32 %v479_v45, %v478_v47  ;;  %491 = vrot.lane.b32.xlu1 %v473_v46, %s4482_s4  ;;  %489 = vrot.lane.b32.xlu0 %v473_v46, %s4483_s5  ;;  %v499_v53 = vmul.f32 %v3367_v48, %v473_v46  ;;  %v507_v56 = vmul.f32 %v3368_v49, %v473_v46 }
 0x82a   :  { %v500_v51 = vmul.f32 %v3368_v49, %v480_v50  ;;  %v506_v54 = vmul.f32 %v3367_v48, %v480_v50 }
 0x82c   :  { %495 = vrot.lane.b32.xlu1 %v480_v50, %s4482_s4  ;;  %493 = vrot.lane.b32.xlu0 %v480_v50, %s4483_s5  ;;  %v501_v57 = vsub.f32 %v499_v53, %v500_v51  ;;  %v508_v58 = vadd.f32 %v507_v56, %v506_v54  ;;  %v3377_v50 = vld [vmem:[%s6660_s0 + $0x1d0] sm:$0xff] }
 0x89a   :  { %v492_v60 = vpop.permute.xlu1 %491  ;;  %v490_v61 = vpop.permute.xlu0 %489 }
 0x89b   :  { %v497_v62 = vsel %vm27_vm5, %v490_v61, %v492_v60 }
 0x89c   :  { %v502_v63 = vmul.f32 %v3369_v59, %v497_v62  ;;  %v511_v9 = vmul.f32 %v3370_v3, %v497_v62 }
 0x89e   :  { %v496_v0 = vpop.permute.xlu1 %495  ;;  %v494_v2 = vpop.permute.xlu0 %493  ;;  %v503_v5 = vadd.f32 %v502_v63, %v501_v57 }
 0x89f   :  { %v498_v4 = vsel %vm27_vm5, %v494_v2, %v496_v0 }
 0x8a0   :  { %v504_v6 = vmul.f32 %v3370_v3, %v498_v4  ;;  %v509_v7 = vmul.f32 %v3369_v59, %v498_v4  ;;  %v3378_v59 = vld [vmem:[%s6660_s0 + $0x1d8] sm:$0xff]  ;;  %v3379_v4 = vld [vmem:[%s6660_s0 + $0x1e0] sm:$0xff] }
 0x8a2   :  { %v505_v11 = vsub.f32 %v503_v5, %v504_v6  ;;  %v510_v12 = vadd.f32 %v509_v7, %v508_v58  ;;  %v3380_v5 = vld [vmem:[%s6660_s0 + $0x1e8] sm:$0xff] }
 0x8a4   :  { %v512_v17 = vadd.f32 %v511_v9, %v510_v12  ;;  %523 = vrot.lane.b32.xlu1 %v505_v11, %s4484_s20  ;;  %521 = vrot.lane.b32.xlu0 %v505_v11, %s4485_s21  ;;  %v531_v19 = vmul.f32 %v3371_v13, %v505_v11  ;;  %v539_v21 = vmul.f32 %v3372_v15, %v505_v11 }
 0x8a6   :  { %v532_v18 = vmul.f32 %v3372_v15, %v512_v17  ;;  %v538_v20 = vmul.f32 %v3371_v13, %v512_v17 }
 0x8a8   :  { %527 = vrot.lane.b32.xlu1 %v512_v17, %s4484_s20  ;;  %525 = vrot.lane.b32.xlu0 %v512_v17, %s4485_s21  ;;  %v533_v22 = vsub.f32 %v531_v19, %v532_v18  ;;  %v540_v23 = vadd.f32 %v539_v21, %v538_v20  ;;  %v3381_v17 = vld [vmem:[%s6660_s0 + $0x1f0] sm:$0xff] }
 0x916   :  { %v524_v25 = vpop.permute.xlu1 %523  ;;  %v522_v26 = vpop.permute.xlu0 %521 }
 0x917   :  { %v529_v27 = vsel %vm30_vm6, %v522_v26, %v524_v25 }
 0x918   :  { %v534_v29 = vmul.f32 %v3373_v24, %v529_v27  ;;  %v543_v37 = vmul.f32 %v3374_v32, %v529_v27 }
 0x91a   :  { %v528_v30 = vpop.permute.xlu1 %527  ;;  %v526_v31 = vpop.permute.xlu0 %525  ;;  %v535_v34 = vadd.f32 %v534_v29, %v533_v22 }
 0x91b   :  { %v530_v33 = vsel %vm30_vm6, %v526_v31, %v528_v30 }
 0x91c   :  { %v536_v35 = vmul.f32 %v3374_v32, %v530_v33  ;;  %v541_v36 = vmul.f32 %v3373_v24, %v530_v33  ;;  %v3382_v24 = vld [vmem:[%s6660_s0 + $0x1f8] sm:$0xff] }
 0x91e   :  { %v537_v38 = vsub.f32 %v535_v34, %v536_v35  ;;  %v542_v40 = vadd.f32 %v541_v36, %v540_v23 }
 0x920   :  { %v544_v43 = vadd.f32 %v543_v37, %v542_v40  ;;  %555 = vrot.lane.b32.xlu1 %v537_v38, %s4486_s10  ;;  %553 = vrot.lane.b32.xlu0 %v537_v38, %s4487_s11  ;;  %v563_v45 = vmul.f32 %v3375_v41, %v537_v38  ;;  %v571_v47 = vmul.f32 %v3376_v42, %v537_v38 }
 0x922   :  { %v564_v44 = vmul.f32 %v3376_v42, %v544_v43  ;;  %v570_v46 = vmul.f32 %v3375_v41, %v544_v43 }
 0x924   :  { %559 = vrot.lane.b32.xlu1 %v544_v43, %s4486_s10  ;;  %557 = vrot.lane.b32.xlu0 %v544_v43, %s4487_s11  ;;  %v565_v48 = vsub.f32 %v563_v45, %v564_v44  ;;  %v572_v49 = vadd.f32 %v571_v47, %v570_v46 }
 0x992   :  { %v556_v51 = vpop.permute.xlu1 %555  ;;  %v554_v53 = vpop.permute.xlu0 %553 }
 0x993   :  { %v561_v54 = vsel %vm33_vm7, %v554_v53, %v556_v51 }
 0x994   :  { %v566_v56 = vmul.f32 %v3377_v50, %v561_v54  ;;  %v575_v0 = vmul.f32 %v3378_v59, %v561_v54 }
 0x996   :  { %v560_v57 = vpop.permute.xlu1 %559  ;;  %v558_v58 = vpop.permute.xlu0 %557  ;;  %v567_v61 = vadd.f32 %v566_v56, %v565_v48 }
 0x997   :  { %v562_v60 = vsel %vm33_vm7, %v558_v58, %v560_v57 }
 0x998   :  { %v568_v62 = vmul.f32 %v3378_v59, %v562_v60  ;;  %v573_v63 = vmul.f32 %v3377_v50, %v562_v60 }
 0x99a   :  { %v569_v2 = vsub.f32 %v567_v61, %v568_v62  ;;  %v574_v3 = vadd.f32 %v573_v63, %v572_v49 }
 0x99c   :  { %v576_v6 = vadd.f32 %v575_v0, %v574_v3  ;;  %587 = vrot.lane.b32.xlu1 %v569_v2, %s4488_s27  ;;  %585 = vrot.lane.b32.xlu0 %v569_v2, %s4489_s28  ;;  %v595_v9 = vmul.f32 %v3379_v4, %v569_v2  ;;  %v603_v12 = vmul.f32 %v3380_v5, %v569_v2 }
 0x99e   :  { %v596_v7 = vmul.f32 %v3380_v5, %v576_v6  ;;  %v602_v11 = vmul.f32 %v3379_v4, %v576_v6 }
 0x9a0   :  { %591 = vrot.lane.b32.xlu1 %v576_v6, %s4488_s27  ;;  %589 = vrot.lane.b32.xlu0 %v576_v6, %s4489_s28  ;;  %v597_v13 = vsub.f32 %v595_v9, %v596_v7  ;;  %v604_v15 = vadd.f32 %v603_v12, %v602_v11 }
 0xa0e   :  { %v588_v18 = vpop.permute.xlu1 %587  ;;  %v586_v19 = vpop.permute.xlu0 %585 }
 0xa0f   :  { %v593_v20 = vsel %vm36_vm8, %v586_v19, %v588_v18 }
 0xa10   :  { %v598_v21 = vmul.f32 %v3381_v17, %v593_v20  ;;  %v607_v32 = vmul.f32 %v3382_v24, %v593_v20 }
 0xa12   :  { %v592_v22 = vpop.permute.xlu1 %591  ;;  %v590_v23 = vpop.permute.xlu0 %589  ;;  %v599_v26 = vadd.f32 %v598_v21, %v597_v13 }
 0xa13   :  { %v594_v25 = vsel %vm36_vm8, %v590_v23, %v592_v22 }
 0xa14   :  { %v600_v27 = vmul.f32 %v3382_v24, %v594_v25  ;;  %v605_v29 = vmul.f32 %v3381_v17, %v594_v25 }
 0xa16   :  { %v606_v30 = vadd.f32 %v605_v29, %v604_v15  ;;  %v601_v31 = vsub.f32 %v599_v26, %v600_v27 }
 0xa18   :  { %611 = vrot.lane.b32.xlu1 %v601_v31, %s4479_s7  ;;  %609 = vrot.lane.b32.xlu0 %v601_v31, %s4478_s6  ;;  %v608_v33 = vadd.f32 %v607_v32, %v606_v30 }
 0xa1c   :  { %615 = vrot.lane.b32.xlu1 %v608_v33, %s4479_s7  ;;  %613 = vrot.lane.b32.xlu0 %v608_v33, %s4478_s6 }
 0xa8a   :  { %v612_v34 = vpop.permute.xlu1 %611  ;;  %v610_v35 = vpop.permute.xlu0 %609 }
 0xa8b   :  { %v617_v36 = vsel %vm21_vm3, %v610_v35, %v612_v34  ;;  %v3384_v34 = vld [vmem:[%s6660_s0 + $0x208] sm:$0xff] }
 0xa8c   :  { %v619_v37 = vsel %vm15_vm9, %v601_v31, %v617_v36 }
 0xa8d   :  { %623 = vrot.lane.b32.xlu1 %v619_v37, %s4480_s18  ;;  %621 = vrot.lane.b32.xlu0 %v619_v37, %s4481_s19 }
 0xa8e   :  { %v616_v38 = vpop.permute.xlu1 %615  ;;  %v614_v40 = vpop.permute.xlu0 %613 }
 0xa8f   :  { %v618_v41 = vsel %vm21_vm3, %v614_v40, %v616_v38 }
 0xa90   :  { %v620_v42 = vsel %vm15_vm9, %v608_v33, %v618_v41  ;;  %v3383_v33 = vld [vmem:[%s6660_s0 + $0x200] sm:$0xff] }
 0xa91   :  { %627 = vrot.lane.b32.xlu1 %v620_v42, %s4480_s18  ;;  %625 = vrot.lane.b32.xlu0 %v620_v42, %s4481_s19 }
 0xaff   :  { %v624_v43 = vpop.permute.xlu1 %623  ;;  %v622_v44 = vpop.permute.xlu0 %621 }
 0xb00   :  { %v629_v45 = vsel %vm24_vm4, %v622_v44, %v624_v43 }
 0xb01   :  { %v631_v46 = vsel %vm18_vm10, %v619_v37, %v629_v45  ;;  %v3385_v37 = vld [vmem:[%s6660_s0 + $0x210] sm:$0xff]  ;;  %v3386_v45 = vld [vmem:[%s6660_s0 + $0x218] sm:$0xff] }
 0xb02   :  { %635 = vrot.lane.b32.xlu1 %v631_v46, %s4482_s4  ;;  %633 = vrot.lane.b32.xlu0 %v631_v46, %s4483_s5 }
 0xb03   :  { %v628_v47 = vpop.permute.xlu1 %627  ;;  %v626_v48 = vpop.permute.xlu0 %625 }
 0xb04   :  { %v630_v49 = vsel %vm24_vm4, %v626_v48, %v628_v47 }
 0xb05   :  { %v632_v50 = vsel %vm18_vm10, %v620_v42, %v630_v49 }
 0xb06   :  { %639 = vrot.lane.b32.xlu1 %v632_v50, %s4482_s4  ;;  %637 = vrot.lane.b32.xlu0 %v632_v50, %s4483_s5 }
 0xb74   :  { %v636_v51 = vpop.permute.xlu1 %635  ;;  %v634_v53 = vpop.permute.xlu0 %633 }
 0xb75   :  { %v641_v54 = vsel %vm27_vm5, %v634_v53, %v636_v51 }
 0xb76   :  { %v643_v56 = vsel %vm21_vm3, %v631_v46, %v641_v54 }
 0xb77   :  { %647 = vrot.lane.b32.xlu1 %v643_v56, %s4484_s20  ;;  %645 = vrot.lane.b32.xlu0 %v643_v56, %s4485_s21 }
 0xb78   :  { %v640_v57 = vpop.permute.xlu1 %639  ;;  %v638_v58 = vpop.permute.xlu0 %637 }
 0xb79   :  { %v642_v59 = vsel %vm27_vm5, %v638_v58, %v640_v57  ;;  %v3388_v57 = vld [vmem:[%s6660_s0 + $0x228] sm:$0xff] }
 0xb7a   :  { %v644_v60 = vsel %vm21_vm3, %v632_v50, %v642_v59 }
 0xb7b   :  { %651 = vrot.lane.b32.xlu1 %v644_v60, %s4484_s20  ;;  %649 = vrot.lane.b32.xlu0 %v644_v60, %s4485_s21 }
 0xbe9   :  { %v648_v61 = vpop.permute.xlu1 %647  ;;  %v646_v62 = vpop.permute.xlu0 %645 }
 0xbea   :  { %v653_v63 = vsel %vm30_vm6, %v646_v62, %v648_v61 }
 0xbeb   :  { %v655_v0 = vsel %vm24_vm4, %v643_v56, %v653_v63  ;;  %v3387_v56 = vld [vmem:[%s6660_s0 + $0x220] sm:$0xff] }
 0xbec   :  { %659 = vrot.lane.b32.xlu1 %v655_v0, %s4486_s10  ;;  %657 = vrot.lane.b32.xlu0 %v655_v0, %s4487_s11 }
 0xbed   :  { %v652_v2 = vpop.permute.xlu1 %651  ;;  %v650_v3 = vpop.permute.xlu0 %649 }
 0xbee   :  { %v654_v4 = vsel %vm30_vm6, %v650_v3, %v652_v2  ;;  %v3389_v3 = vld [vmem:[%s6660_s0 + $0x230] sm:$0xff] }
 0xbef   :  { %v656_v5 = vsel %vm24_vm4, %v644_v60, %v654_v4  ;;  %v3390_v4 = vld [vmem:[%s6660_s0 + $0x238] sm:$0xff] }
 0xbf0   :  { %663 = vrot.lane.b32.xlu1 %v656_v5, %s4486_s10  ;;  %661 = vrot.lane.b32.xlu0 %v656_v5, %s4487_s11 }
 0xc5e   :  { %v660_v6 = vpop.permute.xlu1 %659  ;;  %v658_v7 = vpop.permute.xlu0 %657 }
 0xc5f   :  { %v665_v9 = vsel %vm33_vm7, %v658_v7, %v660_v6 }
 0xc60   :  { %v667_v11 = vsel %vm27_vm5, %v655_v0, %v665_v9 }
 0xc61   :  { %671 = vrot.lane.b32.xlu1 %v667_v11, %s4488_s27  ;;  %669 = vrot.lane.b32.xlu0 %v667_v11, %s4489_s28 }
 0xc62   :  { %v664_v12 = vpop.permute.xlu1 %663  ;;  %v662_v13 = vpop.permute.xlu0 %661 }
 0xc63   :  { %v666_v15 = vsel %vm33_vm7, %v662_v13, %v664_v12 }
 0xc64   :  { %v668_v17 = vsel %vm27_vm5, %v656_v5, %v666_v15 }
 0xc65   :  { %675 = vrot.lane.b32.xlu1 %v668_v17, %s4488_s27  ;;  %673 = vrot.lane.b32.xlu0 %v668_v17, %s4489_s28 }
 0xcd3   :  { %v672_v18 = vpop.permute.xlu1 %671  ;;  %v670_v19 = vpop.permute.xlu0 %669 }
 0xcd4   :  { %v677_v20 = vsel %vm36_vm8, %v670_v19, %v672_v18  ;;  %v3392_v18 = vld [vmem:[%s6660_s0 + $0x248] sm:$0xff] }
 0xcd5   :  { %v679_v21 = vsel %vm30_vm6, %v667_v11, %v677_v20 }
 0xcd6   :  { %v681_v22 = vrot.slane %v679_v21, 4 }
 0xcd7   :  { %v676_v23 = vpop.permute.xlu1 %675  ;;  %v674_v24 = vpop.permute.xlu0 %673 }
 0xcd8   :  { %v678_v25 = vsel %vm36_vm8, %v674_v24, %v676_v23  ;;  %v683_v26 = vsel %vm33_vm7, %v679_v21, %v681_v22 }
 0xcd9   :  { %v680_v27 = vsel %vm30_vm6, %v668_v17, %v678_v25  ;;  %685 = vrot.lane.b32.xlu0 %v683_v26, %s4477_s24  ;;  %v3391_v17 = vld [vmem:[%s6660_s0 + $0x240] sm:$0xff] }
 0xcda   :  { %v682_v29 = vrot.slane %v680_v27, 4 }
 0xcdc   :  { %v684_v30 = vsel %vm33_vm7, %v680_v27, %v682_v29  ;;  %v3393_v27 = vld [vmem:[%s6660_s0 + $0x250] sm:$0xff] }
 0xcdd   :  { %687 = vrot.lane.b32.xlu1 %v684_v30, %s4477_s24 }
 0xd4b   :  { %v686_v31 = vpop.permute.xlu0 %685 }
 0xd4c   :  { %v689_v32 = vsel %vm36_vm8, %v683_v26, %v686_v31 }
 0xd4d   :  { %v699_v35 = vrot.slane %v689_v32, 4  ;;  %v701_v38 = vmul.f32 %v3383_v33, %v689_v32  ;;  %v709_v41 = vmul.f32 %v3384_v34, %v689_v32 }
 0xd4f   :  { %v688_v36 = vpop.permute.xlu1 %687  ;;  %v704_v46 = vmul.f32 %v3385_v37, %v699_v35  ;;  %v713_v50 = vmul.f32 %v3386_v45, %v699_v35  ;;  %v3394_v35 = vld [vmem:[%s6660_s0 + $0x258] sm:$0xff] }
 0xd50   :  { %v690_v40 = vsel %vm36_vm8, %v684_v30, %v688_v36 }
 0xd51   :  { %v700_v42 = vrot.slane %v690_v40, 4  ;;  %v702_v43 = vmul.f32 %v3384_v34, %v690_v40  ;;  %v708_v44 = vmul.f32 %v3383_v33, %v690_v40 }
 0xd53   :  { %v703_v47 = vsub.f32 %v701_v38, %v702_v43  ;;  %v710_v48 = vadd.f32 %v709_v41, %v708_v44  ;;  %v711_v49 = vmul.f32 %v3385_v37, %v700_v42  ;;  %v706_v53 = vmul.f32 %v3386_v45, %v700_v42  ;;  %v3395_v44 = vld [vmem:[%s6660_s0 + $0x260] sm:$0xff]  ;;  %v3396_v45 = vld [vmem:[%s6660_s0 + $0x268] sm:$0xff] }
 0xd55   :  { %v705_v51 = vadd.f32 %v704_v46, %v703_v47  ;;  %v712_v54 = vadd.f32 %v711_v49, %v710_v48 }
 0xd57   :  { %v714_v58 = vadd.f32 %v713_v50, %v712_v54  ;;  %v707_v59 = vsub.f32 %v705_v51, %v706_v53  ;;  %v3397_v54 = vld [vmem:[%s6660_s0 + $0x270] sm:$0xff] }
 0xd59   :  { %725 = vrot.lane.b32.xlu1 %v714_v58, %s4477_s24  ;;  %723 = vrot.lane.b32.xlu0 %v707_v59, %s4477_s24  ;;  %v734_v60 = vmul.f32 %v3387_v56, %v714_v58  ;;  %v735_v61 = vmul.f32 %v3388_v57, %v707_v59  ;;  %v728_v62 = vmul.f32 %v3388_v57, %v714_v58 }
 0xd5a   :  { %v727_v63 = vmul.f32 %v3387_v56, %v707_v59 }
 0xd5b   :  { %v736_v0 = vadd.f32 %v735_v61, %v734_v60 }
 0xd5c   :  { %v729_v2 = vsub.f32 %v727_v63, %v728_v62  ;;  %v3398_v62 = vld [vmem:[%s6660_s0 + $0x278] sm:$0xff] }
 0xdcb   :  { %v726_v5 = vpop.permute.xlu1 %725  ;;  %v724_v6 = vpop.permute.xlu0 %723 }
 0xdcc   :  { %v737_v7 = vmul.f32 %v3389_v3, %v726_v5  ;;  %v730_v9 = vmul.f32 %v3389_v3, %v724_v6  ;;  %v732_v11 = vmul.f32 %v3390_v4, %v726_v5  ;;  %v739_v15 = vmul.f32 %v3390_v4, %v724_v6 }
 0xdce   :  { %v738_v12 = vadd.f32 %v737_v7, %v736_v0  ;;  %v731_v13 = vadd.f32 %v730_v9, %v729_v2  ;;  %v3399_v7 = vld [vmem:[%s6660_s0 + $0x280] sm:$0xff]  ;;  %v3400_v9 = vld [vmem:[%s6660_s0 + $0x288] sm:$0xff] }
 0xdd0   :  { %v740_v19 = vadd.f32 %v739_v15, %v738_v12  ;;  %v733_v20 = vsub.f32 %v731_v13, %v732_v11 }
 0xdd2   :  { %751 = vrot.lane.b32.xlu1 %v733_v20, %s4479_s7  ;;  %749 = vrot.lane.b32.xlu0 %v733_v20, %s4478_s6  ;;  %v760_v21 = vmul.f32 %v3392_v18, %v740_v19  ;;  %v759_v22 = vmul.f32 %v3391_v17, %v733_v20  ;;  %v766_v23 = vmul.f32 %v3391_v17, %v740_v19 }
 0xdd3   :  { %v767_v24 = vmul.f32 %v3392_v18, %v733_v20  ;;  %v3401_v20 = vld [vmem:[%s6660_s0 + $0x290] sm:$0xff] }
 0xdd4   :  { %v761_v25 = vsub.f32 %v759_v22, %v760_v21 }
 0xdd5   :  { %v768_v26 = vadd.f32 %v767_v24, %v766_v23 }
 0xdd6   :  { %755 = vrot.lane.b32.xlu1 %v740_v19, %s4479_s7  ;;  %753 = vrot.lane.b32.xlu0 %v740_v19, %s4478_s6 }
 0xe44   :  { %v752_v29 = vpop.permute.xlu1 %751  ;;  %v750_v30 = vpop.permute.xlu0 %749 }
 0xe45   :  { %v757_v31 = vsel %vm21_vm3, %v750_v30, %v752_v29 }
 0xe46   :  { %v762_v32 = vmul.f32 %v3393_v27, %v757_v31  ;;  %v771_v41 = vmul.f32 %v3394_v35, %v757_v31 }
 0xe48   :  { %v756_v33 = vpop.permute.xlu1 %755  ;;  %v754_v34 = vpop.permute.xlu0 %753  ;;  %v763_v37 = vadd.f32 %v762_v32, %v761_v25 }
 0xe49   :  { %v758_v36 = vsel %vm21_vm3, %v754_v34, %v756_v33 }
 0xe4a   :  { %v764_v38 = vmul.f32 %v3394_v35, %v758_v36  ;;  %v769_v40 = vmul.f32 %v3393_v27, %v758_v36  ;;  %v3402_v27 = vld [vmem:[%s6660_s0 + $0x298] sm:$0xff]  ;;  %v3403_v36 = vld [vmem:[%s6660_s0 + $0x2a0] sm:$0xff] }
 0xe4c   :  { %v765_v42 = vsub.f32 %v763_v37, %v764_v38  ;;  %v770_v43 = vadd.f32 %v769_v40, %v768_v26  ;;  %v3404_v37 = vld [vmem:[%s6660_s0 + $0x2a8] sm:$0xff] }
 0xe4e   :  { %v772_v46 = vadd.f32 %v771_v41, %v770_v43  ;;  %783 = vrot.lane.b32.xlu1 %v765_v42, %s4480_s18  ;;  %781 = vrot.lane.b32.xlu0 %v765_v42, %s4481_s19  ;;  %v791_v48 = vmul.f32 %v3395_v44, %v765_v42  ;;  %v799_v50 = vmul.f32 %v3396_v45, %v765_v42 }
 0xe50   :  { %v792_v47 = vmul.f32 %v3396_v45, %v772_v46  ;;  %v798_v49 = vmul.f32 %v3395_v44, %v772_v46 }
 0xe52   :  { %787 = vrot.lane.b32.xlu1 %v772_v46, %s4480_s18  ;;  %785 = vrot.lane.b32.xlu0 %v772_v46, %s4481_s19  ;;  %v793_v51 = vsub.f32 %v791_v48, %v792_v47  ;;  %v800_v53 = vadd.f32 %v799_v50, %v798_v49  ;;  %v3405_v46 = vld [vmem:[%s6660_s0 + $0x2b0] sm:$0xff] }
 0xec0   :  { %v784_v56 = vpop.permute.xlu1 %783  ;;  %v782_v57 = vpop.permute.xlu0 %781 }
 0xec1   :  { %v789_v58 = vsel %vm24_vm4, %v782_v57, %v784_v56 }
 0xec2   :  { %v794_v59 = vmul.f32 %v3397_v54, %v789_v58  ;;  %v803_v4 = vmul.f32 %v3398_v62, %v789_v58 }
 0xec4   :  { %v788_v60 = vpop.permute.xlu1 %787  ;;  %v786_v61 = vpop.permute.xlu0 %785  ;;  %v795_v0 = vadd.f32 %v794_v59, %v793_v51 }
 0xec5   :  { %v790_v63 = vsel %vm24_vm4, %v786_v61, %v788_v60 }
 0xec6   :  { %v796_v2 = vmul.f32 %v3398_v62, %v790_v63  ;;  %v801_v3 = vmul.f32 %v3397_v54, %v790_v63  ;;  %v3406_v54 = vld [vmem:[%s6660_s0 + $0x2b8] sm:$0xff]  ;;  %v3407_v63 = vld [vmem:[%s6660_s0 + $0x2c0] sm:$0xff] }
 0xec8   :  { %v797_v5 = vsub.f32 %v795_v0, %v796_v2  ;;  %v802_v6 = vadd.f32 %v801_v3, %v800_v53  ;;  %v3408_v0 = vld [vmem:[%s6660_s0 + $0x2c8] sm:$0xff] }
 0xeca   :  { %v804_v11 = vadd.f32 %v803_v4, %v802_v6  ;;  %815 = vrot.lane.b32.xlu1 %v797_v5, %s4482_s4  ;;  %813 = vrot.lane.b32.xlu0 %v797_v5, %s4483_s5  ;;  %v823_v13 = vmul.f32 %v3399_v7, %v797_v5  ;;  %v831_v17 = vmul.f32 %v3400_v9, %v797_v5 }
 0xecc   :  { %v824_v12 = vmul.f32 %v3400_v9, %v804_v11  ;;  %v830_v15 = vmul.f32 %v3399_v7, %v804_v11 }
 0xece   :  { %819 = vrot.lane.b32.xlu1 %v804_v11, %s4482_s4  ;;  %817 = vrot.lane.b32.xlu0 %v804_v11, %s4483_s5  ;;  %v825_v18 = vsub.f32 %v823_v13, %v824_v12  ;;  %v832_v19 = vadd.f32 %v831_v17, %v830_v15  ;;  %v3409_v11 = vld [vmem:[%s6660_s0 + $0x2d0] sm:$0xff] }
 0xf3c   :  { %v816_v21 = vpop.permute.xlu1 %815  ;;  %v814_v22 = vpop.permute.xlu0 %813 }
 0xf3d   :  { %v821_v23 = vsel %vm27_vm5, %v814_v22, %v816_v21 }
 0xf3e   :  { %v826_v24 = vmul.f32 %v3401_v20, %v821_v23  ;;  %v835_v33 = vmul.f32 %v3402_v27, %v821_v23 }
 0xf40   :  { %v820_v25 = vpop.permute.xlu1 %819  ;;  %v818_v26 = vpop.permute.xlu0 %817  ;;  %v827_v30 = vadd.f32 %v826_v24, %v825_v18 }
 0xf41   :  { %v822_v29 = vsel %vm27_vm5, %v818_v26, %v820_v25 }
 0xf42   :  { %v828_v31 = vmul.f32 %v3402_v27, %v822_v29  ;;  %v833_v32 = vmul.f32 %v3401_v20, %v822_v29  ;;  %v3410_v20 = vld [vmem:[%s6660_s0 + $0x2d8] sm:$0xff]  ;;  %v3411_v29 = vld [vmem:[%s6660_s0 + $0x2e0] sm:$0xff] }
 0xf44   :  { %v829_v34 = vsub.f32 %v827_v30, %v828_v31  ;;  %v834_v35 = vadd.f32 %v833_v32, %v832_v19  ;;  %v3412_v30 = vld [vmem:[%s6660_s0 + $0x2e8] sm:$0xff] }
 0xf46   :  { %v836_v38 = vadd.f32 %v835_v33, %v834_v35  ;;  %847 = vrot.lane.b32.xlu1 %v829_v34, %s4484_s20  ;;  %845 = vrot.lane.b32.xlu0 %v829_v34, %s4485_s21  ;;  %v855_v41 = vmul.f32 %v3403_v36, %v829_v34  ;;  %v863_v43 = vmul.f32 %v3404_v37, %v829_v34 }
 0xf48   :  { %v856_v40 = vmul.f32 %v3404_v37, %v836_v38  ;;  %v862_v42 = vmul.f32 %v3403_v36, %v836_v38 }
 0xf4a   :  { %851 = vrot.lane.b32.xlu1 %v836_v38, %s4484_s20  ;;  %849 = vrot.lane.b32.xlu0 %v836_v38, %s4485_s21  ;;  %v857_v44 = vsub.f32 %v855_v41, %v856_v40  ;;  %v864_v45 = vadd.f32 %v863_v43, %v862_v42  ;;  %v3413_v38 = vld [vmem:[%s6660_s0 + $0x2f0] sm:$0xff] }
 0xfb8   :  { %v848_v47 = vpop.permute.xlu1 %847  ;;  %v846_v48 = vpop.permute.xlu0 %845 }
 0xfb9   :  { %v853_v49 = vsel %vm30_vm6, %v846_v48, %v848_v47 }
 0xfba   :  { %v858_v50 = vmul.f32 %v3405_v46, %v853_v49  ;;  %v867_v60 = vmul.f32 %v3406_v54, %v853_v49 }
 0xfbc   :  { %v852_v51 = vpop.permute.xlu1 %851  ;;  %v850_v53 = vpop.permute.xlu0 %849  ;;  %v859_v57 = vadd.f32 %v858_v50, %v857_v44 }
 0xfbd   :  { %v854_v56 = vsel %vm30_vm6, %v850_v53, %v852_v51 }
 0xfbe   :  { %v860_v58 = vmul.f32 %v3406_v54, %v854_v56  ;;  %v865_v59 = vmul.f32 %v3405_v46, %v854_v56  ;;  %v3414_v46 = vld [vmem:[%s6660_s0 + $0x2f8] sm:$0xff] }
 0xfc0   :  { %v861_v61 = vsub.f32 %v859_v57, %v860_v58  ;;  %v866_v62 = vadd.f32 %v865_v59, %v864_v45 }
 0xfc2   :  { %v868_v2 = vadd.f32 %v867_v60, %v866_v62  ;;  %879 = vrot.lane.b32.xlu1 %v861_v61, %s4486_s10  ;;  %877 = vrot.lane.b32.xlu0 %v861_v61, %s4487_s11  ;;  %v887_v4 = vmul.f32 %v3407_v63, %v861_v61  ;;  %v895_v6 = vmul.f32 %v3408_v0, %v861_v61 }
 0xfc4   :  { %v888_v3 = vmul.f32 %v3408_v0, %v868_v2  ;;  %v894_v5 = vmul.f32 %v3407_v63, %v868_v2 }
 0xfc6   :  { %883 = vrot.lane.b32.xlu1 %v868_v2, %s4486_s10  ;;  %881 = vrot.lane.b32.xlu0 %v868_v2, %s4487_s11  ;;  %v889_v7 = vsub.f32 %v887_v4, %v888_v3  ;;  %v896_v9 = vadd.f32 %v895_v6, %v894_v5 }
0x1034   :  { %v880_v12 = vpop.permute.xlu1 %879  ;;  %v878_v13 = vpop.permute.xlu0 %877 }
0x1035   :  { %v885_v15 = vsel %vm33_vm7, %v878_v13, %v880_v12 }
0x1036   :  { %v890_v17 = vmul.f32 %v3409_v11, %v885_v15  ;;  %v899_v25 = vmul.f32 %v3410_v20, %v885_v15 }
0x1038   :  { %v884_v18 = vpop.permute.xlu1 %883  ;;  %v882_v19 = vpop.permute.xlu0 %881  ;;  %v891_v22 = vadd.f32 %v890_v17, %v889_v7 }
0x1039   :  { %v886_v21 = vsel %vm33_vm7, %v882_v19, %v884_v18 }
0x103a   :  { %v892_v23 = vmul.f32 %v3410_v20, %v886_v21  ;;  %v897_v24 = vmul.f32 %v3409_v11, %v886_v21 }
0x103c   :  { %v893_v26 = vsub.f32 %v891_v22, %v892_v23  ;;  %v898_v27 = vadd.f32 %v897_v24, %v896_v9 }
0x103e   :  { %v900_v31 = vadd.f32 %v899_v25, %v898_v27  ;;  %911 = vrot.lane.b32.xlu1 %v893_v26, %s4488_s27  ;;  %909 = vrot.lane.b32.xlu0 %v893_v26, %s4489_s28  ;;  %v919_v33 = vmul.f32 %v3411_v29, %v893_v26  ;;  %v927_v35 = vmul.f32 %v3412_v30, %v893_v26 }
0x1040   :  { %v920_v32 = vmul.f32 %v3412_v30, %v900_v31  ;;  %v926_v34 = vmul.f32 %v3411_v29, %v900_v31 }
0x1042   :  { %915 = vrot.lane.b32.xlu1 %v900_v31, %s4488_s27  ;;  %913 = vrot.lane.b32.xlu0 %v900_v31, %s4489_s28  ;;  %v921_v36 = vsub.f32 %v919_v33, %v920_v32  ;;  %v928_v37 = vadd.f32 %v927_v35, %v926_v34 }
0x10b0   :  { %v912_v40 = vpop.permute.xlu1 %911  ;;  %v910_v41 = vpop.permute.xlu0 %909 }
0x10b1   :  { %v917_v42 = vsel %vm36_vm8, %v910_v41, %v912_v40 }
0x10b2   :  { %v922_v43 = vmul.f32 %v3413_v38, %v917_v42  ;;  %v931_v54 = vmul.f32 %v3414_v46, %v917_v42 }
0x10b4   :  { %v916_v44 = vpop.permute.xlu1 %915  ;;  %v914_v45 = vpop.permute.xlu0 %913  ;;  %v923_v48 = vadd.f32 %v922_v43, %v921_v36 }
0x10b5   :  { %v918_v47 = vsel %vm36_vm8, %v914_v45, %v916_v44 }
0x10b6   :  { %v924_v49 = vmul.f32 %v3414_v46, %v918_v47  ;;  %v929_v50 = vmul.f32 %v3413_v38, %v918_v47 }
0x10b8   :  { %v925_v51 = vsub.f32 %v923_v48, %v924_v49  ;;  %v930_v53 = vadd.f32 %v929_v50, %v928_v37 }
0x10ba   :  { %935 = vrot.lane.b32.xlu1 %v925_v51, %s4480_s18  ;;  %933 = vrot.lane.b32.xlu0 %v925_v51, %s4481_s19  ;;  %v932_v56 = vadd.f32 %v931_v54, %v930_v53  ;;  %v3415_v53 = vld [vmem:[%s6660_s0 + $0x300] sm:$0xff]  ;;  %v3416_v54 = vld [vmem:[%s6660_s0 + $0x308] sm:$0xff] }
0x10be   :  { %939 = vrot.lane.b32.xlu1 %v932_v56, %s4480_s18  ;;  %937 = vrot.lane.b32.xlu0 %v932_v56, %s4481_s19 }
0x112c   :  { %v936_v57 = vpop.permute.xlu1 %935  ;;  %v934_v58 = vpop.permute.xlu0 %933 }
0x112d   :  { %v941_v59 = vsel %vm24_vm4, %v934_v58, %v936_v57 }
0x112e   :  { %v943_v60 = vsel %vm15_vm9, %v925_v51, %v941_v59 }
0x112f   :  { %947 = vrot.lane.b32.xlu1 %v943_v60, %s4482_s4  ;;  %945 = vrot.lane.b32.xlu0 %v943_v60, %s4483_s5 }
0x1130   :  { %v940_v61 = vpop.permute.xlu1 %939  ;;  %v938_v62 = vpop.permute.xlu0 %937 }
0x1131   :  { %v942_v63 = vsel %vm24_vm4, %v938_v62, %v940_v61 }
0x1132   :  { %v944_v0 = vsel %vm15_vm9, %v932_v56, %v942_v63 }
0x1133   :  { %951 = vrot.lane.b32.xlu1 %v944_v0, %s4482_s4  ;;  %949 = vrot.lane.b32.xlu0 %v944_v0, %s4483_s5 }
0x11a1   :  { %v948_v2 = vpop.permute.xlu1 %947  ;;  %v946_v3 = vpop.permute.xlu0 %945 }
0x11a2   :  { %v953_v4 = vsel %vm27_vm5, %v946_v3, %v948_v2 }
0x11a3   :  { %v955_v5 = vsel %vm18_vm10, %v943_v60, %v953_v4  ;;  %v3417_v60 = vld [vmem:[%s6660_s0 + $0x310] sm:$0xff]  ;;  %v3418_v4 = vld [vmem:[%s6660_s0 + $0x318] sm:$0xff] }
0x11a4   :  { %959 = vrot.lane.b32.xlu1 %v955_v5, %s4484_s20  ;;  %957 = vrot.lane.b32.xlu0 %v955_v5, %s4485_s21 }
0x11a5   :  { %v952_v6 = vpop.permute.xlu1 %951  ;;  %v950_v7 = vpop.permute.xlu0 %949 }
0x11a6   :  { %v954_v9 = vsel %vm27_vm5, %v950_v7, %v952_v6 }
0x11a7   :  { %v956_v11 = vsel %vm18_vm10, %v944_v0, %v954_v9 }
0x11a8   :  { %963 = vrot.lane.b32.xlu1 %v956_v11, %s4484_s20  ;;  %961 = vrot.lane.b32.xlu0 %v956_v11, %s4485_s21 }
0x1216   :  { %v960_v12 = vpop.permute.xlu1 %959  ;;  %v958_v13 = vpop.permute.xlu0 %957 }
0x1217   :  { %v965_v15 = vsel %vm30_vm6, %v958_v13, %v960_v12 }
0x1218   :  { %v967_v17 = vsel %vm21_vm3, %v955_v5, %v965_v15 }
0x1219   :  { %971 = vrot.lane.b32.xlu1 %v967_v17, %s4486_s10  ;;  %969 = vrot.lane.b32.xlu0 %v967_v17, %s4487_s11 }
0x121a   :  { %v964_v18 = vpop.permute.xlu1 %963  ;;  %v962_v19 = vpop.permute.xlu0 %961 }
0x121b   :  { %v966_v20 = vsel %vm30_vm6, %v962_v19, %v964_v18  ;;  %v3420_v18 = vld [vmem:[%s6660_s0 + $0x328] sm:$0xff] }
0x121c   :  { %v968_v21 = vsel %vm21_vm3, %v956_v11, %v966_v20 }
0x121d   :  { %975 = vrot.lane.b32.xlu1 %v968_v21, %s4486_s10  ;;  %973 = vrot.lane.b32.xlu0 %v968_v21, %s4487_s11 }
0x128b   :  { %v972_v22 = vpop.permute.xlu1 %971  ;;  %v970_v23 = vpop.permute.xlu0 %969 }
0x128c   :  { %v977_v24 = vsel %vm33_vm7, %v970_v23, %v972_v22 }
0x128d   :  { %v979_v25 = vsel %vm24_vm4, %v967_v17, %v977_v24  ;;  %v3419_v17 = vld [vmem:[%s6660_s0 + $0x320] sm:$0xff] }
0x128e   :  { %983 = vrot.lane.b32.xlu1 %v979_v25, %s4488_s27  ;;  %981 = vrot.lane.b32.xlu0 %v979_v25, %s4489_s28 }
0x128f   :  { %v976_v26 = vpop.permute.xlu1 %975  ;;  %v974_v27 = vpop.permute.xlu0 %973 }
0x1290   :  { %v978_v29 = vsel %vm33_vm7, %v974_v27, %v976_v26  ;;  %v3421_v27 = vld [vmem:[%s6660_s0 + $0x330] sm:$0xff] }
0x1291   :  { %v980_v30 = vsel %vm24_vm4, %v968_v21, %v978_v29  ;;  %v3422_v29 = vld [vmem:[%s6660_s0 + $0x338] sm:$0xff] }
0x1292   :  { %987 = vrot.lane.b32.xlu1 %v980_v30, %s4488_s27  ;;  %985 = vrot.lane.b32.xlu0 %v980_v30, %s4489_s28 }
0x1300   :  { %v984_v31 = vpop.permute.xlu1 %983  ;;  %v982_v32 = vpop.permute.xlu0 %981 }
0x1301   :  { %v989_v33 = vsel %vm36_vm8, %v982_v32, %v984_v31 }
0x1302   :  { %v991_v34 = vsel %vm27_vm5, %v979_v25, %v989_v33 }
0x1303   :  { %v993_v35 = vrot.slane %v991_v34, 4 }
0x1304   :  { %v988_v36 = vpop.permute.xlu1 %987  ;;  %v986_v37 = vpop.permute.xlu0 %985 }
0x1305   :  { %v990_v38 = vsel %vm36_vm8, %v986_v37, %v988_v36  ;;  %v995_v40 = vsel %vm30_vm6, %v991_v34, %v993_v35 }
0x1306   :  { %v992_v41 = vsel %vm27_vm5, %v980_v30, %v990_v38  ;;  %997 = vrot.lane.b32.xlu0 %v995_v40, %s4477_s24  ;;  %v3423_v38 = vld [vmem:[%s6660_s0 + $0x340] sm:$0xff] }
0x1307   :  { %v994_v42 = vrot.slane %v992_v41, 4 }
0x1309   :  { %v996_v43 = vsel %vm30_vm6, %v992_v41, %v994_v42 }
0x130a   :  { %999 = vrot.lane.b32.xlu1 %v996_v43, %s4477_s24 }
0x1378   :  { %v998_v44 = vpop.permute.xlu0 %997 }
0x1379   :  { %v1001_v45 = vsel %vm33_vm7, %v995_v40, %v998_v44  ;;  %v3424_v40 = vld [vmem:[%s6660_s0 + $0x348] sm:$0xff] }
0x137a   :  { %1005 = vrot.lane.b32.xlu1 %v1001_v45, %s4479_s7  ;;  %1003 = vrot.lane.b32.xlu0 %v1001_v45, %s4478_s6 }
0x137c   :  { %v1000_v46 = vpop.permute.xlu1 %999 }
0x137d   :  { %v1002_v47 = vsel %vm33_vm7, %v996_v43, %v1000_v46 }
0x137e   :  { %1009 = vrot.lane.b32.xlu1 %v1002_v47, %s4479_s7  ;;  %1007 = vrot.lane.b32.xlu0 %v1002_v47, %s4478_s6 }
0x13ec   :  { %v1006_v48 = vpop.permute.xlu1 %1005  ;;  %v1004_v49 = vpop.permute.xlu0 %1003 }
0x13ed   :  { %v1011_v50 = vsel %vm21_vm3, %v1004_v49, %v1006_v48  ;;  %v3425_v49 = vld [vmem:[%s6660_s0 + $0x350] sm:$0xff] }
0x13ee   :  { %v1013_v51 = vsel %vm36_vm8, %v1001_v45, %v1011_v50 }
0x13ef   :  { %v1023_v58 = vrot.slane %v1013_v51, 4  ;;  %v1025_v61 = vmul.f32 %v3415_v53, %v1013_v51  ;;  %v1033_v63 = vmul.f32 %v3416_v54, %v1013_v51 }
0x13f0   :  { %v1010_v56 = vpop.permute.xlu1 %1009  ;;  %v1008_v57 = vpop.permute.xlu0 %1007 }
0x13f1   :  { %v1012_v59 = vsel %vm21_vm3, %v1008_v57, %v1010_v56  ;;  %v1028_v5 = vmul.f32 %v3417_v60, %v1023_v58  ;;  %v1037_v11 = vmul.f32 %v3418_v4, %v1023_v58  ;;  %v3426_v58 = vld [vmem:[%s6660_s0 + $0x358] sm:$0xff] }
0x13f2   :  { %v1014_v62 = vsel %vm36_vm8, %v1002_v47, %v1012_v59 }
0x13f3   :  { %v1024_v0 = vrot.slane %v1014_v62, 4  ;;  %v1026_v2 = vmul.f32 %v3416_v54, %v1014_v62  ;;  %v1032_v3 = vmul.f32 %v3415_v53, %v1014_v62 }
0x13f5   :  { %v1027_v6 = vsub.f32 %v1025_v61, %v1026_v2  ;;  %v1034_v7 = vadd.f32 %v1033_v63, %v1032_v3  ;;  %v1035_v9 = vmul.f32 %v3417_v60, %v1024_v0  ;;  %v1030_v12 = vmul.f32 %v3418_v4, %v1024_v0  ;;  %v3427_v3 = vld [vmem:[%s6660_s0 + $0x360] sm:$0xff]  ;;  %v3428_v4 = vld [vmem:[%s6660_s0 + $0x368] sm:$0xff] }
0x13f7   :  { %v1036_v13 = vadd.f32 %v1035_v9, %v1034_v7  ;;  %v1029_v15 = vadd.f32 %v1028_v5, %v1027_v6 }
0x13f9   :  { %v1038_v19 = vadd.f32 %v1037_v11, %v1036_v13  ;;  %v1031_v20 = vsub.f32 %v1029_v15, %v1030_v12  ;;  %v3429_v15 = vld [vmem:[%s6660_s0 + $0x370] sm:$0xff] }
0x13fb   :  { %1049 = vrot.lane.b32.xlu1 %v1038_v19, %s4477_s24  ;;  %1047 = vrot.lane.b32.xlu0 %v1031_v20, %s4477_s24  ;;  %v1058_v21 = vmul.f32 %v3419_v17, %v1038_v19  ;;  %v1059_v22 = vmul.f32 %v3420_v18, %v1031_v20  ;;  %v1052_v23 = vmul.f32 %v3420_v18, %v1038_v19 }
0x13fc   :  { %v1051_v24 = vmul.f32 %v3419_v17, %v1031_v20 }
0x13fd   :  { %v1060_v25 = vadd.f32 %v1059_v22, %v1058_v21 }
0x13fe   :  { %v1053_v26 = vsub.f32 %v1051_v24, %v1052_v23  ;;  %v3430_v23 = vld [vmem:[%s6660_s0 + $0x378] sm:$0xff] }
0x146d   :  { %v1050_v30 = vpop.permute.xlu1 %1049  ;;  %v1048_v31 = vpop.permute.xlu0 %1047 }
0x146e   :  { %v1061_v32 = vmul.f32 %v3421_v27, %v1050_v30  ;;  %v1054_v33 = vmul.f32 %v3421_v27, %v1048_v31  ;;  %v1056_v34 = vmul.f32 %v3422_v29, %v1050_v30  ;;  %v1063_v37 = vmul.f32 %v3422_v29, %v1048_v31 }
0x1470   :  { %v1062_v35 = vadd.f32 %v1061_v32, %v1060_v25  ;;  %v1055_v36 = vadd.f32 %v1054_v33, %v1053_v26  ;;  %v3431_v32 = vld [vmem:[%s6660_s0 + $0x380] sm:$0xff]  ;;  %v3432_v33 = vld [vmem:[%s6660_s0 + $0x388] sm:$0xff] }
0x1472   :  { %v1064_v41 = vadd.f32 %v1063_v37, %v1062_v35  ;;  %v1057_v42 = vsub.f32 %v1055_v36, %v1056_v34 }
0x1474   :  { %1075 = vrot.lane.b32.xlu1 %v1057_v42, %s4479_s7  ;;  %1073 = vrot.lane.b32.xlu0 %v1057_v42, %s4478_s6  ;;  %v1084_v43 = vmul.f32 %v3424_v40, %v1064_v41  ;;  %v1083_v44 = vmul.f32 %v3423_v38, %v1057_v42  ;;  %v1090_v45 = vmul.f32 %v3423_v38, %v1064_v41 }
0x1475   :  { %v1091_v46 = vmul.f32 %v3424_v40, %v1057_v42  ;;  %v3433_v42 = vld [vmem:[%s6660_s0 + $0x390] sm:$0xff] }
0x1476   :  { %v1085_v47 = vsub.f32 %v1083_v44, %v1084_v43 }
0x1477   :  { %v1092_v48 = vadd.f32 %v1091_v46, %v1090_v45 }
0x1478   :  { %1079 = vrot.lane.b32.xlu1 %v1064_v41, %s4479_s7  ;;  %1077 = vrot.lane.b32.xlu0 %v1064_v41, %s4478_s6 }
0x14e6   :  { %v1076_v50 = vpop.permute.xlu1 %1075  ;;  %v1074_v51 = vpop.permute.xlu0 %1073 }
0x14e7   :  { %v1081_v53 = vsel %vm21_vm3, %v1074_v51, %v1076_v50 }
0x14e8   :  { %v1086_v54 = vmul.f32 %v3425_v49, %v1081_v53  ;;  %v1095_v63 = vmul.f32 %v3426_v58, %v1081_v53 }
0x14ea   :  { %v1080_v56 = vpop.permute.xlu1 %1079  ;;  %v1078_v57 = vpop.permute.xlu0 %1077  ;;  %v1087_v60 = vadd.f32 %v1086_v54, %v1085_v47 }
0x14eb   :  { %v1082_v59 = vsel %vm21_vm3, %v1078_v57, %v1080_v56 }
0x14ec   :  { %v1088_v61 = vmul.f32 %v3426_v58, %v1082_v59  ;;  %v1093_v62 = vmul.f32 %v3425_v49, %v1082_v59  ;;  %v3434_v49 = vld [vmem:[%s6660_s0 + $0x398] sm:$0xff]  ;;  %v3435_v59 = vld [vmem:[%s6660_s0 + $0x3a0] sm:$0xff] }
0x14ee   :  { %v1089_v0 = vsub.f32 %v1087_v60, %v1088_v61  ;;  %v1094_v2 = vadd.f32 %v1093_v62, %v1092_v48  ;;  %v3436_v60 = vld [vmem:[%s6660_s0 + $0x3a8] sm:$0xff] }
0x14f0   :  { %v1096_v5 = vadd.f32 %v1095_v63, %v1094_v2  ;;  %1107 = vrot.lane.b32.xlu1 %v1089_v0, %s4480_s18  ;;  %1105 = vrot.lane.b32.xlu0 %v1089_v0, %s4481_s19  ;;  %v1115_v7 = vmul.f32 %v3427_v3, %v1089_v0  ;;  %v1123_v11 = vmul.f32 %v3428_v4, %v1089_v0 }
0x14f2   :  { %v1116_v6 = vmul.f32 %v3428_v4, %v1096_v5  ;;  %v1122_v9 = vmul.f32 %v3427_v3, %v1096_v5 }
0x14f4   :  { %1111 = vrot.lane.b32.xlu1 %v1096_v5, %s4480_s18  ;;  %1109 = vrot.lane.b32.xlu0 %v1096_v5, %s4481_s19  ;;  %v1117_v12 = vsub.f32 %v1115_v7, %v1116_v6  ;;  %v1124_v13 = vadd.f32 %v1123_v11, %v1122_v9  ;;  %v3437_v5 = vld [vmem:[%s6660_s0 + $0x3b0] sm:$0xff] }
0x1562   :  { %v1108_v17 = vpop.permute.xlu1 %1107  ;;  %v1106_v18 = vpop.permute.xlu0 %1105 }
0x1563   :  { %v1113_v19 = vsel %vm24_vm4, %v1106_v18, %v1108_v17 }
0x1564   :  { %v1118_v20 = vmul.f32 %v3429_v15, %v1113_v19  ;;  %v1127_v29 = vmul.f32 %v3430_v23, %v1113_v19 }
0x1566   :  { %v1112_v21 = vpop.permute.xlu1 %1111  ;;  %v1110_v22 = vpop.permute.xlu0 %1109  ;;  %v1119_v25 = vadd.f32 %v1118_v20, %v1117_v12 }
0x1567   :  { %v1114_v24 = vsel %vm24_vm4, %v1110_v22, %v1112_v21 }
0x1568   :  { %v1120_v26 = vmul.f32 %v3430_v23, %v1114_v24  ;;  %v1125_v27 = vmul.f32 %v3429_v15, %v1114_v24  ;;  %v3438_v15 = vld [vmem:[%s6660_s0 + $0x3b8] sm:$0xff]  ;;  %v3439_v24 = vld [vmem:[%s6660_s0 + $0x3c0] sm:$0xff] }
0x156a   :  { %v1121_v30 = vsub.f32 %v1119_v25, %v1120_v26  ;;  %v1126_v31 = vadd.f32 %v1125_v27, %v1124_v13  ;;  %v3440_v25 = vld [vmem:[%s6660_s0 + $0x3c8] sm:$0xff] }
0x156c   :  { %v1128_v34 = vadd.f32 %v1127_v29, %v1126_v31  ;;  %1139 = vrot.lane.b32.xlu1 %v1121_v30, %s4482_s4  ;;  %1137 = vrot.lane.b32.xlu0 %v1121_v30, %s4483_s5  ;;  %v1147_v36 = vmul.f32 %v3431_v32, %v1121_v30  ;;  %v1155_v38 = vmul.f32 %v3432_v33, %v1121_v30 }
0x156e   :  { %v1148_v35 = vmul.f32 %v3432_v33, %v1128_v34  ;;  %v1154_v37 = vmul.f32 %v3431_v32, %v1128_v34 }
0x1570   :  { %1143 = vrot.lane.b32.xlu1 %v1128_v34, %s4482_s4  ;;  %1141 = vrot.lane.b32.xlu0 %v1128_v34, %s4483_s5  ;;  %v1149_v40 = vsub.f32 %v1147_v36, %v1148_v35  ;;  %v1156_v41 = vadd.f32 %v1155_v38, %v1154_v37  ;;  %v3441_v34 = vld [vmem:[%s6660_s0 + $0x3d0] sm:$0xff] }
0x15de   :  { %v1140_v43 = vpop.permute.xlu1 %1139  ;;  %v1138_v44 = vpop.permute.xlu0 %1137 }
0x15df   :  { %v1145_v45 = vsel %vm27_vm5, %v1138_v44, %v1140_v43 }
0x15e0   :  { %v1150_v46 = vmul.f32 %v3433_v42, %v1145_v45  ;;  %v1159_v56 = vmul.f32 %v3434_v49, %v1145_v45 }
0x15e2   :  { %v1144_v47 = vpop.permute.xlu1 %1143  ;;  %v1142_v48 = vpop.permute.xlu0 %1141  ;;  %v1151_v51 = vadd.f32 %v1150_v46, %v1149_v40 }
0x15e3   :  { %v1146_v50 = vsel %vm27_vm5, %v1142_v48, %v1144_v47 }
0x15e4   :  { %v1152_v53 = vmul.f32 %v3434_v49, %v1146_v50  ;;  %v1157_v54 = vmul.f32 %v3433_v42, %v1146_v50  ;;  %v3442_v42 = vld [vmem:[%s6660_s0 + $0x3d8] sm:$0xff]  ;;  %v3443_v50 = vld [vmem:[%s6660_s0 + $0x3e0] sm:$0xff] }
0x15e6   :  { %v1153_v57 = vsub.f32 %v1151_v51, %v1152_v53  ;;  %v1158_v58 = vadd.f32 %v1157_v54, %v1156_v41  ;;  %v3444_v51 = vld [vmem:[%s6660_s0 + $0x3e8] sm:$0xff] }
0x15e8   :  { %v1160_v61 = vadd.f32 %v1159_v56, %v1158_v58  ;;  %1171 = vrot.lane.b32.xlu1 %v1153_v57, %s4484_s20  ;;  %1169 = vrot.lane.b32.xlu0 %v1153_v57, %s4485_s21  ;;  %v1179_v63 = vmul.f32 %v3435_v59, %v1153_v57  ;;  %v1187_v2 = vmul.f32 %v3436_v60, %v1153_v57 }
0x15ea   :  { %v1180_v62 = vmul.f32 %v3436_v60, %v1160_v61  ;;  %v1186_v0 = vmul.f32 %v3435_v59, %v1160_v61 }
0x15ec   :  { %1175 = vrot.lane.b32.xlu1 %v1160_v61, %s4484_s20  ;;  %1173 = vrot.lane.b32.xlu0 %v1160_v61, %s4485_s21  ;;  %v1181_v3 = vsub.f32 %v1179_v63, %v1180_v62  ;;  %v1188_v4 = vadd.f32 %v1187_v2, %v1186_v0  ;;  %v3445_v61 = vld [vmem:[%s6660_s0 + $0x3f0] sm:$0xff] }
0x165a   :  { %v1172_v6 = vpop.permute.xlu1 %1171  ;;  %v1170_v7 = vpop.permute.xlu0 %1169 }
0x165b   :  { %v1177_v9 = vsel %vm30_vm6, %v1170_v7, %v1172_v6 }
0x165c   :  { %v1182_v11 = vmul.f32 %v3437_v5, %v1177_v9  ;;  %v1191_v21 = vmul.f32 %v3438_v15, %v1177_v9 }
0x165e   :  { %v1176_v12 = vpop.permute.xlu1 %1175  ;;  %v1174_v13 = vpop.permute.xlu0 %1173  ;;  %v1183_v18 = vadd.f32 %v1182_v11, %v1181_v3 }
0x165f   :  { %v1178_v17 = vsel %vm30_vm6, %v1174_v13, %v1176_v12 }
0x1660   :  { %v1184_v19 = vmul.f32 %v3438_v15, %v1178_v17  ;;  %v1189_v20 = vmul.f32 %v3437_v5, %v1178_v17  ;;  %v3446_v5 = vld [vmem:[%s6660_s0 + $0x3f8] sm:$0xff] }
0x1662   :  { %v1185_v22 = vsub.f32 %v1183_v18, %v1184_v19  ;;  %v1190_v23 = vadd.f32 %v1189_v20, %v1188_v4 }
0x1664   :  { %v1192_v26 = vadd.f32 %v1191_v21, %v1190_v23  ;;  %1203 = vrot.lane.b32.xlu1 %v1185_v22, %s4486_s10  ;;  %1201 = vrot.lane.b32.xlu0 %v1185_v22, %s4487_s11  ;;  %v1211_v29 = vmul.f32 %v3439_v24, %v1185_v22  ;;  %v1219_v31 = vmul.f32 %v3440_v25, %v1185_v22 }
0x1666   :  { %v1212_v27 = vmul.f32 %v3440_v25, %v1192_v26  ;;  %v1218_v30 = vmul.f32 %v3439_v24, %v1192_v26 }
0x1668   :  { %1207 = vrot.lane.b32.xlu1 %v1192_v26, %s4486_s10  ;;  %1205 = vrot.lane.b32.xlu0 %v1192_v26, %s4487_s11  ;;  %v1213_v32 = vsub.f32 %v1211_v29, %v1212_v27  ;;  %v1220_v33 = vadd.f32 %v1219_v31, %v1218_v30 }
0x16d6   :  { %v1204_v35 = vpop.permute.xlu1 %1203  ;;  %v1202_v36 = vpop.permute.xlu0 %1201 }
0x16d7   :  { %v1209_v37 = vsel %vm33_vm7, %v1202_v36, %v1204_v35 }
0x16d8   :  { %v1214_v38 = vmul.f32 %v3441_v34, %v1209_v37  ;;  %v1223_v47 = vmul.f32 %v3442_v42, %v1209_v37 }
0x16da   :  { %v1208_v40 = vpop.permute.xlu1 %1207  ;;  %v1206_v41 = vpop.permute.xlu0 %1205  ;;  %v1215_v44 = vadd.f32 %v1214_v38, %v1213_v32 }
0x16db   :  { %v1210_v43 = vsel %vm33_vm7, %v1206_v41, %v1208_v40 }
0x16dc   :  { %v1216_v45 = vmul.f32 %v3442_v42, %v1210_v43  ;;  %v1221_v46 = vmul.f32 %v3441_v34, %v1210_v43 }
0x16de   :  { %v1217_v48 = vsub.f32 %v1215_v44, %v1216_v45  ;;  %v1222_v49 = vadd.f32 %v1221_v46, %v1220_v33 }
0x16e0   :  { %v1224_v53 = vadd.f32 %v1223_v47, %v1222_v49  ;;  %1235 = vrot.lane.b32.xlu1 %v1217_v48, %s4488_s27  ;;  %1233 = vrot.lane.b32.xlu0 %v1217_v48, %s4489_s28  ;;  %v1243_v56 = vmul.f32 %v3443_v50, %v1217_v48  ;;  %v1251_v58 = vmul.f32 %v3444_v51, %v1217_v48 }
0x16e2   :  { %v1244_v54 = vmul.f32 %v3444_v51, %v1224_v53  ;;  %v1250_v57 = vmul.f32 %v3443_v50, %v1224_v53 }
0x16e4   :  { %1239 = vrot.lane.b32.xlu1 %v1224_v53, %s4488_s27  ;;  %1237 = vrot.lane.b32.xlu0 %v1224_v53, %s4489_s28  ;;  %v1245_v59 = vsub.f32 %v1243_v56, %v1244_v54  ;;  %v1252_v60 = vadd.f32 %v1251_v58, %v1250_v57 }
0x1752   :  { %v1236_v62 = vpop.permute.xlu1 %1235  ;;  %v1234_v63 = vpop.permute.xlu0 %1233 }
0x1753   :  { %v1241_v0 = vsel %vm36_vm8, %v1234_v63, %v1236_v62 }
0x1754   :  { %v1246_v2 = vmul.f32 %v3445_v61, %v1241_v0  ;;  %v1255_v12 = vmul.f32 %v3446_v5, %v1241_v0 }
0x1756   :  { %v1240_v3 = vpop.permute.xlu1 %1239  ;;  %v1238_v4 = vpop.permute.xlu0 %1237  ;;  %v1247_v7 = vadd.f32 %v1246_v2, %v1245_v59 }
0x1757   :  { %v1242_v6 = vsel %vm36_vm8, %v1238_v4, %v1240_v3 }
0x1758   :  { %v1248_v9 = vmul.f32 %v3446_v5, %v1242_v6  ;;  %v1253_v11 = vmul.f32 %v3445_v61, %v1242_v6 }
0x175a   :  { %v1249_v13 = vsub.f32 %v1247_v7, %v1248_v9  ;;  %v1254_v15 = vadd.f32 %v1253_v11, %v1252_v60 }
0x175c   :  { %v1256_v17 = vadd.f32 %v1255_v12, %v1254_v15  ;;  %1257 = vrot.lane.b32.xlu0 %v1249_v13, %s4477_s24  ;;  %v3447_v15 = vld [vmem:[%s6660_s0 + $0x400] sm:$0xff] }
0x175e   :  { %1259 = vrot.lane.b32.xlu1 %v1256_v17, %s4477_s24 }
0x17ce   :  { %v1258_v18 = vpop.permute.xlu0 %1257 }
0x17cf   :  { %v1261_v19 = vsel %vm15_vm9, %v1249_v13, %v1258_v18  ;;  %v3448_v18 = vld [vmem:[%s6660_s0 + $0x408] sm:$0xff] }
0x17d0   :  { %v1260_v20 = vpop.permute.xlu1 %1259  ;;  %1265 = vrot.lane.b32.xlu1 %v1261_v19, %s4479_s7  ;;  %1263 = vrot.lane.b32.xlu0 %v1261_v19, %s4478_s6 }
0x17d1   :  { %v1262_v21 = vsel %vm15_vm9, %v1256_v17, %v1260_v20 }
0x17d4   :  { %1269 = vrot.lane.b32.xlu1 %v1262_v21, %s4479_s7  ;;  %1267 = vrot.lane.b32.xlu0 %v1262_v21, %s4478_s6 }
0x1842   :  { %v1266_v22 = vpop.permute.xlu1 %1265  ;;  %v1264_v23 = vpop.permute.xlu0 %1263 }
0x1843   :  { %v1271_v24 = vsel %vm21_vm3, %v1264_v23, %v1266_v22 }
0x1844   :  { %v1273_v25 = vsel %vm18_vm10, %v1261_v19, %v1271_v24 }
0x1845   :  { %1277 = vrot.lane.b32.xlu1 %v1273_v25, %s4480_s18  ;;  %1275 = vrot.lane.b32.xlu0 %v1273_v25, %s4481_s19 }
0x1846   :  { %v1270_v26 = vpop.permute.xlu1 %1269  ;;  %v1268_v27 = vpop.permute.xlu0 %1267 }
0x1847   :  { %v1272_v29 = vsel %vm21_vm3, %v1268_v27, %v1270_v26 }
0x1848   :  { %v1274_v30 = vsel %vm18_vm10, %v1262_v21, %v1272_v29  ;;  %v3449_v21 = vld [vmem:[%s6660_s0 + $0x410] sm:$0xff]  ;;  %v3450_v29 = vld [vmem:[%s6660_s0 + $0x418] sm:$0xff] }
0x1849   :  { %1281 = vrot.lane.b32.xlu1 %v1274_v30, %s4480_s18  ;;  %1279 = vrot.lane.b32.xlu0 %v1274_v30, %s4481_s19 }
0x18b7   :  { %v1278_v31 = vpop.permute.xlu1 %1277  ;;  %v1276_v32 = vpop.permute.xlu0 %1275 }
0x18b8   :  { %v1283_v33 = vsel %vm24_vm4, %v1276_v32, %v1278_v31 }
0x18b9   :  { %v1285_v34 = vsel %vm21_vm3, %v1273_v25, %v1283_v33 }
0x18ba   :  { %1289 = vrot.lane.b32.xlu1 %v1285_v34, %s4482_s4  ;;  %1287 = vrot.lane.b32.xlu0 %v1285_v34, %s4483_s5 }
0x18bb   :  { %v1282_v35 = vpop.permute.xlu1 %1281  ;;  %v1280_v36 = vpop.permute.xlu0 %1279 }
0x18bc   :  { %v1284_v37 = vsel %vm24_vm4, %v1280_v36, %v1282_v35 }
0x18bd   :  { %v1286_v38 = vsel %vm21_vm3, %v1274_v30, %v1284_v37 }
0x18be   :  { %1293 = vrot.lane.b32.xlu1 %v1286_v38, %s4482_s4  ;;  %1291 = vrot.lane.b32.xlu0 %v1286_v38, %s4483_s5 }
0x192c   :  { %v1290_v40 = vpop.permute.xlu1 %1289  ;;  %v1288_v41 = vpop.permute.xlu0 %1287 }
0x192d   :  { %v1295_v42 = vsel %vm27_vm5, %v1288_v41, %v1290_v40  ;;  %v3452_v40 = vld [vmem:[%s6660_s0 + $0x428] sm:$0xff] }
0x192e   :  { %v1297_v43 = vsel %vm24_vm4, %v1285_v34, %v1295_v42 }
0x192f   :  { %1301 = vrot.lane.b32.xlu1 %v1297_v43, %s4484_s20  ;;  %1299 = vrot.lane.b32.xlu0 %v1297_v43, %s4485_s21 }
0x1930   :  { %v1294_v44 = vpop.permute.xlu1 %1293  ;;  %v1292_v45 = vpop.permute.xlu0 %1291 }
0x1931   :  { %v1296_v46 = vsel %vm27_vm5, %v1292_v45, %v1294_v44 }
0x1932   :  { %v1298_v47 = vsel %vm24_vm4, %v1286_v38, %v1296_v46  ;;  %v3451_v38 = vld [vmem:[%s6660_s0 + $0x420] sm:$0xff] }
0x1933   :  { %1305 = vrot.lane.b32.xlu1 %v1298_v47, %s4484_s20  ;;  %1303 = vrot.lane.b32.xlu0 %v1298_v47, %s4485_s21 }
0x19a1   :  { %v1302_v48 = vpop.permute.xlu1 %1301  ;;  %v1300_v49 = vpop.permute.xlu0 %1299 }
0x19a2   :  { %v1307_v50 = vsel %vm30_vm6, %v1300_v49, %v1302_v48  ;;  %v3453_v49 = vld [vmem:[%s6660_s0 + $0x430] sm:$0xff] }
0x19a3   :  { %v1309_v51 = vsel %vm27_vm5, %v1297_v43, %v1307_v50  ;;  %v3454_v50 = vld [vmem:[%s6660_s0 + $0x438] sm:$0xff] }
0x19a4   :  { %1313 = vrot.lane.b32.xlu1 %v1309_v51, %s4486_s10  ;;  %1311 = vrot.lane.b32.xlu0 %v1309_v51, %s4487_s11 }
0x19a5   :  { %v1306_v53 = vpop.permute.xlu1 %1305  ;;  %v1304_v54 = vpop.permute.xlu0 %1303 }
0x19a6   :  { %v1308_v56 = vsel %vm30_vm6, %v1304_v54, %v1306_v53 }
0x19a7   :  { %v1310_v57 = vsel %vm27_vm5, %v1298_v47, %v1308_v56 }
0x19a8   :  { %1317 = vrot.lane.b32.xlu1 %v1310_v57, %s4486_s10  ;;  %1315 = vrot.lane.b32.xlu0 %v1310_v57, %s4487_s11 }
0x1a16   :  { %v1314_v58 = vpop.permute.xlu1 %1313  ;;  %v1312_v59 = vpop.permute.xlu0 %1311 }
0x1a17   :  { %v1319_v60 = vsel %vm33_vm7, %v1312_v59, %v1314_v58 }
0x1a18   :  { %v1321_v61 = vsel %vm30_vm6, %v1309_v51, %v1319_v60 }
0x1a19   :  { %1325 = vrot.lane.b32.xlu1 %v1321_v61, %s4488_s27  ;;  %1323 = vrot.lane.b32.xlu0 %v1321_v61, %s4489_s28 }
0x1a1a   :  { %v1318_v62 = vpop.permute.xlu1 %1317  ;;  %v1316_v63 = vpop.permute.xlu0 %1315 }
0x1a1b   :  { %v1320_v0 = vsel %vm33_vm7, %v1316_v63, %v1318_v62  ;;  %v3456_v62 = vld [vmem:[%s6660_s0 + $0x448] sm:$0xff] }
0x1a1c   :  { %v1322_v2 = vsel %vm30_vm6, %v1310_v57, %v1320_v0 }
0x1a1d   :  { %1329 = vrot.lane.b32.xlu1 %v1322_v2, %s4488_s27  ;;  %1327 = vrot.lane.b32.xlu0 %v1322_v2, %s4489_s28 }
0x1a8b   :  { %v1326_v3 = vpop.permute.xlu1 %1325  ;;  %v1324_v4 = vpop.permute.xlu0 %1323 }
0x1a8c   :  { %v1331_v5 = vsel %vm36_vm8, %v1324_v4, %v1326_v3 }
0x1a8d   :  { %v1333_v6 = vsel %vm33_vm7, %v1321_v61, %v1331_v5  ;;  %v3455_v61 = vld [vmem:[%s6660_s0 + $0x440] sm:$0xff] }
0x1a8e   :  { %v1335_v7 = vrot.slane %v1333_v6, 4 }
0x1a8f   :  { %v1330_v9 = vpop.permute.xlu1 %1329  ;;  %v1328_v11 = vpop.permute.xlu0 %1327 }
0x1a90   :  { %v1337_v12 = vsel %vm36_vm8, %v1333_v6, %v1335_v7  ;;  %v1332_v13 = vsel %vm36_vm8, %v1328_v11, %v1330_v9  ;;  %v3457_v9 = vld [vmem:[%s6660_s0 + $0x450] sm:$0xff] }
0x1a91   :  { %v1334_v17 = vsel %vm33_vm7, %v1322_v2, %v1332_v13  ;;  %v1347_v20 = vrot.slane %v1337_v12, 4  ;;  %v1349_v22 = vmul.f32 %v3447_v15, %v1337_v12  ;;  %v1357_v24 = vmul.f32 %v3448_v18, %v1337_v12 }
0x1a92   :  { %v1336_v19 = vrot.slane %v1334_v17, 4 }
0x1a93   :  { %v1352_v30 = vmul.f32 %v3449_v21, %v1347_v20  ;;  %v1361_v35 = vmul.f32 %v3450_v29, %v1347_v20 }
0x1a94   :  { %v1338_v23 = vsel %vm36_vm8, %v1334_v17, %v1336_v19  ;;  %v3458_v19 = vld [vmem:[%s6660_s0 + $0x458] sm:$0xff] }
0x1a95   :  { %v1348_v25 = vrot.slane %v1338_v23, 4  ;;  %v1350_v26 = vmul.f32 %v3448_v18, %v1338_v23  ;;  %v1356_v27 = vmul.f32 %v3447_v15, %v1338_v23 }
0x1a97   :  { %v1351_v31 = vsub.f32 %v1349_v22, %v1350_v26  ;;  %v1358_v32 = vadd.f32 %v1357_v24, %v1356_v27  ;;  %v1359_v33 = vmul.f32 %v3449_v21, %v1348_v25  ;;  %v1354_v37 = vmul.f32 %v3450_v29, %v1348_v25  ;;  %v3459_v27 = vld [vmem:[%s6660_s0 + $0x460] sm:$0xff]  ;;  %v3460_v29 = vld [vmem:[%s6660_s0 + $0x468] sm:$0xff] }
0x1a99   :  { %v1360_v34 = vadd.f32 %v1359_v33, %v1358_v32  ;;  %v1353_v36 = vadd.f32 %v1352_v30, %v1351_v31 }
0x1a9b   :  { %v1362_v41 = vadd.f32 %v1361_v35, %v1360_v34  ;;  %v1355_v42 = vsub.f32 %v1353_v36, %v1354_v37  ;;  %v3461_v37 = vld [vmem:[%s6660_s0 + $0x470] sm:$0xff] }
0x1a9d   :  { %1373 = vrot.lane.b32.xlu1 %v1362_v41, %s4477_s24  ;;  %1371 = vrot.lane.b32.xlu0 %v1355_v42, %s4477_s24  ;;  %v1382_v43 = vmul.f32 %v3451_v38, %v1362_v41  ;;  %v1383_v44 = vmul.f32 %v3452_v40, %v1355_v42  ;;  %v1376_v45 = vmul.f32 %v3452_v40, %v1362_v41 }
0x1a9e   :  { %v1375_v46 = vmul.f32 %v3451_v38, %v1355_v42 }
0x1a9f   :  { %v1384_v47 = vadd.f32 %v1383_v44, %v1382_v43 }
0x1aa0   :  { %v1377_v48 = vsub.f32 %v1375_v46, %v1376_v45  ;;  %v3462_v45 = vld [vmem:[%s6660_s0 + $0x478] sm:$0xff] }
0x1b0f   :  { %v1374_v51 = vpop.permute.xlu1 %1373  ;;  %v1372_v53 = vpop.permute.xlu0 %1371 }
0x1b10   :  { %v1385_v54 = vmul.f32 %v3453_v49, %v1374_v51  ;;  %v1378_v56 = vmul.f32 %v3453_v49, %v1372_v53  ;;  %v1380_v57 = vmul.f32 %v3454_v50, %v1374_v51  ;;  %v1387_v60 = vmul.f32 %v3454_v50, %v1372_v53 }
0x1b12   :  { %v1386_v58 = vadd.f32 %v1385_v54, %v1384_v47  ;;  %v1379_v59 = vadd.f32 %v1378_v56, %v1377_v48  ;;  %v3463_v54 = vld [vmem:[%s6660_s0 + $0x480] sm:$0xff]  ;;  %v3464_v56 = vld [vmem:[%s6660_s0 + $0x488] sm:$0xff] }
0x1b14   :  { %v1388_v63 = vadd.f32 %v1387_v60, %v1386_v58  ;;  %v1381_v0 = vsub.f32 %v1379_v59, %v1380_v57 }
0x1b16   :  { %1399 = vrot.lane.b32.xlu1 %v1381_v0, %s4479_s7  ;;  %1397 = vrot.lane.b32.xlu0 %v1381_v0, %s4478_s6  ;;  %v1408_v2 = vmul.f32 %v3456_v62, %v1388_v63  ;;  %v1407_v3 = vmul.f32 %v3455_v61, %v1381_v0  ;;  %v1414_v4 = vmul.f32 %v3455_v61, %v1388_v63 }
0x1b17   :  { %v1415_v5 = vmul.f32 %v3456_v62, %v1381_v0  ;;  %v3465_v0 = vld [vmem:[%s6660_s0 + $0x490] sm:$0xff] }
0x1b18   :  { %v1409_v6 = vsub.f32 %v1407_v3, %v1408_v2 }
0x1b19   :  { %v1416_v7 = vadd.f32 %v1415_v5, %v1414_v4 }
0x1b1a   :  { %1403 = vrot.lane.b32.xlu1 %v1388_v63, %s4479_s7  ;;  %1401 = vrot.lane.b32.xlu0 %v1388_v63, %s4478_s6 }
0x1b88   :  { %v1400_v11 = vpop.permute.xlu1 %1399  ;;  %v1398_v12 = vpop.permute.xlu0 %1397 }
0x1b89   :  { %v1405_v13 = vsel %vm21_vm3, %v1398_v12, %v1400_v11 }
0x1b8a   :  { %v1410_v15 = vmul.f32 %v3457_v9, %v1405_v13  ;;  %v1419_v24 = vmul.f32 %v3458_v19, %v1405_v13 }
0x1b8c   :  { %v1404_v17 = vpop.permute.xlu1 %1403  ;;  %v1402_v18 = vpop.permute.xlu0 %1401  ;;  %v1411_v21 = vadd.f32 %v1410_v15, %v1409_v6 }
0x1b8d   :  { %v1406_v20 = vsel %vm21_vm3, %v1402_v18, %v1404_v17 }
0x1b8e   :  { %v1412_v22 = vmul.f32 %v3458_v19, %v1406_v20  ;;  %v1417_v23 = vmul.f32 %v3457_v9, %v1406_v20  ;;  %v3466_v9 = vld [vmem:[%s6660_s0 + $0x498] sm:$0xff]  ;;  %v3467_v20 = vld [vmem:[%s6660_s0 + $0x4a0] sm:$0xff] }
0x1b90   :  { %v1413_v25 = vsub.f32 %v1411_v21, %v1412_v22  ;;  %v1418_v26 = vadd.f32 %v1417_v23, %v1416_v7  ;;  %v3468_v21 = vld [vmem:[%s6660_s0 + $0x4a8] sm:$0xff] }
0x1b92   :  { %v1420_v30 = vadd.f32 %v1419_v24, %v1418_v26  ;;  %1431 = vrot.lane.b32.xlu1 %v1413_v25, %s4480_s18  ;;  %1429 = vrot.lane.b32.xlu0 %v1413_v25, %s4481_s19  ;;  %v1439_v32 = vmul.f32 %v3459_v27, %v1413_v25  ;;  %v1447_v34 = vmul.f32 %v3460_v29, %v1413_v25 }
0x1b94   :  { %v1440_v31 = vmul.f32 %v3460_v29, %v1420_v30  ;;  %v1446_v33 = vmul.f32 %v3459_v27, %v1420_v30 }
0x1b96   :  { %1435 = vrot.lane.b32.xlu1 %v1420_v30, %s4480_s18  ;;  %1433 = vrot.lane.b32.xlu0 %v1420_v30, %s4481_s19  ;;  %v1441_v35 = vsub.f32 %v1439_v32, %v1440_v31  ;;  %v1448_v36 = vadd.f32 %v1447_v34, %v1446_v33  ;;  %v3469_v30 = vld [vmem:[%s6660_s0 + $0x4b0] sm:$0xff] }
0x1c04   :  { %v1432_v38 = vpop.permute.xlu1 %1431  ;;  %v1430_v40 = vpop.permute.xlu0 %1429 }
0x1c05   :  { %v1437_v41 = vsel %vm24_vm4, %v1430_v40, %v1432_v38 }
0x1c06   :  { %v1442_v42 = vmul.f32 %v3461_v37, %v1437_v41  ;;  %v1451_v50 = vmul.f32 %v3462_v45, %v1437_v41 }
0x1c08   :  { %v1436_v43 = vpop.permute.xlu1 %1435  ;;  %v1434_v44 = vpop.permute.xlu0 %1433  ;;  %v1443_v47 = vadd.f32 %v1442_v42, %v1441_v35 }
0x1c09   :  { %v1438_v46 = vsel %vm24_vm4, %v1434_v44, %v1436_v43 }
0x1c0a   :  { %v1444_v48 = vmul.f32 %v3462_v45, %v1438_v46  ;;  %v1449_v49 = vmul.f32 %v3461_v37, %v1438_v46  ;;  %v3470_v37 = vld [vmem:[%s6660_s0 + $0x4b8] sm:$0xff]  ;;  %v3471_v46 = vld [vmem:[%s6660_s0 + $0x4c0] sm:$0xff] }
0x1c0c   :  { %v1445_v51 = vsub.f32 %v1443_v47, %v1444_v48  ;;  %v1450_v53 = vadd.f32 %v1449_v49, %v1448_v36  ;;  %v3472_v47 = vld [vmem:[%s6660_s0 + $0x4c8] sm:$0xff] }
0x1c0e   :  { %v1452_v57 = vadd.f32 %v1451_v50, %v1450_v53  ;;  %1463 = vrot.lane.b32.xlu1 %v1445_v51, %s4482_s4  ;;  %1461 = vrot.lane.b32.xlu0 %v1445_v51, %s4483_s5  ;;  %v1471_v59 = vmul.f32 %v3463_v54, %v1445_v51  ;;  %v1479_v61 = vmul.f32 %v3464_v56, %v1445_v51 }
0x1c10   :  { %v1472_v58 = vmul.f32 %v3464_v56, %v1452_v57  ;;  %v1478_v60 = vmul.f32 %v3463_v54, %v1452_v57 }
0x1c12   :  { %1467 = vrot.lane.b32.xlu1 %v1452_v57, %s4482_s4  ;;  %1465 = vrot.lane.b32.xlu0 %v1452_v57, %s4483_s5  ;;  %v1473_v62 = vsub.f32 %v1471_v59, %v1472_v58  ;;  %v1480_v63 = vadd.f32 %v1479_v61, %v1478_v60  ;;  %v3473_v57 = vld [vmem:[%s6660_s0 + $0x4d0] sm:$0xff] }
0x1c80   :  { %v1464_v2 = vpop.permute.xlu1 %1463  ;;  %v1462_v3 = vpop.permute.xlu0 %1461 }
0x1c81   :  { %v1469_v4 = vsel %vm27_vm5, %v1462_v3, %v1464_v2 }
0x1c82   :  { %v1474_v5 = vmul.f32 %v3465_v0, %v1469_v4  ;;  %v1483_v17 = vmul.f32 %v3466_v9, %v1469_v4 }
0x1c84   :  { %v1468_v6 = vpop.permute.xlu1 %1467  ;;  %v1466_v7 = vpop.permute.xlu0 %1465  ;;  %v1475_v12 = vadd.f32 %v1474_v5, %v1473_v62 }
0x1c85   :  { %v1470_v11 = vsel %vm27_vm5, %v1466_v7, %v1468_v6 }
0x1c86   :  { %v1476_v13 = vmul.f32 %v3466_v9, %v1470_v11  ;;  %v1481_v15 = vmul.f32 %v3465_v0, %v1470_v11  ;;  %v3474_v0 = vld [vmem:[%s6660_s0 + $0x4d8] sm:$0xff]  ;;  %v3475_v11 = vld [vmem:[%s6660_s0 + $0x4e0] sm:$0xff] }
0x1c88   :  { %v1477_v18 = vsub.f32 %v1475_v12, %v1476_v13  ;;  %v1482_v19 = vadd.f32 %v1481_v15, %v1480_v63  ;;  %v3476_v12 = vld [vmem:[%s6660_s0 + $0x4e8] sm:$0xff] }
0x1c8a   :  { %v1484_v22 = vadd.f32 %v1483_v17, %v1482_v19  ;;  %1495 = vrot.lane.b32.xlu1 %v1477_v18, %s4484_s20  ;;  %1493 = vrot.lane.b32.xlu0 %v1477_v18, %s4485_s21  ;;  %v1503_v24 = vmul.f32 %v3467_v20, %v1477_v18  ;;  %v1511_v26 = vmul.f32 %v3468_v21, %v1477_v18 }
0x1c8c   :  { %v1504_v23 = vmul.f32 %v3468_v21, %v1484_v22  ;;  %v1510_v25 = vmul.f32 %v3467_v20, %v1484_v22 }
0x1c8e   :  { %1499 = vrot.lane.b32.xlu1 %v1484_v22, %s4484_s20  ;;  %1497 = vrot.lane.b32.xlu0 %v1484_v22, %s4485_s21  ;;  %v1505_v27 = vsub.f32 %v1503_v24, %v1504_v23  ;;  %v1512_v29 = vadd.f32 %v1511_v26, %v1510_v25  ;;  %v3477_v22 = vld [vmem:[%s6660_s0 + $0x4f0] sm:$0xff] }
0x1cfc   :  { %v1496_v31 = vpop.permute.xlu1 %1495  ;;  %v1494_v32 = vpop.permute.xlu0 %1493 }
0x1cfd   :  { %v1501_v33 = vsel %vm30_vm6, %v1494_v32, %v1496_v31 }
0x1cfe   :  { %v1506_v34 = vmul.f32 %v3469_v30, %v1501_v33  ;;  %v1515_v43 = vmul.f32 %v3470_v37, %v1501_v33 }
0x1d00   :  { %v1500_v35 = vpop.permute.xlu1 %1499  ;;  %v1498_v36 = vpop.permute.xlu0 %1497  ;;  %v1507_v40 = vadd.f32 %v1506_v34, %v1505_v27 }
0x1d01   :  { %v1502_v38 = vsel %vm30_vm6, %v1498_v36, %v1500_v35 }
0x1d02   :  { %v1508_v41 = vmul.f32 %v3470_v37, %v1502_v38  ;;  %v1513_v42 = vmul.f32 %v3469_v30, %v1502_v38  ;;  %v3478_v30 = vld [vmem:[%s6660_s0 + $0x4f8] sm:$0xff] }
0x1d04   :  { %v1509_v44 = vsub.f32 %v1507_v40, %v1508_v41  ;;  %v1514_v45 = vadd.f32 %v1513_v42, %v1512_v29 }
0x1d06   :  { %v1516_v48 = vadd.f32 %v1515_v43, %v1514_v45  ;;  %1527 = vrot.lane.b32.xlu1 %v1509_v44, %s4486_s10  ;;  %1525 = vrot.lane.b32.xlu0 %v1509_v44, %s4487_s11  ;;  %v1535_v50 = vmul.f32 %v3471_v46, %v1509_v44  ;;  %v1543_v53 = vmul.f32 %v3472_v47, %v1509_v44 }
0x1d08   :  { %v1536_v49 = vmul.f32 %v3472_v47, %v1516_v48  ;;  %v1542_v51 = vmul.f32 %v3471_v46, %v1516_v48 }
0x1d0a   :  { %1531 = vrot.lane.b32.xlu1 %v1516_v48, %s4486_s10  ;;  %1529 = vrot.lane.b32.xlu0 %v1516_v48, %s4487_s11  ;;  %v1537_v54 = vsub.f32 %v1535_v50, %v1536_v49  ;;  %v1544_v56 = vadd.f32 %v1543_v53, %v1542_v51 }
0x1d78   :  { %v1528_v58 = vpop.permute.xlu1 %1527  ;;  %v1526_v59 = vpop.permute.xlu0 %1525 }
0x1d79   :  { %v1533_v60 = vsel %vm33_vm7, %v1526_v59, %v1528_v58 }
0x1d7a   :  { %v1538_v61 = vmul.f32 %v3473_v57, %v1533_v60  ;;  %v1547_v6 = vmul.f32 %v3474_v0, %v1533_v60 }
0x1d7c   :  { %v1532_v62 = vpop.permute.xlu1 %1531  ;;  %v1530_v63 = vpop.permute.xlu0 %1529  ;;  %v1539_v3 = vadd.f32 %v1538_v61, %v1537_v54 }
0x1d7d   :  { %v1534_v2 = vsel %vm33_vm7, %v1530_v63, %v1532_v62 }
0x1d7e   :  { %v1540_v4 = vmul.f32 %v3474_v0, %v1534_v2  ;;  %v1545_v5 = vmul.f32 %v3473_v57, %v1534_v2 }
0x1d80   :  { %v1541_v7 = vsub.f32 %v1539_v3, %v1540_v4  ;;  %v1546_v9 = vadd.f32 %v1545_v5, %v1544_v56 }
0x1d82   :  { %v1548_v13 = vadd.f32 %v1547_v6, %v1546_v9  ;;  %1559 = vrot.lane.b32.xlu1 %v1541_v7, %s4488_s27  ;;  %1557 = vrot.lane.b32.xlu0 %v1541_v7, %s4489_s28  ;;  %v1567_v17 = vmul.f32 %v3475_v11, %v1541_v7  ;;  %v1575_v19 = vmul.f32 %v3476_v12, %v1541_v7 }
0x1d84   :  { %v1568_v15 = vmul.f32 %v3476_v12, %v1548_v13  ;;  %v1574_v18 = vmul.f32 %v3475_v11, %v1548_v13 }
0x1d86   :  { %1563 = vrot.lane.b32.xlu1 %v1548_v13, %s4488_s27  ;;  %1561 = vrot.lane.b32.xlu0 %v1548_v13, %s4489_s28  ;;  %v1569_v20 = vsub.f32 %v1567_v17, %v1568_v15  ;;  %v1576_v21 = vadd.f32 %v1575_v19, %v1574_v18 }
0x1df4   :  { %v1560_v23 = vpop.permute.xlu1 %1559  ;;  %v1558_v24 = vpop.permute.xlu0 %1557 }
0x1df5   :  { %v1565_v25 = vsel %vm36_vm8, %v1558_v24, %v1560_v23 }
0x1df6   :  { %v1570_v26 = vmul.f32 %v3477_v22, %v1565_v25  ;;  %v1579_v37 = vmul.f32 %v3478_v30, %v1565_v25 }
0x1df8   :  { %v1564_v27 = vpop.permute.xlu1 %1563  ;;  %v1562_v29 = vpop.permute.xlu0 %1561  ;;  %v1571_v32 = vadd.f32 %v1570_v26, %v1569_v20 }
0x1df9   :  { %v1566_v31 = vsel %vm36_vm8, %v1562_v29, %v1564_v27 }
0x1dfa   :  { %v1572_v33 = vmul.f32 %v3478_v30, %v1566_v31  ;;  %v1577_v34 = vmul.f32 %v3477_v22, %v1566_v31 }
0x1dfc   :  { %v1573_v35 = vsub.f32 %v1571_v32, %v1572_v33  ;;  %v1578_v36 = vadd.f32 %v1577_v34, %v1576_v21 }
0x1dfe   :  { %1583 = vrot.lane.b32.xlu1 %v1573_v35, %s4479_s7  ;;  %1581 = vrot.lane.b32.xlu0 %v1573_v35, %s4478_s6  ;;  %v1580_v38 = vadd.f32 %v1579_v37, %v1578_v36 }
0x1e02   :  { %1587 = vrot.lane.b32.xlu1 %v1580_v38, %s4479_s7  ;;  %1585 = vrot.lane.b32.xlu0 %v1580_v38, %s4478_s6 }
0x1e70   :  { %v1584_v40 = vpop.permute.xlu1 %1583  ;;  %v1582_v41 = vpop.permute.xlu0 %1581 }
0x1e71   :  { %v1589_v42 = vsel %vm21_vm3, %v1582_v41, %v1584_v40  ;;  %v3480_v40 = vld [vmem:[%s6660_s0 + $0x508] sm:$0xff] }
0x1e72   :  { %v1591_v43 = vsel %vm15_vm9, %v1573_v35, %v1589_v42 }
0x1e73   :  { %1595 = vrot.lane.b32.xlu1 %v1591_v43, %s4480_s18  ;;  %1593 = vrot.lane.b32.xlu0 %v1591_v43, %s4481_s19 }
0x1e74   :  { %v1588_v44 = vpop.permute.xlu1 %1587  ;;  %v1586_v45 = vpop.permute.xlu0 %1585 }
0x1e75   :  { %v1590_v46 = vsel %vm21_vm3, %v1586_v45, %v1588_v44 }
0x1e76   :  { %v1592_v47 = vsel %vm15_vm9, %v1580_v38, %v1590_v46  ;;  %v3479_v38 = vld [vmem:[%s6660_s0 + $0x500] sm:$0xff] }
0x1e77   :  { %1599 = vrot.lane.b32.xlu1 %v1592_v47, %s4480_s18  ;;  %1597 = vrot.lane.b32.xlu0 %v1592_v47, %s4481_s19 }
0x1ee5   :  { %v1596_v48 = vpop.permute.xlu1 %1595  ;;  %v1594_v49 = vpop.permute.xlu0 %1593 }
0x1ee6   :  { %v1601_v50 = vsel %vm24_vm4, %v1594_v49, %v1596_v48 }
0x1ee7   :  { %v1603_v51 = vsel %vm18_vm10, %v1591_v43, %v1601_v50  ;;  %v3481_v43 = vld [vmem:[%s6660_s0 + $0x510] sm:$0xff]  ;;  %v3482_v50 = vld [vmem:[%s6660_s0 + $0x518] sm:$0xff] }
0x1ee8   :  { %1607 = vrot.lane.b32.xlu1 %v1603_v51, %s4482_s4  ;;  %1605 = vrot.lane.b32.xlu0 %v1603_v51, %s4483_s5 }
0x1ee9   :  { %v1600_v53 = vpop.permute.xlu1 %1599  ;;  %v1598_v54 = vpop.permute.xlu0 %1597 }
0x1eea   :  { %v1602_v56 = vsel %vm24_vm4, %v1598_v54, %v1600_v53 }
0x1eeb   :  { %v1604_v57 = vsel %vm18_vm10, %v1592_v47, %v1602_v56 }
0x1eec   :  { %1611 = vrot.lane.b32.xlu1 %v1604_v57, %s4482_s4  ;;  %1609 = vrot.lane.b32.xlu0 %v1604_v57, %s4483_s5 }
0x1f5a   :  { %v1608_v58 = vpop.permute.xlu1 %1607  ;;  %v1606_v59 = vpop.permute.xlu0 %1605 }
0x1f5b   :  { %v1613_v60 = vsel %vm27_vm5, %v1606_v59, %v1608_v58 }
0x1f5c   :  { %v1615_v61 = vsel %vm21_vm3, %v1603_v51, %v1613_v60 }
0x1f5d   :  { %1619 = vrot.lane.b32.xlu1 %v1615_v61, %s4484_s20  ;;  %1617 = vrot.lane.b32.xlu0 %v1615_v61, %s4485_s21 }
0x1f5e   :  { %v1612_v62 = vpop.permute.xlu1 %1611  ;;  %v1610_v63 = vpop.permute.xlu0 %1609 }
0x1f5f   :  { %v1614_v0 = vsel %vm27_vm5, %v1610_v63, %v1612_v62  ;;  %v3484_v62 = vld [vmem:[%s6660_s0 + $0x528] sm:$0xff] }
0x1f60   :  { %v1616_v2 = vsel %vm21_vm3, %v1604_v57, %v1614_v0 }
0x1f61   :  { %1623 = vrot.lane.b32.xlu1 %v1616_v2, %s4484_s20  ;;  %1621 = vrot.lane.b32.xlu0 %v1616_v2, %s4485_s21 }
0x1fcf   :  { %v1620_v3 = vpop.permute.xlu1 %1619  ;;  %v1618_v4 = vpop.permute.xlu0 %1617 }
0x1fd0   :  { %v1625_v5 = vsel %vm30_vm6, %v1618_v4, %v1620_v3 }
0x1fd1   :  { %v1627_v6 = vsel %vm24_vm4, %v1615_v61, %v1625_v5  ;;  %v3483_v61 = vld [vmem:[%s6660_s0 + $0x520] sm:$0xff] }
0x1fd2   :  { %1631 = vrot.lane.b32.xlu1 %v1627_v6, %s4486_s10  ;;  %1629 = vrot.lane.b32.xlu0 %v1627_v6, %s4487_s11 }
0x1fd3   :  { %v1624_v7 = vpop.permute.xlu1 %1623  ;;  %v1622_v9 = vpop.permute.xlu0 %1621 }
0x1fd4   :  { %v1626_v11 = vsel %vm30_vm6, %v1622_v9, %v1624_v7  ;;  %v3485_v9 = vld [vmem:[%s6660_s0 + $0x530] sm:$0xff] }
0x1fd5   :  { %v1628_v12 = vsel %vm24_vm4, %v1616_v2, %v1626_v11  ;;  %v3486_v11 = vld [vmem:[%s6660_s0 + $0x538] sm:$0xff] }
0x1fd6   :  { %1635 = vrot.lane.b32.xlu1 %v1628_v12, %s4486_s10  ;;  %1633 = vrot.lane.b32.xlu0 %v1628_v12, %s4487_s11 }
0x2044   :  { %v1632_v13 = vpop.permute.xlu1 %1631  ;;  %v1630_v15 = vpop.permute.xlu0 %1629 }
0x2045   :  { %v1637_v17 = vsel %vm33_vm7, %v1630_v15, %v1632_v13 }
0x2046   :  { %v1639_v18 = vsel %vm27_vm5, %v1627_v6, %v1637_v17 }
0x2047   :  { %1643 = vrot.lane.b32.xlu1 %v1639_v18, %s4488_s27  ;;  %1641 = vrot.lane.b32.xlu0 %v1639_v18, %s4489_s28 }
0x2048   :  { %v1636_v19 = vpop.permute.xlu1 %1635  ;;  %v1634_v20 = vpop.permute.xlu0 %1633 }
0x2049   :  { %v1638_v21 = vsel %vm33_vm7, %v1634_v20, %v1636_v19 }
0x204a   :  { %v1640_v22 = vsel %vm27_vm5, %v1628_v12, %v1638_v21 }
0x204b   :  { %1647 = vrot.lane.b32.xlu1 %v1640_v22, %s4488_s27  ;;  %1645 = vrot.lane.b32.xlu0 %v1640_v22, %s4489_s28 }
0x20b9   :  { %v1644_v23 = vpop.permute.xlu1 %1643  ;;  %v1642_v24 = vpop.permute.xlu0 %1641 }
0x20ba   :  { %v1649_v25 = vsel %vm36_vm8, %v1642_v24, %v1644_v23  ;;  %v3488_v23 = vld [vmem:[%s6660_s0 + $0x548] sm:$0xff] }
0x20bb   :  { %v1651_v26 = vsel %vm30_vm6, %v1639_v18, %v1649_v25 }
0x20bc   :  { %v1653_v27 = vrot.slane %v1651_v26, 4 }
0x20bd   :  { %v1648_v29 = vpop.permute.xlu1 %1647  ;;  %v1646_v30 = vpop.permute.xlu0 %1645 }
0x20be   :  { %v1650_v31 = vsel %vm36_vm8, %v1646_v30, %v1648_v29  ;;  %v1655_v32 = vsel %vm33_vm7, %v1651_v26, %v1653_v27 }
0x20bf   :  { %v1652_v33 = vsel %vm30_vm6, %v1640_v22, %v1650_v31  ;;  %1657 = vrot.lane.b32.xlu0 %v1655_v32, %s4477_s24  ;;  %v3487_v22 = vld [vmem:[%s6660_s0 + $0x540] sm:$0xff] }
0x20c0   :  { %v1654_v34 = vrot.slane %v1652_v33, 4 }
0x20c2   :  { %v1656_v35 = vsel %vm33_vm7, %v1652_v33, %v1654_v34  ;;  %v3489_v33 = vld [vmem:[%s6660_s0 + $0x550] sm:$0xff] }
0x20c3   :  { %1659 = vrot.lane.b32.xlu1 %v1656_v35, %s4477_s24 }
0x2131   :  { %v1658_v36 = vpop.permute.xlu0 %1657 }
0x2132   :  { %v1661_v37 = vsel %vm36_vm8, %v1655_v32, %v1658_v36 }
0x2133   :  { %v1671_v41 = vrot.slane %v1661_v37, 4  ;;  %v1673_v44 = vmul.f32 %v3479_v38, %v1661_v37  ;;  %v1681_v46 = vmul.f32 %v3480_v40, %v1661_v37 }
0x2135   :  { %v1660_v42 = vpop.permute.xlu1 %1659  ;;  %v1676_v51 = vmul.f32 %v3481_v43, %v1671_v41  ;;  %v1685_v57 = vmul.f32 %v3482_v50, %v1671_v41  ;;  %v3490_v41 = vld [vmem:[%s6660_s0 + $0x558] sm:$0xff] }
0x2136   :  { %v1662_v45 = vsel %vm36_vm8, %v1656_v35, %v1660_v42 }
0x2137   :  { %v1672_v47 = vrot.slane %v1662_v45, 4  ;;  %v1674_v48 = vmul.f32 %v3480_v40, %v1662_v45  ;;  %v1680_v49 = vmul.f32 %v3479_v38, %v1662_v45 }
0x2139   :  { %v1675_v53 = vsub.f32 %v1673_v44, %v1674_v48  ;;  %v1682_v54 = vadd.f32 %v1681_v46, %v1680_v49  ;;  %v1683_v56 = vmul.f32 %v3481_v43, %v1672_v47  ;;  %v1678_v59 = vmul.f32 %v3482_v50, %v1672_v47  ;;  %v3491_v49 = vld [vmem:[%s6660_s0 + $0x560] sm:$0xff]  ;;  %v3492_v50 = vld [vmem:[%s6660_s0 + $0x568] sm:$0xff] }
0x213b   :  { %v1677_v58 = vadd.f32 %v1676_v51, %v1675_v53  ;;  %v1684_v60 = vadd.f32 %v1683_v56, %v1682_v54 }
0x213d   :  { %v1686_v63 = vadd.f32 %v1685_v57, %v1684_v60  ;;  %v1679_v0 = vsub.f32 %v1677_v58, %v1678_v59  ;;  %v3493_v60 = vld [vmem:[%s6660_s0 + $0x570] sm:$0xff] }
0x213f   :  { %1697 = vrot.lane.b32.xlu1 %v1686_v63, %s4477_s24  ;;  %1695 = vrot.lane.b32.xlu0 %v1679_v0, %s4477_s24  ;;  %v1706_v2 = vmul.f32 %v3483_v61, %v1686_v63  ;;  %v1707_v3 = vmul.f32 %v3484_v62, %v1679_v0  ;;  %v1700_v4 = vmul.f32 %v3484_v62, %v1686_v63 }
0x2140   :  { %v1699_v5 = vmul.f32 %v3483_v61, %v1679_v0 }
0x2141   :  { %v1708_v6 = vadd.f32 %v1707_v3, %v1706_v2 }
0x2142   :  { %v1701_v7 = vsub.f32 %v1699_v5, %v1700_v4  ;;  %v3494_v4 = vld [vmem:[%s6660_s0 + $0x578] sm:$0xff] }
0x21b1   :  { %v1698_v12 = vpop.permute.xlu1 %1697  ;;  %v1696_v13 = vpop.permute.xlu0 %1695 }
0x21b2   :  { %v1709_v15 = vmul.f32 %v3485_v9, %v1698_v12  ;;  %v1702_v17 = vmul.f32 %v3485_v9, %v1696_v13  ;;  %v1704_v18 = vmul.f32 %v3486_v11, %v1698_v12  ;;  %v1711_v21 = vmul.f32 %v3486_v11, %v1696_v13 }
0x21b4   :  { %v1710_v19 = vadd.f32 %v1709_v15, %v1708_v6  ;;  %v1703_v20 = vadd.f32 %v1702_v17, %v1701_v7  ;;  %v3495_v15 = vld [vmem:[%s6660_s0 + $0x580] sm:$0xff]  ;;  %v3496_v17 = vld [vmem:[%s6660_s0 + $0x588] sm:$0xff] }
0x21b6   :  { %v1705_v24 = vsub.f32 %v1703_v20, %v1704_v18  ;;  %v1712_v25 = vadd.f32 %v1711_v21, %v1710_v19 }
0x21b8   :  { %1723 = vrot.lane.b32.xlu1 %v1705_v24, %s4479_s7  ;;  %1721 = vrot.lane.b32.xlu0 %v1705_v24, %s4478_s6  ;;  %v1732_v26 = vmul.f32 %v3488_v23, %v1712_v25  ;;  %v1731_v27 = vmul.f32 %v3487_v22, %v1705_v24  ;;  %v1738_v29 = vmul.f32 %v3487_v22, %v1712_v25 }
0x21b9   :  { %v1739_v30 = vmul.f32 %v3488_v23, %v1705_v24 }
0x21ba   :  { %v1733_v31 = vsub.f32 %v1731_v27, %v1732_v26 }
0x21bb   :  { %v1740_v32 = vadd.f32 %v1739_v30, %v1738_v29 }
0x21bc   :  { %1727 = vrot.lane.b32.xlu1 %v1712_v25, %s4479_s7  ;;  %1725 = vrot.lane.b32.xlu0 %v1712_v25, %s4478_s6  ;;  %v3497_v25 = vld [vmem:[%s6660_s0 + $0x590] sm:$0xff] }
0x222a   :  { %v1724_v34 = vpop.permute.xlu1 %1723  ;;  %v1722_v35 = vpop.permute.xlu0 %1721 }
0x222b   :  { %v1729_v36 = vsel %vm21_vm3, %v1722_v35, %v1724_v34 }
0x222c   :  { %v1734_v37 = vmul.f32 %v3489_v33, %v1729_v36  ;;  %v1743_v46 = vmul.f32 %v3490_v41, %v1729_v36 }
0x222e   :  { %v1728_v38 = vpop.permute.xlu1 %1727  ;;  %v1726_v40 = vpop.permute.xlu0 %1725  ;;  %v1735_v43 = vadd.f32 %v1734_v37, %v1733_v31 }
0x222f   :  { %v1730_v42 = vsel %vm21_vm3, %v1726_v40, %v1728_v38 }
0x2230   :  { %v1736_v44 = vmul.f32 %v3490_v41, %v1730_v42  ;;  %v1741_v45 = vmul.f32 %v3489_v33, %v1730_v42  ;;  %v3498_v33 = vld [vmem:[%s6660_s0 + $0x598] sm:$0xff]  ;;  %v3499_v42 = vld [vmem:[%s6660_s0 + $0x5a0] sm:$0xff] }
0x2232   :  { %v1737_v47 = vsub.f32 %v1735_v43, %v1736_v44  ;;  %v1742_v48 = vadd.f32 %v1741_v45, %v1740_v32  ;;  %v3500_v43 = vld [vmem:[%s6660_s0 + $0x5a8] sm:$0xff] }
0x2234   :  { %v1744_v51 = vadd.f32 %v1743_v46, %v1742_v48  ;;  %1755 = vrot.lane.b32.xlu1 %v1737_v47, %s4480_s18  ;;  %1753 = vrot.lane.b32.xlu0 %v1737_v47, %s4481_s19  ;;  %v1763_v54 = vmul.f32 %v3491_v49, %v1737_v47  ;;  %v1771_v57 = vmul.f32 %v3492_v50, %v1737_v47 }
0x2236   :  { %v1764_v53 = vmul.f32 %v3492_v50, %v1744_v51  ;;  %v1770_v56 = vmul.f32 %v3491_v49, %v1744_v51 }
0x2238   :  { %1759 = vrot.lane.b32.xlu1 %v1744_v51, %s4480_s18  ;;  %1757 = vrot.lane.b32.xlu0 %v1744_v51, %s4481_s19  ;;  %v1765_v58 = vsub.f32 %v1763_v54, %v1764_v53  ;;  %v1772_v59 = vadd.f32 %v1771_v57, %v1770_v56  ;;  %v3501_v51 = vld [vmem:[%s6660_s0 + $0x5b0] sm:$0xff] }
0x22a6   :  { %v1756_v61 = vpop.permute.xlu1 %1755  ;;  %v1754_v62 = vpop.permute.xlu0 %1753 }
0x22a7   :  { %v1761_v63 = vsel %vm24_vm4, %v1754_v62, %v1756_v61 }
0x22a8   :  { %v1766_v0 = vmul.f32 %v3493_v60, %v1761_v63  ;;  %v1775_v11 = vmul.f32 %v3494_v4, %v1761_v63 }
0x22aa   :  { %v1760_v2 = vpop.permute.xlu1 %1759  ;;  %v1758_v3 = vpop.permute.xlu0 %1757  ;;  %v1767_v6 = vadd.f32 %v1766_v0, %v1765_v58 }
0x22ab   :  { %v1762_v5 = vsel %vm24_vm4, %v1758_v3, %v1760_v2 }
0x22ac   :  { %v1768_v7 = vmul.f32 %v3494_v4, %v1762_v5  ;;  %v1773_v9 = vmul.f32 %v3493_v60, %v1762_v5  ;;  %v3502_v60 = vld [vmem:[%s6660_s0 + $0x5b8] sm:$0xff]  ;;  %v3503_v5 = vld [vmem:[%s6660_s0 + $0x5c0] sm:$0xff] }
0x22ae   :  { %v1769_v12 = vsub.f32 %v1767_v6, %v1768_v7  ;;  %v1774_v13 = vadd.f32 %v1773_v9, %v1772_v59  ;;  %v3504_v6 = vld [vmem:[%s6660_s0 + $0x5c8] sm:$0xff] }
0x22b0   :  { %v1776_v18 = vadd.f32 %v1775_v11, %v1774_v13  ;;  %1787 = vrot.lane.b32.xlu1 %v1769_v12, %s4482_s4  ;;  %1785 = vrot.lane.b32.xlu0 %v1769_v12, %s4483_s5  ;;  %v1795_v20 = vmul.f32 %v3495_v15, %v1769_v12  ;;  %v1803_v22 = vmul.f32 %v3496_v17, %v1769_v12 }
0x22b2   :  { %v1796_v19 = vmul.f32 %v3496_v17, %v1776_v18  ;;  %v1802_v21 = vmul.f32 %v3495_v15, %v1776_v18 }
0x22b4   :  { %1791 = vrot.lane.b32.xlu1 %v1776_v18, %s4482_s4  ;;  %1789 = vrot.lane.b32.xlu0 %v1776_v18, %s4483_s5  ;;  %v1797_v23 = vsub.f32 %v1795_v20, %v1796_v19  ;;  %v1804_v24 = vadd.f32 %v1803_v22, %v1802_v21  ;;  %v3505_v18 = vld [vmem:[%s6660_s0 + $0x5d0] sm:$0xff] }
0x2322   :  { %v1788_v26 = vpop.permute.xlu1 %1787  ;;  %v1786_v27 = vpop.permute.xlu0 %1785 }
0x2323   :  { %v1793_v29 = vsel %vm27_vm5, %v1786_v27, %v1788_v26 }
0x2324   :  { %v1798_v30 = vmul.f32 %v3497_v25, %v1793_v29  ;;  %v1807_v38 = vmul.f32 %v3498_v33, %v1793_v29 }
0x2326   :  { %v1792_v31 = vpop.permute.xlu1 %1791  ;;  %v1790_v32 = vpop.permute.xlu0 %1789  ;;  %v1799_v35 = vadd.f32 %v1798_v30, %v1797_v23 }
0x2327   :  { %v1794_v34 = vsel %vm27_vm5, %v1790_v32, %v1792_v31 }
0x2328   :  { %v1800_v36 = vmul.f32 %v3498_v33, %v1794_v34  ;;  %v1805_v37 = vmul.f32 %v3497_v25, %v1794_v34  ;;  %v3506_v25 = vld [vmem:[%s6660_s0 + $0x5d8] sm:$0xff]  ;;  %v3507_v34 = vld [vmem:[%s6660_s0 + $0x5e0] sm:$0xff] }
0x232a   :  { %v1801_v40 = vsub.f32 %v1799_v35, %v1800_v36  ;;  %v1806_v41 = vadd.f32 %v1805_v37, %v1804_v24  ;;  %v3508_v35 = vld [vmem:[%s6660_s0 + $0x5e8] sm:$0xff] }
0x232c   :  { %v1808_v44 = vadd.f32 %v1807_v38, %v1806_v41  ;;  %1819 = vrot.lane.b32.xlu1 %v1801_v40, %s4484_s20  ;;  %1817 = vrot.lane.b32.xlu0 %v1801_v40, %s4485_s21  ;;  %v1827_v46 = vmul.f32 %v3499_v42, %v1801_v40  ;;  %v1835_v48 = vmul.f32 %v3500_v43, %v1801_v40 }
0x232e   :  { %v1828_v45 = vmul.f32 %v3500_v43, %v1808_v44  ;;  %v1834_v47 = vmul.f32 %v3499_v42, %v1808_v44 }
0x2330   :  { %1823 = vrot.lane.b32.xlu1 %v1808_v44, %s4484_s20  ;;  %1821 = vrot.lane.b32.xlu0 %v1808_v44, %s4485_s21  ;;  %v1829_v49 = vsub.f32 %v1827_v46, %v1828_v45  ;;  %v1836_v50 = vadd.f32 %v1835_v48, %v1834_v47  ;;  %v3509_v44 = vld [vmem:[%s6660_s0 + $0x5f0] sm:$0xff] }
0x239e   :  { %v1820_v53 = vpop.permute.xlu1 %1819  ;;  %v1818_v54 = vpop.permute.xlu0 %1817 }
0x239f   :  { %v1825_v56 = vsel %vm30_vm6, %v1818_v54, %v1820_v53 }
0x23a0   :  { %v1830_v57 = vmul.f32 %v3501_v51, %v1825_v56  ;;  %v1839_v2 = vmul.f32 %v3502_v60, %v1825_v56 }
0x23a2   :  { %v1824_v58 = vpop.permute.xlu1 %1823  ;;  %v1822_v59 = vpop.permute.xlu0 %1821  ;;  %v1831_v62 = vadd.f32 %v1830_v57, %v1829_v49 }
0x23a3   :  { %v1826_v61 = vsel %vm30_vm6, %v1822_v59, %v1824_v58 }
0x23a4   :  { %v1832_v63 = vmul.f32 %v3502_v60, %v1826_v61  ;;  %v1837_v0 = vmul.f32 %v3501_v51, %v1826_v61  ;;  %v3510_v51 = vld [vmem:[%s6660_s0 + $0x5f8] sm:$0xff] }
0x23a6   :  { %v1833_v3 = vsub.f32 %v1831_v62, %v1832_v63  ;;  %v1838_v4 = vadd.f32 %v1837_v0, %v1836_v50 }
0x23a8   :  { %v1840_v7 = vadd.f32 %v1839_v2, %v1838_v4  ;;  %1851 = vrot.lane.b32.xlu1 %v1833_v3, %s4486_s10  ;;  %1849 = vrot.lane.b32.xlu0 %v1833_v3, %s4487_s11  ;;  %v1859_v11 = vmul.f32 %v3503_v5, %v1833_v3  ;;  %v1867_v13 = vmul.f32 %v3504_v6, %v1833_v3 }
0x23aa   :  { %v1860_v9 = vmul.f32 %v3504_v6, %v1840_v7  ;;  %v1866_v12 = vmul.f32 %v3503_v5, %v1840_v7 }
0x23ac   :  { %1855 = vrot.lane.b32.xlu1 %v1840_v7, %s4486_s10  ;;  %1853 = vrot.lane.b32.xlu0 %v1840_v7, %s4487_s11  ;;  %v1861_v15 = vsub.f32 %v1859_v11, %v1860_v9  ;;  %v1868_v17 = vadd.f32 %v1867_v13, %v1866_v12 }
0x241a   :  { %v1852_v19 = vpop.permute.xlu1 %1851  ;;  %v1850_v20 = vpop.permute.xlu0 %1849 }
0x241b   :  { %v1857_v21 = vsel %vm33_vm7, %v1850_v20, %v1852_v19 }
0x241c   :  { %v1862_v22 = vmul.f32 %v3505_v18, %v1857_v21  ;;  %v1871_v31 = vmul.f32 %v3506_v25, %v1857_v21 }
0x241e   :  { %v1856_v23 = vpop.permute.xlu1 %1855  ;;  %v1854_v24 = vpop.permute.xlu0 %1853  ;;  %v1863_v27 = vadd.f32 %v1862_v22, %v1861_v15 }
0x241f   :  { %v1858_v26 = vsel %vm33_vm7, %v1854_v24, %v1856_v23 }
0x2420   :  { %v1864_v29 = vmul.f32 %v3506_v25, %v1858_v26  ;;  %v1869_v30 = vmul.f32 %v3505_v18, %v1858_v26 }
0x2422   :  { %v1865_v32 = vsub.f32 %v1863_v27, %v1864_v29  ;;  %v1870_v33 = vadd.f32 %v1869_v30, %v1868_v17 }
0x2424   :  { %v1872_v36 = vadd.f32 %v1871_v31, %v1870_v33  ;;  %1883 = vrot.lane.b32.xlu1 %v1865_v32, %s4488_s27  ;;  %1881 = vrot.lane.b32.xlu0 %v1865_v32, %s4489_s28  ;;  %v1891_v38 = vmul.f32 %v3507_v34, %v1865_v32  ;;  %v1899_v41 = vmul.f32 %v3508_v35, %v1865_v32 }
0x2426   :  { %v1892_v37 = vmul.f32 %v3508_v35, %v1872_v36  ;;  %v1898_v40 = vmul.f32 %v3507_v34, %v1872_v36  ;;  %v6674_v34 = vmov 0.0|0.0   ;;  %v1990_v35 = vld [vmem:[%s6662_s2] sm:$0xff] }
0x2427   :  { %4295 = vmatprep.subr.bf16.mxu0 %v6674_v34  ;;  %4151 = vmatprep.subr.bf16.mxu1 %v6674_v34 }
0x2428   :  { %1887 = vrot.lane.b32.xlu1 %v1872_v36, %s4488_s27  ;;  %1885 = vrot.lane.b32.xlu0 %v1872_v36, %s4489_s28  ;;  %v1893_v42 = vsub.f32 %v1891_v38, %v1892_v37  ;;  %v1900_v43 = vadd.f32 %v1899_v41, %v1898_v40  ;;  %v1991_v36 = vld [vmem:[%s6662_s2 + $0x8] sm:$0xff]  ;;  %v2668_v40 = vand.u32 4294901760, %v1990_v35 }
0x2429   :  { %v2671_v41 = vand.u32 4294901760, %v1991_v36 }
0x2496   :  { %v1884_v45 = vpop.permute.xlu1 %1883  ;;  %v1882_v46 = vpop.permute.xlu0 %1881 }
0x2497   :  { %v1889_v47 = vsel %vm36_vm8, %v1882_v46, %v1884_v45  ;;  %v1993_v45 = vld [vmem:[%s6662_s2 + $0x18] sm:$0xff] }
0x2498   :  { %v1894_v48 = vmul.f32 %v3509_v44, %v1889_v47  ;;  %v1903_v60 = vmul.f32 %v3510_v51, %v1889_v47 }
0x249a   :  { %v1888_v49 = vpop.permute.xlu1 %1887  ;;  %v1886_v50 = vpop.permute.xlu0 %1885  ;;  %v1895_v54 = vadd.f32 %v1894_v48, %v1893_v42  ;;  %v3512_v42 = vld [vmem:[%s6662_s2 + $0x88] sm:$0xff] }
0x249b   :  { %v1890_v53 = vsel %vm36_vm8, %v1886_v50, %v1888_v49  ;;  %v2030_v47 = vand.u32 4294901760, %v3512_v42  ;;  %v2677_v49 = vand.u32 4294901760, %v1993_v45  ;;  %v3513_v50 = vld [vmem:[%s6662_s2 + $0x90] sm:$0xff] }
0x249c   :  { %v1896_v56 = vmul.f32 %v3510_v51, %v1890_v53  ;;  %v1901_v57 = vmul.f32 %v3509_v44, %v1890_v53  ;;  %v1992_v44 = vld [vmem:[%s6662_s2 + $0x10] sm:$0xff]  ;;  %v5926_v53 = vpack.c.bf16 %v2671_v41, %v2668_v40 }
0x249d   :  { %v2674_v48 = vand.u32 4294901760, %v1992_v44 }
0x249e   :  { %v1897_v58 = vsub.f32 %v1895_v54, %v1896_v56  ;;  %v1902_v59 = vadd.f32 %v1901_v57, %v1900_v43  ;;  %v2027_v43 = vand.u32 4294901760, %v3511_v14  ;;  %6732 = vst [vmem:[#allocation2_spill] sm:$0xff] %v5926_v53  ;;  %v5928_v54 = vsub.f32 %v1990_v35, %v2668_v40  ;;  %v3514_v57 = vld [vmem:[%s6662_s2 + $0x98] sm:$0xff]  ;;  %4297 = vmatpush3.bf16.msra.mxu0 %v5926_v53  ;;  %v1999_v40 = vld [vmem:[%s6662_s2 + $0x48] sm:$0xff] }
0x249f   :  { %v5930_v56 = vsub.f32 %v1991_v36, %v2671_v41  ;;  %4298 = vmatprep.subr.bf16.mxu0 %v6674_v34  ;;  %v3518_v35 = vld [vmem:[%s6662_s2 + $0xb8] sm:$0xff] }
0x24a0   :  { %1907 = vrot.lane.b32.xlu1 %v1897_v58, %s4480_s18  ;;  %1905 = vrot.lane.b32.xlu0 %v1897_v58, %s4481_s19  ;;  %v1904_v61 = vadd.f32 %v1903_v60, %v1902_v59  ;;  %v5938_v60 = vpack.c.bf16 %v2030_v47, %v2027_v43 }
0x24a2   :  { %6733 = vst [vmem:[#allocation3_spill] sm:$0xff] %v5938_v60  ;;  %4153 = vmatpush3.bf16.msra.mxu1 %v5938_v60 }
0x24a3   :  { %4154 = vmatprep.subr.bf16.mxu1 %v6674_v34 }
0x24a4   :  { %1911 = vrot.lane.b32.xlu1 %v1904_v61, %s4480_s18  ;;  %1909 = vrot.lane.b32.xlu0 %v1904_v61, %s4481_s19 }
0x2512   :  { %v1908_v62 = vpop.permute.xlu1 %1907  ;;  %v1906_v63 = vpop.permute.xlu0 %1905 }
0x2513   :  { %v1913_v0 = vsel %vm24_vm4, %v1906_v63, %v1908_v62  ;;  %v5942_v62 = vsub.f32 %v3512_v42, %v2030_v47  ;;  %v1995_v63 = vld [vmem:[%s6662_s2 + $0x28] sm:$0xff] }
0x2514   :  { %v1915_v2 = vsel %vm15_vm9, %v1897_v58, %v1913_v0  ;;  %v1994_v58 = vld [vmem:[%s6662_s2 + $0x20] sm:$0xff] }
0x2515   :  { %1919 = vrot.lane.b32.xlu1 %v1915_v2, %s4482_s4  ;;  %1917 = vrot.lane.b32.xlu0 %v1915_v2, %s4483_s5  ;;  %v3515_v0 = vld [vmem:[%s6662_s2 + $0xa0] sm:$0xff] }
0x2516   :  { %v1912_v3 = vpop.permute.xlu1 %1911  ;;  %v1910_v4 = vpop.permute.xlu0 %1909 }
0x2517   :  { %v1914_v5 = vsel %vm24_vm4, %v1910_v4, %v1912_v3  ;;  %v5951_v4 = vpack.c.bf16 %v2677_v49, %v2674_v48 }
0x2518   :  { %v1916_v6 = vsel %vm15_vm9, %v1904_v61, %v1914_v5  ;;  %v5940_v61 = vsub.f32 %v3511_v14, %v2027_v43  ;;  %v5953_v5 = vsub.f32 %v1992_v44, %v2674_v48  ;;  %v2695_v43 = vand.u32 4294901760, %v1999_v40  ;;  %v3519_v48 = vld [vmem:[%s6662_s2 + $0xc0] sm:$0xff] }
0x2519   :  { %1923 = vrot.lane.b32.xlu1 %v1916_v6, %s4482_s4  ;;  %1921 = vrot.lane.b32.xlu0 %v1916_v6, %s4483_s5  ;;  %6734 = vst [vmem:[#allocation4_spill] sm:$0xff] %v5951_v4 }
0x251a   :  { %4300 = vmatpush3.bf16.msra.mxu0 %v5951_v4 }
0x251b   :  { %4301 = vmatprep.subr.bf16.mxu0 %v6674_v34 }
0x2587   :  { %v1920_v7 = vpop.permute.xlu1 %1919  ;;  %v1918_v9 = vpop.permute.xlu0 %1917 }
0x2588   :  { %v1925_v11 = vsel %vm27_vm5, %v1918_v9, %v1920_v7  ;;  %v2033_v7 = vand.u32 4294901760, %v3513_v50 }
0x2589   :  { %v1927_v12 = vsel %vm18_vm10, %v1915_v2, %v1925_v11 }
0x258a   :  { %1931 = vrot.lane.b32.xlu1 %v1927_v12, %s4484_s20  ;;  %1929 = vrot.lane.b32.xlu0 %v1927_v12, %s4485_s21 }
0x258b   :  { %v1924_v13 = vpop.permute.xlu1 %1923  ;;  %v1922_v15 = vpop.permute.xlu0 %1921 }
0x258c   :  { %v1926_v10 = vsel %vm27_vm5, %v1922_v15, %v1924_v13  ;;  %v2680_v13 = vand.u32 4294901760, %v1994_v58  ;;  %v3516_v15 = vld [vmem:[%s6662_s2 + $0xa8] sm:$0xff] }
0x258d   :  { %v1928_v17 = vsel %vm18_vm10, %v1916_v6, %v1926_v10  ;;  %v5955_v6 = vsub.f32 %v1993_v45, %v2677_v49  ;;  %v3520_v49 = vld [vmem:[%s6662_s2 + $0xc8] sm:$0xff] }
0x258e   :  { %1935 = vrot.lane.b32.xlu1 %v1928_v17, %s4484_s20  ;;  %1933 = vrot.lane.b32.xlu0 %v1928_v17, %s4485_s21 }
0x25fc   :  { %v1932_v18 = vpop.permute.xlu1 %1931  ;;  %v1930_v19 = vpop.permute.xlu0 %1929 }
0x25fd   :  { %v1937_v20 = vsel %vm30_vm6, %v1930_v19, %v1932_v18  ;;  %v2683_v18 = vand.u32 4294901760, %v1995_v63  ;;  %v2039_v19 = vand.u32 4294901760, %v3515_v0 }
0x25fe   :  { %v1939_v21 = vsel %vm21_vm3, %v1927_v12, %v1937_v20  ;;  %v2036_v12 = vand.u32 4294901760, %v3514_v57 }
0x25ff   :  { %1943 = vrot.lane.b32.xlu1 %v1939_v21, %s4486_s10  ;;  %1941 = vrot.lane.b32.xlu0 %v1939_v21, %s4487_s11  ;;  %v5982_v39 = vpack.c.bf16 %v2683_v18, %v2680_v13 }
0x2600   :  { %v1936_v22 = vpop.permute.xlu1 %1935  ;;  %v1934_v23 = vpop.permute.xlu0 %1933 }
0x2601   :  { %v1938_v16 = vsel %vm30_vm6, %v1934_v23, %v1936_v22  ;;  %v5977_v22 = vsub.f32 %v3514_v57, %v2036_v12  ;;  %v5979_v23 = vsub.f32 %v1994_v58, %v2680_v13  ;;  %6736 = vst [vmem:[#allocation6_spill] sm:$0xff] %v5982_v39  ;;  %4303 = vmatpush3.bf16.msra.mxu0 %v5982_v39  ;;  %v2054_v57 = vand.u32 4294901760, %v3520_v49  ;;  %v2000_v58 = vld [vmem:[%s6662_s2 + $0x50] sm:$0xff] }
0x2602   :  { %v1940_v24 = vsel %vm21_vm3, %v1928_v17, %v1938_v16  ;;  %v5973_v17 = vsub.f32 %v3513_v50, %v2033_v7  ;;  %v5984_v16 = vsub.f32 %v1995_v63, %v2683_v18  ;;  %4304 = vmatprep.subr.bf16.mxu0 %v6674_v34 }
0x2603   :  { %1947 = vrot.lane.b32.xlu1 %v1940_v24, %s4486_s10  ;;  %1945 = vrot.lane.b32.xlu0 %v1940_v24, %s4487_s11 }
0x2671   :  { %v1944_v25 = vpop.permute.xlu1 %1943  ;;  %v1942_v26 = vpop.permute.xlu0 %1941 }
0x2672   :  { %v1949_v27 = vsel %vm33_vm7, %v1942_v26, %v1944_v25  ;;  %v5986_v25 = vsub.f32 %v3515_v0, %v2039_v19  ;;  %v2698_v0 = vand.u32 4294901760, %v2000_v58 }
0x2673   :  { %v1951_v29 = vsel %vm24_vm4, %v1939_v21, %v1949_v27  ;;  %v5975_v21 = vpack.c.bf16 %v2036_v12, %v2033_v7  ;;  %v3522_v7 = vld [vmem:[%s6662_s2 + $0xd8] sm:$0xff] }
0x2674   :  { %1955 = vrot.lane.b32.xlu1 %v1951_v29, %s4488_s27  ;;  %1953 = vrot.lane.b32.xlu0 %v1951_v29, %s4489_s28  ;;  %v2060_v13 = vand.u32 4294901760, %v3522_v7 }
0x2675   :  { %v1948_v30 = vpop.permute.xlu1 %1947  ;;  %v1946_v31 = vpop.permute.xlu0 %1945  ;;  %6735 = vst [vmem:[#allocation5_spill] sm:$0xff] %v5975_v21  ;;  %4156 = vmatpush3.bf16.msra.mxu1 %v5975_v21 }
0x2676   :  { %v1950_v32 = vsel %vm33_vm7, %v1946_v31, %v1948_v30  ;;  %4157 = vmatprep.subr.bf16.mxu1 %v6674_v34  ;;  %v1997_v30 = vld [vmem:[%s6662_s2 + $0x38] sm:$0xff]  ;;  %v2686_v31 = vand.u32 4294901760, %v1996_v1 }
0x2677   :  { %v1952_v33 = vsel %vm24_vm4, %v1940_v24, %v1950_v32  ;;  %v2042_v24 = vand.u32 4294901760, %v3516_v15  ;;  %v2689_v32 = vand.u32 4294901760, %v1997_v30 }
0x2678   :  { %1959 = vrot.lane.b32.xlu1 %v1952_v33, %s4488_s27  ;;  %1957 = vrot.lane.b32.xlu0 %v1952_v33, %s4489_s28  ;;  %v6028_v44 = vsub.f32 %v1996_v1, %v2686_v31  ;;  %v3524_v1 = vld [vmem:[%s6662_s2 + $0xe8] sm:$0xff] }
0x2679   :  { %v5997_v27 = vpack.c.bf16 %v2042_v24, %v2039_v19  ;;  %v6017_v36 = vpack.c.bf16 %v2689_v32, %v2686_v31  ;;  %v6030_v45 = vsub.f32 %v1997_v30, %v2689_v32 }
0x267b   :  { %6737 = vst [vmem:[#allocation7_spill] sm:$0xff] %v5997_v27  ;;  %4159 = vmatpush3.bf16.msra.mxu1 %v5997_v27  ;;  %6738 = vst [vmem:[#allocation8_spill] sm:$0xff] %v6017_v36  ;;  %4306 = vmatpush3.bf16.msra.mxu0 %v6017_v36  ;;  %v6696_v36 = vand.u32 4294901760, %v5986_v25 }
0x267c   :  { %4160 = vmatprep.subr.bf16.mxu1 %v6674_v34  ;;  %4307 = vmatprep.subr.bf16.mxu0 %v6674_v34 }
0x26e6   :  { %v1956_v37 = vpop.permute.xlu1 %1955  ;;  %v1954_v38 = vpop.permute.xlu0 %1953 }
0x26e7   :  { %v1961_v46 = vsel %vm36_vm8, %v1954_v38, %v1956_v37  ;;  %v2048_v37 = vand.u32 4294901760, %v3518_v35  ;;  %v1998_v38 = vld [vmem:[%s6662_s2 + $0x40] sm:$0xff] }
0x26e8   :  { %v1963_v51 = vsel %vm27_vm5, %v1951_v29, %v1961_v46  ;;  %v5999_v29 = vsub.f32 %v3516_v15, %v2042_v24  ;;  %v2692_v42 = vand.u32 4294901760, %v1998_v38  ;;  %v2002_v15 = vld [vmem:[%s6662_s2 + $0x60] sm:$0xff] }
0x26e9   :  { %v1965_v59 = vrot.slane %v1963_v51, 4  ;;  %v6034_v47 = vsub.f32 %v3518_v35, %v2048_v37  ;;  %v2704_v19 = vand.u32 4294901760, %v2002_v15  ;;  %v3523_v24 = vld [vmem:[%s6662_s2 + $0xe0] sm:$0xff] }
0x26ea   :  { %v1960_v2 = vpop.permute.xlu1 %1959  ;;  %v1958_v3 = vpop.permute.xlu0 %1957  ;;  %v6044_v50 = vpack.c.bf16 %v2695_v43, %v2692_v42  ;;  %v2063_v32 = vand.u32 4294901760, %v3523_v24 }
0x26eb   :  { %v1962_v9 = vsel %vm36_vm8, %v1958_v3, %v1960_v2  ;;  %v5961_v11 = vsel %vm30_vm6, %v1963_v51, %v1965_v59  ;;  %v2051_v51 = vand.u32 4294901760, %v3519_v48  ;;  %v2001_v59 = vld [vmem:[%s6662_s2 + $0x58] sm:$0xff]  ;;  %v3521_v3 = vld [vmem:[%s6662_s2 + $0xd0] sm:$0xff] }
0x26ec   :  { %v1964_v10 = vsel %vm27_vm5, %v1952_v33, %v1962_v9  ;;  %1969 = vrot.lane.b32.xlu0 %v5961_v11, %s4477_s24  ;;  %v3517_v33 = vld [vmem:[%s6662_s2 + $0xb0] sm:$0xff]  ;;  %6740 = vst [vmem:[#allocation10_spill] sm:$0xff] %v6044_v50  ;;  %4309 = vmatpush3.bf16.msra.mxu0 %v6044_v50  ;;  %v2701_v2 = vand.u32 4294901760, %v2001_v59  ;;  %v2057_v12 = vand.u32 4294901760, %v3521_v3 }
0x26ed   :  { %v1966_v20 = vrot.slane %v1964_v10, 4  ;;  %v2045_v14 = vand.u32 4294901760, %v3517_v33  ;;  %v6054_v63 = vpack.c.bf16 %v2054_v57, %v2051_v51  ;;  %4310 = vmatprep.subr.bf16.mxu0 %v6674_v34  ;;  %v6095_v8 = vsub.f32 %v3519_v48, %v2051_v51  ;;  %v3526_v48 = vld [vmem:[%s6662_s2 + $0xf8] sm:$0xff] }
0x26ee   :  { %v6064_v9 = vpack.c.bf16 %v2701_v2, %v2698_v0  ;;  %v6074_v18 = vpack.c.bf16 %v2060_v13, %v2057_v12  ;;  %v6120_v51 = vsub.f32 %v3521_v3, %v2057_v12 }
0x26ef   :  { %v5990_v26 = vsel %vm30_vm6, %v1964_v10, %v1966_v20  ;;  %v6026_v41 = vpack.c.bf16 %v2048_v37, %v2045_v14  ;;  %v6032_v46 = vsub.f32 %v3517_v33, %v2045_v14  ;;  %6741 = vst [vmem:[#allocation11_spill] sm:$0xff] %v6054_v63  ;;  %v2003_v10 = vld [vmem:[%s6662_s2 + $0x68] sm:$0xff]  ;;  %v2066_v33 = vand.u32 4294901760, %v3524_v1 }
0x26f0   :  { %1971 = vrot.lane.b32.xlu1 %v5990_v26, %s4477_s24  ;;  %6742 = vst [vmem:[#allocation12_spill] sm:$0xff] %v6064_v9  ;;  %4312 = vmatpush3.bf16.msra.mxu0 %v6064_v9  ;;  %6743 = vst [vmem:[#allocation13_spill] sm:$0xff] %v6074_v18  ;;  %v2707_v20 = vand.u32 4294901760, %v2003_v10  ;;  %v6091_v14 = vsub.f32 %v1998_v38, %v2692_v42  ;;  %v6093_v37 = vsub.f32 %v1999_v40, %v2695_v43  ;;  %v2005_v9 = vld [vmem:[%s6662_s2 + $0x78] sm:$0xff]  ;;  %v3525_v43 = vld [vmem:[%s6662_s2 + $0xf0] sm:$0xff] }
0x26f1   :  { %6739 = vst [vmem:[#allocation9_spill] sm:$0xff] %v6026_v41  ;;  %4162 = vmatpush3.bf16.msra.mxu1 %v6026_v41  ;;  %4313 = vmatprep.subr.bf16.mxu0 %v6674_v34  ;;  %v6110_v38 = vsub.f32 %v2000_v58, %v2698_v0  ;;  %v6112_v40 = vsub.f32 %v2001_v59, %v2701_v2  ;;  %v2069_v12 = vand.u32 4294901760, %v3525_v43  ;;  %v6712_v21 = vand.u32 4294901760, %v6095_v8 }
0x26f2   :  { %4163 = vmatprep.subr.bf16.mxu1 %v6674_v34  ;;  %v6084_v31 = vpack.c.bf16 %v2707_v20, %v2704_v19  ;;  %v6129_v59 = vpack.c.bf16 %v2066_v33, %v2063_v32  ;;  %v6131_v0 = vsub.f32 %v3523_v24, %v2063_v32  ;;  %v6133_v2 = vsub.f32 %v3524_v1, %v2066_v33 }
0x26f3   :  { %v6672_v24 = vand.u32 4294901760, %v5930_v56  ;;  %v6677_v1 = vand.u32 4294901760, %v5942_v62  ;;  %v6682_v32 = vand.u32 4294901760, %v5953_v5 }
0x26f4   :  { %6744 = vst [vmem:[#allocation14_spill] sm:$0xff] %v6084_v31  ;;  %4315 = vmatpush3.bf16.msra.mxu0 %v6084_v31  ;;  %6745 = vst [vmem:[#allocation15_spill] sm:$0xff] %v6129_v59 }
0x26f5   :  { %4165 = vmatpush3.bf16.msra.mxu1 %v6054_v63  ;;  %4316 = vmatprep.subr.bf16.mxu0 %v6674_v34  ;;  %v2713_v63 = vand.u32 4294901760, %v2005_v9  ;;  %v2769_v33 = vsub.f32 %v5930_v56, %v6672_v24  ;;  %v2776_v24 = vsub.f32 %v5953_v5, %v6682_v32 }
0x26f6   :  { %4166 = vmatprep.subr.bf16.mxu1 %v6674_v34 }
0x26f7   :  { %v2777_v32 = vand.u32 4294901760, %v2776_v24 }
0x26f9   :  { %4168 = vmatpush3.bf16.msra.mxu1 %v6074_v18  ;;  %v2004_v18 = vld [vmem:[%s6662_s2 + $0x70] sm:$0xff] }
0x26fa   :  { %4169 = vmatprep.subr.bf16.mxu1 %v6674_v34  ;;  %v2710_v42 = vand.u32 4294901760, %v2004_v18 }
0x26fd   :  { %4171 = vmatpush3.bf16.msra.mxu1 %v6129_v59 }
0x26fe   :  { %4172 = vmatprep.subr.bf16.mxu1 %v6674_v34 }
0x275e   :  { %v1970_v30 = vpop.permute.xlu0 %1969 }
0x275f   :  { %v6089_v35 = vsel %vm33_vm7, %v5961_v11, %v1970_v30  ;;  %v6108_v11 = vsub.f32 %v3520_v49, %v2054_v57  ;;  %v6122_v30 = vsub.f32 %v3522_v7, %v2060_v13  ;;  %v6125_v49 = vsub.f32 %v2002_v15, %v2704_v19 }
0x2760   :  { %1977 = vrot.lane.b32.xlu1 %v6089_v35, %s4479_s7  ;;  %1975 = vrot.lane.b32.xlu0 %v6089_v35, %s4478_s6  ;;  %v6127_v57 = vsub.f32 %v2003_v10, %v2707_v20  ;;  %v6141_v7 = vsub.f32 %v2004_v18, %v2710_v42  ;;  %v2072_v13 = vand.u32 4294901760, %v3526_v48  ;;  %v6147_v15 = vpack.c.bf16 %v2713_v63, %v2710_v42 }
0x2761   :  { %v6149_v10 = vsub.f32 %v2005_v9, %v2713_v63  ;;  %v6673_v19 = vand.u32 4294901760, %v5928_v54  ;;  %v6748_v20 = vmov 0.0   ;;  %v6676_v9 = vand.u32 4294901760, %v5940_v61 }
0x2762   :  { %v1972_v58 = vpop.permute.xlu1 %1971  ;;  %6746 = vst [vmem:[#allocation16_spill] sm:$0xff] %v6147_v15  ;;  %v6153_v28 = vpack.c.bf16 %v2072_v13, %v2069_v12  ;;  %v6157_v18 = vsub.f32 %v3526_v48, %v2072_v13  ;;  %3973 = vmatprep.mubr.msk.f32.mxu0 %vm4491_vm11, %v6748_v20  ;;  %4318 = vmatpush3.bf16.msra.mxu0 %v6147_v15  ;;  %v6689_v42 = vand.u32 4294901760, %v5955_v6  ;;  %v6693_v48 = vand.u32 4294901760, %v5977_v22 }
0x2763   :  { %v6139_v3 = vsel %vm33_vm7, %v5990_v26, %v1972_v58  ;;  %v6155_v26 = vsub.f32 %v3525_v43, %v2069_v12  ;;  %v2762_v63 = vsub.f32 %v5928_v54, %v6673_v19  ;;  %4319 = vmatprep.subr.bf16.mxu0 %v6674_v34  ;;  %3763 = vmatprep.mubr.msk.f32.mxu1 %vm4491_vm11, %v6748_v20  ;;  %v6692_v43 = vand.u32 4294901760, %v5973_v17 }
0x2764   :  { %1981 = vrot.lane.b32.xlu1 %v6139_v3, %s4479_s7  ;;  %1979 = vrot.lane.b32.xlu0 %v6139_v3, %s4478_s6  ;;  %6747 = vst [vmem:[#allocation17_spill] sm:$0xff] %v6153_v28  ;;  %v2121_v12 = vsub.f32 %v5940_v61, %v6676_v9  ;;  %v2128_v13 = vsub.f32 %v5942_v62, %v6677_v1  ;;  %v2770_v19 = vand.u32 4294901760, %v2769_v33  ;;  %v6749_v1 = vmov 0.0|0.0  }
0x2765   :  { %v2763_v58 = vand.u32 4294901760, %v2762_v63  ;;  %4174 = vmatpush3.bf16.msra.mxu1 %v6153_v28  ;;  %v2783_v34 = vsub.f32 %v5955_v6, %v6689_v42  ;;  %v2135_v63 = vsub.f32 %v5973_v17, %v6692_v43  ;;  %v2142_v9 = vsub.f32 %v5977_v22, %v6693_v48 }
0x2766   :  { %4175 = vmatprep.subr.bf16.mxu1 %v6749_v1  ;;  %v2122_v15 = vand.u32 4294901760, %v2121_v12  ;;  %v2129_v59 = vand.u32 4294901760, %v2128_v13  ;;  %v6698_v28 = vand.u32 4294901760, %v5979_v23  ;;  %v6697_v48 = vand.u32 4294901760, %v5984_v16 }
0x2767   :  { %v6200_v33 = vpack.c.bf16 %v2770_v19, %v2763_v58  ;;  %v2784_v31 = vand.u32 4294901760, %v2783_v34  ;;  %v2136_v50 = vand.u32 4294901760, %v2135_v63  ;;  %v2143_v42 = vand.u32 4294901760, %v2142_v9 }
0x2768   :  { %v6202_v41 = vpack.c.bf16 %v2129_v59, %v2122_v15  ;;  %v2790_v43 = vsub.f32 %v5979_v23, %v6698_v28  ;;  %v6699_v19 = vand.u32 4294901760, %v5999_v29  ;;  %v6700_v34 = vand.u32 4294901760, %v6028_v44 }
0x2769   :  { %v6209_v12 = vpack.c.bf16 %v2784_v31, %v2777_v32  ;;  %v6211_v24 = vpack.c.bf16 %v2143_v42, %v2136_v50  ;;  %v2797_v59 = vsub.f32 %v5984_v16, %v6697_v48  ;;  %v2149_v15 = vsub.f32 %v5986_v25, %v6696_v36 }
0x276a   :  { %v2791_v58 = vand.u32 4294901760, %v2790_v43  ;;  %v6703_v9 = vand.u32 4294901760, %v6030_v45  ;;  %v2156_v50 = vsub.f32 %v5999_v29, %v6699_v19  ;;  %v2804_v31 = vsub.f32 %v6028_v44, %v6700_v34 }
0x276b   :  { %v6708_v32 = vand.u32 4294901760, %v6032_v46  ;;  %v6715_v42 = vand.u32 4294901760, %v6034_v47  ;;  %v2798_v43 = vand.u32 4294901760, %v2797_v59  ;;  %v2150_v13 = vand.u32 4294901760, %v2149_v15 }
0x276c   :  { %v2811_v63 = vsub.f32 %v6030_v45, %v6703_v9  ;;  %v6714_v36 = vand.u32 4294901760, %v6091_v14  ;;  %v2157_v48 = vand.u32 4294901760, %v2156_v50  ;;  %v2805_v28 = vand.u32 4294901760, %v2804_v31 }
0x276d   :  { %v2163_v19 = vsub.f32 %v6032_v46, %v6708_v32  ;;  %v2170_v34 = vsub.f32 %v6034_v47, %v6715_v42  ;;  %v6240_v27 = vpack.c.bf16 %v2798_v43, %v2791_v58  ;;  %v6711_v9 = vand.u32 4294901760, %v6093_v37 }
0x276e   :  { %v2812_v59 = vand.u32 4294901760, %v2811_v63  ;;  %v2818_v15 = vsub.f32 %v6091_v14, %v6714_v36  ;;  %v6246_v39 = vpack.c.bf16 %v2157_v48, %v2150_v13  ;;  %v6713_v43 = vand.u32 4294901760, %v6108_v11 }
0x276f   :  { %v2164_v50 = vand.u32 4294901760, %v2163_v19  ;;  %v2171_v31 = vand.u32 4294901760, %v2170_v34  ;;  %v2825_v58 = vsub.f32 %v6093_v37, %v6711_v9  ;;  %v2177_v48 = vsub.f32 %v6095_v8, %v6712_v21 }
0x2770   :  { %v6249_v32 = vpack.c.bf16 %v2812_v59, %v2805_v28  ;;  %v2819_v4 = vand.u32 4294901760, %v2818_v15  ;;  %v6718_v19 = vand.u32 4294901760, %v6110_v38  ;;  %v6721_v34 = vand.u32 4294901760, %v6112_v40 }
0x2771   :  { %v6255_v63 = vpack.c.bf16 %v2171_v31, %v2164_v50  ;;  %v2826_v13 = vand.u32 4294901760, %v2825_v58  ;;  %v2184_v28 = vsub.f32 %v6108_v11, %v6713_v43  ;;  %v6722_v59 = vand.u32 4294901760, %v6120_v51 }
0x2772   :  { %v6723_v15 = vand.u32 4294901760, %v6122_v30  ;;  %v2178_v9 = vand.u32 4294901760, %v2177_v48  ;;  %v2832_v50 = vsub.f32 %v6110_v38, %v6718_v19  ;;  %v2839_v31 = vsub.f32 %v6112_v40, %v6721_v34 }
0x2773   :  { %v6273_v21 = vpack.c.bf16 %v2826_v13, %v2819_v4  ;;  %v2185_v58 = vand.u32 4294901760, %v2184_v28  ;;  %v2191_v43 = vsub.f32 %v6120_v51, %v6722_v59  ;;  %v6724_v60 = vand.u32 4294901760, %v6125_v49 }
0x2774   :  { %v2198_v36 = vsub.f32 %v6122_v30, %v6723_v15  ;;  %v2833_v48 = vand.u32 4294901760, %v2832_v50  ;;  %v2840_v42 = vand.u32 4294901760, %v2839_v31  ;;  %v6726_v19 = vand.u32 4294901760, %v6127_v57 }
0x2775   :  { %v6283_v53 = vpack.c.bf16 %v2185_v58, %v2178_v9  ;;  %v2192_v34 = vand.u32 4294901760, %v2191_v43  ;;  %v6725_v13 = vand.u32 4294901760, %v6131_v0  ;;  %v2846_v59 = vsub.f32 %v6125_v49, %v6724_v60 }
0x2776   :  { %v2199_v4 = vand.u32 4294901760, %v2198_v36  ;;  %v6286_v28 = vpack.c.bf16 %v2840_v42, %v2833_v48  ;;  %v2853_v50 = vsub.f32 %v6127_v57, %v6726_v19  ;;  %v6727_v31 = vand.u32 4294901760, %v6133_v2 }
0x2777   :  { %6750 = vst [vmem:[#allocation18_spill] sm:$0xff] %v6283_v53  ;;  %v2205_v36 = vsub.f32 %v6131_v0, %v6725_v13  ;;  %v6728_v9 = vand.u32 4294901760, %v6141_v7  ;;  %v6729_v42 = vand.u32 4294901760, %v6149_v10  ;;  %v2847_v43 = vand.u32 4294901760, %v2846_v59 }
0x2778   :  { %6751 = vst [vmem:[#allocation19_spill] sm:$0xff] %v6286_v28  ;;  %v6295_v15 = vpack.c.bf16 %v2199_v4, %v2192_v34  ;;  %v2854_v58 = vand.u32 4294901760, %v2853_v50  ;;  %v2212_v48 = vsub.f32 %v6133_v2, %v6727_v31  ;;  %v6731_v13 = vand.u32 4294901760, %v6155_v26 }
0x2779   :  { %v2206_v60 = vand.u32 4294901760, %v2205_v36  ;;  %v2860_v34 = vsub.f32 %v6141_v7, %v6728_v9  ;;  %v2867_v4 = vsub.f32 %v6149_v10, %v6729_v42  ;;  %v6730_v59 = vand.u32 4294901760, %v6157_v18 }
0x277a   :  { %6752 = vst [vmem:[#allocation20_spill] sm:$0xff] %v6295_v15  ;;  %v6312_v19 = vpack.c.bf16 %v2854_v58, %v2847_v43  ;;  %v2213_v15 = vand.u32 4294901760, %v2212_v48  ;;  %v2219_v36 = vsub.f32 %v6155_v26, %v6731_v13 }
0x277b   :  { %v2861_v50 = vand.u32 4294901760, %v2860_v34  ;;  %v2868_v28 = vand.u32 4294901760, %v2867_v4  ;;  %v2226_v9 = vsub.f32 %v6157_v18, %v6730_v59 }
0x277c   :  { %v6318_v31 = vpack.c.bf16 %v2213_v15, %v2206_v60  ;;  %v2220_v53 = vand.u32 4294901760, %v2219_v36 }
0x277d   :  { %v6323_v42 = vpack.c.bf16 %v2868_v28, %v2861_v50  ;;  %v2227_v43 = vand.u32 4294901760, %v2226_v9 }
0x277f   :  { %v6325_v58 = vpack.c.bf16 %v2227_v43, %v2220_v53 }
0x27d2   :  { %v1978_v9 = vpop.permute.xlu1 %1977  ;;  %v1976_v36 = vpop.permute.xlu0 %1975 }
0x27d3   :  { %v1983_v43 = vsel %vm21_vm3, %v1976_v36, %v1978_v9 }
0x27d4   :  { %v1985_v59 = vsel %vm36_vm8, %v6089_v35, %v1983_v43  ;;  %v6772_v43 = vld [vmem:[#allocation2_spill] sm:$0xff] }
0x27d5   :  { %v1987_v15 = vmul.f32 %v1985_v59, %v1985_v59 }
0x27d6   :  { %v1982_v28 = vpop.permute.xlu1 %1981  ;;  %v1980_v13 = vpop.permute.xlu0 %1979 }
0x27d7   :  { %v1984_v53 = vsel %vm21_vm3, %v1980_v13, %v1982_v28  ;;  %v6768_v28 = vpack.c.bf16 %v6127_v57, %v6125_v49 }
0x27d8   :  { %v1986_v4 = vsel %vm36_vm8, %v6139_v3, %v1984_v53  ;;  %v6769_v53 = vpack.c.bf16 %v6133_v2, %v6131_v0 }
0x27d9   :  { %v1988_v50 = vmul.f32 %v1986_v4, %v1986_v4  ;;  %v6770_v4 = vpack.c.bf16 %v6149_v10, %v6141_v7 }
0x27db   :  { %v1989_v60 = vadd.f32 %v1988_v50, %v1987_v15  ;;  %v6771_v50 = vpack.c.bf16 %v6157_v18, %v6155_v26 }
0x27dd   :  { %v2024_v34 = vrot.slane %v1989_v60, 4  ;;  %v6369_v48 = vand.u32 4294901760, %v1989_v60 }
0x27df   :  { %v6371_v9 = vand.u32 4294901760, %v2024_v34  ;;  %v6374_v36 = vsub.f32 %v1989_v60, %v6369_v48  ;;  %v6767_v60 = vpack.c.bf16 %v6122_v30, %v6120_v51 }
0x27e1   :  { %v2750_v35 = vand.u32 4294901760, %v6374_v36  ;;  %v6378_v52 = vsub.f32 %v2024_v34, %v6371_v9  ;;  %v6766_v34 = vpack.c.bf16 %v6112_v40, %v6110_v38 }
0x27e3   :  { %v2751_v55 = vsub.f32 %v6374_v36, %v2750_v35  ;;  %v2109_v3 = vand.u32 4294901760, %v6378_v52 }
0x27e5   :  { %v2752_v13 = vand.u32 4294901760, %v2751_v55  ;;  %v2110_v59 = vsub.f32 %v6378_v52, %v2109_v3  ;;  %v6773_v55 = vld [vmem:[#allocation3_spill] sm:$0xff] }
0x27e7   :  { %3974 = vmatmul.mubr.f32.vlgmr.msra.gmra.mrb[0].mxu0 %v2752_v13  ;;  %v2111_v15 = vand.u32 4294901760, %v2110_v59  ;;  %v6774_v13 = vld [vmem:[#allocation4_spill] sm:$0xff]  ;;  %v6775_v59 = vld [vmem:[#allocation5_spill] sm:$0xff] }
0x27e8   :  { %4321 = vmatpush3.bf16.msra.mxu0 %v6200_v33  ;;  %4008 = vmatprep.mubr.msk.f32.mxu0 %vm4491_vm11, %v6748_v20  ;;  %v6757_v33 = vpack.c.bf16 %v5942_v62, %v5940_v61 }
0x27e9   :  { %3764 = vmatmul.mubr.f32.vlgmr.msra.gmra.mrb[0].mxu1 %v2111_v15  ;;  %4322 = vmatprep.subr.bf16.mxu0 %v6749_v1  ;;  %v6776_v15 = vld [vmem:[#allocation6_spill] sm:$0xff] }
0x27ea   :  { %4177 = vmatpush3.bf16.msra.mxu1 %v6202_v41  ;;  %3798 = vmatprep.mubr.msk.f32.mxu1 %vm4491_vm11, %v6748_v20  ;;  %v6753_v41 = vld [vmem:[#allocation18_spill] sm:$0xff] }
0x27eb   :  { %4178 = vmatprep.subr.bf16.mxu1 %v6749_v1 }
0x27ec   :  { %4324 = vmatpush3.bf16.msra.mxu0 %v6209_v12  ;;  %v6758_v12 = vpack.c.bf16 %v5955_v6, %v5953_v5 }
0x27ed   :  { %4325 = vmatprep.subr.bf16.mxu0 %v6749_v1 }
0x27ee   :  { %4180 = vmatpush3.bf16.msra.mxu1 %v6211_v24  ;;  %v6759_v24 = vpack.c.bf16 %v5977_v22, %v5973_v17 }
0x27ef   :  { %4181 = vmatprep.subr.bf16.mxu1 %v6749_v1 }
0x27f0   :  { %4327 = vmatpush3.bf16.msra.mxu0 %v6240_v27  ;;  %v6754_v27 = vld [vmem:[#allocation19_spill] sm:$0xff] }
0x27f1   :  { %4328 = vmatprep.subr.bf16.mxu0 %v6749_v1 }
0x27f2   :  { %4183 = vmatpush3.bf16.msra.mxu1 %v6246_v39  ;;  %v6755_v39 = vld [vmem:[#allocation20_spill] sm:$0xff] }
0x27f3   :  { %4184 = vmatprep.subr.bf16.mxu1 %v6749_v1 }
0x27f4   :  { %4330 = vmatpush3.bf16.msra.mxu0 %v6249_v32  ;;  %v6760_v32 = vpack.c.bf16 %v5984_v16, %v5979_v23 }
0x27f5   :  { %4331 = vmatprep.subr.bf16.mxu0 %v6749_v1 }
0x27f6   :  { %4186 = vmatpush3.bf16.msra.mxu1 %v6255_v63  ;;  %v6761_v63 = vpack.c.bf16 %v5999_v29, %v5986_v25 }
0x27f7   :  { %4187 = vmatprep.subr.bf16.mxu1 %v6749_v1 }
0x27f8   :  { %4333 = vmatpush3.bf16.msra.mxu0 %v6273_v21  ;;  %v6756_v21 = vpack.c.bf16 %v5930_v56, %v5928_v54 }
0x27f9   :  { %4334 = vmatprep.subr.bf16.mxu0 %v6749_v1 }
0x27fa   :  { %4189 = vmatpush3.bf16.msra.mxu1 %v6753_v41  ;;  %v6777_v41 = vld [vmem:[#allocation7_spill] sm:$0xff] }
0x27fb   :  { %4190 = vmatprep.subr.bf16.mxu1 %v6749_v1 }
0x27fc   :  { %4336 = vmatpush3.bf16.msra.mxu0 %v6754_v27  ;;  %v6778_v27 = vld [vmem:[#allocation8_spill] sm:$0xff] }
0x27fd   :  { %4337 = vmatprep.subr.bf16.mxu0 %v6749_v1 }
0x27fe   :  { %4192 = vmatpush3.bf16.msra.mxu1 %v6755_v39  ;;  %v6779_v39 = vld [vmem:[#allocation9_spill] sm:$0xff] }
0x27ff   :  { %4193 = vmatprep.subr.bf16.mxu1 %v6749_v1 }
0x2800   :  { %4339 = vmatpush3.bf16.msra.mxu0 %v6312_v19  ;;  %v6762_v19 = vpack.c.bf16 %v6030_v45, %v6028_v44 }
0x2801   :  { %4340 = vmatprep.subr.bf16.mxu0 %v6749_v1 }
0x2802   :  { %4195 = vmatpush3.bf16.msra.mxu1 %v6318_v31  ;;  %v6763_v31 = vpack.c.bf16 %v6034_v47, %v6032_v46 }
0x2803   :  { %4196 = vmatprep.subr.bf16.mxu1 %v6749_v1 }
0x2804   :  { %4342 = vmatpush3.bf16.msra.mxu0 %v6323_v42  ;;  %v6764_v42 = vpack.c.bf16 %v6093_v37, %v6091_v14 }
0x2805   :  { %4343 = vmatprep.subr.bf16.mxu0 %v6749_v1 }
0x2806   :  { %4198 = vmatpush3.bf16.msra.mxu1 %v6325_v58  ;;  %v6765_v58 = vpack.c.bf16 %v6108_v11, %v6095_v8 }
0x2807   :  { %4009 = vmatmul.mubr.f32.vlgmr.msra.gmra.mrb[0].mxu0 %v6369_v48  ;;  %4199 = vmatprep.subr.bf16.mxu1 %v6749_v1 }
0x2808   :  { %4345 = vmatpush3.bf16.msra.mxu0 %v6756_v21  ;;  %4043 = vmatprep.mubr.msk.f32.mxu0 %vm4491_vm11, %v6748_v20  ;;  %v6780_v21 = vld [vmem:[#allocation10_spill] sm:$0xff] }
0x2809   :  { %3799 = vmatmul.mubr.f32.vlgmr.msra.gmra.mrb[0].mxu1 %v6371_v9  ;;  %4346 = vmatprep.subr.bf16.mxu0 %v6749_v1 }
0x280a   :  { %4201 = vmatpush3.bf16.msra.mxu1 %v6757_v33  ;;  %3833 = vmatprep.mubr.msk.f32.mxu1 %vm4491_vm11, %v6748_v20  ;;  %v6781_v33 = vld [vmem:[#allocation11_spill] sm:$0xff] }
0x280b   :  { %4202 = vmatprep.subr.bf16.mxu1 %v6749_v1 }
0x280c   :  { %4348 = vmatpush3.bf16.msra.mxu0 %v6758_v12  ;;  %v6782_v12 = vld [vmem:[#allocation12_spill] sm:$0xff] }
0x280d   :  { %4349 = vmatprep.subr.bf16.mxu0 %v6749_v1 }
0x280e   :  { %4204 = vmatpush3.bf16.msra.mxu1 %v6759_v24  ;;  %v6783_v24 = vld [vmem:[#allocation13_spill] sm:$0xff] }
0x280f   :  { %4205 = vmatprep.subr.bf16.mxu1 %v6749_v1 }
0x2810   :  { %4351 = vmatpush3.bf16.msra.mxu0 %v6760_v32  ;;  %v6784_v32 = vld [vmem:[#allocation14_spill] sm:$0xff] }
0x2811   :  { %4352 = vmatprep.subr.bf16.mxu0 %v6749_v1 }
0x2812   :  { %4207 = vmatpush3.bf16.msra.mxu1 %v6761_v63  ;;  %v6785_v63 = vld [vmem:[#allocation15_spill] sm:$0xff] }
0x2813   :  { %4208 = vmatprep.subr.bf16.mxu1 %v6749_v1 }
0x2814   :  { %4354 = vmatpush3.bf16.msra.mxu0 %v6762_v19  ;;  %v6786_v19 = vld [vmem:[#allocation16_spill] sm:$0xff] }
0x2815   :  { %4355 = vmatprep.subr.bf16.mxu0 %v6749_v1 }
0x2816   :  { %4210 = vmatpush3.bf16.msra.mxu1 %v6763_v31  ;;  %v6787_v31 = vand.u32 4294901760, %v5928_v54  ;;  %v6792_v54 = vand.u32 4294901760, %v5953_v5  ;;  %v6796_v5 = vand.u32 4294901760, %v5979_v23  ;;  %v6802_v23 = vand.u32 4294901760, %v6032_v46 }
0x2817   :  { %4211 = vmatprep.subr.bf16.mxu1 %v6749_v1  ;;  %v6808_v46 = vand.u32 4294901760, %v6110_v38  ;;  %v6814_v38 = vand.u32 4294901760, %v6131_v0 }
0x2818   :  { %4357 = vmatpush3.bf16.msra.mxu0 %v6764_v42  ;;  %v6788_v42 = vand.u32 4294901760, %v5930_v56  ;;  %v6793_v56 = vand.u32 4294901760, %v5955_v6  ;;  %v6797_v6 = vand.u32 4294901760, %v5984_v16  ;;  %v6803_v16 = vand.u32 4294901760, %v6034_v47 }
0x2819   :  { %4358 = vmatprep.subr.bf16.mxu0 %v6749_v1  ;;  %v6809_v47 = vand.u32 4294901760, %v6112_v40  ;;  %v6815_v40 = vand.u32 4294901760, %v6133_v2 }
0x281a   :  { %4213 = vmatpush3.bf16.msra.mxu1 %v6765_v58  ;;  %v4392_v58 = vpack.c.bf16 %v6788_v42, %v6787_v31  ;;  %v4257_v42 = vpack.c.bf16 %v6803_v16, %v6802_v23 }
0x281b   :  { %4214 = vmatprep.subr.bf16.mxu1 %v6749_v1 }
0x281c   :  { %4360 = vmatpush3.bf16.msra.mxu0 %v6766_v34  ;;  %v6789_v34 = vld [vmem:[#allocation17_spill] sm:$0xff] }
0x281d   :  { %4361 = vmatprep.subr.bf16.mxu0 %v6749_v1 }
0x281e   :  { %4216 = vmatpush3.bf16.msra.mxu1 %v6767_v60  ;;  %v6790_v60 = vand.u32 4294901760, %v5940_v61  ;;  %v6794_v61 = vand.u32 4294901760, %v5973_v17  ;;  %v6799_v17 = vand.u32 4294901760, %v5999_v29  ;;  %v6805_v29 = vand.u32 4294901760, %v6093_v37 }
0x281f   :  { %4217 = vmatprep.subr.bf16.mxu1 %v6749_v1  ;;  %v6811_v37 = vand.u32 4294901760, %v6122_v30  ;;  %v6817_v30 = vand.u32 4294901760, %v6149_v10 }
0x2820   :  { %4363 = vmatpush3.bf16.msra.mxu0 %v6768_v28  ;;  %v6791_v28 = vand.u32 4294901760, %v5942_v62  ;;  %v6795_v62 = vand.u32 4294901760, %v5977_v22 }
0x2821   :  { %4364 = vmatprep.subr.bf16.mxu0 %v6749_v1 }
0x2822   :  { %4219 = vmatpush3.bf16.msra.mxu1 %v6769_v53  ;;  %v4248_v53 = vpack.c.bf16 %v6791_v28, %v6790_v60  ;;  %v4407_v28 = vpack.c.bf16 %v6809_v47, %v6808_v46 }
0x2823   :  { %4220 = vmatprep.subr.bf16.mxu1 %v6749_v1 }
0x2824   :  { %4366 = vmatpush3.bf16.msra.mxu0 %v6770_v4  ;;  %v4395_v4 = vpack.c.bf16 %v6793_v56, %v6792_v54  ;;  %v4266_v56 = vpack.c.bf16 %v6815_v40, %v6814_v38 }
0x2825   :  { %4367 = vmatprep.subr.bf16.mxu0 %v6749_v1 }
0x2826   :  { %4222 = vmatpush3.bf16.msra.mxu1 %v6771_v50  ;;  %v6801_v50 = vand.u32 4294901760, %v6030_v45  ;;  %v6807_v45 = vand.u32 4294901760, %v6108_v11  ;;  %v6813_v11 = vand.u32 4294901760, %v6127_v57  ;;  %v6819_v57 = vand.u32 4294901760, %v6157_v18 }
0x2827   :  { %4044 = vmatmul.mubr.f32.vlgmr.msra.gmra.mrb[0].mxu0 %v6374_v36  ;;  %4223 = vmatprep.subr.bf16.mxu1 %v6749_v1  ;;  %v4251_v36 = vpack.c.bf16 %v6795_v62, %v6794_v61 }
0x2828   :  { %4369 = vmatpush3.bf16.msra.mxu0 %v6772_v43  ;;  %4078 = vmatprep.mubr.msk.f32.mxu0 %vm4491_vm11, %v6748_v20 }
0x2829   :  { %3834 = vmatmul.mubr.f32.vlgmr.msra.gmra.mrb[0].mxu1 %v6378_v52  ;;  %4370 = vmatprep.subr.bf16.mxu0 %v6749_v1  ;;  %v6798_v52 = vand.u32 4294901760, %v5986_v25  ;;  %v6804_v25 = vand.u32 4294901760, %v6091_v14  ;;  %v6810_v14 = vand.u32 4294901760, %v6120_v51  ;;  %v6816_v51 = vand.u32 4294901760, %v6141_v7 }
0x282a   :  { %4225 = vmatpush3.bf16.msra.mxu1 %v6773_v55  ;;  %3868 = vmatprep.mubr.msk.f32.mxu1 %vm4491_vm11, %v6748_v20 }
0x282b   :  { %4226 = vmatprep.subr.bf16.mxu1 %v6749_v1  ;;  %v4254_v22 = vpack.c.bf16 %v6799_v17, %v6798_v52 }
0x282c   :  { %4372 = vmatpush3.bf16.msra.mxu0 %v6774_v13 }
0x282d   :  { %4373 = vmatprep.subr.bf16.mxu0 %v6749_v1 }
0x282e   :  { %4228 = vmatpush3.bf16.msra.mxu1 %v6775_v59 }
0x282f   :  { %4229 = vmatprep.subr.bf16.mxu1 %v6749_v1 }
0x2830   :  { %4375 = vmatpush3.bf16.msra.mxu0 %v6776_v15 }
0x2831   :  { %4376 = vmatprep.subr.bf16.mxu0 %v6749_v1 }
0x2832   :  { %4231 = vmatpush3.bf16.msra.mxu1 %v6777_v41 }
0x2833   :  { %4232 = vmatprep.subr.bf16.mxu1 %v6749_v1 }
0x2834   :  { %4378 = vmatpush3.bf16.msra.mxu0 %v6778_v27 }
0x2835   :  { %4379 = vmatprep.subr.bf16.mxu0 %v6749_v1 }
0x2836   :  { %4234 = vmatpush3.bf16.msra.mxu1 %v6779_v39 }
0x2837   :  { %4235 = vmatprep.subr.bf16.mxu1 %v6749_v1 }
0x2838   :  { %4381 = vmatpush3.bf16.msra.mxu0 %v6780_v21 }
0x2839   :  { %4382 = vmatprep.subr.bf16.mxu0 %v6749_v1 }
0x283a   :  { %4237 = vmatpush3.bf16.msra.mxu1 %v6781_v33 }
0x283b   :  { %4238 = vmatprep.subr.bf16.mxu1 %v6749_v1 }
0x283c   :  { %4384 = vmatpush3.bf16.msra.mxu0 %v6782_v12 }
0x283d   :  { %4385 = vmatprep.subr.bf16.mxu0 %v6749_v1 }
0x283e   :  { %4240 = vmatpush3.bf16.msra.mxu1 %v6783_v24 }
0x283f   :  { %4241 = vmatprep.subr.bf16.mxu1 %v6749_v1 }
0x2840   :  { %4387 = vmatpush3.bf16.msra.mxu0 %v6784_v32 }
0x2841   :  { %4388 = vmatprep.subr.bf16.mxu0 %v6749_v1 }
0x2842   :  { %4243 = vmatpush3.bf16.msra.mxu1 %v6785_v63 }
0x2843   :  { %4244 = vmatprep.subr.bf16.mxu1 %v6749_v1 }
0x2844   :  { %4390 = vmatpush3.bf16.msra.mxu0 %v6786_v19 }
0x2845   :  { %4391 = vmatprep.subr.bf16.mxu0 %v6749_v1 }
0x2846   :  { %4246 = vmatpush3.bf16.msra.mxu1 %v6789_v34 }
0x2847   :  { %4079 = vmatmul.mubr.f32.vlgmr.msra.gmra.mrb[0].mxu0 %v2750_v35  ;;  %4247 = vmatprep.subr.bf16.mxu1 %v6749_v1  ;;  %v4398_v35 = vpack.c.bf16 %v6797_v6, %v6796_v5 }
0x2848   :  { %4393 = vmatpush3.bf16.msra.mxu0 %v4392_v58  ;;  %4113 = vmatprep.mubr.msk.f32.mxu0 %vm4491_vm11, %v6748_v20  ;;  %v4404_v58 = vpack.c.bf16 %v6805_v29, %v6804_v25 }
0x2849   :  { %3869 = vmatmul.mubr.f32.vlgmr.msra.gmra.mrb[0].mxu1 %v2109_v3  ;;  %4394 = vmatprep.subr.bf16.mxu0 %v6749_v1  ;;  %v6800_v3 = vand.u32 4294901760, %v6028_v44  ;;  %v6806_v44 = vand.u32 4294901760, %v6095_v8  ;;  %v6812_v8 = vand.u32 4294901760, %v6125_v49  ;;  %v6818_v49 = vand.u32 4294901760, %v6155_v26 }
0x284a   :  { %4249 = vmatpush3.bf16.msra.mxu1 %v4248_v53  ;;  %3903 = vmatprep.mubr.msk.f32.mxu1 %vm4491_vm11, %v6748_v20  ;;  %v4263_v53 = vpack.c.bf16 %v6811_v37, %v6810_v14 }
0x284b   :  { %4250 = vmatprep.subr.bf16.mxu1 %v6749_v1  ;;  %v4401_v31 = vpack.c.bf16 %v6801_v50, %v6800_v3  ;;  %v4260_v60 = vpack.c.bf16 %v6807_v45, %v6806_v44  ;;  %v4410_v54 = vpack.c.bf16 %v6813_v11, %v6812_v8  ;;  %v4269_v61 = vpack.c.bf16 %v6819_v57, %v6818_v49 }
0x284c   :  { %4396 = vmatpush3.bf16.msra.mxu0 %v4395_v4  ;;  %v4413_v4 = vpack.c.bf16 %v6817_v30, %v6816_v51 }
0x284d   :  { %4397 = vmatprep.subr.bf16.mxu0 %v6749_v1 }
0x284e   :  { %4252 = vmatpush3.bf16.msra.mxu1 %v4251_v36 }
0x284f   :  { %4253 = vmatprep.subr.bf16.mxu1 %v6749_v1 }
0x2850   :  { %4399 = vmatpush3.bf16.msra.mxu0 %v4398_v35 }
0x2851   :  { %4400 = vmatprep.subr.bf16.mxu0 %v6749_v1 }
0x2852   :  { %4255 = vmatpush3.bf16.msra.mxu1 %v4254_v22 }
0x2853   :  { %4256 = vmatprep.subr.bf16.mxu1 %v6749_v1 }
0x2854   :  { %4402 = vmatpush3.bf16.msra.mxu0 %v4401_v31 }
0x2855   :  { %4403 = vmatprep.subr.bf16.mxu0 %v6749_v1 }
0x2856   :  { %4258 = vmatpush3.bf16.msra.mxu1 %v4257_v42 }
0x2857   :  { %4259 = vmatprep.subr.bf16.mxu1 %v6749_v1 }
0x2858   :  { %4405 = vmatpush3.bf16.msra.mxu0 %v4404_v58 }
0x2859   :  { %4406 = vmatprep.subr.bf16.mxu0 %v6749_v1 }
0x285a   :  { %4261 = vmatpush3.bf16.msra.mxu1 %v4260_v60 }
0x285b   :  { %4262 = vmatprep.subr.bf16.mxu1 %v6749_v1 }
0x285c   :  { %4408 = vmatpush3.bf16.msra.mxu0 %v4407_v28 }
0x285d   :  { %4409 = vmatprep.subr.bf16.mxu0 %v6749_v1 }
0x285e   :  { %4264 = vmatpush3.bf16.msra.mxu1 %v4263_v53 }
0x285f   :  { %4265 = vmatprep.subr.bf16.mxu1 %v6749_v1 }
0x2860   :  { %4411 = vmatpush3.bf16.msra.mxu0 %v4410_v54 }
0x2861   :  { %4412 = vmatprep.subr.bf16.mxu0 %v6749_v1 }
0x2862   :  { %4267 = vmatpush3.bf16.msra.mxu1 %v4266_v56 }
0x2863   :  { %4268 = vmatprep.subr.bf16.mxu1 %v6749_v1 }
0x2864   :  { %4414 = vmatpush3.bf16.msra.mxu0 %v4413_v4 }
0x2865   :  { %4415 = vmatprep.subr.bf16.mxu0 %v6749_v1 }
0x2866   :  { %4270 = vmatpush3.bf16.msra.mxu1 %v4269_v61 }
0x2867   :  { %4114 = vmatmul.mubr.f32.vlgmr.msra.gmra.mrb[0].mxu0 %v6369_v48  ;;  %4271 = vmatprep.subr.bf16.mxu1 %v6749_v1 }
0x2868   :  { %4417 = vmatpush3.bf16.msra.mxu0 %v6772_v43  ;;  %4148 = vmatprep.mubr.msk.f32.mxu0 %vm4491_vm11, %v6748_v20 }
0x2869   :  { %3904 = vmatmul.mubr.f32.vlgmr.msra.gmra.mrb[0].mxu1 %v6371_v9  ;;  %4418 = vmatprep.subr.bf16.mxu0 %v6749_v1 }
0x286a   :  { %4273 = vmatpush3.bf16.msra.mxu1 %v6773_v55  ;;  %3938 = vmatprep.mubr.msk.f32.mxu1 %vm4491_vm11, %v6748_v20 }
0x286b   :  { %4274 = vmatprep.subr.bf16.mxu1 %v6749_v1 }
0x286c   :  { %4420 = vmatpush3.bf16.msra.mxu0 %v6774_v13 }
0x286d   :  { %4421 = vmatprep.subr.bf16.mxu0 %v6749_v1 }
0x286e   :  { %4276 = vmatpush3.bf16.msra.mxu1 %v6775_v59 }
0x286f   :  { %4277 = vmatprep.subr.bf16.mxu1 %v6749_v1 }
0x2870   :  { %4423 = vmatpush3.bf16.msra.mxu0 %v6776_v15 }
0x2871   :  { %4424 = vmatprep.subr.bf16.mxu0 %v6749_v1 }
0x2872   :  { %4279 = vmatpush3.bf16.msra.mxu1 %v6777_v41 }
0x2873   :  { %4280 = vmatprep.subr.bf16.mxu1 %v6749_v1 }
0x2874   :  { %4426 = vmatpush3.bf16.msra.mxu0 %v6778_v27 }
0x2875   :  { %4427 = vmatprep.subr.bf16.mxu0 %v6749_v1 }
0x2876   :  { %4282 = vmatpush3.bf16.msra.mxu1 %v6779_v39 }
0x2877   :  { %4283 = vmatprep.subr.bf16.mxu1 %v6749_v1 }
0x2878   :  { %4429 = vmatpush3.bf16.msra.mxu0 %v6780_v21 }
0x2879   :  { %4430 = vmatprep.subr.bf16.mxu0 %v6749_v1 }
0x287a   :  { %4285 = vmatpush3.bf16.msra.mxu1 %v6781_v33 }
0x287b   :  { %4286 = vmatprep.subr.bf16.mxu1 %v6749_v1 }
0x287c   :  { %4432 = vmatpush3.bf16.msra.mxu0 %v6782_v12 }
0x287d   :  { %4433 = vmatprep.subr.bf16.mxu0 %v6749_v1 }
0x287e   :  { %4288 = vmatpush3.bf16.msra.mxu1 %v6783_v24 }
0x287f   :  { %4289 = vmatprep.subr.bf16.mxu1 %v6749_v1 }
0x2880   :  { %4435 = vmatpush3.bf16.msra.mxu0 %v6784_v32 }
0x2881   :  { %4436 = vmatprep.subr.bf16.mxu0 %v6749_v1 }
0x2882   :  { %4291 = vmatpush3.bf16.msra.mxu1 %v6785_v63 }
0x2883   :  { %4292 = vmatprep.subr.bf16.mxu1 %v6749_v1 }
0x2884   :  { %4438 = vmatpush3.bf16.msra.mxu0 %v6786_v19 }
0x2886   :  { %4294 = vmatpush3.bf16.msra.mxu1 %v6789_v34 }
0x2887   :  { %4149 = vmatmul.mubr.f32.vlgmr.msra.gmra.mrb[0].mxu0 %v6369_v48 }
0x2889   :  { %3939 = vmatmul.mubr.f32.vlgmr.msra.gmra.mrb[0].mxu1 %v6371_v9 }
0x295a   :  { %v3304_v0 = vpop.f32.mrb[0].mxu0 }
0x295b   :  { %v4150_v2 = vpop.f32.mrb[1].mxu0 }
0x295c   :  { %v2663_v7 = vpop.f32.mrb[0].mxu1 }
0x295d   :  { %v4439_v10 = vadd.f32 %v3304_v0, %v2663_v7  ;;  %v3940_v26 = vpop.f32.mrb[1].mxu1 }
0x295f   :  { %3308 = vst [vmem:[%s6663_s3] sm:$0xf] %v4439_v10 }

</bundles_post_ra>
